<compile_context>
chip_gen: v5e
topology: v5e:2x2
jax: 0.10.0
libtpu: 0.0.40
codegen_flags: <defaults>
</compile_context>

<pallas_src>
import jax
import jax.numpy as jnp
from jax.experimental import pallas as pl
from jax.experimental.pallas import tpu as pltpu


def _round_up(x, m):
    return (x + m - 1) // m * m


def _pad_to(a, shape, dtype):
    """Zero-pad `a` (trailing side of every dim) to `shape`, cast to dtype."""
    a = a.astype(dtype)
    if tuple(a.shape) == tuple(shape):
        return a
    pads = [(0, s - d) for s, d in zip(shape, a.shape)]
    return jnp.pad(a, pads)


# ----------------------------------------------------------------------------
# Tiled matmul + bias kernel:  Y = X @ W + b
#   X: (N, K) bf16, W: (K, M) bf16, b: (1, M) f32  ->  Y: (N, M) f32
# Used for (a) the hoisted LSTM input projection over all time steps and
# (b) the final vocab projection.
# ----------------------------------------------------------------------------
def _matmul_bias_kernel(x_ref, w_ref, b_ref, o_ref):
    o_ref[...] = (
        jnp.dot(x_ref[...], w_ref[...], preferred_element_type=jnp.float32)
        + b_ref[...]
    ).astype(o_ref.dtype)


def matmul_bias(x, w, b):
    """x: (N, K), w: (K, M), b: (1, M) -> (N, M) float32 (tiled, bf16 MXU)."""
    N, K = x.shape
    Kw, M = w.shape
    assert K == Kw, (K, Kw)

    # MXU-friendly tiles: 256-wide when big enough, else the (padded) extent.
    tn = 256 if N > 256 else _round_up(max(N, 8), 8)
    tm = 256 if M > 256 else _round_up(max(M, 128), 128)
    Np = _round_up(N, tn)
    Mp = _round_up(M, tm)
    Kp = _round_up(K, 128)

    xp = _pad_to(x, (Np, Kp), jnp.bfloat16)
    wp = _pad_to(w, (Kp, Mp), jnp.bfloat16)
    bp = _pad_to(b, (1, Mp), jnp.float32)

    out = pl.pallas_call(
        _matmul_bias_kernel,
        out_shape=jax.ShapeDtypeStruct((Np, Mp), jnp.float32),
        grid_spec=pltpu.PrefetchScalarGridSpec(
            num_scalar_prefetch=0,
            grid=(Np // tn, Mp // tm),
            in_specs=[
                pl.BlockSpec((tn, Kp), lambda i, j: (i, 0)),
                pl.BlockSpec((Kp, tm), lambda i, j: (0, j)),
                pl.BlockSpec((1, tm), lambda i, j: (0, j)),
            ],
            out_specs=pl.BlockSpec((tn, tm), lambda i, j: (i, j)),
        ),
        compiler_params=pltpu.CompilerParams(
            dimension_semantics=("parallel", "parallel")),
    )(xp, wp, bp)
    return out[:N, :M]


# ----------------------------------------------------------------------------
# LSTM recurrence kernel (single grid point, time loop inside the kernel).
# x_gates already holds x @ W_ih^T + (b_ih + b_hh) for every time step, with
# gates laid out per-gate, each Hp (multiple of 128) lanes wide: [i|f|g|o].
#   c_t = sigmoid(f) * c + sigmoid(i) * tanh(g) ; h_t = sigmoid(o) * tanh(c_t)
# ----------------------------------------------------------------------------
def _lstm_recurrence_kernel(xg_ref, whh_ref, h_out_ref):
    T, Bp, _ = xg_ref.shape
    Hp = h_out_ref.shape[-1]

    def step(t, carry):
        h, c = carry
        gates = xg_ref[t] + jnp.dot(
            h.astype(jnp.bfloat16), whh_ref[...],
            preferred_element_type=jnp.float32)          # (Bp, 4*Hp) f32
        i_g = jax.nn.sigmoid(gates[:, 0 * Hp:1 * Hp])
        f_g = jax.nn.sigmoid(gates[:, 1 * Hp:2 * Hp])
        g_g = jnp.tanh(gates[:, 2 * Hp:3 * Hp])
        o_g = jax.nn.sigmoid(gates[:, 3 * Hp:4 * Hp])
        c_new = f_g * c + i_g * g_g
        h_new = o_g * jnp.tanh(c_new)
        h_out_ref[t] = h_new                              # single store / step
        return h_new, c_new

    h0 = jnp.zeros((Bp, Hp), jnp.float32)
    c0 = jnp.zeros((Bp, Hp), jnp.float32)
    jax.lax.fori_loop(0, T, step, (h0, c0), unroll=(T <= 16))


def lstm_recurrence(x_gates, w_hh_t):
    """x_gates: (T, Bp, 4*Hp) f32, w_hh_t: (Hp, 4*Hp) bf16 -> (T, Bp, Hp) f32."""
    T, Bp, G4 = x_gates.shape
    Hp = w_hh_t.shape[0]
    assert G4 == 4 * Hp
    return pl.pallas_call(
        _lstm_recurrence_kernel,
        out_shape=jax.ShapeDtypeStruct((T, Bp, Hp), jnp.float32),
        grid_spec=pltpu.PrefetchScalarGridSpec(
            num_scalar_prefetch=0,
            grid=(1,),
            in_specs=[
                pl.BlockSpec((T, Bp, G4), lambda i: (0, 0, 0)),
                pl.BlockSpec((Hp, G4), lambda i: (0, 0)),
            ],
            out_specs=pl.BlockSpec((T, Bp, Hp), lambda i: (0, 0, 0)),
        ),
        compiler_params=pltpu.CompilerParams(
            dimension_semantics=("arbitrary",)),          # recurrence: serial
    )(x_gates, w_hh_t)


# ----------------------------------------------------------------------------
# Full DecoderLSTM forward
# ----------------------------------------------------------------------------
def decoder_lstm_forward(params, features, captions):
    """features: (B, E) float32, captions: (T, B) int32 -> (T+1, B, V)."""
    V = params["lin_b"].shape[1]

    # Embedding lookup (plain-JAX gather glue).
    emb = jnp.take(params["embed"], captions, axis=0)     # (T, B, E)
    # TODO(synk): nn.Dropout(0.5) treated as identity (eval-mode semantics);
    # training-mode stochastic dropout omitted.

    # Prepend image features as first time step.
    x = jnp.concatenate([features[None, :, :], emb], axis=0)   # (T+1, B, E)

    Tp1, B, E = x.shape
    Bp = _round_up(max(B, 8), 8)                          # sublane padding
    x = _pad_to(x, (Tp1, Bp, E), jnp.float32)

    h = x
    for layer in params["lstm"]:
        Hp = layer["w_hh_t"].shape[0]
        in_dim = h.shape[-1]
        # Hoisted input projection + folded bias for all time steps at once.
        xg = matmul_bias(h.reshape(Tp1 * Bp, in_dim),
                         layer["w_ih_t"], layer["bias"])  # (Tp1*Bp, 4*Hp)
        xg = xg.reshape(Tp1, Bp, 4 * Hp)
        # Sequential recurrence: only h @ W_hh^T per step, single kernel.
        h = lstm_recurrence(xg, layer["w_hh_t"])          # (Tp1, Bp, Hp)

    Hp = h.shape[-1]
    logits = matmul_bias(h.reshape(Tp1 * Bp, Hp),
                         params["lin_w_t"], params["lin_b"])    # (Tp1*Bp, V)
    return logits.reshape(Tp1, Bp, V)[:, :B, :]


# ----------------------------------------------------------------------------
# Parameter construction (PyTorch-style init, padded/packed for the kernels).
# Gate order i, f, g, o; each gate padded to Hp lanes; matmul weights bf16.
# ----------------------------------------------------------------------------
def init_params(key, embed_size, hidden_size, vocab_size, num_layers):
    H = hidden_size
    Hp = _round_up(H, 128)
    keys = jax.random.split(key, 1 + 4 * num_layers + 2)   # all keys distinct
    k = 1.0 / jnp.sqrt(jnp.float32(H))

    params = {
        "embed": jax.random.normal(keys[0], (vocab_size, embed_size),
                                   jnp.float32),
    }

    def pack_gate_weight(w, in_pad):
        # w: (4H, in_dim) torch layout -> (in_pad, 4*Hp) bf16, per-gate aligned.
        in_dim = w.shape[1]
        cols = []
        for g in range(4):
            blk = jnp.zeros((Hp, in_pad), jnp.float32)
            blk = blk.at[:H, :in_dim].set(w[g * H:(g + 1) * H, :])
            cols.append(blk.T)                              # (in_pad, Hp)
        return jnp.concatenate(cols, axis=1).astype(jnp.bfloat16)

    def pack_gate_bias(b):
        # b: (4H,) -> (1, 4*Hp) f32, per-gate aligned, zeros in padding.
        out = jnp.zeros((4 * Hp,), jnp.float32)
        for g in range(4):
            out = out.at[g * Hp:g * Hp + H].set(b[g * H:(g + 1) * H])
        return out.reshape(1, 4 * Hp)

    layers = []
    for l in range(num_layers):
        in_dim = embed_size if l == 0 else H
        in_pad = embed_size if l == 0 else Hp   # layers >=1 consume padded h
        kw = keys[1 + 4 * l: 1 + 4 * (l + 1)]
        w_ih = jax.random.uniform(kw[0], (4 * H, in_dim), jnp.float32, -k, k)
        w_hh = jax.random.uniform(kw[1], (4 * H, H), jnp.float32, -k, k)
        b_ih = jax.random.uniform(kw[2], (4 * H,), jnp.float32, -k, k)
        b_hh = jax.random.uniform(kw[3], (4 * H,), jnp.float32, -k, k)
        layers.append({
            "w_ih_t": pack_gate_weight(w_ih, in_pad),       # (in_pad, 4*Hp)
            "w_hh_t": pack_gate_weight(w_hh, Hp),           # (Hp, 4*Hp)
            "bias": pack_gate_bias(b_ih + b_hh),            # (1, 4*Hp)
        })
    params["lstm"] = layers

    lin_w = jax.random.uniform(keys[1 + 4 * num_layers], (vocab_size, H),
                               jnp.float32, -k, k)
    lin_b = jax.random.uniform(keys[2 + 4 * num_layers], (vocab_size,),
                               jnp.float32, -k, k)
    lin_w_t = jnp.zeros((Hp, vocab_size), jnp.float32).at[:H, :].set(lin_w.T)
    params["lin_w_t"] = lin_w_t.astype(jnp.bfloat16)        # (Hp, V)
    params["lin_b"] = lin_b.reshape(1, vocab_size).astype(jnp.float32)
    return params


if __name__ == "__main__":
    # Small shapes consistent with the module's forward.
    embed_size, hidden_size, vocab_size, num_layers = 16, 32, 50, 2
    batch, seq = 2, 8

    key = jax.random.PRNGKey(0)
    k_par, k_feat, k_cap = jax.random.split(key, 3)

    params = init_params(k_par, embed_size, hidden_size, vocab_size, num_layers)
    features = jax.random.normal(k_feat, (batch, embed_size), jnp.float32)
    captions = jax.random.randint(k_cap, (seq, batch), 0, vocab_size, jnp.int32)

    fwd = jax.jit(decoder_lstm_forward)
    outputs = fwd(params, features, captions)
    jax.block_until_ready(outputs)

    assert outputs.shape == (seq + 1, batch, vocab_size), outputs.shape
    assert outputs.dtype == jnp.float32
    print("KERNEL_OK")
</pallas_src>

<mosaic_0001>
module attributes {stable_mosaic.version = 11 : i64} {
  func.func @_matmul_bias_kernel(%arg0: i32, %arg1: i32, %arg2: memref<72x128xbf16, #tpu.memory_space<vmem>>, %arg3: memref<128x256xbf16, #tpu.memory_space<vmem>>, %arg4: memref<1x256xf32, #tpu.memory_space<vmem>>, %arg5: memref<72x256xf32, #tpu.memory_space<vmem>>) attributes {dimension_semantics = [#tpu.dimension_semantics<parallel>, #tpu.dimension_semantics<parallel>], iteration_bounds = array<i64: 1, 2>, scalar_prefetch = 0 : i64, scratch_operands = 0 : i64, tpu.core_type = #tpu.core_type<tc>, window_params = [{transform_indices = @transform_0, window_bounds = array<i64: 72, 128>}, {transform_indices = @transform_1, window_bounds = array<i64: 128, 256>}, {transform_indices = @transform_2, window_bounds = array<i64: 1, 256>}, {transform_indices = @transform_3, window_bounds = array<i64: 72, 256>}]} {
    %c0 = arith.constant 0 : index
    %c0_0 = arith.constant 0 : index
    %0 = vector.load %arg2[%c0, %c0_0] : memref<72x128xbf16, #tpu.memory_space<vmem>>, vector<72x128xbf16>
    %c0_1 = arith.constant 0 : index
    %c0_2 = arith.constant 0 : index
    %1 = vector.load %arg3[%c0_1, %c0_2] : memref<128x256xbf16, #tpu.memory_space<vmem>>, vector<128x256xbf16>
    %cst = arith.constant dense<0.000000e+00> : vector<72x256xf32>
    %2 = tpu.matmul %0, %1, %cst {dimension_numbers = #tpu.dot_dimension_numbers<[1], [0], [0], [1], [0, 0, 1, 1], [], []>} : vector<72x128xbf16>, vector<128x256xbf16>, vector<72x256xf32> -> vector<72x256xf32>
    %c0_3 = arith.constant 0 : index
    %c0_4 = arith.constant 0 : index
    %3 = vector.load %arg4[%c0_3, %c0_4] : memref<1x256xf32, #tpu.memory_space<vmem>>, vector<1x256xf32>
    %4 = vector.broadcast %3 : vector<1x256xf32> to vector<72x256xf32>
    %5 = arith.addf %2, %4 : vector<72x256xf32>
    %c0_5 = arith.constant 0 : index
    %c0_6 = arith.constant 0 : index
    %6 = vector.load %arg5[%c0_5, %c0_6] : memref<72x256xf32, #tpu.memory_space<vmem>>, vector<72x256xf32>
    tpu.vector_store %arg5[%c0_5, %c0_6], %5 {strides = array<i32>} : memref<72x256xf32, #tpu.memory_space<vmem>>, vector<72x256xf32>,
    return
  }
  func.func @transform_0(%arg0: i32, %arg1: i32) -> (i32, i32) {
    %c0_i32 = arith.constant 0 : i32
    %c0_i32_0 = arith.constant 0 : i32
    return %arg0, %c0_i32 : i32, i32
  }
  func.func @transform_1(%arg0: i32, %arg1: i32) -> (i32, i32) {
    %c0_i32 = arith.constant 0 : i32
    %c0_i32_0 = arith.constant 0 : i32
    return %c0_i32, %arg1 : i32, i32
  }
  func.func @transform_2(%arg0: i32, %arg1: i32) -> (i32, i32) {
    %c0_i32 = arith.constant 0 : i32
    %c0_i32_0 = arith.constant 0 : i32
    return %c0_i32, %arg1 : i32, i32
  }
  func.func @transform_3(%arg0: i32, %arg1: i32) -> (i32, i32) {
    %c0_i32 = arith.constant 0 : i32
    return %arg0, %arg1 : i32, i32
  }
}

module attributes {stable_mosaic.version = 11 : i64} {
  func.func @_matmul_bias_kernel(%arg0: i32, %arg1: i32, %arg2: memref<72x128xbf16, #tpu.memory_space<vmem>>, %arg3: memref<128x256xbf16, #tpu.memory_space<vmem>>, %arg4: memref<1x256xf32, #tpu.memory_space<vmem>>, %arg5: memref<72x256xf32, #tpu.memory_space<vmem>>) attributes {dimension_semantics = [#tpu.dimension_semantics<parallel>, #tpu.dimension_semantics<parallel>], iteration_bounds = array<i64: 1, 2>, scalar_prefetch = 0 : i64, scratch_operands = 0 : i64, tpu.core_type = #tpu.core_type<tc>, window_params = [{transform_indices = @transform_0, window_bounds = array<i64: 72, 128>}, {transform_indices = @transform_1, window_bounds = array<i64: 128, 256>}, {transform_indices = @transform_2, window_bounds = array<i64: 1, 256>}, {transform_indices = @transform_3, window_bounds = array<i64: 72, 256>}]} {
    %c0 = arith.constant 0 : index
    %c0_0 = arith.constant 0 : index
    %0 = vector.load %arg2[%c0, %c0_0] : memref<72x128xbf16, #tpu.memory_space<vmem>>, vector<72x128xbf16>
    %c0_1 = arith.constant 0 : index
    %c0_2 = arith.constant 0 : index
    %1 = vector.load %arg3[%c0_1, %c0_2] : memref<128x256xbf16, #tpu.memory_space<vmem>>, vector<128x256xbf16>
    %cst = arith.constant dense<0.000000e+00> : vector<72x256xf32>
    %2 = tpu.matmul %0, %1, %cst {dimension_numbers = #tpu.dot_dimension_numbers<[1], [0], [0], [1], [0, 0, 1, 1], [], []>} : vector<72x128xbf16>, vector<128x256xbf16>, vector<72x256xf32> -> vector<72x256xf32>
    %c0_3 = arith.constant 0 : index
    %c0_4 = arith.constant 0 : index
    %3 = vector.load %arg4[%c0_3, %c0_4] : memref<1x256xf32, #tpu.memory_space<vmem>>, vector<1x256xf32>
    %4 = vector.broadcast %3 : vector<1x256xf32> to vector<72x256xf32>
    %5 = arith.addf %2, %4 : vector<72x256xf32>
    %c0_5 = arith.constant 0 : index
    %c0_6 = arith.constant 0 : index
    %6 = vector.load %arg5[%c0_5, %c0_6] : memref<72x256xf32, #tpu.memory_space<vmem>>, vector<72x256xf32>
    tpu.vector_store %arg5[%c0_5, %c0_6], %5 {strides = array<i32>} : memref<72x256xf32, #tpu.memory_space<vmem>>, vector<72x256xf32>,
    return
  }
  func.func @transform_0(%arg0: i32, %arg1: i32) -> (i32, i32) {
    %c0_i32 = arith.constant 0 : i32
    %c0_i32_0 = arith.constant 0 : i32
    return %arg0, %c0_i32 : i32, i32
  }
  func.func @transform_1(%arg0: i32, %arg1: i32) -> (i32, i32) {
    %c0_i32 = arith.constant 0 : i32
    %c0_i32_0 = arith.constant 0 : i32
    return %c0_i32, %arg1 : i32, i32
  }
  func.func @transform_2(%arg0: i32, %arg1: i32) -> (i32, i32) {
    %c0_i32 = arith.constant 0 : i32
    %c0_i32_0 = arith.constant 0 : i32
    return %c0_i32, %arg1 : i32, i32
  }
  func.func @transform_3(%arg0: i32, %arg1: i32) -> (i32, i32) {
    %c0_i32 = arith.constant 0 : i32
    return %arg0, %arg1 : i32, i32
  }
}

module attributes {stable_mosaic.version = 11 : i64} {
  func.func @_lstm_recurrence_kernel(%arg0: i32, %arg1: memref<9x8x512xf32, #tpu.memory_space<vmem>>, %arg2: memref<128x512xbf16, #tpu.memory_space<vmem>>, %arg3: memref<9x8x128xf32, #tpu.memory_space<vmem>>) attributes {dimension_semantics = [#tpu.dimension_semantics<arbitrary>], iteration_bounds = array<i64: 1>, scalar_prefetch = 0 : i64, scratch_operands = 0 : i64, tpu.core_type = #tpu.core_type<tc>, window_params = [{pipeline_mode = #tpu.pipeline_mode<synchronous>, transform_indices = @transform_0, window_bounds = array<i64: 9, 8, 512>}, {pipeline_mode = #tpu.pipeline_mode<synchronous>, transform_indices = @transform_1, window_bounds = array<i64: 128, 512>}, {pipeline_mode = #tpu.pipeline_mode<synchronous>, transform_indices = @transform_2, window_bounds = array<i64: 9, 8, 128>}]} {
    %cst = arith.constant 0.000000e+00 : f32
    %0 = vector.broadcast %cst : f32 to vector<8x128xf32>
    %cst_0 = arith.constant 0.000000e+00 : f32
    %1 = vector.broadcast %cst_0 : f32 to vector<8x128xf32>
    %c0_i32 = arith.constant 0 : i32
    %2 = arith.index_cast %c0_i32 : i32 to index
    %c0 = arith.constant 0 : index
    %c0_1 = arith.constant 0 : index
    %3 = vector.load %arg1[%2, %c0, %c0_1] : memref<9x8x512xf32, #tpu.memory_space<vmem>>, vector<1x8x512xf32>
    %4 = vector.shape_cast %3 : vector<1x8x512xf32> to vector<8x512xf32>
    %5 = arith.truncf %0 : vector<8x128xf32> to vector<8x128xbf16>
    %c0_2 = arith.constant 0 : index
    %c0_3 = arith.constant 0 : index
    %6 = vector.load %arg2[%c0_2, %c0_3] : memref<128x512xbf16, #tpu.memory_space<vmem>>, vector<128x512xbf16>
    %cst_4 = arith.constant dense<0.000000e+00> : vector<8x512xf32>
    %7 = tpu.matmul %5, %6, %cst_4 {dimension_numbers = #tpu.dot_dimension_numbers<[1], [0], [0], [1], [0, 0, 1, 1], [], []>} : vector<8x128xbf16>, vector<128x512xbf16>, vector<8x512xf32> -> vector<8x512xf32>
    %8 = arith.addf %4, %7 : vector<8x512xf32>
    %9 = vector.extract_strided_slice %8 {offsets = [0, 0], sizes = [8, 128], strides = [1, 1]} : vector<8x512xf32> to vector<8x128xf32>
    %10 = arith.negf %9 : vector<8x128xf32>
    %11 = math.exp %10 : vector<8x128xf32>
    %cst_5 = arith.constant 1.000000e+00 : f32
    %12 = vector.broadcast %cst_5 : f32 to vector<8x128xf32>
    %13 = arith.addf %12, %11 : vector<8x128xf32>
    %14 = arith.divf %12, %13 : vector<8x128xf32>
    %15 = vector.extract_strided_slice %8 {offsets = [0, 128], sizes = [8, 128], strides = [1, 1]} : vector<8x512xf32> to vector<8x128xf32>
    %16 = arith.negf %15 : vector<8x128xf32>
    %17 = math.exp %16 : vector<8x128xf32>
    %cst_6 = arith.constant 1.000000e+00 : f32
    %18 = vector.broadcast %cst_6 : f32 to vector<8x128xf32>
    %19 = arith.addf %18, %17 : vector<8x128xf32>
    %20 = arith.divf %18, %19 : vector<8x128xf32>
    %21 = vector.extract_strided_slice %8 {offsets = [0, 256], sizes = [8, 128], strides = [1, 1]} : vector<8x512xf32> to vector<8x128xf32>
    %22 = math.tanh %21 : vector<8x128xf32>
    %23 = vector.extract_strided_slice %8 {offsets = [0, 384], sizes = [8, 128], strides = [1, 1]} : vector<8x512xf32> to vector<8x128xf32>
    %24 = arith.negf %23 : vector<8x128xf32>
    %25 = math.exp %24 : vector<8x128xf32>
    %cst_7 = arith.constant 1.000000e+00 : f32
    %26 = vector.broadcast %cst_7 : f32 to vector<8x128xf32>
    %27 = arith.addf %26, %25 : vector<8x128xf32>
    %28 = arith.divf %26, %27 : vector<8x128xf32>
    %29 = arith.mulf %20, %1 : vector<8x128xf32>
    %30 = arith.mulf %14, %22 : vector<8x128xf32>
    %31 = arith.addf %29, %30 : vector<8x128xf32>
    %32 = math.tanh %31 : vector<8x128xf32>
    %33 = arith.mulf %28, %32 : vector<8x128xf32>
    %34 = arith.index_cast %c0_i32 : i32 to index
    %c0_8 = arith.constant 0 : index
    %c0_9 = arith.constant 0 : index
    %35 = vector.load %arg3[%34, %c0_8, %c0_9] : memref<9x8x128xf32, #tpu.memory_space<vmem>>, vector<1x8x128xf32>
    %36 = vector.shape_cast %35 : vector<1x8x128xf32> to vector<8x128xf32>
    %37 = vector.shape_cast %33 : vector<8x128xf32> to vector<1x8x128xf32>
    tpu.vector_store %arg3[%34, %c0_8, %c0_9], %37 {strides = array<i32>} : memref<9x8x128xf32, #tpu.memory_space<vmem>>, vector<1x8x128xf32>,
    %c1_i32 = arith.constant 1 : i32
    %38 = arith.index_cast %c1_i32 : i32 to index
    %c0_10 = arith.constant 0 : index
    %c0_11 = arith.constant 0 : index
    %39 = vector.load %arg1[%38, %c0_10, %c0_11] : memref<9x8x512xf32, #tpu.memory_space<vmem>>, vector<1x8x512xf32>
    %40 = vector.shape_cast %39 : vector<1x8x512xf32> to vector<8x512xf32>
    %41 = arith.truncf %33 : vector<8x128xf32> to vector<8x128xbf16>
    %c0_12 = arith.constant 0 : index
    %c0_13 = arith.constant 0 : index
    %42 = vector.load %arg2[%c0_12, %c0_13] : memref<128x512xbf16, #tpu.memory_space<vmem>>, vector<128x512xbf16>
    %cst_14 = arith.constant dense<0.000000e+00> : vector<8x512xf32>
    %43 = tpu.matmul %41, %42, %cst_14 {dimension_numbers = #tpu.dot_dimension_numbers<[1], [0], [0], [1], [0, 0, 1, 1], [], []>} : vector<8x128xbf16>, vector<128x512xbf16>, vector<8x512xf32> -> vector<8x512xf32>
    %44 = arith.addf %40, %43 : vector<8x512xf32>
    %45 = vector.extract_strided_slice %44 {offsets = [0, 0], sizes = [8, 128], strides = [1, 1]} : vector<8x512xf32> to vector<8x128xf32>
    %46 = arith.negf %45 : vector<8x128xf32>
    %47 = math.exp %46 : vector<8x128xf32>
    %cst_15 = arith.constant 1.000000e+00 : f32
    %48 = vector.broadcast %cst_15 : f32 to vector<8x128xf32>
    %49 = arith.addf %48, %47 : vector<8x128xf32>
    %50 = arith.divf %48, %49 : vector<8x128xf32>
    %51 = vector.extract_strided_slice %44 {offsets = [0, 128], sizes = [8, 128], strides = [1, 1]} : vector<8x512xf32> to vector<8x128xf32>
    %52 = arith.negf %51 : vector<8x128xf32>
    %53 = math.exp %52 : vector<8x128xf32>
    %cst_16 = arith.constant 1.000000e+00 : f32
    %54 = vector.broadcast %cst_16 : f32 to vector<8x128xf32>
    %55 = arith.addf %54, %53 : vector<8x128xf32>
    %56 = arith.divf %54, %55 : vector<8x128xf32>
    %57 = vector.extract_strided_slice %44 {offsets = [0, 256], sizes = [8, 128], strides = [1, 1]} : vector<8x512xf32> to vector<8x128xf32>
    %58 = math.tanh %57 : vector<8x128xf32>
    %59 = vector.extract_strided_slice %44 {offsets = [0, 384], sizes = [8, 128], strides = [1, 1]} : vector<8x512xf32> to vector<8x128xf32>
    %60 = arith.negf %59 : vector<8x128xf32>
    %61 = math.exp %60 : vector<8x128xf32>
    %cst_17 = arith.constant 1.000000e+00 : f32
    %62 = vector.broadcast %cst_17 : f32 to vector<8x128xf32>
    %63 = arith.addf %62, %61 : vector<8x128xf32>
    %64 = arith.divf %62, %63 : vector<8x128xf32>
    %65 = arith.mulf %56, %31 : vector<8x128xf32>
    %66 = arith.mulf %50, %58 : vector<8x128xf32>
    %67 = arith.addf %65, %66 : vector<8x128xf32>
    %68 = math.tanh %67 : vector<8x128xf32>
    %69 = arith.mulf %64, %68 : vector<8x128xf32>
    %70 = arith.index_cast %c1_i32 : i32 to index
    %c0_18 = arith.constant 0 : index
    %c0_19 = arith.constant 0 : index
    %71 = vector.load %arg3[%70, %c0_18, %c0_19] : memref<9x8x128xf32, #tpu.memory_space<vmem>>, vector<1x8x128xf32>
    %72 = vector.shape_cast %71 : vector<1x8x128xf32> to vector<8x128xf32>
    %73 = vector.shape_cast %69 : vector<8x128xf32> to vector<1x8x128xf32>
    tpu.vector_store %arg3[%70, %c0_18, %c0_19], %73 {strides = array<i32>} : memref<9x8x128xf32, #tpu.memory_space<vmem>>, vector<1x8x128xf32>,
    %c2_i32 = arith.constant 2 : i32
    %74 = arith.index_cast %c2_i32 : i32 to index
    %c0_20 = arith.constant 0 : index
    %c0_21 = arith.constant 0 : index
    %75 = vector.load %arg1[%74, %c0_20, %c0_21] : memref<9x8x512xf32, #tpu.memory_space<vmem>>, vector<1x8x512xf32>
    %76 = vector.shape_cast %75 : vector<1x8x512xf32> to vector<8x512xf32>
    %77 = arith.truncf %69 : vector<8x128xf32> to vector<8x128xbf16>
    %c0_22 = arith.constant 0 : index
    %c0_23 = arith.constant 0 : index
    %78 = vector.load %arg2[%c0_22, %c0_23] : memref<128x512xbf16, #tpu.memory_space<vmem>>, vector<128x512xbf16>
    %cst_24 = arith.constant dense<0.000000e+00> : vector<8x512xf32>
    %79 = tpu.matmul %77, %78, %cst_24 {dimension_numbers = #tpu.dot_dimension_numbers<[1], [0], [0], [1], [0, 0, 1, 1], [], []>} : vector<8x128xbf16>, vector<128x512xbf16>, vector<8x512xf32> -> vector<8x512xf32>
    %80 = arith.addf %76, %79 : vector<8x512xf32>
    %81 = vector.extract_strided_slice %80 {offsets = [0, 0], sizes = [8, 128], strides = [1, 1]} : vector<8x512xf32> to vector<8x128xf32>
    %82 = arith.negf %81 : vector<8x128xf32>
    %83 = math.exp %82 : vector<8x128xf32>
    %cst_25 = arith.constant 1.000000e+00 : f32
    %84 = vector.broadcast %cst_25 : f32 to vector<8x128xf32>
    %85 = arith.addf %84, %83 : vector<8x128xf32>
    %86 = arith.divf %84, %85 : vector<8x128xf32>
    %87 = vector.extract_strided_slice %80 {offsets = [0, 128], sizes = [8, 128], strides = [1, 1]} : vector<8x512xf32> to vector<8x128xf32>
    %88 = arith.negf %87 : vector<8x128xf32>
    %89 = math.exp %88 : vector<8x128xf32>
    %cst_26 = arith.constant 1.000000e+00 : f32
    %90 = vector.broadcast %cst_26 : f32 to vector<8x128xf32>
    %91 = arith.addf %90, %89 : vector<8x128xf32>
    %92 = arith.divf %90, %91 : vector<8x128xf32>
    %93 = vector.extract_strided_slice %80 {offsets = [0, 256], sizes = [8, 128], strides = [1, 1]} : vector<8x512xf32> to vector<8x128xf32>
    %94 = math.tanh %93 : vector<8x128xf32>
    %95 = vector.extract_strided_slice %80 {offsets = [0, 384], sizes = [8, 128], strides = [1, 1]} : vector<8x512xf32> to vector<8x128xf32>
    %96 = arith.negf %95 : vector<8x128xf32>
    %97 = math.exp %96 : vector<8x128xf32>
    %cst_27 = arith.constant 1.000000e+00 : f32
    %98 = vector.broadcast %cst_27 : f32 to vector<8x128xf32>
    %99 = arith.addf %98, %97 : vector<8x128xf32>
    %100 = arith.divf %98, %99 : vector<8x128xf32>
    %101 = arith.mulf %92, %67 : vector<8x128xf32>
    %102 = arith.mulf %86, %94 : vector<8x128xf32>
    %103 = arith.addf %101, %102 : vector<8x128xf32>
    %104 = math.tanh %103 : vector<8x128xf32>
    %105 = arith.mulf %100, %104 : vector<8x128xf32>
    %106 = arith.index_cast %c2_i32 : i32 to index
    %c0_28 = arith.constant 0 : index
    %c0_29 = arith.constant 0 : index
    %107 = vector.load %arg3[%106, %c0_28, %c0_29] : memref<9x8x128xf32, #tpu.memory_space<vmem>>, vector<1x8x128xf32>
    %108 = vector.shape_cast %107 : vector<1x8x128xf32> to vector<8x128xf32>
    %109 = vector.shape_cast %105 : vector<8x128xf32> to vector<1x8x128xf32>
    tpu.vector_store %arg3[%106, %c0_28, %c0_29], %109 {strides = array<i32>} : memref<9x8x128xf32, #tpu.memory_space<vmem>>, vector<1x8x128xf32>,
    %c3_i32 = arith.constant 3 : i32
    %110 = arith.index_cast %c3_i32 : i32 to index
    %c0_30 = arith.constant 0 : index
    %c0_31 = arith.constant 0 : index
    %111 = vector.load %arg1[%110, %c0_30, %c0_31] : memref<9x8x512xf32, #tpu.memory_space<vmem>>, vector<1x8x512xf32>
    %112 = vector.shape_cast %111 : vector<1x8x512xf32> to vector<8x512xf32>
    %113 = arith.truncf %105 : vector<8x128xf32> to vector<8x128xbf16>
    %c0_32 = arith.constant 0 : index
    %c0_33 = arith.constant 0 : index
    %114 = vector.load %arg2[%c0_32, %c0_33] : memref<128x512xbf16, #tpu.memory_space<vmem>>, vector<128x512xbf16>
    %cst_34 = arith.constant dense<0.000000e+00> : vector<8x512xf32>
    %115 = tpu.matmul %113, %114, %cst_34 {dimension_numbers = #tpu.dot_dimension_numbers<[1], [0], [0], [1], [0, 0, 1, 1], [], []>} : vector<8x128xbf16>, vector<128x512xbf16>, vector<8x512xf32> -> vector<8x512xf32>
    %116 = arith.addf %112, %115 : vector<8x512xf32>
    %117 = vector.extract_strided_slice %116 {offsets = [0, 0], sizes = [8, 128], strides = [1, 1]} : vector<8x512xf32> to vector<8x128xf32>
    %118 = arith.negf %117 : vector<8x128xf32>
    %119 = math.exp %118 : vector<8x128xf32>
    %cst_35 = arith.constant 1.000000e+00 : f32
    %120 = vector.broadcast %cst_35 : f32 to vector<8x128xf32>
    %121 = arith.addf %120, %119 : vector<8x128xf32>
    %122 = arith.divf %120, %121 : vector<8x128xf32>
    %123 = vector.extract_strided_slice %116 {offsets = [0, 128], sizes = [8, 128], strides = [1, 1]} : vector<8x512xf32> to vector<8x128xf32>
    %124 = arith.negf %123 : vector<8x128xf32>
    %125 = math.exp %124 : vector<8x128xf32>
    %cst_36 = arith.constant 1.000000e+00 : f32
    %126 = vector.broadcast %cst_36 : f32 to vector<8x128xf32>
    %127 = arith.addf %126, %125 : vector<8x128xf32>
    %128 = arith.divf %126, %127 : vector<8x128xf32>
    %129 = vector.extract_strided_slice %116 {offsets = [0, 256], sizes = [8, 128], strides = [1, 1]} : vector<8x512xf32> to vector<8x128xf32>
    %130 = math.tanh %129 : vector<8x128xf32>
    %131 = vector.extract_strided_slice %116 {offsets = [0, 384], sizes = [8, 128], strides = [1, 1]} : vector<8x512xf32> to vector<8x128xf32>
    %132 = arith.negf %131 : vector<8x128xf32>
    %133 = math.exp %132 : vector<8x128xf32>
    %cst_37 = arith.constant 1.000000e+00 : f32
    %134 = vector.broadcast %cst_37 : f32 to vector<8x128xf32>
    %135 = arith.addf %134, %133 : vector<8x128xf32>
    %136 = arith.divf %134, %135 : vector<8x128xf32>
    %137 = arith.mulf %128, %103 : vector<8x128xf32>
    %138 = arith.mulf %122, %130 : vector<8x128xf32>
    %139 = arith.addf %137, %138 : vector<8x128xf32>
    %140 = math.tanh %139 : vector<8x128xf32>
    %141 = arith.mulf %136, %140 : vector<8x128xf32>
    %142 = arith.index_cast %c3_i32 : i32 to index
    %c0_38 = arith.constant 0 : index
    %c0_39 = arith.constant 0 : index
    %143 = vector.load %arg3[%142, %c0_38, %c0_39] : memref<9x8x128xf32, #tpu.memory_space<vmem>>, vector<1x8x128xf32>
    %144 = vector.shape_cast %143 : vector<1x8x128xf32> to vector<8x128xf32>
    %145 = vector.shape_cast %141 : vector<8x128xf32> to vector<1x8x128xf32>
    tpu.vector_store %arg3[%142, %c0_38, %c0_39], %145 {strides = array<i32>} : memref<9x8x128xf32, #tpu.memory_space<vmem>>, vector<1x8x128xf32>,
    %c4_i32 = arith.constant 4 : i32
    %146 = arith.index_cast %c4_i32 : i32 to index
    %c0_40 = arith.constant 0 : index
    %c0_41 = arith.constant 0 : index
    %147 = vector.load %arg1[%146, %c0_40, %c0_41] : memref<9x8x512xf32, #tpu.memory_space<vmem>>, vector<1x8x512xf32>
    %148 = vector.shape_cast %147 : vector<1x8x512xf32> to vector<8x512xf32>
    %149 = arith.truncf %141 : vector<8x128xf32> to vector<8x128xbf16>
    %c0_42 = arith.constant 0 : index
    %c0_43 = arith.constant 0 : index
    %150 = vector.load %arg2[%c0_42, %c0_43] : memref<128x512xbf16, #tpu.memory_space<vmem>>, vector<128x512xbf16>
    %cst_44 = arith.constant dense<0.000000e+00> : vector<8x512xf32>
    %151 = tpu.matmul %149, %150, %cst_44 {dimension_numbers = #tpu.dot_dimension_numbers<[1], [0], [0], [1], [0, 0, 1, 1], [], []>} : vector<8x128xbf16>, vector<128x512xbf16>, vector<8x512xf32> -> vector<8x512xf32>
    %152 = arith.addf %148, %151 : vector<8x512xf32>
    %153 = vector.extract_strided_slice %152 {offsets = [0, 0], sizes = [8, 128], strides = [1, 1]} : vector<8x512xf32> to vector<8x128xf32>
    %154 = arith.negf %153 : vector<8x128xf32>
    %155 = math.exp %154 : vector<8x128xf32>
    %cst_45 = arith.constant 1.000000e+00 : f32
    %156 = vector.broadcast %cst_45 : f32 to vector<8x128xf32>
    %157 = arith.addf %156, %155 : vector<8x128xf32>
    %158 = arith.divf %156, %157 : vector<8x128xf32>
    %159 = vector.extract_strided_slice %152 {offsets = [0, 128], sizes = [8, 128], strides = [1, 1]} : vector<8x512xf32> to vector<8x128xf32>
    %160 = arith.negf %159 : vector<8x128xf32>
    %161 = math.exp %160 : vector<8x128xf32>
    %cst_46 = arith.constant 1.000000e+00 : f32
    %162 = vector.broadcast %cst_46 : f32 to vector<8x128xf32>
    %163 = arith.addf %162, %161 : vector<8x128xf32>
    %164 = arith.divf %162, %163 : vector<8x128xf32>
    %165 = vector.extract_strided_slice %152 {offsets = [0, 256], sizes = [8, 128], strides = [1, 1]} : vector<8x512xf32> to vector<8x128xf32>
    %166 = math.tanh %165 : vector<8x128xf32>
    %167 = vector.extract_strided_slice %152 {offsets = [0, 384], sizes = [8, 128], strides = [1, 1]} : vector<8x512xf32> to vector<8x128xf32>
    %168 = arith.negf %167 : vector<8x128xf32>
    %169 = math.exp %168 : vector<8x128xf32>
    %cst_47 = arith.constant 1.000000e+00 : f32
    %170 = vector.broadcast %cst_47 : f32 to vector<8x128xf32>
    %171 = arith.addf %170, %169 : vector<8x128xf32>
    %172 = arith.divf %170, %171 : vector<8x128xf32>
    %173 = arith.mulf %164, %139 : vector<8x128xf32>
    %174 = arith.mulf %158, %166 : vector<8x128xf32>
    %175 = arith.addf %173, %174 : vector<8x128xf32>
    %176 = math.tanh %175 : vector<8x128xf32>
    %177 = arith.mulf %172, %176 : vector<8x128xf32>
    %178 = arith.index_cast %c4_i32 : i32 to index
    %c0_48 = arith.constant 0 : index
    %c0_49 = arith.constant 0 : index
    %179 = vector.load %arg3[%178, %c0_48, %c0_49] : memref<9x8x128xf32, #tpu.memory_space<vmem>>, vector<1x8x128xf32>
    %180 = vector.shape_cast %179 : vector<1x8x128xf32> to vector<8x128xf32>
    %181 = vector.shape_cast %177 : vector<8x128xf32> to vector<1x8x128xf32>
    tpu.vector_store %arg3[%178, %c0_48, %c0_49], %181 {strides = array<i32>} : memref<9x8x128xf32, #tpu.memory_space<vmem>>, vector<1x8x128xf32>,
    %c5_i32 = arith.constant 5 : i32
    %182 = arith.index_cast %c5_i32 : i32 to index
    %c0_50 = arith.constant 0 : index
    %c0_51 = arith.constant 0 : index
    %183 = vector.load %arg1[%182, %c0_50, %c0_51] : memref<9x8x512xf32, #tpu.memory_space<vmem>>, vector<1x8x512xf32>
    %184 = vector.shape_cast %183 : vector<1x8x512xf32> to vector<8x512xf32>
    %185 = arith.truncf %177 : vector<8x128xf32> to vector<8x128xbf16>
    %c0_52 = arith.constant 0 : index
    %c0_53 = arith.constant 0 : index
    %186 = vector.load %arg2[%c0_52, %c0_53] : memref<128x512xbf16, #tpu.memory_space<vmem>>, vector<128x512xbf16>
    %cst_54 = arith.constant dense<0.000000e+00> : vector<8x512xf32>
    %187 = tpu.matmul %185, %186, %cst_54 {dimension_numbers = #tpu.dot_dimension_numbers<[1], [0], [0], [1], [0, 0, 1, 1], [], []>} : vector<8x128xbf16>, vector<128x512xbf16>, vector<8x512xf32> -> vector<8x512xf32>
    %188 = arith.addf %184, %187 : vector<8x512xf32>
    %189 = vector.extract_strided_slice %188 {offsets = [0, 0], sizes = [8, 128], strides = [1, 1]} : vector<8x512xf32> to vector<8x128xf32>
    %190 = arith.negf %189 : vector<8x128xf32>
    %191 = math.exp %190 : vector<8x128xf32>
    %cst_55 = arith.constant 1.000000e+00 : f32
    %192 = vector.broadcast %cst_55 : f32 to vector<8x128xf32>
    %193 = arith.addf %192, %191 : vector<8x128xf32>
    %194 = arith.divf %192, %193 : vector<8x128xf32>
    %195 = vector.extract_strided_slice %188 {offsets = [0, 128], sizes = [8, 128], strides = [1, 1]} : vector<8x512xf32> to vector<8x128xf32>
    %196 = arith.negf %195 : vector<8x128xf32>
    %197 = math.exp %196 : vector<8x128xf32>
    %cst_56 = arith.constant 1.000000e+00 : f32
    %198 = vector.broadcast %cst_56 : f32 to vector<8x128xf32>
    %199 = arith.addf %198, %197 : vector<8x128xf32>
    %200 = arith.divf %198, %199 : vector<8x128xf32>
    %201 = vector.extract_strided_slice %188 {offsets = [0, 256], sizes = [8, 128], strides = [1, 1]} : vector<8x512xf32> to vector<8x128xf32>
    %202 = math.tanh %201 : vector<8x128xf32>
    %203 = vector.extract_strided_slice %188 {offsets = [0, 384], sizes = [8, 128], strides = [1, 1]} : vector<8x512xf32> to vector<8x128xf32>
    %204 = arith.negf %203 : vector<8x128xf32>
    %205 = math.exp %204 : vector<8x128xf32>
    %cst_57 = arith.constant 1.000000e+00 : f32
    %206 = vector.broadcast %cst_57 : f32 to vector<8x128xf32>
    %207 = arith.addf %206, %205 : vector<8x128xf32>
    %208 = arith.divf %206, %207 : vector<8x128xf32>
    %209 = arith.mulf %200, %175 : vector<8x128xf32>
    %210 = arith.mulf %194, %202 : vector<8x128xf32>
    %211 = arith.addf %209, %210 : vector<8x128xf32>
    %212 = math.tanh %211 : vector<8x128xf32>
    %213 = arith.mulf %208, %212 : vector<8x128xf32>
    %214 = arith.index_cast %c5_i32 : i32 to index
    %c0_58 = arith.constant 0 : index
    %c0_59 = arith.constant 0 : index
    %215 = vector.load %arg3[%214, %c0_58, %c0_59] : memref<9x8x128xf32, #tpu.memory_space<vmem>>, vector<1x8x128xf32>
    %216 = vector.shape_cast %215 : vector<1x8x128xf32> to vector<8x128xf32>
    %217 = vector.shape_cast %213 : vector<8x128xf32> to vector<1x8x128xf32>
    tpu.vector_store %arg3[%214, %c0_58, %c0_59], %217 {strides = array<i32>} : memref<9x8x128xf32, #tpu.memory_space<vmem>>, vector<1x8x128xf32>,
    %c6_i32 = arith.constant 6 : i32
    %218 = arith.index_cast %c6_i32 : i32 to index
    %c0_60 = arith.constant 0 : index
    %c0_61 = arith.constant 0 : index
    %219 = vector.load %arg1[%218, %c0_60, %c0_61] : memref<9x8x512xf32, #tpu.memory_space<vmem>>, vector<1x8x512xf32>
    %220 = vector.shape_cast %219 : vector<1x8x512xf32> to vector<8x512xf32>
    %221 = arith.truncf %213 : vector<8x128xf32> to vector<8x128xbf16>
    %c0_62 = arith.constant 0 : index
    %c0_63 = arith.constant 0 : index
    %222 = vector.load %arg2[%c0_62, %c0_63] : memref<128x512xbf16, #tpu.memory_space<vmem>>, vector<128x512xbf16>
    %cst_64 = arith.constant dense<0.000000e+00> : vector<8x512xf32>
    %223 = tpu.matmul %221, %222, %cst_64 {dimension_numbers = #tpu.dot_dimension_numbers<[1], [0], [0], [1], [0, 0, 1, 1], [], []>} : vector<8x128xbf16>, vector<128x512xbf16>, vector<8x512xf32> -> vector<8x512xf32>
    %224 = arith.addf %220, %223 : vector<8x512xf32>
    %225 = vector.extract_strided_slice %224 {offsets = [0, 0], sizes = [8, 128], strides = [1, 1]} : vector<8x512xf32> to vector<8x128xf32>
    %226 = arith.negf %225 : vector<8x128xf32>
    %227 = math.exp %226 : vector<8x128xf32>
    %cst_65 = arith.constant 1.000000e+00 : f32
    %228 = vector.broadcast %cst_65 : f32 to vector<8x128xf32>
    %229 = arith.addf %228, %227 : vector<8x128xf32>
    %230 = arith.divf %228, %229 : vector<8x128xf32>
    %231 = vector.extract_strided_slice %224 {offsets = [0, 128], sizes = [8, 128], strides = [1, 1]} : vector<8x512xf32> to vector<8x128xf32>
    %232 = arith.negf %231 : vector<8x128xf32>
    %233 = math.exp %232 : vector<8x128xf32>
    %cst_66 = arith.constant 1.000000e+00 : f32
    %234 = vector.broadcast %cst_66 : f32 to vector<8x128xf32>
    %235 = arith.addf %234, %233 : vector<8x128xf32>
    %236 = arith.divf %234, %235 : vector<8x128xf32>
    %237 = vector.extract_strided_slice %224 {offsets = [0, 256], sizes = [8, 128], strides = [1, 1]} : vector<8x512xf32> to vector<8x128xf32>
    %238 = math.tanh %237 : vector<8x128xf32>
    %239 = vector.extract_strided_slice %224 {offsets = [0, 384], sizes = [8, 128], strides = [1, 1]} : vector<8x512xf32> to vector<8x128xf32>
    %240 = arith.negf %239 : vector<8x128xf32>
    %241 = math.exp %240 : vector<8x128xf32>
    %cst_67 = arith.constant 1.000000e+00 : f32
    %242 = vector.broadcast %cst_67 : f32 to vector<8x128xf32>
    %243 = arith.addf %242, %241 : vector<8x128xf32>
    %244 = arith.divf %242, %243 : vector<8x128xf32>
    %245 = arith.mulf %236, %211 : vector<8x128xf32>
    %246 = arith.mulf %230, %238 : vector<8x128xf32>
    %247 = arith.addf %245, %246 : vector<8x128xf32>
    %248 = math.tanh %247 : vector<8x128xf32>
    %249 = arith.mulf %244, %248 : vector<8x128xf32>
    %250 = arith.index_cast %c6_i32 : i32 to index
    %c0_68 = arith.constant 0 : index
    %c0_69 = arith.constant 0 : index
    %251 = vector.load %arg3[%250, %c0_68, %c0_69] : memref<9x8x128xf32, #tpu.memory_space<vmem>>, vector<1x8x128xf32>
    %252 = vector.shape_cast %251 : vector<1x8x128xf32> to vector<8x128xf32>
    %253 = vector.shape_cast %249 : vector<8x128xf32> to vector<1x8x128xf32>
    tpu.vector_store %arg3[%250, %c0_68, %c0_69], %253 {strides = array<i32>} : memref<9x8x128xf32, #tpu.memory_space<vmem>>, vector<1x8x128xf32>,
    %c7_i32 = arith.constant 7 : i32
    %254 = arith.index_cast %c7_i32 : i32 to index
    %c0_70 = arith.constant 0 : index
    %c0_71 = arith.constant 0 : index
    %255 = vector.load %arg1[%254, %c0_70, %c0_71] : memref<9x8x512xf32, #tpu.memory_space<vmem>>, vector<1x8x512xf32>
    %256 = vector.shape_cast %255 : vector<1x8x512xf32> to vector<8x512xf32>
    %257 = arith.truncf %249 : vector<8x128xf32> to vector<8x128xbf16>
    %c0_72 = arith.constant 0 : index
    %c0_73 = arith.constant 0 : index
    %258 = vector.load %arg2[%c0_72, %c0_73] : memref<128x512xbf16, #tpu.memory_space<vmem>>, vector<128x512xbf16>
    %cst_74 = arith.constant dense<0.000000e+00> : vector<8x512xf32>
    %259 = tpu.matmul %257, %258, %cst_74 {dimension_numbers = #tpu.dot_dimension_numbers<[1], [0], [0], [1], [0, 0, 1, 1], [], []>} : vector<8x128xbf16>, vector<128x512xbf16>, vector<8x512xf32> -> vector<8x512xf32>
    %260 = arith.addf %256, %259 : vector<8x512xf32>
    %261 = vector.extract_strided_slice %260 {offsets = [0, 0], sizes = [8, 128], strides = [1, 1]} : vector<8x512xf32> to vector<8x128xf32>
    %262 = arith.negf %261 : vector<8x128xf32>
    %263 = math.exp %262 : vector<8x128xf32>
    %cst_75 = arith.constant 1.000000e+00 : f32
    %264 = vector.broadcast %cst_75 : f32 to vector<8x128xf32>
    %265 = arith.addf %264, %263 : vector<8x128xf32>
    %266 = arith.divf %264, %265 : vector<8x128xf32>
    %267 = vector.extract_strided_slice %260 {offsets = [0, 128], sizes = [8, 128], strides = [1, 1]} : vector<8x512xf32> to vector<8x128xf32>
    %268 = arith.negf %267 : vector<8x128xf32>
    %269 = math.exp %268 : vector<8x128xf32>
    %cst_76 = arith.constant 1.000000e+00 : f32
    %270 = vector.broadcast %cst_76 : f32 to vector<8x128xf32>
    %271 = arith.addf %270, %269 : vector<8x128xf32>
    %272 = arith.divf %270, %271 : vector<8x128xf32>
    %273 = vector.extract_strided_slice %260 {offsets = [0, 256], sizes = [8, 128], strides = [1, 1]} : vector<8x512xf32> to vector<8x128xf32>
    %274 = math.tanh %273 : vector<8x128xf32>
    %275 = vector.extract_strided_slice %260 {offsets = [0, 384], sizes = [8, 128], strides = [1, 1]} : vector<8x512xf32> to vector<8x128xf32>
    %276 = arith.negf %275 : vector<8x128xf32>
    %277 = math.exp %276 : vector<8x128xf32>
    %cst_77 = arith.constant 1.000000e+00 : f32
    %278 = vector.broadcast %cst_77 : f32 to vector<8x128xf32>
    %279 = arith.addf %278, %277 : vector<8x128xf32>
    %280 = arith.divf %278, %279 : vector<8x128xf32>
    %281 = arith.mulf %272, %247 : vector<8x128xf32>
    %282 = arith.mulf %266, %274 : vector<8x128xf32>
    %283 = arith.addf %281, %282 : vector<8x128xf32>
    %284 = math.tanh %283 : vector<8x128xf32>
    %285 = arith.mulf %280, %284 : vector<8x128xf32>
    %286 = arith.index_cast %c7_i32 : i32 to index
    %c0_78 = arith.constant 0 : index
    %c0_79 = arith.constant 0 : index
    %287 = vector.load %arg3[%286, %c0_78, %c0_79] : memref<9x8x128xf32, #tpu.memory_space<vmem>>, vector<1x8x128xf32>
    %288 = vector.shape_cast %287 : vector<1x8x128xf32> to vector<8x128xf32>
    %289 = vector.shape_cast %285 : vector<8x128xf32> to vector<1x8x128xf32>
    tpu.vector_store %arg3[%286, %c0_78, %c0_79], %289 {strides = array<i32>} : memref<9x8x128xf32, #tpu.memory_space<vmem>>, vector<1x8x128xf32>,
    %c8_i32 = arith.constant 8 : i32
    %290 = arith.index_cast %c8_i32 : i32 to index
    %c0_80 = arith.constant 0 : index
    %c0_81 = arith.constant 0 : index
    %291 = vector.load %arg1[%290, %c0_80, %c0_81] : memref<9x8x512xf32, #tpu.memory_space<vmem>>, vector<1x8x512xf32>
    %292 = vector.shape_cast %291 : vector<1x8x512xf32> to vector<8x512xf32>
    %293 = arith.truncf %285 : vector<8x128xf32> to vector<8x128xbf16>
    %c0_82 = arith.constant 0 : index
    %c0_83 = arith.constant 0 : index
    %294 = vector.load %arg2[%c0_82, %c0_83] : memref<128x512xbf16, #tpu.memory_space<vmem>>, vector<128x512xbf16>
    %cst_84 = arith.constant dense<0.000000e+00> : vector<8x512xf32>
    %295 = tpu.matmul %293, %294, %cst_84 {dimension_numbers = #tpu.dot_dimension_numbers<[1], [0], [0], [1], [0, 0, 1, 1], [], []>} : vector<8x128xbf16>, vector<128x512xbf16>, vector<8x512xf32> -> vector<8x512xf32>
    %296 = arith.addf %292, %295 : vector<8x512xf32>
    %297 = vector.extract_strided_slice %296 {offsets = [0, 0], sizes = [8, 128], strides = [1, 1]} : vector<8x512xf32> to vector<8x128xf32>
    %298 = arith.negf %297 : vector<8x128xf32>
    %299 = math.exp %298 : vector<8x128xf32>
    %cst_85 = arith.constant 1.000000e+00 : f32
    %300 = vector.broadcast %cst_85 : f32 to vector<8x128xf32>
    %301 = arith.addf %300, %299 : vector<8x128xf32>
    %302 = arith.divf %300, %301 : vector<8x128xf32>
    %303 = vector.extract_strided_slice %296 {offsets = [0, 128], sizes = [8, 128], strides = [1, 1]} : vector<8x512xf32> to vector<8x128xf32>
    %304 = arith.negf %303 : vector<8x128xf32>
    %305 = math.exp %304 : vector<8x128xf32>
    %cst_86 = arith.constant 1.000000e+00 : f32
    %306 = vector.broadcast %cst_86 : f32 to vector<8x128xf32>
    %307 = arith.addf %306, %305 : vector<8x128xf32>
    %308 = arith.divf %306, %307 : vector<8x128xf32>
    %309 = vector.extract_strided_slice %296 {offsets = [0, 256], sizes = [8, 128], strides = [1, 1]} : vector<8x512xf32> to vector<8x128xf32>
    %310 = math.tanh %309 : vector<8x128xf32>
    %311 = vector.extract_strided_slice %296 {offsets = [0, 384], sizes = [8, 128], strides = [1, 1]} : vector<8x512xf32> to vector<8x128xf32>
    %312 = arith.negf %311 : vector<8x128xf32>
    %313 = math.exp %312 : vector<8x128xf32>
    %cst_87 = arith.constant 1.000000e+00 : f32
    %314 = vector.broadcast %cst_87 : f32 to vector<8x128xf32>
    %315 = arith.addf %314, %313 : vector<8x128xf32>
    %316 = arith.divf %314, %315 : vector<8x128xf32>
    %317 = arith.mulf %308, %283 : vector<8x128xf32>
    %318 = arith.mulf %302, %310 : vector<8x128xf32>
    %319 = arith.addf %317, %318 : vector<8x128xf32>
    %320 = math.tanh %319 : vector<8x128xf32>
    %321 = arith.mulf %316, %320 : vector<8x128xf32>
    %322 = arith.index_cast %c8_i32 : i32 to index
    %c0_88 = arith.constant 0 : index
    %c0_89 = arith.constant 0 : index
    %323 = vector.load %arg3[%322, %c0_88, %c0_89] : memref<9x8x128xf32, #tpu.memory_space<vmem>>, vector<1x8x128xf32>
    %324 = vector.shape_cast %323 : vector<1x8x128xf32> to vector<8x128xf32>
    %325 = vector.shape_cast %321 : vector<8x128xf32> to vector<1x8x128xf32>
    tpu.vector_store %arg3[%322, %c0_88, %c0_89], %325 {strides = array<i32>} : memref<9x8x128xf32, #tpu.memory_space<vmem>>, vector<1x8x128xf32>,
    %c9_i32 = arith.constant 9 : i32
    return
  }
  func.func @transform_0(%arg0: i32) -> (i32, i32, i32) {
    %c0_i32 = arith.constant 0 : i32
    %c0_i32_0 = arith.constant 0 : i32
    %c0_i32_1 = arith.constant 0 : i32
    %c0_i32_2 = arith.constant 0 : i32
    return %c0_i32, %c0_i32_0, %c0_i32_1 : i32, i32, i32
  }
  func.func @transform_1(%arg0: i32) -> (i32, i32) {
    %c0_i32 = arith.constant 0 : i32
    %c0_i32_0 = arith.constant 0 : i32
    %c0_i32_1 = arith.constant 0 : i32
    return %c0_i32, %c0_i32_0 : i32, i32
  }
  func.func @transform_2(%arg0: i32) -> (i32, i32, i32) {
    %c0_i32 = arith.constant 0 : i32
    %c0_i32_0 = arith.constant 0 : i32
    %c0_i32_1 = arith.constant 0 : i32
    %c0_i32_2 = arith.constant 0 : i32
    return %c0_i32, %c0_i32_0, %c0_i32_1 : i32, i32, i32
  }
}

module attributes {stable_mosaic.version = 11 : i64} {
  func.func @_lstm_recurrence_kernel(%arg0: i32, %arg1: memref<9x8x512xf32, #tpu.memory_space<vmem>>, %arg2: memref<128x512xbf16, #tpu.memory_space<vmem>>, %arg3: memref<9x8x128xf32, #tpu.memory_space<vmem>>) attributes {dimension_semantics = [#tpu.dimension_semantics<arbitrary>], iteration_bounds = array<i64: 1>, scalar_prefetch = 0 : i64, scratch_operands = 0 : i64, tpu.core_type = #tpu.core_type<tc>, window_params = [{pipeline_mode = #tpu.pipeline_mode<synchronous>, transform_indices = @transform_0, window_bounds = array<i64: 9, 8, 512>}, {pipeline_mode = #tpu.pipeline_mode<synchronous>, transform_indices = @transform_1, window_bounds = array<i64: 128, 512>}, {pipeline_mode = #tpu.pipeline_mode<synchronous>, transform_indices = @transform_2, window_bounds = array<i64: 9, 8, 128>}]} {
    %cst = arith.constant 0.000000e+00 : f32
    %0 = vector.broadcast %cst : f32 to vector<8x128xf32>
    %cst_0 = arith.constant 0.000000e+00 : f32
    %1 = vector.broadcast %cst_0 : f32 to vector<8x128xf32>
    %c0_i32 = arith.constant 0 : i32
    %2 = arith.index_cast %c0_i32 : i32 to index
    %c0 = arith.constant 0 : index
    %c0_1 = arith.constant 0 : index
    %3 = vector.load %arg1[%2, %c0, %c0_1] : memref<9x8x512xf32, #tpu.memory_space<vmem>>, vector<1x8x512xf32>
    %4 = vector.shape_cast %3 : vector<1x8x512xf32> to vector<8x512xf32>
    %5 = arith.truncf %0 : vector<8x128xf32> to vector<8x128xbf16>
    %c0_2 = arith.constant 0 : index
    %c0_3 = arith.constant 0 : index
    %6 = vector.load %arg2[%c0_2, %c0_3] : memref<128x512xbf16, #tpu.memory_space<vmem>>, vector<128x512xbf16>
    %cst_4 = arith.constant dense<0.000000e+00> : vector<8x512xf32>
    %7 = tpu.matmul %5, %6, %cst_4 {dimension_numbers = #tpu.dot_dimension_numbers<[1], [0], [0], [1], [0, 0, 1, 1], [], []>} : vector<8x128xbf16>, vector<128x512xbf16>, vector<8x512xf32> -> vector<8x512xf32>
    %8 = arith.addf %4, %7 : vector<8x512xf32>
    %9 = vector.extract_strided_slice %8 {offsets = [0, 0], sizes = [8, 128], strides = [1, 1]} : vector<8x512xf32> to vector<8x128xf32>
    %10 = arith.negf %9 : vector<8x128xf32>
    %11 = math.exp %10 : vector<8x128xf32>
    %cst_5 = arith.constant 1.000000e+00 : f32
    %12 = vector.broadcast %cst_5 : f32 to vector<8x128xf32>
    %13 = arith.addf %12, %11 : vector<8x128xf32>
    %14 = arith.divf %12, %13 : vector<8x128xf32>
    %15 = vector.extract_strided_slice %8 {offsets = [0, 128], sizes = [8, 128], strides = [1, 1]} : vector<8x512xf32> to vector<8x128xf32>
    %16 = arith.negf %15 : vector<8x128xf32>
    %17 = math.exp %16 : vector<8x128xf32>
    %cst_6 = arith.constant 1.000000e+00 : f32
    %18 = vector.broadcast %cst_6 : f32 to vector<8x128xf32>
    %19 = arith.addf %18, %17 : vector<8x128xf32>
    %20 = arith.divf %18, %19 : vector<8x128xf32>
    %21 = vector.extract_strided_slice %8 {offsets = [0, 256], sizes = [8, 128], strides = [1, 1]} : vector<8x512xf32> to vector<8x128xf32>
    %22 = math.tanh %21 : vector<8x128xf32>
    %23 = vector.extract_strided_slice %8 {offsets = [0, 384], sizes = [8, 128], strides = [1, 1]} : vector<8x512xf32> to vector<8x128xf32>
    %24 = arith.negf %23 : vector<8x128xf32>
    %25 = math.exp %24 : vector<8x128xf32>
    %cst_7 = arith.constant 1.000000e+00 : f32
    %26 = vector.broadcast %cst_7 : f32 to vector<8x128xf32>
    %27 = arith.addf %26, %25 : vector<8x128xf32>
    %28 = arith.divf %26, %27 : vector<8x128xf32>
    %29 = arith.mulf %20, %1 : vector<8x128xf32>
    %30 = arith.mulf %14, %22 : vector<8x128xf32>
    %31 = arith.addf %29, %30 : vector<8x128xf32>
    %32 = math.tanh %31 : vector<8x128xf32>
    %33 = arith.mulf %28, %32 : vector<8x128xf32>
    %34 = arith.index_cast %c0_i32 : i32 to index
    %c0_8 = arith.constant 0 : index
    %c0_9 = arith.constant 0 : index
    %35 = vector.load %arg3[%34, %c0_8, %c0_9] : memref<9x8x128xf32, #tpu.memory_space<vmem>>, vector<1x8x128xf32>
    %36 = vector.shape_cast %35 : vector<1x8x128xf32> to vector<8x128xf32>
    %37 = vector.shape_cast %33 : vector<8x128xf32> to vector<1x8x128xf32>
    tpu.vector_store %arg3[%34, %c0_8, %c0_9], %37 {strides = array<i32>} : memref<9x8x128xf32, #tpu.memory_space<vmem>>, vector<1x8x128xf32>,
    %c1_i32 = arith.constant 1 : i32
    %38 = arith.index_cast %c1_i32 : i32 to index
    %c0_10 = arith.constant 0 : index
    %c0_11 = arith.constant 0 : index
    %39 = vector.load %arg1[%38, %c0_10, %c0_11] : memref<9x8x512xf32, #tpu.memory_space<vmem>>, vector<1x8x512xf32>
    %40 = vector.shape_cast %39 : vector<1x8x512xf32> to vector<8x512xf32>
    %41 = arith.truncf %33 : vector<8x128xf32> to vector<8x128xbf16>
    %c0_12 = arith.constant 0 : index
    %c0_13 = arith.constant 0 : index
    %42 = vector.load %arg2[%c0_12, %c0_13] : memref<128x512xbf16, #tpu.memory_space<vmem>>, vector<128x512xbf16>
    %cst_14 = arith.constant dense<0.000000e+00> : vector<8x512xf32>
    %43 = tpu.matmul %41, %42, %cst_14 {dimension_numbers = #tpu.dot_dimension_numbers<[1], [0], [0], [1], [0, 0, 1, 1], [], []>} : vector<8x128xbf16>, vector<128x512xbf16>, vector<8x512xf32> -> vector<8x512xf32>
    %44 = arith.addf %40, %43 : vector<8x512xf32>
    %45 = vector.extract_strided_slice %44 {offsets = [0, 0], sizes = [8, 128], strides = [1, 1]} : vector<8x512xf32> to vector<8x128xf32>
    %46 = arith.negf %45 : vector<8x128xf32>
    %47 = math.exp %46 : vector<8x128xf32>
    %cst_15 = arith.constant 1.000000e+00 : f32
    %48 = vector.broadcast %cst_15 : f32 to vector<8x128xf32>
    %49 = arith.addf %48, %47 : vector<8x128xf32>
    %50 = arith.divf %48, %49 : vector<8x128xf32>
    %51 = vector.extract_strided_slice %44 {offsets = [0, 128], sizes = [8, 128], strides = [1, 1]} : vector<8x512xf32> to vector<8x128xf32>
    %52 = arith.negf %51 : vector<8x128xf32>
    %53 = math.exp %52 : vector<8x128xf32>
    %cst_16 = arith.constant 1.000000e+00 : f32
    %54 = vector.broadcast %cst_16 : f32 to vector<8x128xf32>
    %55 = arith.addf %54, %53 : vector<8x128xf32>
    %56 = arith.divf %54, %55 : vector<8x128xf32>
    %57 = vector.extract_strided_slice %44 {offsets = [0, 256], sizes = [8, 128], strides = [1, 1]} : vector<8x512xf32> to vector<8x128xf32>
    %58 = math.tanh %57 : vector<8x128xf32>
    %59 = vector.extract_strided_slice %44 {offsets = [0, 384], sizes = [8, 128], strides = [1, 1]} : vector<8x512xf32> to vector<8x128xf32>
    %60 = arith.negf %59 : vector<8x128xf32>
    %61 = math.exp %60 : vector<8x128xf32>
    %cst_17 = arith.constant 1.000000e+00 : f32
    %62 = vector.broadcast %cst_17 : f32 to vector<8x128xf32>
    %63 = arith.addf %62, %61 : vector<8x128xf32>
    %64 = arith.divf %62, %63 : vector<8x128xf32>
    %65 = arith.mulf %56, %31 : vector<8x128xf32>
    %66 = arith.mulf %50, %58 : vector<8x128xf32>
    %67 = arith.addf %65, %66 : vector<8x128xf32>
    %68 = math.tanh %67 : vector<8x128xf32>
    %69 = arith.mulf %64, %68 : vector<8x128xf32>
    %70 = arith.index_cast %c1_i32 : i32 to index
    %c0_18 = arith.constant 0 : index
    %c0_19 = arith.constant 0 : index
    %71 = vector.load %arg3[%70, %c0_18, %c0_19] : memref<9x8x128xf32, #tpu.memory_space<vmem>>, vector<1x8x128xf32>
    %72 = vector.shape_cast %71 : vector<1x8x128xf32> to vector<8x128xf32>
    %73 = vector.shape_cast %69 : vector<8x128xf32> to vector<1x8x128xf32>
    tpu.vector_store %arg3[%70, %c0_18, %c0_19], %73 {strides = array<i32>} : memref<9x8x128xf32, #tpu.memory_space<vmem>>, vector<1x8x128xf32>,
    %c2_i32 = arith.constant 2 : i32
    %74 = arith.index_cast %c2_i32 : i32 to index
    %c0_20 = arith.constant 0 : index
    %c0_21 = arith.constant 0 : index
    %75 = vector.load %arg1[%74, %c0_20, %c0_21] : memref<9x8x512xf32, #tpu.memory_space<vmem>>, vector<1x8x512xf32>
    %76 = vector.shape_cast %75 : vector<1x8x512xf32> to vector<8x512xf32>
    %77 = arith.truncf %69 : vector<8x128xf32> to vector<8x128xbf16>
    %c0_22 = arith.constant 0 : index
    %c0_23 = arith.constant 0 : index
    %78 = vector.load %arg2[%c0_22, %c0_23] : memref<128x512xbf16, #tpu.memory_space<vmem>>, vector<128x512xbf16>
    %cst_24 = arith.constant dense<0.000000e+00> : vector<8x512xf32>
    %79 = tpu.matmul %77, %78, %cst_24 {dimension_numbers = #tpu.dot_dimension_numbers<[1], [0], [0], [1], [0, 0, 1, 1], [], []>} : vector<8x128xbf16>, vector<128x512xbf16>, vector<8x512xf32> -> vector<8x512xf32>
    %80 = arith.addf %76, %79 : vector<8x512xf32>
    %81 = vector.extract_strided_slice %80 {offsets = [0, 0], sizes = [8, 128], strides = [1, 1]} : vector<8x512xf32> to vector<8x128xf32>
    %82 = arith.negf %81 : vector<8x128xf32>
    %83 = math.exp %82 : vector<8x128xf32>
    %cst_25 = arith.constant 1.000000e+00 : f32
    %84 = vector.broadcast %cst_25 : f32 to vector<8x128xf32>
    %85 = arith.addf %84, %83 : vector<8x128xf32>
    %86 = arith.divf %84, %85 : vector<8x128xf32>
    %87 = vector.extract_strided_slice %80 {offsets = [0, 128], sizes = [8, 128], strides = [1, 1]} : vector<8x512xf32> to vector<8x128xf32>
    %88 = arith.negf %87 : vector<8x128xf32>
    %89 = math.exp %88 : vector<8x128xf32>
    %cst_26 = arith.constant 1.000000e+00 : f32
    %90 = vector.broadcast %cst_26 : f32 to vector<8x128xf32>
    %91 = arith.addf %90, %89 : vector<8x128xf32>
    %92 = arith.divf %90, %91 : vector<8x128xf32>
    %93 = vector.extract_strided_slice %80 {offsets = [0, 256], sizes = [8, 128], strides = [1, 1]} : vector<8x512xf32> to vector<8x128xf32>
    %94 = math.tanh %93 : vector<8x128xf32>
    %95 = vector.extract_strided_slice %80 {offsets = [0, 384], sizes = [8, 128], strides = [1, 1]} : vector<8x512xf32> to vector<8x128xf32>
    %96 = arith.negf %95 : vector<8x128xf32>
    %97 = math.exp %96 : vector<8x128xf32>
    %cst_27 = arith.constant 1.000000e+00 : f32
    %98 = vector.broadcast %cst_27 : f32 to vector<8x128xf32>
    %99 = arith.addf %98, %97 : vector<8x128xf32>
    %100 = arith.divf %98, %99 : vector<8x128xf32>
    %101 = arith.mulf %92, %67 : vector<8x128xf32>
    %102 = arith.mulf %86, %94 : vector<8x128xf32>
    %103 = arith.addf %101, %102 : vector<8x128xf32>
    %104 = math.tanh %103 : vector<8x128xf32>
    %105 = arith.mulf %100, %104 : vector<8x128xf32>
    %106 = arith.index_cast %c2_i32 : i32 to index
    %c0_28 = arith.constant 0 : index
    %c0_29 = arith.constant 0 : index
    %107 = vector.load %arg3[%106, %c0_28, %c0_29] : memref<9x8x128xf32, #tpu.memory_space<vmem>>, vector<1x8x128xf32>
    %108 = vector.shape_cast %107 : vector<1x8x128xf32> to vector<8x128xf32>
    %109 = vector.shape_cast %105 : vector<8x128xf32> to vector<1x8x128xf32>
    tpu.vector_store %arg3[%106, %c0_28, %c0_29], %109 {strides = array<i32>} : memref<9x8x128xf32, #tpu.memory_space<vmem>>, vector<1x8x128xf32>,
    %c3_i32 = arith.constant 3 : i32
    %110 = arith.index_cast %c3_i32 : i32 to index
    %c0_30 = arith.constant 0 : index
    %c0_31 = arith.constant 0 : index
    %111 = vector.load %arg1[%110, %c0_30, %c0_31] : memref<9x8x512xf32, #tpu.memory_space<vmem>>, vector<1x8x512xf32>
    %112 = vector.shape_cast %111 : vector<1x8x512xf32> to vector<8x512xf32>
    %113 = arith.truncf %105 : vector<8x128xf32> to vector<8x128xbf16>
    %c0_32 = arith.constant 0 : index
    %c0_33 = arith.constant 0 : index
    %114 = vector.load %arg2[%c0_32, %c0_33] : memref<128x512xbf16, #tpu.memory_space<vmem>>, vector<128x512xbf16>
    %cst_34 = arith.constant dense<0.000000e+00> : vector<8x512xf32>
    %115 = tpu.matmul %113, %114, %cst_34 {dimension_numbers = #tpu.dot_dimension_numbers<[1], [0], [0], [1], [0, 0, 1, 1], [], []>} : vector<8x128xbf16>, vector<128x512xbf16>, vector<8x512xf32> -> vector<8x512xf32>
    %116 = arith.addf %112, %115 : vector<8x512xf32>
    %117 = vector.extract_strided_slice %116 {offsets = [0, 0], sizes = [8, 128], strides = [1, 1]} : vector<8x512xf32> to vector<8x128xf32>
    %118 = arith.negf %117 : vector<8x128xf32>
    %119 = math.exp %118 : vector<8x128xf32>
    %cst_35 = arith.constant 1.000000e+00 : f32
    %120 = vector.broadcast %cst_35 : f32 to vector<8x128xf32>
    %121 = arith.addf %120, %119 : vector<8x128xf32>
    %122 = arith.divf %120, %121 : vector<8x128xf32>
    %123 = vector.extract_strided_slice %116 {offsets = [0, 128], sizes = [8, 128], strides = [1, 1]} : vector<8x512xf32> to vector<8x128xf32>
    %124 = arith.negf %123 : vector<8x128xf32>
    %125 = math.exp %124 : vector<8x128xf32>
    %cst_36 = arith.constant 1.000000e+00 : f32
    %126 = vector.broadcast %cst_36 : f32 to vector<8x128xf32>
    %127 = arith.addf %126, %125 : vector<8x128xf32>
    %128 = arith.divf %126, %127 : vector<8x128xf32>
    %129 = vector.extract_strided_slice %116 {offsets = [0, 256], sizes = [8, 128], strides = [1, 1]} : vector<8x512xf32> to vector<8x128xf32>
    %130 = math.tanh %129 : vector<8x128xf32>
    %131 = vector.extract_strided_slice %116 {offsets = [0, 384], sizes = [8, 128], strides = [1, 1]} : vector<8x512xf32> to vector<8x128xf32>
    %132 = arith.negf %131 : vector<8x128xf32>
    %133 = math.exp %132 : vector<8x128xf32>
    %cst_37 = arith.constant 1.000000e+00 : f32
    %134 = vector.broadcast %cst_37 : f32 to vector<8x128xf32>
    %135 = arith.addf %134, %133 : vector<8x128xf32>
    %136 = arith.divf %134, %135 : vector<8x128xf32>
    %137 = arith.mulf %128, %103 : vector<8x128xf32>
    %138 = arith.mulf %122, %130 : vector<8x128xf32>
    %139 = arith.addf %137, %138 : vector<8x128xf32>
    %140 = math.tanh %139 : vector<8x128xf32>
    %141 = arith.mulf %136, %140 : vector<8x128xf32>
    %142 = arith.index_cast %c3_i32 : i32 to index
    %c0_38 = arith.constant 0 : index
    %c0_39 = arith.constant 0 : index
    %143 = vector.load %arg3[%142, %c0_38, %c0_39] : memref<9x8x128xf32, #tpu.memory_space<vmem>>, vector<1x8x128xf32>
    %144 = vector.shape_cast %143 : vector<1x8x128xf32> to vector<8x128xf32>
    %145 = vector.shape_cast %141 : vector<8x128xf32> to vector<1x8x128xf32>
    tpu.vector_store %arg3[%142, %c0_38, %c0_39], %145 {strides = array<i32>} : memref<9x8x128xf32, #tpu.memory_space<vmem>>, vector<1x8x128xf32>,
    %c4_i32 = arith.constant 4 : i32
    %146 = arith.index_cast %c4_i32 : i32 to index
    %c0_40 = arith.constant 0 : index
    %c0_41 = arith.constant 0 : index
    %147 = vector.load %arg1[%146, %c0_40, %c0_41] : memref<9x8x512xf32, #tpu.memory_space<vmem>>, vector<1x8x512xf32>
    %148 = vector.shape_cast %147 : vector<1x8x512xf32> to vector<8x512xf32>
    %149 = arith.truncf %141 : vector<8x128xf32> to vector<8x128xbf16>
    %c0_42 = arith.constant 0 : index
    %c0_43 = arith.constant 0 : index
    %150 = vector.load %arg2[%c0_42, %c0_43] : memref<128x512xbf16, #tpu.memory_space<vmem>>, vector<128x512xbf16>
    %cst_44 = arith.constant dense<0.000000e+00> : vector<8x512xf32>
    %151 = tpu.matmul %149, %150, %cst_44 {dimension_numbers = #tpu.dot_dimension_numbers<[1], [0], [0], [1], [0, 0, 1, 1], [], []>} : vector<8x128xbf16>, vector<128x512xbf16>, vector<8x512xf32> -> vector<8x512xf32>
    %152 = arith.addf %148, %151 : vector<8x512xf32>
    %153 = vector.extract_strided_slice %152 {offsets = [0, 0], sizes = [8, 128], strides = [1, 1]} : vector<8x512xf32> to vector<8x128xf32>
    %154 = arith.negf %153 : vector<8x128xf32>
    %155 = math.exp %154 : vector<8x128xf32>
    %cst_45 = arith.constant 1.000000e+00 : f32
    %156 = vector.broadcast %cst_45 : f32 to vector<8x128xf32>
    %157 = arith.addf %156, %155 : vector<8x128xf32>
    %158 = arith.divf %156, %157 : vector<8x128xf32>
    %159 = vector.extract_strided_slice %152 {offsets = [0, 128], sizes = [8, 128], strides = [1, 1]} : vector<8x512xf32> to vector<8x128xf32>
    %160 = arith.negf %159 : vector<8x128xf32>
    %161 = math.exp %160 : vector<8x128xf32>
    %cst_46 = arith.constant 1.000000e+00 : f32
    %162 = vector.broadcast %cst_46 : f32 to vector<8x128xf32>
    %163 = arith.addf %162, %161 : vector<8x128xf32>
    %164 = arith.divf %162, %163 : vector<8x128xf32>
    %165 = vector.extract_strided_slice %152 {offsets = [0, 256], sizes = [8, 128], strides = [1, 1]} : vector<8x512xf32> to vector<8x128xf32>
    %166 = math.tanh %165 : vector<8x128xf32>
    %167 = vector.extract_strided_slice %152 {offsets = [0, 384], sizes = [8, 128], strides = [1, 1]} : vector<8x512xf32> to vector<8x128xf32>
    %168 = arith.negf %167 : vector<8x128xf32>
    %169 = math.exp %168 : vector<8x128xf32>
    %cst_47 = arith.constant 1.000000e+00 : f32
    %170 = vector.broadcast %cst_47 : f32 to vector<8x128xf32>
    %171 = arith.addf %170, %169 : vector<8x128xf32>
    %172 = arith.divf %170, %171 : vector<8x128xf32>
    %173 = arith.mulf %164, %139 : vector<8x128xf32>
    %174 = arith.mulf %158, %166 : vector<8x128xf32>
    %175 = arith.addf %173, %174 : vector<8x128xf32>
    %176 = math.tanh %175 : vector<8x128xf32>
    %177 = arith.mulf %172, %176 : vector<8x128xf32>
    %178 = arith.index_cast %c4_i32 : i32 to index
    %c0_48 = arith.constant 0 : index
    %c0_49 = arith.constant 0 : index
    %179 = vector.load %arg3[%178, %c0_48, %c0_49] : memref<9x8x128xf32, #tpu.memory_space<vmem>>, vector<1x8x128xf32>
    %180 = vector.shape_cast %179 : vector<1x8x128xf32> to vector<8x128xf32>
    %181 = vector.shape_cast %177 : vector<8x128xf32> to vector<1x8x128xf32>
    tpu.vector_store %arg3[%178, %c0_48, %c0_49], %181 {strides = array<i32>} : memref<9x8x128xf32, #tpu.memory_space<vmem>>, vector<1x8x128xf32>,
    %c5_i32 = arith.constant 5 : i32
    %182 = arith.index_cast %c5_i32 : i32 to index
    %c0_50 = arith.constant 0 : index
    %c0_51 = arith.constant 0 : index
    %183 = vector.load %arg1[%182, %c0_50, %c0_51] : memref<9x8x512xf32, #tpu.memory_space<vmem>>, vector<1x8x512xf32>
    %184 = vector.shape_cast %183 : vector<1x8x512xf32> to vector<8x512xf32>
    %185 = arith.truncf %177 : vector<8x128xf32> to vector<8x128xbf16>
    %c0_52 = arith.constant 0 : index
    %c0_53 = arith.constant 0 : index
    %186 = vector.load %arg2[%c0_52, %c0_53] : memref<128x512xbf16, #tpu.memory_space<vmem>>, vector<128x512xbf16>
    %cst_54 = arith.constant dense<0.000000e+00> : vector<8x512xf32>
    %187 = tpu.matmul %185, %186, %cst_54 {dimension_numbers = #tpu.dot_dimension_numbers<[1], [0], [0], [1], [0, 0, 1, 1], [], []>} : vector<8x128xbf16>, vector<128x512xbf16>, vector<8x512xf32> -> vector<8x512xf32>
    %188 = arith.addf %184, %187 : vector<8x512xf32>
    %189 = vector.extract_strided_slice %188 {offsets = [0, 0], sizes = [8, 128], strides = [1, 1]} : vector<8x512xf32> to vector<8x128xf32>
    %190 = arith.negf %189 : vector<8x128xf32>
    %191 = math.exp %190 : vector<8x128xf32>
    %cst_55 = arith.constant 1.000000e+00 : f32
    %192 = vector.broadcast %cst_55 : f32 to vector<8x128xf32>
    %193 = arith.addf %192, %191 : vector<8x128xf32>
    %194 = arith.divf %192, %193 : vector<8x128xf32>
    %195 = vector.extract_strided_slice %188 {offsets = [0, 128], sizes = [8, 128], strides = [1, 1]} : vector<8x512xf32> to vector<8x128xf32>
    %196 = arith.negf %195 : vector<8x128xf32>
    %197 = math.exp %196 : vector<8x128xf32>
    %cst_56 = arith.constant 1.000000e+00 : f32
    %198 = vector.broadcast %cst_56 : f32 to vector<8x128xf32>
    %199 = arith.addf %198, %197 : vector<8x128xf32>
    %200 = arith.divf %198, %199 : vector<8x128xf32>
    %201 = vector.extract_strided_slice %188 {offsets = [0, 256], sizes = [8, 128], strides = [1, 1]} : vector<8x512xf32> to vector<8x128xf32>
    %202 = math.tanh %201 : vector<8x128xf32>
    %203 = vector.extract_strided_slice %188 {offsets = [0, 384], sizes = [8, 128], strides = [1, 1]} : vector<8x512xf32> to vector<8x128xf32>
    %204 = arith.negf %203 : vector<8x128xf32>
    %205 = math.exp %204 : vector<8x128xf32>
    %cst_57 = arith.constant 1.000000e+00 : f32
    %206 = vector.broadcast %cst_57 : f32 to vector<8x128xf32>
    %207 = arith.addf %206, %205 : vector<8x128xf32>
    %208 = arith.divf %206, %207 : vector<8x128xf32>
    %209 = arith.mulf %200, %175 : vector<8x128xf32>
    %210 = arith.mulf %194, %202 : vector<8x128xf32>
    %211 = arith.addf %209, %210 : vector<8x128xf32>
    %212 = math.tanh %211 : vector<8x128xf32>
    %213 = arith.mulf %208, %212 : vector<8x128xf32>
    %214 = arith.index_cast %c5_i32 : i32 to index
    %c0_58 = arith.constant 0 : index
    %c0_59 = arith.constant 0 : index
    %215 = vector.load %arg3[%214, %c0_58, %c0_59] : memref<9x8x128xf32, #tpu.memory_space<vmem>>, vector<1x8x128xf32>
    %216 = vector.shape_cast %215 : vector<1x8x128xf32> to vector<8x128xf32>
    %217 = vector.shape_cast %213 : vector<8x128xf32> to vector<1x8x128xf32>
    tpu.vector_store %arg3[%214, %c0_58, %c0_59], %217 {strides = array<i32>} : memref<9x8x128xf32, #tpu.memory_space<vmem>>, vector<1x8x128xf32>,
    %c6_i32 = arith.constant 6 : i32
    %218 = arith.index_cast %c6_i32 : i32 to index
    %c0_60 = arith.constant 0 : index
    %c0_61 = arith.constant 0 : index
    %219 = vector.load %arg1[%218, %c0_60, %c0_61] : memref<9x8x512xf32, #tpu.memory_space<vmem>>, vector<1x8x512xf32>
    %220 = vector.shape_cast %219 : vector<1x8x512xf32> to vector<8x512xf32>
    %221 = arith.truncf %213 : vector<8x128xf32> to vector<8x128xbf16>
    %c0_62 = arith.constant 0 : index
    %c0_63 = arith.constant 0 : index
    %222 = vector.load %arg2[%c0_62, %c0_63] : memref<128x512xbf16, #tpu.memory_space<vmem>>, vector<128x512xbf16>
    %cst_64 = arith.constant dense<0.000000e+00> : vector<8x512xf32>
    %223 = tpu.matmul %221, %222, %cst_64 {dimension_numbers = #tpu.dot_dimension_numbers<[1], [0], [0], [1], [0, 0, 1, 1], [], []>} : vector<8x128xbf16>, vector<128x512xbf16>, vector<8x512xf32> -> vector<8x512xf32>
    %224 = arith.addf %220, %223 : vector<8x512xf32>
    %225 = vector.extract_strided_slice %224 {offsets = [0, 0], sizes = [8, 128], strides = [1, 1]} : vector<8x512xf32> to vector<8x128xf32>
    %226 = arith.negf %225 : vector<8x128xf32>
    %227 = math.exp %226 : vector<8x128xf32>
    %cst_65 = arith.constant 1.000000e+00 : f32
    %228 = vector.broadcast %cst_65 : f32 to vector<8x128xf32>
    %229 = arith.addf %228, %227 : vector<8x128xf32>
    %230 = arith.divf %228, %229 : vector<8x128xf32>
    %231 = vector.extract_strided_slice %224 {offsets = [0, 128], sizes = [8, 128], strides = [1, 1]} : vector<8x512xf32> to vector<8x128xf32>
    %232 = arith.negf %231 : vector<8x128xf32>
    %233 = math.exp %232 : vector<8x128xf32>
    %cst_66 = arith.constant 1.000000e+00 : f32
    %234 = vector.broadcast %cst_66 : f32 to vector<8x128xf32>
    %235 = arith.addf %234, %233 : vector<8x128xf32>
    %236 = arith.divf %234, %235 : vector<8x128xf32>
    %237 = vector.extract_strided_slice %224 {offsets = [0, 256], sizes = [8, 128], strides = [1, 1]} : vector<8x512xf32> to vector<8x128xf32>
    %238 = math.tanh %237 : vector<8x128xf32>
    %239 = vector.extract_strided_slice %224 {offsets = [0, 384], sizes = [8, 128], strides = [1, 1]} : vector<8x512xf32> to vector<8x128xf32>
    %240 = arith.negf %239 : vector<8x128xf32>
    %241 = math.exp %240 : vector<8x128xf32>
    %cst_67 = arith.constant 1.000000e+00 : f32
    %242 = vector.broadcast %cst_67 : f32 to vector<8x128xf32>
    %243 = arith.addf %242, %241 : vector<8x128xf32>
    %244 = arith.divf %242, %243 : vector<8x128xf32>
    %245 = arith.mulf %236, %211 : vector<8x128xf32>
    %246 = arith.mulf %230, %238 : vector<8x128xf32>
    %247 = arith.addf %245, %246 : vector<8x128xf32>
    %248 = math.tanh %247 : vector<8x128xf32>
    %249 = arith.mulf %244, %248 : vector<8x128xf32>
    %250 = arith.index_cast %c6_i32 : i32 to index
    %c0_68 = arith.constant 0 : index
    %c0_69 = arith.constant 0 : index
    %251 = vector.load %arg3[%250, %c0_68, %c0_69] : memref<9x8x128xf32, #tpu.memory_space<vmem>>, vector<1x8x128xf32>
    %252 = vector.shape_cast %251 : vector<1x8x128xf32> to vector<8x128xf32>
    %253 = vector.shape_cast %249 : vector<8x128xf32> to vector<1x8x128xf32>
    tpu.vector_store %arg3[%250, %c0_68, %c0_69], %253 {strides = array<i32>} : memref<9x8x128xf32, #tpu.memory_space<vmem>>, vector<1x8x128xf32>,
    %c7_i32 = arith.constant 7 : i32
    %254 = arith.index_cast %c7_i32 : i32 to index
    %c0_70 = arith.constant 0 : index
    %c0_71 = arith.constant 0 : index
    %255 = vector.load %arg1[%254, %c0_70, %c0_71] : memref<9x8x512xf32, #tpu.memory_space<vmem>>, vector<1x8x512xf32>
    %256 = vector.shape_cast %255 : vector<1x8x512xf32> to vector<8x512xf32>
    %257 = arith.truncf %249 : vector<8x128xf32> to vector<8x128xbf16>
    %c0_72 = arith.constant 0 : index
    %c0_73 = arith.constant 0 : index
    %258 = vector.load %arg2[%c0_72, %c0_73] : memref<128x512xbf16, #tpu.memory_space<vmem>>, vector<128x512xbf16>
    %cst_74 = arith.constant dense<0.000000e+00> : vector<8x512xf32>
    %259 = tpu.matmul %257, %258, %cst_74 {dimension_numbers = #tpu.dot_dimension_numbers<[1], [0], [0], [1], [0, 0, 1, 1], [], []>} : vector<8x128xbf16>, vector<128x512xbf16>, vector<8x512xf32> -> vector<8x512xf32>
    %260 = arith.addf %256, %259 : vector<8x512xf32>
    %261 = vector.extract_strided_slice %260 {offsets = [0, 0], sizes = [8, 128], strides = [1, 1]} : vector<8x512xf32> to vector<8x128xf32>
    %262 = arith.negf %261 : vector<8x128xf32>
    %263 = math.exp %262 : vector<8x128xf32>
    %cst_75 = arith.constant 1.000000e+00 : f32
    %264 = vector.broadcast %cst_75 : f32 to vector<8x128xf32>
    %265 = arith.addf %264, %263 : vector<8x128xf32>
    %266 = arith.divf %264, %265 : vector<8x128xf32>
    %267 = vector.extract_strided_slice %260 {offsets = [0, 128], sizes = [8, 128], strides = [1, 1]} : vector<8x512xf32> to vector<8x128xf32>
    %268 = arith.negf %267 : vector<8x128xf32>
    %269 = math.exp %268 : vector<8x128xf32>
    %cst_76 = arith.constant 1.000000e+00 : f32
    %270 = vector.broadcast %cst_76 : f32 to vector<8x128xf32>
    %271 = arith.addf %270, %269 : vector<8x128xf32>
    %272 = arith.divf %270, %271 : vector<8x128xf32>
    %273 = vector.extract_strided_slice %260 {offsets = [0, 256], sizes = [8, 128], strides = [1, 1]} : vector<8x512xf32> to vector<8x128xf32>
    %274 = math.tanh %273 : vector<8x128xf32>
    %275 = vector.extract_strided_slice %260 {offsets = [0, 384], sizes = [8, 128], strides = [1, 1]} : vector<8x512xf32> to vector<8x128xf32>
    %276 = arith.negf %275 : vector<8x128xf32>
    %277 = math.exp %276 : vector<8x128xf32>
    %cst_77 = arith.constant 1.000000e+00 : f32
    %278 = vector.broadcast %cst_77 : f32 to vector<8x128xf32>
    %279 = arith.addf %278, %277 : vector<8x128xf32>
    %280 = arith.divf %278, %279 : vector<8x128xf32>
    %281 = arith.mulf %272, %247 : vector<8x128xf32>
    %282 = arith.mulf %266, %274 : vector<8x128xf32>
    %283 = arith.addf %281, %282 : vector<8x128xf32>
    %284 = math.tanh %283 : vector<8x128xf32>
    %285 = arith.mulf %280, %284 : vector<8x128xf32>
    %286 = arith.index_cast %c7_i32 : i32 to index
    %c0_78 = arith.constant 0 : index
    %c0_79 = arith.constant 0 : index
    %287 = vector.load %arg3[%286, %c0_78, %c0_79] : memref<9x8x128xf32, #tpu.memory_space<vmem>>, vector<1x8x128xf32>
    %288 = vector.shape_cast %287 : vector<1x8x128xf32> to vector<8x128xf32>
    %289 = vector.shape_cast %285 : vector<8x128xf32> to vector<1x8x128xf32>
    tpu.vector_store %arg3[%286, %c0_78, %c0_79], %289 {strides = array<i32>} : memref<9x8x128xf32, #tpu.memory_space<vmem>>, vector<1x8x128xf32>,
    %c8_i32 = arith.constant 8 : i32
    %290 = arith.index_cast %c8_i32 : i32 to index
    %c0_80 = arith.constant 0 : index
    %c0_81 = arith.constant 0 : index
    %291 = vector.load %arg1[%290, %c0_80, %c0_81] : memref<9x8x512xf32, #tpu.memory_space<vmem>>, vector<1x8x512xf32>
    %292 = vector.shape_cast %291 : vector<1x8x512xf32> to vector<8x512xf32>
    %293 = arith.truncf %285 : vector<8x128xf32> to vector<8x128xbf16>
    %c0_82 = arith.constant 0 : index
    %c0_83 = arith.constant 0 : index
    %294 = vector.load %arg2[%c0_82, %c0_83] : memref<128x512xbf16, #tpu.memory_space<vmem>>, vector<128x512xbf16>
    %cst_84 = arith.constant dense<0.000000e+00> : vector<8x512xf32>
    %295 = tpu.matmul %293, %294, %cst_84 {dimension_numbers = #tpu.dot_dimension_numbers<[1], [0], [0], [1], [0, 0, 1, 1], [], []>} : vector<8x128xbf16>, vector<128x512xbf16>, vector<8x512xf32> -> vector<8x512xf32>
    %296 = arith.addf %292, %295 : vector<8x512xf32>
    %297 = vector.extract_strided_slice %296 {offsets = [0, 0], sizes = [8, 128], strides = [1, 1]} : vector<8x512xf32> to vector<8x128xf32>
    %298 = arith.negf %297 : vector<8x128xf32>
    %299 = math.exp %298 : vector<8x128xf32>
    %cst_85 = arith.constant 1.000000e+00 : f32
    %300 = vector.broadcast %cst_85 : f32 to vector<8x128xf32>
    %301 = arith.addf %300, %299 : vector<8x128xf32>
    %302 = arith.divf %300, %301 : vector<8x128xf32>
    %303 = vector.extract_strided_slice %296 {offsets = [0, 128], sizes = [8, 128], strides = [1, 1]} : vector<8x512xf32> to vector<8x128xf32>
    %304 = arith.negf %303 : vector<8x128xf32>
    %305 = math.exp %304 : vector<8x128xf32>
    %cst_86 = arith.constant 1.000000e+00 : f32
    %306 = vector.broadcast %cst_86 : f32 to vector<8x128xf32>
    %307 = arith.addf %306, %305 : vector<8x128xf32>
    %308 = arith.divf %306, %307 : vector<8x128xf32>
    %309 = vector.extract_strided_slice %296 {offsets = [0, 256], sizes = [8, 128], strides = [1, 1]} : vector<8x512xf32> to vector<8x128xf32>
    %310 = math.tanh %309 : vector<8x128xf32>
    %311 = vector.extract_strided_slice %296 {offsets = [0, 384], sizes = [8, 128], strides = [1, 1]} : vector<8x512xf32> to vector<8x128xf32>
    %312 = arith.negf %311 : vector<8x128xf32>
    %313 = math.exp %312 : vector<8x128xf32>
    %cst_87 = arith.constant 1.000000e+00 : f32
    %314 = vector.broadcast %cst_87 : f32 to vector<8x128xf32>
    %315 = arith.addf %314, %313 : vector<8x128xf32>
    %316 = arith.divf %314, %315 : vector<8x128xf32>
    %317 = arith.mulf %308, %283 : vector<8x128xf32>
    %318 = arith.mulf %302, %310 : vector<8x128xf32>
    %319 = arith.addf %317, %318 : vector<8x128xf32>
    %320 = math.tanh %319 : vector<8x128xf32>
    %321 = arith.mulf %316, %320 : vector<8x128xf32>
    %322 = arith.index_cast %c8_i32 : i32 to index
    %c0_88 = arith.constant 0 : index
    %c0_89 = arith.constant 0 : index
    %323 = vector.load %arg3[%322, %c0_88, %c0_89] : memref<9x8x128xf32, #tpu.memory_space<vmem>>, vector<1x8x128xf32>
    %324 = vector.shape_cast %323 : vector<1x8x128xf32> to vector<8x128xf32>
    %325 = vector.shape_cast %321 : vector<8x128xf32> to vector<1x8x128xf32>
    tpu.vector_store %arg3[%322, %c0_88, %c0_89], %325 {strides = array<i32>} : memref<9x8x128xf32, #tpu.memory_space<vmem>>, vector<1x8x128xf32>,
    %c9_i32 = arith.constant 9 : i32
    return
  }
  func.func @transform_0(%arg0: i32) -> (i32, i32, i32) {
    %c0_i32 = arith.constant 0 : i32
    %c0_i32_0 = arith.constant 0 : i32
    %c0_i32_1 = arith.constant 0 : i32
    %c0_i32_2 = arith.constant 0 : i32
    return %c0_i32, %c0_i32_0, %c0_i32_1 : i32, i32, i32
  }
  func.func @transform_1(%arg0: i32) -> (i32, i32) {
    %c0_i32 = arith.constant 0 : i32
    %c0_i32_0 = arith.constant 0 : i32
    %c0_i32_1 = arith.constant 0 : i32
    return %c0_i32, %c0_i32_0 : i32, i32
  }
  func.func @transform_2(%arg0: i32) -> (i32, i32, i32) {
    %c0_i32 = arith.constant 0 : i32
    %c0_i32_0 = arith.constant 0 : i32
    %c0_i32_1 = arith.constant 0 : i32
    %c0_i32_2 = arith.constant 0 : i32
    return %c0_i32, %c0_i32_0, %c0_i32_1 : i32, i32, i32
  }
}

module attributes {stable_mosaic.version = 11 : i64} {
  func.func @_matmul_bias_kernel(%arg0: i32, %arg1: i32, %arg2: memref<72x128xbf16, #tpu.memory_space<vmem>>, %arg3: memref<128x128xbf16, #tpu.memory_space<vmem>>, %arg4: memref<1x128xf32, #tpu.memory_space<vmem>>, %arg5: memref<72x128xf32, #tpu.memory_space<vmem>>) attributes {dimension_semantics = [#tpu.dimension_semantics<parallel>, #tpu.dimension_semantics<parallel>], iteration_bounds = array<i64: 1, 1>, scalar_prefetch = 0 : i64, scratch_operands = 0 : i64, tpu.core_type = #tpu.core_type<tc>, window_params = [{transform_indices = @transform_0, window_bounds = array<i64: 72, 128>}, {transform_indices = @transform_1, window_bounds = array<i64: 128, 128>}, {transform_indices = @transform_2, window_bounds = array<i64: 1, 128>}, {transform_indices = @transform_3, window_bounds = array<i64: 72, 128>}]} {
    %c0 = arith.constant 0 : index
    %c0_0 = arith.constant 0 : index
    %0 = vector.load %arg2[%c0, %c0_0] : memref<72x128xbf16, #tpu.memory_space<vmem>>, vector<72x128xbf16>
    %c0_1 = arith.constant 0 : index
    %c0_2 = arith.constant 0 : index
    %1 = vector.load %arg3[%c0_1, %c0_2] : memref<128x128xbf16, #tpu.memory_space<vmem>>, vector<128x128xbf16>
    %cst = arith.constant dense<0.000000e+00> : vector<72x128xf32>
    %2 = tpu.matmul %0, %1, %cst {dimension_numbers = #tpu.dot_dimension_numbers<[1], [0], [0], [1], [0, 0, 1, 1], [], []>} : vector<72x128xbf16>, vector<128x128xbf16>, vector<72x128xf32> -> vector<72x128xf32>
    %c0_3 = arith.constant 0 : index
    %c0_4 = arith.constant 0 : index
    %3 = vector.load %arg4[%c0_3, %c0_4] : memref<1x128xf32, #tpu.memory_space<vmem>>, vector<1x128xf32>
    %4 = vector.broadcast %3 : vector<1x128xf32> to vector<72x128xf32>
    %5 = arith.addf %2, %4 : vector<72x128xf32>
    %c0_5 = arith.constant 0 : index
    %c0_6 = arith.constant 0 : index
    %6 = vector.load %arg5[%c0_5, %c0_6] : memref<72x128xf32, #tpu.memory_space<vmem>>, vector<72x128xf32>
    tpu.vector_store %arg5[%c0_5, %c0_6], %5 {strides = array<i32>} : memref<72x128xf32, #tpu.memory_space<vmem>>, vector<72x128xf32>,
    return
  }
  func.func @transform_0(%arg0: i32, %arg1: i32) -> (i32, i32) {
    %c0_i32 = arith.constant 0 : i32
    %c0_i32_0 = arith.constant 0 : i32
    return %arg0, %c0_i32 : i32, i32
  }
  func.func @transform_1(%arg0: i32, %arg1: i32) -> (i32, i32) {
    %c0_i32 = arith.constant 0 : i32
    %c0_i32_0 = arith.constant 0 : i32
    return %c0_i32, %arg1 : i32, i32
  }
  func.func @transform_2(%arg0: i32, %arg1: i32) -> (i32, i32) {
    %c0_i32 = arith.constant 0 : i32
    %c0_i32_0 = arith.constant 0 : i32
    return %c0_i32, %arg1 : i32, i32
  }
  func.func @transform_3(%arg0: i32, %arg1: i32) -> (i32, i32) {
    %c0_i32 = arith.constant 0 : i32
    return %arg0, %arg1 : i32, i32
  }
}

</mosaic_0001>

<bundles_post_ra>
// kernel: decoder_lstm_forward.7
= control target key start
LH: loop header
LB: loop body
LE: loop exit
PB: predicated region body
PF: predicated region fallthrough
CT: control target
= control target key end

     0   :  { %8 = vsyncpa [#allocation3], 0  ;;  %s1135_s0 = inlined_call_operand.vmem [shape: bf16[72,128], index: 0, kind: input, shape index: {}]   ;;  %s1136_s1 = inlined_call_operand.hbm [shape: bf16[128,512], index: 1, kind: input, shape index: {}]   ;;  %s1137_s2 = inlined_call_operand.vmem [shape: f32[1,512], index: 2, kind: input, shape index: {}]   ;;  %s1138_s3 = inlined_call_operand.vmem [shape: f32[72,512], index: 3, kind: output, shape index: {}]  }
   0x1   :  { %10 = vsyncpa [#allocation3 + $0x1], 0  ;;  %s926_s12 = smov 0   ;;  %s928_s13 = smov 0  }
   0x2   :  { %s930_s14 = smov 0   ;;  %s932_s15 = smov 0  }
   0x3   :  { %s934_s16 = smov 0   ;;  %s936_s17 = smov 0  }
   0x4 LB: > { %s629_s18 = sadd.s32 4294967295, %s901_s17   ;;  %s25_s19 = sadd.s32 1, %s897_s16  ;;  %s901_s17 = sphi %s936_s17, %s16_s17   ;;  %s897_s16 = sphi %s934_s16, %s1146_s16   ;;  %s893_s15 = sphi %s932_s15, %s1145_s15   ;;  %s889_s14 = sphi %s930_s14, %s1144_s14   ;;  %s885_s13 = sphi %s928_s13, %s1143_s13   ;;  %s881_s12 = sphi %s926_s12, %s1142_s12  }
   0x5   : > { %p26_p0 = scmp.ge.s32.totalorder %s25_s19, 2  ;;  %s61_s20 = sadd.s32 1, %s889_s14 }
   0x6   : > { %p68_p1 = scmp.ne.s32.totalorder %s889_s14, %s885_s13  ;;  %p69_p2 = scmp.eq.s32.totalorder %s901_s17, 0 }
   0x7   : > { %s1148_s19 = smov (%p26_p0, %s25_s19), 0  ;;  %p74_p4 = scmp.ne.s32.totalorder %s885_s13, %s881_s12 }
   0x8   : > { %p962_p3 = por %p69_p2, %p68_p1  ;;  %s58_s22 = ssub.s32 %s897_s16, %s1148_s19 }
   0x9   : > { %p75_p5 = scmp.eq.s32.totalorder %s629_s18, 0  ;;  %p59_p6 = scmp.eq.s32.totalorder %s58_s22, 0 }
   0xa   : > { %p126_p7 = scmp.eq.s32.totalorder %s629_s18, 1  ;;  %p769_p10 = scmp.lt.s32.totalorder %s901_s17, 2 }
   0xb   : > { %p969_p8 = por %p75_p5, %p74_p4  ;;  %s161_s26 = sand.u32 1, %s889_s14  }
   0xc   : > { %s974_s24 = scalar_select %p59_p6, %s889_s14, %s61_s20  }
   0xd   : > { %p976_p9 = por %p126_p7, %p68_p1  ;;  %s724_s27 = sshll.u32 %s897_s16, 3 }
   0xe   : > { %s634_s28 = sshll.u32 %s161_s26, 7  ;;  %s170_s4 = scalar_lea.hbm %s1136_s1, %s724_s27 }
   0xf   : > { %s171_s5 = sshll.u32 %s170_s4, 4  ;;  %s165_s6 = scalar_lea.vmem [#allocation2], %s634_s28  ;;  %s172_s5 = int_to_ptr.hbm [resolvable:$true] %s171_s5 }
  0x10   : > { %s173_s7 = sshll.u32 %s165_s6, 4  ;;  %p766_p11 = pnand %p769_p10, %p962_p3  ;;  %s174_s7 = int_to_ptr.vmem [resolvable:$true] %s173_s7 }
  0x11   : > { %p637_p12 = scmp.ge.s32.totalorder %s901_s17, 1  ;;  %s162_s8 = scalar_lea.sflag [#allocation3], %s161_s26 }
  0x12   : > { %s903_s9 = smov 256   ;;  %s904_s10 = smov 128  }
  0x13   : > { %s905_s11 = smov 8   ;;  %p189_p13 = scmp.lt.s32.totalorder %s901_s17, 3 }
  0x14   : > { %768 = dma.hbm_to_vmem [thread:$0]  (!%p766_p11), %s172_s5, 2048, %s174_s7, %s162_s8, %s903_s9, %s904_s10, %s905_s11  }
  0x15   : > { %p190_p0 = pnand %p637_p12, %p189_p13 }
  0x16   : > { %s991_s12 = sand.u32 (!%p190_p0), 1, %s885_s13  }
  0x17   : > { %193 = sbr.rel (%p190_p0) target bundleno = 241 (0xf1), region = 32  ;;  %s638_s18 = sshll.u32 (!%p190_p0), %s991_s12, 7 }
  0x18   : > { %s196_s20 = scalar_lea.sflag (!%p190_p0), [#allocation3], %s991_s12  ;;  %s995_s22 = scalar_lea.vmem (!%p190_p0), [#allocation2], %s638_s18 }
  0x1c   : > { %876 = dma.done.wait (%p969_p8), %s196_s20, 2048  }
  0x1d   : > { %878 = vsyncadd (%p969_p8), %s196_s20, 4294965248  ;;  %v714_v0 = vld [vmem:[%s995_s22 + $0x70] sm:$0xf]  ;;  %v744_v1 = vld [vmem:[%s995_s22 + $0x74] sm:$0xf0]  ;;  %s639_s7 = sshll.u32 %s893_s15, 1 }
  0x1e   : > { %v743_v2 = vld [vmem:[%s995_s22 + $0x74] sm:$0xf]  ;;  %v715_v3 = vor.u32 %v744_v1, %v714_v0  ;;  %v716_v4 = vld [vmem:[%s995_s22 + $0x78] sm:$0xf0]  ;;  %v706_v5 = vld [vmem:[%s995_s22 + $0x60] sm:$0xf] }
  0x1f   : > { %v742_v6 = vld [vmem:[%s995_s22 + $0x64] sm:$0xf0]  ;;  %v719_v7 = vor.u32 %v743_v2, %v716_v4  ;;  %v741_v8 = vld [vmem:[%s995_s22 + $0x64] sm:$0xf]  ;;  %v708_v9 = vld [vmem:[%s995_s22 + $0x68] sm:$0xf0] }
  0x20   : > { %746 = vmatpush.bf16.msra.mxu2 %v715_v3  ;;  %v707_v10 = vor.u32 %v742_v6, %v706_v5  ;;  %384 = vmatpush.bf16.msra.mxu0 %v715_v3  ;;  %v711_v11 = vor.u32 %v741_v8, %v708_v9  ;;  %v698_v12 = vld [vmem:[%s995_s22 + $0x50] sm:$0xf]  ;;  %v740_v13 = vld [vmem:[%s995_s22 + $0x54] sm:$0xf0]  ;;  %v739_v14 = vld [vmem:[%s995_s22 + $0x54] sm:$0xf] }
  0x21   : > { %417 = vmatpush.bf16.msra.mxu1 %v719_v7  ;;  %754 = vmatpush.bf16.msra.mxu3 %v719_v7  ;;  %v700_v15 = vld [vmem:[%s995_s22 + $0x58] sm:$0xf0]  ;;  %v699_v16 = vor.u32 %v740_v13, %v698_v12  ;;  %v690_v18 = vld [vmem:[%s995_s22 + $0x40] sm:$0xf]  ;;  %v738_v19 = vld [vmem:[%s995_s22 + $0x44] sm:$0xf0] }
  0x22   : > { %v703_v17 = vor.u32 %v739_v14, %v700_v15  ;;  %v737_v20 = vld [vmem:[%s995_s22 + $0x44] sm:$0xf]  ;;  %v692_v21 = vld [vmem:[%s995_s22 + $0x48] sm:$0xf0]  ;;  %v691_v22 = vor.u32 %v738_v19, %v690_v18  ;;  %v682_v24 = vld [vmem:[%s995_s22 + $0x30] sm:$0xf] }
  0x23   : > { %v695_v23 = vor.u32 %v737_v20, %v692_v21  ;;  %v736_v25 = vld [vmem:[%s995_s22 + $0x34] sm:$0xf0]  ;;  %v735_v26 = vld [vmem:[%s995_s22 + $0x34] sm:$0xf]  ;;  %v684_v27 = vld [vmem:[%s995_s22 + $0x38] sm:$0xf0] }
  0x24   : > { %747 = vmatpush.bf16.msra.mxu2 %v707_v10  ;;  %385 = vmatpush.bf16.msra.mxu0 %v707_v10  ;;  %v683_v28 = vor.u32 %v736_v25, %v682_v24  ;;  %v687_v29 = vor.u32 %v735_v26, %v684_v27  ;;  %v674_v30 = vld [vmem:[%s995_s22 + $0x20] sm:$0xf]  ;;  %v734_v31 = vld [vmem:[%s995_s22 + $0x24] sm:$0xf0]  ;;  %v733_v32 = vld [vmem:[%s995_s22 + $0x24] sm:$0xf] }
  0x25   : > { %418 = vmatpush.bf16.msra.mxu1 %v711_v11  ;;  %755 = vmatpush.bf16.msra.mxu3 %v711_v11  ;;  %v676_v33 = vld [vmem:[%s995_s22 + $0x28] sm:$0xf0]  ;;  %v675_v34 = vor.u32 %v734_v31, %v674_v30  ;;  %v666_v36 = vld [vmem:[%s995_s22 + $0x10] sm:$0xf]  ;;  %v732_v37 = vld [vmem:[%s995_s22 + $0x14] sm:$0xf0] }
  0x26   : > { %v679_v35 = vor.u32 %v733_v32, %v676_v33  ;;  %v731_v38 = vld [vmem:[%s995_s22 + $0x14] sm:$0xf]  ;;  %v668_v39 = vld [vmem:[%s995_s22 + $0x18] sm:$0xf0]  ;;  %v667_v40 = vor.u32 %v732_v37, %v666_v36  ;;  %v658_v42 = vld [vmem:[%s995_s22] sm:$0xf] }
  0x27   : > { %v671_v41 = vor.u32 %v731_v38, %v668_v39  ;;  %v730_v43 = vld [vmem:[%s995_s22 + $0x4] sm:$0xf0]  ;;  %v729_v44 = vld [vmem:[%s995_s22 + $0x4] sm:$0xf]  ;;  %v660_v45 = vld [vmem:[%s995_s22 + $0x8] sm:$0xf0] }
  0x28   : > { %748 = vmatpush.bf16.msra.mxu2 %v699_v16  ;;  %386 = vmatpush.bf16.msra.mxu0 %v699_v16  ;;  %v659_v46 = vor.u32 %v730_v43, %v658_v42  ;;  %v663_v47 = vor.u32 %v729_v44, %v660_v45  ;;  %v727_v48 = vld [vmem:[%s1135_s0 + $0x10] sm:$0xff]  ;;  %v725_v49 = vld [vmem:[%s1135_s0] sm:$0xff]  ;;  %v728_v50 = vld [vmem:[%s1135_s0 + $0x18] sm:$0xff]  ;;  %p239_p1 = scmp.lt.s32.totalorder %s639_s7, 3  ;;  %s762_s11 = smul.u32 144, %s991_s12 }
  0x29   : > { %419 = vmatpush.bf16.msra.mxu1 %v703_v17  ;;  %756 = vmatpush.bf16.msra.mxu3 %v703_v17  ;;  %v253_v51 = vld [vmem:[%s1135_s0 + $0x20] sm:$0xf]  ;;  %v726_v53 = vld [vmem:[%s1135_s0 + $0x8] sm:$0xff]  ;;  %s745_s12 = sshll.u32 (%p976_p9), %s893_s15, 4 }
  0x2a   : > { %v293_v52 = vunpack.c.l.b16 %v253_v51  ;;  %s1150_s7 = smov (!%p239_p1, %s639_s7), 3  ;;  %s1053_s18 = scalar_lea.vmem [#allocation4], %s762_s11 }
  0x2b   : > { %s241_s10 = scalar_lea.vmem %s1137_s2, %s1150_s7  ;;  %s1081_s21 = scalar_lea.vmem (%p976_p9), %s1138_s3, %s745_s12 }
  0x2c   : > { %749 = vmatpush.bf16.msra.mxu2 %v691_v22  ;;  %387 = vmatpush.bf16.msra.mxu0 %v691_v22  ;;  %v298_v54 = vpack.c.b16 %v293_v52, %v293_v52  ;;  %v270_v55 = vld [vmem:[%s241_s10] sm:$0x3] }
  0x2d   : > { %420 = vmatpush.bf16.msra.mxu1 %v695_v23  ;;  %757 = vmatpush.bf16.msra.mxu3 %v695_v23  ;;  %v273_v56 = vperm.slane %v270_v55, 1  ;;  %v272_v57 = vperm.slane %v270_v55, 0 }
  0x30   : > { %750 = vmatpush.bf16.msra.mxu2 %v683_v28  ;;  %388 = vmatpush.bf16.msra.mxu0 %v683_v28 }
  0x31   : > { %421 = vmatpush.bf16.msra.mxu1 %v687_v29  ;;  %758 = vmatpush.bf16.msra.mxu3 %v687_v29 }
  0x34   : > { %751 = vmatpush.bf16.msra.mxu2 %v675_v34  ;;  %389 = vmatpush.bf16.msra.mxu0 %v675_v34 }
  0x35   : > { %422 = vmatpush.bf16.msra.mxu1 %v679_v35  ;;  %759 = vmatpush.bf16.msra.mxu3 %v679_v35 }
  0x38   : > { %752 = vmatpush.bf16.msra.mxu2 %v667_v40  ;;  %390 = vmatpush.bf16.msra.mxu0 %v667_v40 }
  0x39   : > { %423 = vmatpush.bf16.msra.mxu1 %v671_v41  ;;  %760 = vmatpush.bf16.msra.mxu3 %v671_v41 }
  0x3c   : > { %753 = vmatpush.bf16.msra.mxu2 %v659_v46  ;;  %391 = vmatpush.bf16.msra.mxu0 %v659_v46 }
  0x3d   : > { %424 = vmatpush.bf16.msra.mxu1 %v663_v47  ;;  %761 = vmatpush.bf16.msra.mxu3 %v663_v47 }
  0x3f   : > { %402 = vmatmul.bf16.vlgmr.msra.gmra.mxu2 %v727_v48  ;;  %392 = vmatmul.bf16.vlgmr.msra.gmra.mxu0 %v725_v49 }
  0x40   : > { %425 = vmatmul.bf16.vlgmr.msra.gmra.mxu1 %v725_v49  ;;  %440 = vmatmul.bf16.vlgmr.msra.gmra.mxu3 %v728_v50 }
  0x4f   : > { %407 = vmatmul.bf16.gmra.mxu2 %v728_v50  ;;  %397 = vmatmul.bf16.gmra.mxu0 %v726_v53 }
  0x50   : > { %430 = vmatmul.bf16.gmra.mxu1 %v726_v53  ;;  %445 = vmatmul.bf16.gmra.mxu3 %v298_v54 }
  0x5f   : > { %412 = vmatmul.bf16.gmra.mxu2 %v298_v54 }
  0x60   : > { %435 = vmatmul.bf16.gmra.mxu1 %v727_v48 }
  0xbc   : > { %v393_v58 = vpop.f32.mrf.mxu0 }
  0xbd   : > { %v426_v59 = vpop.f32.mrf.mxu1  ;;  %v394_v60 = vadd.f32 %v393_v58, %v272_v57 }
  0xbe   : > { %v427_v61 = vadd.f32 %v426_v59, %v273_v56 }
  0xbf   : > { %450 = vst [vmem:[%s1053_s18] sm:$0xff] %v394_v60 }
  0xc0   : > { %451 = vst [vmem:[%s1053_s18 + $0x8] sm:$0xff] %v427_v61 }
  0xc2   : > { %v403_v62 = vpop.f32.mrf.mxu2 }
  0xc3   : > { %v404_v63 = vadd.f32 %v403_v62, %v272_v57  ;;  %v441_v0 = vpop.f32.mrf.mxu3 }
  0xc4   : > { %v442_v1 = vadd.f32 %v441_v0, %v273_v56  ;;  %v395_v2 = vpop.f32.mrf.mxu0 }
  0xc5   : > { %458 = vst [vmem:[%s1053_s18 + $0x40] sm:$0xff] %v404_v63  ;;  %v428_v3 = vpop.f32.mrf.mxu1  ;;  %v396_v4 = vadd.f32 %v395_v2, %v272_v57 }
  0xc6   : > { %v429_v5 = vadd.f32 %v428_v3, %v273_v56  ;;  %463 = vst [vmem:[%s1053_s18 + $0x68] sm:$0xff] %v442_v1  ;;  %v493_v32 = vld [vmem:[%s1053_s18] sm:$0xff] (%p976_p9) }
  0xc7   : > { %452 = vst [vmem:[%s1053_s18 + $0x10] sm:$0xff] %v396_v4  ;;  %v495_v33 = vld [vmem:[%s1053_s18 + $0x8] sm:$0xff] (%p976_p9) }
  0xc8   : > { %453 = vst [vmem:[%s1053_s18 + $0x18] sm:$0xff] %v429_v5 }
  0xc9   : > { %494 = vst [vmem:[%s1081_s21] sm:$0xff] (%p976_p9), %v493_v32 }
  0xca   : > { %v405_v6 = vpop.f32.mrf.mxu2  ;;  %496 = vst [vmem:[%s1081_s21 + $0x8] sm:$0xff] (%p976_p9), %v495_v33 }
  0xcb   : > { %v406_v7 = vadd.f32 %v405_v6, %v272_v57  ;;  %v443_v8 = vpop.f32.mrf.mxu3 }
  0xcc   : > { %v444_v9 = vadd.f32 %v443_v8, %v273_v56  ;;  %v398_v10 = vpop.f32.mrf.mxu0  ;;  %v509_v40 = vld [vmem:[%s1053_s18 + $0x40] sm:$0xff] (%p976_p9) }
  0xcd   : > { %460 = vst [vmem:[%s1053_s18 + $0x50] sm:$0xff] %v406_v7  ;;  %v431_v11 = vpop.f32.mrf.mxu1  ;;  %v399_v12 = vadd.f32 %v398_v10, %v272_v57  ;;  %v519_v45 = vld [vmem:[%s1053_s18 + $0x68] sm:$0xff] (%p976_p9) }
  0xce   : > { %v432_v13 = vadd.f32 %v431_v11, %v273_v56  ;;  %465 = vst [vmem:[%s1053_s18 + $0x78] sm:$0xff] %v444_v9  ;;  %v497_v34 = vld [vmem:[%s1053_s18 + $0x10] sm:$0xff] (%p976_p9) }
  0xcf   : > { %454 = vst [vmem:[%s1053_s18 + $0x20] sm:$0xff] %v399_v12  ;;  %v499_v35 = vld [vmem:[%s1053_s18 + $0x18] sm:$0xff] (%p976_p9) }
  0xd0   : > { %455 = vst [vmem:[%s1053_s18 + $0x28] sm:$0xff] %v432_v13 }
  0xd1   : > { %498 = vst [vmem:[%s1081_s21 + $0x20] sm:$0xff] (%p976_p9), %v497_v34 }
  0xd2   : > { %v408_v14 = vpop.f32.mrf.mxu2  ;;  %500 = vst [vmem:[%s1081_s21 + $0x28] sm:$0xff] (%p976_p9), %v499_v35 }
  0xd3   : > { %v409_v15 = vadd.f32 %v408_v14, %v272_v57  ;;  %v446_v16 = vpop.f32.mrf.mxu3  ;;  %510 = vst [vmem:[%s1081_s21 + $0x80] sm:$0xff] (%p976_p9), %v509_v40 }
  0xd4   : > { %v447_v17 = vadd.f32 %v446_v16, %v273_v56  ;;  %v400_v18 = vpop.f32.mrf.mxu0  ;;  %v513_v42 = vld [vmem:[%s1053_s18 + $0x50] sm:$0xff] (%p976_p9)  ;;  %520 = vst [vmem:[%s1081_s21 + $0xc8] sm:$0xff] (%p976_p9), %v519_v45 }
  0xd5   : > { %462 = vst [vmem:[%s1053_s18 + $0x60] sm:$0xff] %v409_v15  ;;  %v433_v19 = vpop.f32.mrf.mxu1  ;;  %v401_v20 = vadd.f32 %v400_v18, %v272_v57  ;;  %v523_v47 = vld [vmem:[%s1053_s18 + $0x78] sm:$0xff] (%p976_p9) }
  0xd6   : > { %v434_v21 = vadd.f32 %v433_v19, %v273_v56  ;;  %467 = vst [vmem:[%s1053_s18 + $0x88] sm:$0xff] %v447_v17  ;;  %v501_v36 = vld [vmem:[%s1053_s18 + $0x20] sm:$0xff] (%p976_p9) }
  0xd7   : > { %456 = vst [vmem:[%s1053_s18 + $0x30] sm:$0xff] %v401_v20  ;;  %v503_v37 = vld [vmem:[%s1053_s18 + $0x28] sm:$0xff] (%p976_p9) }
  0xd8   : > { %457 = vst [vmem:[%s1053_s18 + $0x38] sm:$0xff] %v434_v21 }
  0xd9   : > { %502 = vst [vmem:[%s1081_s21 + $0x40] sm:$0xff] (%p976_p9), %v501_v36 }
  0xda   : > { %v410_v22 = vpop.f32.mrf.mxu2  ;;  %504 = vst [vmem:[%s1081_s21 + $0x48] sm:$0xff] (%p976_p9), %v503_v37 }
  0xdb   : > { %v411_v23 = vadd.f32 %v410_v22, %v272_v57  ;;  %v448_v24 = vpop.f32.mrf.mxu3  ;;  %514 = vst [vmem:[%s1081_s21 + $0xa0] sm:$0xff] (%p976_p9), %v513_v42 }
  0xdc   : > { %v517_v44 = vld [vmem:[%s1053_s18 + $0x60] sm:$0xff] (%p976_p9)  ;;  %524 = vst [vmem:[%s1081_s21 + $0xe8] sm:$0xff] (%p976_p9), %v523_v47 }
  0xdd   : > { %464 = vst [vmem:[%s1053_s18 + $0x70] sm:$0xff] %v411_v23  ;;  %v436_v25 = vpop.f32.mrf.mxu1  ;;  %v527_v49 = vld [vmem:[%s1053_s18 + $0x88] sm:$0xff] (%p976_p9) }
  0xde   : > { %v437_v26 = vadd.f32 %v436_v25, %v273_v56  ;;  %v505_v38 = vld [vmem:[%s1053_s18 + $0x30] sm:$0xff] (%p976_p9)  ;;  %518 = vst [vmem:[%s1081_s21 + $0xc0] sm:$0xff] (%p976_p9), %v517_v44 }
  0xdf   : > { %v507_v39 = vld [vmem:[%s1053_s18 + $0x38] sm:$0xff] (%p976_p9)  ;;  %506 = vst [vmem:[%s1081_s21 + $0x60] sm:$0xff] (%p976_p9), %v505_v38 }
  0xe0   : > { %459 = vst [vmem:[%s1053_s18 + $0x48] sm:$0xff] %v437_v26 }
  0xe1   : > { %508 = vst [vmem:[%s1081_s21 + $0x68] sm:$0xff] (%p976_p9), %v507_v39 }
  0xe2   : > { %v413_v27 = vpop.f32.mrf.mxu2  ;;  %528 = vst [vmem:[%s1081_s21 + $0x108] sm:$0xff] (%p976_p9), %v527_v49 }
  0xe3   : > { %v414_v28 = vadd.f32 %v413_v27, %v272_v57 }
  0xe4   : > { %v521_v46 = vld [vmem:[%s1053_s18 + $0x70] sm:$0xff] (%p976_p9) }
  0xe5   : > { %466 = vst [vmem:[%s1053_s18 + $0x80] sm:$0xff] %v414_v28  ;;  %v438_v29 = vpop.f32.mrf.mxu1 }
  0xe6   : > { %v439_v30 = vadd.f32 %v438_v29, %v273_v56  ;;  %474 = sbr.rel (!%p976_p9) target bundleno = 241 (0xf1), region = 40  ;;  %522 = vst [vmem:[%s1081_s21 + $0xe0] sm:$0xff] (%p976_p9), %v521_v46 }
  0xe7   : > { %v511_v41 = vld [vmem:[%s1053_s18 + $0x48] sm:$0xff] (%p976_p9) }
  0xe8   : > { %461 = vst [vmem:[%s1053_s18 + $0x58] sm:$0xff] %v439_v30 }
  0xe9   : > { %512 = vst [vmem:[%s1081_s21 + $0x88] sm:$0xff] (%p976_p9), %v511_v41 }
  0xea   : > { %v415_v31 = vpop.f32.mrf.mxu2 }
  0xec   : > { %v525_v48 = vld [vmem:[%s1053_s18 + $0x80] sm:$0xff] }
  0xed   : > { %526 = vst [vmem:[%s1081_s21 + $0x100] sm:$0xff] %v525_v48 }
  0xef   : > { %v515_v43 = vld [vmem:[%s1053_s18 + $0x58] sm:$0xff] }
  0xf0   : > { %516 = vst [vmem:[%s1081_s21 + $0xa8] sm:$0xff] %v515_v43 }
  0xf1 PF: > { %s16_s17 = sadd.s32 1, %s901_s17   ;;  %s1142_s12 = smov %s885_s13 }
  0xf2   : > { %p13_p2 = scmp.ge.s32.totalorder %s16_s17, 4   ;;  %s1143_s13 = smov %s889_s14 }
  0xf3   : > { %s1144_s14 = smov %s974_s24  ;;  %s1145_s15 = smov %s897_s16 }
  0xf4   : > { %s1146_s16 = smov %s1148_s19  ;;  %15 = sbr.rel (!%p13_p2) target bundleno = 4 (0x4), region = 101 }
  0xf9   :  { %544 = vsyncpa [#allocation3], 1 }
  0xfa   :  { %546 = vsyncpa [#allocation3 + $0x1], 1 }

// kernel: decoder_lstm_forward.5
= control target key start
LH: loop header
LB: loop body
LE: loop exit
PB: predicated region body
PF: predicated region fallthrough
CT: control target
= control target key end

     0   :  { %s932_s12 = smov 0   ;;  %s934_s13 = smov 0   ;;  %s1137_s0 = inlined_call_operand.vmem [shape: bf16[72,128], index: 0, kind: input, shape index: {}]   ;;  %s1138_s1 = inlined_call_operand.vmem [shape: bf16[128,512], index: 1, kind: input, shape index: {}]   ;;  %s1139_s2 = inlined_call_operand.vmem [shape: f32[1,512], index: 2, kind: input, shape index: {}]   ;;  %s1140_s3 = inlined_call_operand.vmem [shape: f32[72,512], index: 3, kind: output, shape index: {}]  }
   0x1   :  { %s936_s14 = smov 0   ;;  %s938_s15 = smov 0  }
   0x2   :  { %s940_s16 = smov 0  }
   0x3 LB: > { %s22_s17 = sadd.s32 1, %s906_s15  ;;  %s698_s18 = sadd.s32 4294967295, %s910_s16   ;;  %s910_s16 = sphi %s940_s16, %s13_s16   ;;  %s906_s15 = sphi %s938_s15, %s1145_s15   ;;  %s902_s14 = sphi %s936_s14, %s1144_s14   ;;  %s898_s13 = sphi %s934_s13, %s1143_s13   ;;  %s894_s12 = sphi %s932_s12, %s1142_s12  }
   0x4   : > { %p23_p0 = scmp.ge.s32.totalorder %s22_s17, 2  ;;  %p65_p1 = scmp.ne.s32.totalorder %s898_s13, %s894_s12 }
   0x5   : > { %p66_p2 = scmp.eq.s32.totalorder %s910_s16, 0  ;;  %p123_p4 = scmp.eq.s32.totalorder %s698_s18, 1 }
   0x6   : > { %s1147_s17 = smov (%p23_p0, %s22_s17), 0  ;;  %s58_s20 = sadd.s32 1, %s898_s13 }
   0x7   : > { %p67_p3 = por %p66_p2, %p65_p1  ;;  %s55_s19 = ssub.s32 %s906_s15, %s1147_s17 }
   0x8   : > { %p56_p5 = scmp.eq.s32.totalorder %s55_s19, 0  ;;  %p967_p6 = por %p123_p4, %p65_p1 }
   0x9   : > { %p702_p7 = scmp.ge.s32.totalorder %s910_s16, 2 }
   0xa   : > { %s972_s22 = scalar_select %p56_p5, %s898_s13, %s58_s20  }
   0xb   : > { %154 = sbr.rel (%p702_p7) target bundleno = 36 (0x24), region = 20 }
  0x10   : > { %157 = sbr.rel (!%p67_p3) target bundleno = 36 (0x24), region = 24  ;;  %s159_s23 = sand.u32 (%p67_p3), 1, %s898_s13  }
  0x11   : > { %s793_s24 = sshll.u32 (%p67_p3), %s906_s15, 3  ;;  %s703_s25 = sshll.u32 (%p67_p3), %s159_s23, 7 }
  0x12   : > { %s980_s28 = scalar_lea.vmem (%p67_p3), %s1138_s1, %s793_s24  ;;  %s161_s29 = scalar_lea.vmem (%p67_p3), [#allocation2], %s703_s25 }
  0x13   : > { %v223_v0 = vld [vmem:[%s980_s28] sm:$0xff] (%p67_p3)  ;;  %v225_v1 = vld [vmem:[%s980_s28 + $0x10] sm:$0xff] (%p67_p3) }
  0x14   : > { %v227_v2 = vld [vmem:[%s980_s28 + $0x20] sm:$0xff] (%p67_p3)  ;;  %224 = vst [vmem:[%s161_s29] sm:$0xff] (%p67_p3), %v223_v0  ;;  %v229_v3 = vld [vmem:[%s980_s28 + $0x30] sm:$0xff] (%p67_p3) }
  0x15   : > { %226 = vst [vmem:[%s161_s29 + $0x8] sm:$0xff] %v225_v1  ;;  %v231_v4 = vld [vmem:[%s980_s28 + $0x40] sm:$0xff]  ;;  %v233_v5 = vld [vmem:[%s980_s28 + $0x50] sm:$0xff] }
  0x16   : > { %228 = vst [vmem:[%s161_s29 + $0x10] sm:$0xff] %v227_v2  ;;  %v235_v6 = vld [vmem:[%s980_s28 + $0x60] sm:$0xff]  ;;  %v237_v7 = vld [vmem:[%s980_s28 + $0x70] sm:$0xff] }
  0x17   : > { %230 = vst [vmem:[%s161_s29 + $0x18] sm:$0xff] %v229_v3  ;;  %v239_v8 = vld [vmem:[%s980_s28 + $0x80] sm:$0xff]  ;;  %v241_v9 = vld [vmem:[%s980_s28 + $0x90] sm:$0xff] }
  0x18   : > { %232 = vst [vmem:[%s161_s29 + $0x20] sm:$0xff] %v231_v4  ;;  %v243_v10 = vld [vmem:[%s980_s28 + $0xa0] sm:$0xff]  ;;  %v245_v11 = vld [vmem:[%s980_s28 + $0xb0] sm:$0xff] }
  0x19   : > { %234 = vst [vmem:[%s161_s29 + $0x28] sm:$0xff] %v233_v5  ;;  %v247_v12 = vld [vmem:[%s980_s28 + $0xc0] sm:$0xff]  ;;  %v249_v13 = vld [vmem:[%s980_s28 + $0xd0] sm:$0xff] }
  0x1a   : > { %236 = vst [vmem:[%s161_s29 + $0x30] sm:$0xff] %v235_v6  ;;  %v251_v14 = vld [vmem:[%s980_s28 + $0xe0] sm:$0xff]  ;;  %v253_v15 = vld [vmem:[%s980_s28 + $0xf0] sm:$0xff] }
  0x1b   : > { %238 = vst [vmem:[%s161_s29 + $0x38] sm:$0xff] %v237_v7 }
  0x1c   : > { %240 = vst [vmem:[%s161_s29 + $0x40] sm:$0xff] %v239_v8 }
  0x1d   : > { %242 = vst [vmem:[%s161_s29 + $0x48] sm:$0xff] %v241_v9 }
  0x1e   : > { %244 = vst [vmem:[%s161_s29 + $0x50] sm:$0xff] %v243_v10 }
  0x1f   : > { %246 = vst [vmem:[%s161_s29 + $0x58] sm:$0xff] %v245_v11 }
  0x20   : > { %248 = vst [vmem:[%s161_s29 + $0x60] sm:$0xff] %v247_v12 }
  0x21   : > { %250 = vst [vmem:[%s161_s29 + $0x68] sm:$0xff] %v249_v13 }
  0x22   : > { %252 = vst [vmem:[%s161_s29 + $0x70] sm:$0xff] %v251_v14 }
  0x23   : > { %254 = vst [vmem:[%s161_s29 + $0x78] sm:$0xff] %v253_v15 }
  0x24 PF: > { %p706_p8 = scmp.ge.s32.totalorder %s910_s16, 1  ;;  %p267_p9 = scmp.lt.s32.totalorder %s910_s16, 3 }
  0x26   : > { %p268_p10 = pnand %p706_p8, %p267_p9 }
  0x27   : > { %s274_s30 = sand.u32 (!%p268_p10), 1, %s894_s12   ;;  %s708_s24 = sshll.u32 (!%p268_p10), %s902_s14, 1 }
  0x28   : > { %271 = sbr.rel (%p268_p10) target bundleno = 257 (0x101), region = 66  ;;  %s707_s4 = sshll.u32 (!%p268_p10), %s274_s30, 7 }
  0x29   : > { %s1003_s5 = scalar_lea.vmem (!%p268_p10), [#allocation2], %s707_s4  ;;  %p313_p11 = scmp.lt.s32.totalorder (!%p268_p10), %s708_s24, 3 }
  0x2a   : > { %s831_s28 = smul.u32 (!%p268_p10), 144, %s274_s30 }
  0x2c   : > { %s1058_s29 = scalar_lea.vmem (!%p268_p10), [#allocation3], %s831_s28 }
  0x2d   : > { %v783_v16 = vld [vmem:[%s1003_s5 + $0x70] sm:$0xf]  ;;  %v813_v17 = vld [vmem:[%s1003_s5 + $0x74] sm:$0xf0]  ;;  %v812_v18 = vld [vmem:[%s1003_s5 + $0x74] sm:$0xf] }
  0x2e   : > { %v784_v19 = vor.u32 %v813_v17, %v783_v16  ;;  %v785_v20 = vld [vmem:[%s1003_s5 + $0x78] sm:$0xf0]  ;;  %v775_v21 = vld [vmem:[%s1003_s5 + $0x60] sm:$0xf]  ;;  %v811_v22 = vld [vmem:[%s1003_s5 + $0x64] sm:$0xf0] }
  0x2f   : > { %v788_v23 = vor.u32 %v812_v18, %v785_v20  ;;  %v810_v24 = vld [vmem:[%s1003_s5 + $0x64] sm:$0xf]  ;;  %v777_v25 = vld [vmem:[%s1003_s5 + $0x68] sm:$0xf0]  ;;  %v776_v26 = vor.u32 %v811_v22, %v775_v21  ;;  %v767_v28 = vld [vmem:[%s1003_s5 + $0x50] sm:$0xf] }
  0x30   : > { %815 = vmatpush.bf16.msra.mxu2 %v784_v19  ;;  %458 = vmatpush.bf16.msra.mxu0 %v784_v19  ;;  %v780_v27 = vor.u32 %v810_v24, %v777_v25  ;;  %v809_v29 = vld [vmem:[%s1003_s5 + $0x54] sm:$0xf0]  ;;  %v808_v30 = vld [vmem:[%s1003_s5 + $0x54] sm:$0xf]  ;;  %v769_v31 = vld [vmem:[%s1003_s5 + $0x58] sm:$0xf0] }
  0x31   : > { %491 = vmatpush.bf16.msra.mxu1 %v788_v23  ;;  %823 = vmatpush.bf16.msra.mxu3 %v788_v23  ;;  %v768_v32 = vor.u32 %v809_v29, %v767_v28  ;;  %v772_v33 = vor.u32 %v808_v30, %v769_v31  ;;  %v759_v34 = vld [vmem:[%s1003_s5 + $0x40] sm:$0xf]  ;;  %v807_v35 = vld [vmem:[%s1003_s5 + $0x44] sm:$0xf0]  ;;  %v806_v36 = vld [vmem:[%s1003_s5 + $0x44] sm:$0xf] }
  0x32   : > { %v761_v37 = vld [vmem:[%s1003_s5 + $0x48] sm:$0xf0]  ;;  %v760_v38 = vor.u32 %v807_v35, %v759_v34  ;;  %v751_v40 = vld [vmem:[%s1003_s5 + $0x30] sm:$0xf]  ;;  %v805_v41 = vld [vmem:[%s1003_s5 + $0x34] sm:$0xf0] }
  0x33   : > { %v764_v39 = vor.u32 %v806_v36, %v761_v37  ;;  %v804_v42 = vld [vmem:[%s1003_s5 + $0x34] sm:$0xf]  ;;  %v753_v43 = vld [vmem:[%s1003_s5 + $0x38] sm:$0xf0]  ;;  %v752_v44 = vor.u32 %v805_v41, %v751_v40  ;;  %v743_v46 = vld [vmem:[%s1003_s5 + $0x20] sm:$0xf] }
  0x34   : > { %816 = vmatpush.bf16.msra.mxu2 %v776_v26  ;;  %459 = vmatpush.bf16.msra.mxu0 %v776_v26  ;;  %v756_v45 = vor.u32 %v804_v42, %v753_v43  ;;  %v803_v47 = vld [vmem:[%s1003_s5 + $0x24] sm:$0xf0]  ;;  %v802_v48 = vld [vmem:[%s1003_s5 + $0x24] sm:$0xf]  ;;  %v745_v49 = vld [vmem:[%s1003_s5 + $0x28] sm:$0xf0] }
  0x35   : > { %492 = vmatpush.bf16.msra.mxu1 %v780_v27  ;;  %824 = vmatpush.bf16.msra.mxu3 %v780_v27  ;;  %v744_v50 = vor.u32 %v803_v47, %v743_v46  ;;  %v748_v51 = vor.u32 %v802_v48, %v745_v49  ;;  %v735_v52 = vld [vmem:[%s1003_s5 + $0x10] sm:$0xf]  ;;  %v801_v53 = vld [vmem:[%s1003_s5 + $0x14] sm:$0xf0]  ;;  %v800_v54 = vld [vmem:[%s1003_s5 + $0x14] sm:$0xf] }
  0x36   : > { %v737_v55 = vld [vmem:[%s1003_s5 + $0x18] sm:$0xf0]  ;;  %v736_v56 = vor.u32 %v801_v53, %v735_v52  ;;  %v727_v58 = vld [vmem:[%s1003_s5] sm:$0xf]  ;;  %v799_v59 = vld [vmem:[%s1003_s5 + $0x4] sm:$0xf0] }
  0x37   : > { %v740_v57 = vor.u32 %v800_v54, %v737_v55  ;;  %v798_v60 = vld [vmem:[%s1003_s5 + $0x4] sm:$0xf]  ;;  %v729_v61 = vld [vmem:[%s1003_s5 + $0x8] sm:$0xf0]  ;;  %v728_v62 = vor.u32 %v799_v59, %v727_v58  ;;  %v796_v0 = vld [vmem:[%s1137_s0 + $0x10] sm:$0xff]  ;;  %s1149_s24 = smov (!%p313_p11, %s708_s24), 3 }
  0x38   : > { %817 = vmatpush.bf16.msra.mxu2 %v768_v32  ;;  %460 = vmatpush.bf16.msra.mxu0 %v768_v32  ;;  %v732_v63 = vor.u32 %v798_v60, %v729_v61  ;;  %v794_v1 = vld [vmem:[%s1137_s0] sm:$0xff]  ;;  %v797_v2 = vld [vmem:[%s1137_s0 + $0x18] sm:$0xff]  ;;  %v795_v5 = vld [vmem:[%s1137_s0 + $0x8] sm:$0xff]  ;;  %s315_s27 = scalar_lea.vmem %s1139_s2, %s1149_s24  ;;  %s814_s12 = sshll.u32 (%p967_p6), %s902_s14, 4 }
  0x39   : > { %493 = vmatpush.bf16.msra.mxu1 %v772_v33  ;;  %825 = vmatpush.bf16.msra.mxu3 %v772_v33  ;;  %v327_v3 = vld [vmem:[%s1137_s0 + $0x20] sm:$0xf]  ;;  %s1086_s5 = scalar_lea.vmem (%p967_p6), %s1140_s3, %s814_s12 }
  0x3a   : > { %v367_v4 = vunpack.c.l.b16 %v327_v3  ;;  %v344_v7 = vld [vmem:[%s315_s27] sm:$0x3] }
  0x3b   : > { %v347_v8 = vperm.slane %v344_v7, 1  ;;  %v346_v9 = vperm.slane %v344_v7, 0 }
  0x3c   : > { %818 = vmatpush.bf16.msra.mxu2 %v760_v38  ;;  %461 = vmatpush.bf16.msra.mxu0 %v760_v38  ;;  %v372_v6 = vpack.c.b16 %v367_v4, %v367_v4 }
  0x3d   : > { %494 = vmatpush.bf16.msra.mxu1 %v764_v39  ;;  %826 = vmatpush.bf16.msra.mxu3 %v764_v39 }
  0x40   : > { %819 = vmatpush.bf16.msra.mxu2 %v752_v44  ;;  %462 = vmatpush.bf16.msra.mxu0 %v752_v44 }
  0x41   : > { %495 = vmatpush.bf16.msra.mxu1 %v756_v45  ;;  %827 = vmatpush.bf16.msra.mxu3 %v756_v45 }
  0x44   : > { %820 = vmatpush.bf16.msra.mxu2 %v744_v50  ;;  %463 = vmatpush.bf16.msra.mxu0 %v744_v50 }
  0x45   : > { %496 = vmatpush.bf16.msra.mxu1 %v748_v51  ;;  %828 = vmatpush.bf16.msra.mxu3 %v748_v51 }
  0x48   : > { %821 = vmatpush.bf16.msra.mxu2 %v736_v56  ;;  %464 = vmatpush.bf16.msra.mxu0 %v736_v56 }
  0x49   : > { %497 = vmatpush.bf16.msra.mxu1 %v740_v57  ;;  %829 = vmatpush.bf16.msra.mxu3 %v740_v57 }
  0x4c   : > { %822 = vmatpush.bf16.msra.mxu2 %v728_v62  ;;  %465 = vmatpush.bf16.msra.mxu0 %v728_v62 }
  0x4d   : > { %498 = vmatpush.bf16.msra.mxu1 %v732_v63  ;;  %830 = vmatpush.bf16.msra.mxu3 %v732_v63 }
  0x4f   : > { %476 = vmatmul.bf16.vlgmr.msra.gmra.mxu2 %v796_v0  ;;  %466 = vmatmul.bf16.vlgmr.msra.gmra.mxu0 %v794_v1 }
  0x50   : > { %499 = vmatmul.bf16.vlgmr.msra.gmra.mxu1 %v794_v1  ;;  %514 = vmatmul.bf16.vlgmr.msra.gmra.mxu3 %v797_v2 }
  0x5f   : > { %481 = vmatmul.bf16.gmra.mxu2 %v797_v2  ;;  %471 = vmatmul.bf16.gmra.mxu0 %v795_v5 }
  0x60   : > { %504 = vmatmul.bf16.gmra.mxu1 %v795_v5  ;;  %519 = vmatmul.bf16.gmra.mxu3 %v372_v6 }
  0x6f   : > { %486 = vmatmul.bf16.gmra.mxu2 %v372_v6 }
  0x70   : > { %509 = vmatmul.bf16.gmra.mxu1 %v796_v0 }
  0xcc   : > { %v467_v10 = vpop.f32.mrf.mxu0 }
  0xcd   : > { %v500_v11 = vpop.f32.mrf.mxu1  ;;  %v468_v12 = vadd.f32 %v467_v10, %v346_v9 }
  0xce   : > { %v501_v13 = vadd.f32 %v500_v11, %v347_v8 }
  0xcf   : > { %524 = vst [vmem:[%s1058_s29] sm:$0xff] %v468_v12 }
  0xd0   : > { %525 = vst [vmem:[%s1058_s29 + $0x8] sm:$0xff] %v501_v13 }
  0xd2   : > { %v477_v14 = vpop.f32.mrf.mxu2 }
  0xd3   : > { %v478_v15 = vadd.f32 %v477_v14, %v346_v9  ;;  %v515_v16 = vpop.f32.mrf.mxu3 }
  0xd4   : > { %v516_v17 = vadd.f32 %v515_v16, %v347_v8  ;;  %v469_v18 = vpop.f32.mrf.mxu0 }
  0xd5   : > { %532 = vst [vmem:[%s1058_s29 + $0x40] sm:$0xff] %v478_v15  ;;  %v502_v19 = vpop.f32.mrf.mxu1  ;;  %v470_v20 = vadd.f32 %v469_v18, %v346_v9 }
  0xd6   : > { %v503_v21 = vadd.f32 %v502_v19, %v347_v8  ;;  %537 = vst [vmem:[%s1058_s29 + $0x68] sm:$0xff] %v516_v17  ;;  %v567_v48 = vld [vmem:[%s1058_s29] sm:$0xff] (%p967_p6) }
  0xd7   : > { %526 = vst [vmem:[%s1058_s29 + $0x10] sm:$0xff] %v470_v20  ;;  %v569_v49 = vld [vmem:[%s1058_s29 + $0x8] sm:$0xff] (%p967_p6) }
  0xd8   : > { %527 = vst [vmem:[%s1058_s29 + $0x18] sm:$0xff] %v503_v21 }
  0xd9   : > { %568 = vst [vmem:[%s1086_s5] sm:$0xff] (%p967_p6), %v567_v48 }
  0xda   : > { %v479_v22 = vpop.f32.mrf.mxu2  ;;  %570 = vst [vmem:[%s1086_s5 + $0x8] sm:$0xff] (%p967_p6), %v569_v49 }
  0xdb   : > { %v480_v23 = vadd.f32 %v479_v22, %v346_v9  ;;  %v517_v24 = vpop.f32.mrf.mxu3 }
  0xdc   : > { %v518_v25 = vadd.f32 %v517_v24, %v347_v8  ;;  %v472_v26 = vpop.f32.mrf.mxu0  ;;  %v583_v56 = vld [vmem:[%s1058_s29 + $0x40] sm:$0xff] (%p967_p6) }
  0xdd   : > { %534 = vst [vmem:[%s1058_s29 + $0x50] sm:$0xff] %v480_v23  ;;  %v505_v27 = vpop.f32.mrf.mxu1  ;;  %v473_v28 = vadd.f32 %v472_v26, %v346_v9  ;;  %v593_v61 = vld [vmem:[%s1058_s29 + $0x68] sm:$0xff] (%p967_p6) }
  0xde   : > { %v506_v29 = vadd.f32 %v505_v27, %v347_v8  ;;  %539 = vst [vmem:[%s1058_s29 + $0x78] sm:$0xff] %v518_v25  ;;  %v571_v50 = vld [vmem:[%s1058_s29 + $0x10] sm:$0xff] (%p967_p6) }
  0xdf   : > { %528 = vst [vmem:[%s1058_s29 + $0x20] sm:$0xff] %v473_v28  ;;  %v573_v51 = vld [vmem:[%s1058_s29 + $0x18] sm:$0xff] (%p967_p6) }
  0xe0   : > { %529 = vst [vmem:[%s1058_s29 + $0x28] sm:$0xff] %v506_v29 }
  0xe1   : > { %572 = vst [vmem:[%s1086_s5 + $0x20] sm:$0xff] (%p967_p6), %v571_v50 }
  0xe2   : > { %v482_v30 = vpop.f32.mrf.mxu2  ;;  %574 = vst [vmem:[%s1086_s5 + $0x28] sm:$0xff] (%p967_p6), %v573_v51 }
  0xe3   : > { %v483_v31 = vadd.f32 %v482_v30, %v346_v9  ;;  %v520_v32 = vpop.f32.mrf.mxu3  ;;  %584 = vst [vmem:[%s1086_s5 + $0x80] sm:$0xff] (%p967_p6), %v583_v56 }
  0xe4   : > { %v521_v33 = vadd.f32 %v520_v32, %v347_v8  ;;  %v474_v34 = vpop.f32.mrf.mxu0  ;;  %v587_v58 = vld [vmem:[%s1058_s29 + $0x50] sm:$0xff] (%p967_p6)  ;;  %594 = vst [vmem:[%s1086_s5 + $0xc8] sm:$0xff] (%p967_p6), %v593_v61 }
  0xe5   : > { %536 = vst [vmem:[%s1058_s29 + $0x60] sm:$0xff] %v483_v31  ;;  %v507_v35 = vpop.f32.mrf.mxu1  ;;  %v475_v36 = vadd.f32 %v474_v34, %v346_v9  ;;  %v597_v63 = vld [vmem:[%s1058_s29 + $0x78] sm:$0xff] (%p967_p6) }
  0xe6   : > { %v508_v37 = vadd.f32 %v507_v35, %v347_v8  ;;  %541 = vst [vmem:[%s1058_s29 + $0x88] sm:$0xff] %v521_v33  ;;  %v575_v52 = vld [vmem:[%s1058_s29 + $0x20] sm:$0xff] (%p967_p6) }
  0xe7   : > { %530 = vst [vmem:[%s1058_s29 + $0x30] sm:$0xff] %v475_v36  ;;  %v577_v53 = vld [vmem:[%s1058_s29 + $0x28] sm:$0xff] (%p967_p6) }
  0xe8   : > { %531 = vst [vmem:[%s1058_s29 + $0x38] sm:$0xff] %v508_v37 }
  0xe9   : > { %576 = vst [vmem:[%s1086_s5 + $0x40] sm:$0xff] (%p967_p6), %v575_v52 }
  0xea   : > { %v484_v38 = vpop.f32.mrf.mxu2  ;;  %578 = vst [vmem:[%s1086_s5 + $0x48] sm:$0xff] (%p967_p6), %v577_v53 }
  0xeb   : > { %v485_v39 = vadd.f32 %v484_v38, %v346_v9  ;;  %v522_v40 = vpop.f32.mrf.mxu3  ;;  %588 = vst [vmem:[%s1086_s5 + $0xa0] sm:$0xff] (%p967_p6), %v587_v58 }
  0xec   : > { %v591_v60 = vld [vmem:[%s1058_s29 + $0x60] sm:$0xff] (%p967_p6)  ;;  %598 = vst [vmem:[%s1086_s5 + $0xe8] sm:$0xff] (%p967_p6), %v597_v63 }
  0xed   : > { %538 = vst [vmem:[%s1058_s29 + $0x70] sm:$0xff] %v485_v39  ;;  %v510_v41 = vpop.f32.mrf.mxu1  ;;  %v601_v1 = vld [vmem:[%s1058_s29 + $0x88] sm:$0xff] (%p967_p6) }
  0xee   : > { %v511_v42 = vadd.f32 %v510_v41, %v347_v8  ;;  %v579_v54 = vld [vmem:[%s1058_s29 + $0x30] sm:$0xff] (%p967_p6)  ;;  %592 = vst [vmem:[%s1086_s5 + $0xc0] sm:$0xff] (%p967_p6), %v591_v60 }
  0xef   : > { %v581_v55 = vld [vmem:[%s1058_s29 + $0x38] sm:$0xff] (%p967_p6)  ;;  %580 = vst [vmem:[%s1086_s5 + $0x60] sm:$0xff] (%p967_p6), %v579_v54 }
  0xf0   : > { %533 = vst [vmem:[%s1058_s29 + $0x48] sm:$0xff] %v511_v42 }
  0xf1   : > { %582 = vst [vmem:[%s1086_s5 + $0x68] sm:$0xff] (%p967_p6), %v581_v55 }
  0xf2   : > { %v487_v43 = vpop.f32.mrf.mxu2  ;;  %602 = vst [vmem:[%s1086_s5 + $0x108] sm:$0xff] (%p967_p6), %v601_v1 }
  0xf3   : > { %v488_v44 = vadd.f32 %v487_v43, %v346_v9 }
  0xf4   : > { %v595_v62 = vld [vmem:[%s1058_s29 + $0x70] sm:$0xff] (%p967_p6) }
  0xf5   : > { %540 = vst [vmem:[%s1058_s29 + $0x80] sm:$0xff] %v488_v44  ;;  %v512_v45 = vpop.f32.mrf.mxu1 }
  0xf6   : > { %v513_v46 = vadd.f32 %v512_v45, %v347_v8  ;;  %548 = sbr.rel (!%p967_p6) target bundleno = 257 (0x101), region = 74  ;;  %596 = vst [vmem:[%s1086_s5 + $0xe0] sm:$0xff] (%p967_p6), %v595_v62 }
  0xf7   : > { %v585_v57 = vld [vmem:[%s1058_s29 + $0x48] sm:$0xff] (%p967_p6) }
  0xf8   : > { %535 = vst [vmem:[%s1058_s29 + $0x58] sm:$0xff] %v513_v46 }
  0xf9   : > { %586 = vst [vmem:[%s1086_s5 + $0x88] sm:$0xff] (%p967_p6), %v585_v57 }
  0xfa   : > { %v489_v47 = vpop.f32.mrf.mxu2 }
  0xfc   : > { %v599_v0 = vld [vmem:[%s1058_s29 + $0x80] sm:$0xff] }
  0xfd   : > { %600 = vst [vmem:[%s1086_s5 + $0x100] sm:$0xff] %v599_v0 }
  0xff   : > { %v589_v59 = vld [vmem:[%s1058_s29 + $0x58] sm:$0xff] }
 0x100   : > { %590 = vst [vmem:[%s1086_s5 + $0xa8] sm:$0xff] %v589_v59 }
 0x101 PF: > { %s13_s16 = sadd.s32 1, %s910_s16   ;;  %s1142_s12 = smov %s898_s13 }
 0x102   : > { %p10_p12 = scmp.ge.s32.totalorder %s13_s16, 4   ;;  %s1143_s13 = smov %s972_s22 }
 0x103   : > { %s1144_s14 = smov %s906_s15  ;;  %s1145_s15 = smov %s1147_s17 }
 0x104   :  { %12 = sbr.rel (!%p10_p12) target bundleno = 3 (0x3), region = 134 }

// kernel: decoder_lstm_forward.9
= control target key start
LH: loop header
LB: loop body
LE: loop exit
PB: predicated region body
PF: predicated region fallthrough
CT: control target
= control target key end

     0   :  { %s339_s1 = inlined_call_operand.vmem [shape: bf16[128,128], index: 1, kind: input, shape index: {}]   ;;  %s340_s2 = inlined_call_operand.vmem [shape: f32[1,128], index: 2, kind: input, shape index: {}]   ;;  %s341_s0 = inlined_call_operand.vmem [shape: bf16[72,128], index: 0, kind: input, shape index: {}]   ;;  %s342_s3 = inlined_call_operand.vmem [shape: f32[72,128], index: 3, kind: output, shape index: {}]  }
   0x1   :  { %v224_v0 = vld [vmem:[%s339_s1 + $0x38] sm:$0xff]  ;;  %v223_v1 = vld [vmem:[%s339_s1 + $0x30] sm:$0xff]  ;;  %v222_v2 = vld [vmem:[%s339_s1 + $0x28] sm:$0xff] }
   0x2   :  { %227 = vmatpush.bf16.msra.mxu3 %v224_v0  ;;  %226 = vmatpush.bf16.msra.mxu2 %v224_v0  ;;  %v221_v3 = vld [vmem:[%s339_s1 + $0x20] sm:$0xff]  ;;  %v220_v4 = vld [vmem:[%s339_s1 + $0x18] sm:$0xff]  ;;  %v219_v5 = vld [vmem:[%s339_s1 + $0x10] sm:$0xff] }
   0x3   :  { %119 = vmatpush.bf16.msra.mxu0 %v224_v0  ;;  %225 = vmatpush.bf16.msra.mxu1 %v224_v0  ;;  %v218_v6 = vld [vmem:[%s339_s1 + $0x8] sm:$0xff]  ;;  %v217_v7 = vld [vmem:[%s339_s1] sm:$0xff]  ;;  %v216_v8 = vld [vmem:[%s341_s0 + $0x18] sm:$0xff] }
   0x4   :  { %v215_v9 = vld [vmem:[%s341_s0 + $0x10] sm:$0xff]  ;;  %v213_v10 = vld [vmem:[%s341_s0] sm:$0xff]  ;;  %v214_v11 = vld [vmem:[%s341_s0 + $0x8] sm:$0xff] }
   0x5   :  { %v22_v12 = vld [vmem:[%s341_s0 + $0x20] sm:$0xf] }
   0x6   :  { %230 = vmatpush.bf16.msra.mxu3 %v223_v1  ;;  %229 = vmatpush.bf16.msra.mxu2 %v223_v1  ;;  %v60_v13 = vunpack.c.l.b16 %v22_v12  ;;  %v249_v15 = vld [vmem:[%s340_s2] ss:$0 sm:$0xff] }
   0x7   :  { %120 = vmatpush.bf16.msra.mxu0 %v223_v1  ;;  %228 = vmatpush.bf16.msra.mxu1 %v223_v1 }
   0x8   :  { %v65_v14 = vpack.c.b16 %v60_v13, %v60_v13 }
   0xa   :  { %233 = vmatpush.bf16.msra.mxu3 %v222_v2  ;;  %232 = vmatpush.bf16.msra.mxu2 %v222_v2 }
   0xb   :  { %121 = vmatpush.bf16.msra.mxu0 %v222_v2  ;;  %231 = vmatpush.bf16.msra.mxu1 %v222_v2 }
   0xe   :  { %236 = vmatpush.bf16.msra.mxu3 %v221_v3  ;;  %235 = vmatpush.bf16.msra.mxu2 %v221_v3 }
   0xf   :  { %122 = vmatpush.bf16.msra.mxu0 %v221_v3  ;;  %234 = vmatpush.bf16.msra.mxu1 %v221_v3 }
  0x12   :  { %239 = vmatpush.bf16.msra.mxu3 %v220_v4  ;;  %238 = vmatpush.bf16.msra.mxu2 %v220_v4 }
  0x13   :  { %123 = vmatpush.bf16.msra.mxu0 %v220_v4  ;;  %237 = vmatpush.bf16.msra.mxu1 %v220_v4 }
  0x16   :  { %242 = vmatpush.bf16.msra.mxu3 %v219_v5  ;;  %241 = vmatpush.bf16.msra.mxu2 %v219_v5 }
  0x17   :  { %124 = vmatpush.bf16.msra.mxu0 %v219_v5  ;;  %240 = vmatpush.bf16.msra.mxu1 %v219_v5 }
  0x1a   :  { %245 = vmatpush.bf16.msra.mxu3 %v218_v6  ;;  %244 = vmatpush.bf16.msra.mxu2 %v218_v6 }
  0x1b   :  { %125 = vmatpush.bf16.msra.mxu0 %v218_v6  ;;  %243 = vmatpush.bf16.msra.mxu1 %v218_v6 }
  0x1e   :  { %248 = vmatpush.bf16.msra.mxu3 %v217_v7  ;;  %247 = vmatpush.bf16.msra.mxu2 %v217_v7 }
  0x1f   :  { %126 = vmatpush.bf16.msra.mxu0 %v217_v7  ;;  %246 = vmatpush.bf16.msra.mxu1 %v217_v7 }
  0x21   :  { %142 = vmatmul.bf16.vlgmr.msra.gmra.mxu3 %v216_v8  ;;  %137 = vmatmul.bf16.vlgmr.msra.gmra.mxu2 %v215_v9 }
  0x22   :  { %127 = vmatmul.bf16.vlgmr.msra.gmra.mxu0 %v213_v10  ;;  %132 = vmatmul.bf16.vlgmr.msra.gmra.mxu1 %v214_v11 }
  0x31   :  { %147 = vmatmul.bf16.gmra.mxu3 %v65_v14 }
  0x9f   :  { %v128_v16 = vpop.f32.mrf.mxu0  ;;  %v133_v17 = vpop.f32.mrf.mxu1 }
  0xa0   :  { %v129_v18 = vadd.f32 %v249_v15, %v128_v16  ;;  %v134_v19 = vadd.f32 %v249_v15, %v133_v17 }
  0xa2   :  { %152 = vst [vmem:[%s342_s3] sm:$0xff] %v129_v18 }
  0xa3   :  { %154 = vst [vmem:[%s342_s3 + $0x10] sm:$0xff] %v134_v19 }
  0xa4   :  { %v143_v20 = vpop.f32.mrf.mxu3  ;;  %v138_v21 = vpop.f32.mrf.mxu2 }
  0xa5   :  { %v144_v22 = vadd.f32 %v249_v15, %v143_v20  ;;  %v139_v23 = vadd.f32 %v249_v15, %v138_v21 }
  0xa7   :  { %158 = vst [vmem:[%s342_s3 + $0x30] sm:$0xff] %v144_v22  ;;  %v130_v24 = vpop.f32.mrf.mxu0  ;;  %v135_v25 = vpop.f32.mrf.mxu1 }
  0xa8   :  { %156 = vst [vmem:[%s342_s3 + $0x20] sm:$0xff] %v139_v23  ;;  %v131_v26 = vadd.f32 %v249_v15, %v130_v24  ;;  %v136_v27 = vadd.f32 %v249_v15, %v135_v25 }
  0xaa   :  { %153 = vst [vmem:[%s342_s3 + $0x8] sm:$0xff] %v131_v26 }
  0xab   :  { %155 = vst [vmem:[%s342_s3 + $0x18] sm:$0xff] %v136_v27 }
  0xac   :  { %v145_v28 = vpop.f32.mrf.mxu3  ;;  %v140_v29 = vpop.f32.mrf.mxu2 }
  0xad   :  { %v146_v30 = vadd.f32 %v249_v15, %v145_v28  ;;  %v141_v31 = vadd.f32 %v249_v15, %v140_v29 }
  0xaf   :  { %159 = vst [vmem:[%s342_s3 + $0x38] sm:$0xff] %v146_v30 }
  0xb0   :  { %157 = vst [vmem:[%s342_s3 + $0x28] sm:$0xff] %v141_v31 }
  0xb4   :  { %v148_v32 = vpop.f32.mrf.mxu3 }
  0xb5   :  { %v149_v33 = vadd.f32 %v249_v15, %v148_v32 }
  0xb7   :  { %160 = vst [vmem:[%s342_s3 + $0x40] sm:$0xff] %v149_v33 }
  0xbc   :  { %v150_v34 = vpop.f32.mrf.mxu3 }

// kernel: decoder_lstm_forward.8
= control target key start
LH: loop header
LB: loop body
LE: loop exit
PB: predicated region body
PF: predicated region fallthrough
CT: control target
= control target key end

     0   :  { %7 = vsyncpa [#allocation3], 0  ;;  %s4582_s12 = smov [#allocation2]   ;;  %s4583_s14 = smov 256   ;;  %s4771_s0 = inlined_call_operand.vmem [shape: f32[9,8,512], index: 0, kind: input, shape index: {}]   ;;  %s4772_s1 = inlined_call_operand.hbm [shape: bf16[128,512], index: 1, kind: input, shape index: {}]   ;;  %s4773_s2 = inlined_call_operand.vmem [shape: f32[9,8,128], index: 2, kind: output, shape index: {}]  }
   0x1   :  { %s14_s11 = sshll.u32 %s4772_s1, 4  ;;  %s16_s13 = sshll.u32 %s4582_s12, 4  ;;  %s15_s11 = int_to_ptr.hbm [resolvable:$true] %s14_s11  ;;  %s17_s13 = int_to_ptr.vmem [resolvable:$true] %s16_s13 }
   0x2   :  { %s4584_s15 = smov 16  }
   0x3   :  { %22 = dma.hbm_to_vmem [thread:$0]  %s15_s11, 4096, %s17_s13, [#allocation3], %s4583_s14, %s4583_s14, %s4584_s15  }
   0x4   :  { %4580 = dma.done.wait [#allocation3], 4096  }
   0x5   :  { %4581 = vsyncadd [#allocation3], 4294963200  ;;  %v3015_v0 = vld [vmem:[#allocation2 + $0xe0] sm:$0xf]  ;;  %v4150_v1 = vld [vmem:[#allocation2 + $0xec] sm:$0xf0] }
   0x6   :  { %v4148_v2 = vld [vmem:[#allocation2 + $0xe4] sm:$0xf]  ;;  %v3016_v3 = vor.u32 %v4150_v1, %v3015_v0  ;;  %v3017_v4 = vld [vmem:[#allocation2 + $0xf0] sm:$0xf0]  ;;  %v4149_v5 = vld [vmem:[#allocation2 + $0xec] sm:$0xf] }
   0x7   :  { %v3025_v6 = vld [vmem:[#allocation2 + $0xf8] sm:$0xf0]  ;;  %v3020_v7 = vor.u32 %v4148_v2, %v3017_v4  ;;  %v2999_v9 = vld [vmem:[#allocation2 + $0xc0] sm:$0xf]  ;;  %v4146_v10 = vld [vmem:[#allocation2 + $0xcc] sm:$0xf0] }
   0x8   :  { %v3028_v8 = vor.u32 %v4149_v5, %v3025_v6  ;;  %v4144_v11 = vld [vmem:[#allocation2 + $0xc4] sm:$0xf]  ;;  %224 = vmatpush.bf16.msra.mxu0 %v3016_v3  ;;  %v3000_v12 = vor.u32 %v4146_v10, %v2999_v9  ;;  %v3001_v13 = vld [vmem:[#allocation2 + $0xd0] sm:$0xf0]  ;;  %v4145_v14 = vld [vmem:[#allocation2 + $0xcc] sm:$0xf] }
   0x9   :  { %v3009_v15 = vld [vmem:[#allocation2 + $0xd8] sm:$0xf0]  ;;  %237 = vmatpush.bf16.msra.mxu1 %v3020_v7  ;;  %v3004_v16 = vor.u32 %v4144_v11, %v3001_v13  ;;  %v3023_v18 = vld [vmem:[#allocation2 + $0xe8] sm:$0xf]  ;;  %v4151_v19 = vld [vmem:[#allocation2 + $0xf4] sm:$0xf0] }
   0xa   :  { %263 = vmatpush.bf16.msra.mxu3 %v3028_v8  ;;  %v3012_v17 = vor.u32 %v4145_v14, %v3009_v15  ;;  %v2983_v20 = vld [vmem:[#allocation2 + $0xa0] sm:$0xf]  ;;  %v3024_v21 = vor.u32 %v4151_v19, %v3023_v18  ;;  %v4142_v22 = vld [vmem:[#allocation2 + $0xac] sm:$0xf0]  ;;  %v4140_v23 = vld [vmem:[#allocation2 + $0xa4] sm:$0xf] }
   0xb   :  { %v2985_v24 = vld [vmem:[#allocation2 + $0xb0] sm:$0xf0]  ;;  %v4141_v25 = vld [vmem:[#allocation2 + $0xac] sm:$0xf]  ;;  %v2993_v26 = vld [vmem:[#allocation2 + $0xb8] sm:$0xf0]  ;;  %v2984_v28 = vor.u32 %v4142_v22, %v2983_v20 }
   0xc   :  { %v3007_v27 = vld [vmem:[#allocation2 + $0xc8] sm:$0xf]  ;;  %225 = vmatpush.bf16.msra.mxu0 %v3000_v12  ;;  %250 = vmatpush.bf16.msra.mxu2 %v3024_v21  ;;  %v4147_v29 = vld [vmem:[#allocation2 + $0xd4] sm:$0xf0]  ;;  %v2967_v30 = vld [vmem:[#allocation2 + $0x80] sm:$0xf]  ;;  %v2988_v32 = vor.u32 %v4140_v23, %v2985_v24  ;;  %v2996_v33 = vor.u32 %v4141_v25, %v2993_v26 }
   0xd   :  { %v4138_v31 = vld [vmem:[#allocation2 + $0x8c] sm:$0xf0]  ;;  %238 = vmatpush.bf16.msra.mxu1 %v3004_v16  ;;  %v3008_v34 = vor.u32 %v4147_v29, %v3007_v27  ;;  %v4136_v35 = vld [vmem:[#allocation2 + $0x84] sm:$0xf]  ;;  %v2969_v36 = vld [vmem:[#allocation2 + $0x90] sm:$0xf0] }
   0xe   :  { %264 = vmatpush.bf16.msra.mxu3 %v3012_v17  ;;  %v4137_v37 = vld [vmem:[#allocation2 + $0x8c] sm:$0xf]  ;;  %v2977_v38 = vld [vmem:[#allocation2 + $0x98] sm:$0xf0]  ;;  %v2991_v39 = vld [vmem:[#allocation2 + $0xa8] sm:$0xf]  ;;  %v2968_v41 = vor.u32 %v4138_v31, %v2967_v30  ;;  %v2972_v45 = vor.u32 %v4136_v35, %v2969_v36 }
   0xf   :  { %v4143_v40 = vld [vmem:[#allocation2 + $0xb4] sm:$0xf0]  ;;  %v2951_v43 = vld [vmem:[#allocation2 + $0x60] sm:$0xf]  ;;  %v4134_v44 = vld [vmem:[#allocation2 + $0x6c] sm:$0xf0]  ;;  %v2980_v46 = vor.u32 %v4137_v37, %v2977_v38 }
  0x10   :  { %226 = vmatpush.bf16.msra.mxu0 %v2984_v28  ;;  %251 = vmatpush.bf16.msra.mxu2 %v3008_v34  ;;  %v2992_v42 = vor.u32 %v4143_v40, %v2991_v39  ;;  %v4132_v47 = vld [vmem:[#allocation2 + $0x64] sm:$0xf]  ;;  %v2975_v48 = vld [vmem:[#allocation2 + $0x88] sm:$0xf]  ;;  %v4139_v49 = vld [vmem:[#allocation2 + $0x94] sm:$0xf0]  ;;  %v2952_v53 = vor.u32 %v4134_v44, %v2951_v43 }
  0x11   :  { %239 = vmatpush.bf16.msra.mxu1 %v2988_v32  ;;  %v2953_v50 = vld [vmem:[#allocation2 + $0x70] sm:$0xf0]  ;;  %v4133_v51 = vld [vmem:[#allocation2 + $0x6c] sm:$0xf]  ;;  %v2961_v52 = vld [vmem:[#allocation2 + $0x78] sm:$0xf0]  ;;  %v2976_v54 = vor.u32 %v4139_v49, %v2975_v48 }
  0x12   :  { %265 = vmatpush.bf16.msra.mxu3 %v2996_v33  ;;  %v2935_v55 = vld [vmem:[#allocation2 + $0x40] sm:$0xf]  ;;  %v4130_v56 = vld [vmem:[#allocation2 + $0x4c] sm:$0xf0]  ;;  %v2956_v57 = vor.u32 %v4132_v47, %v2953_v50  ;;  %v2964_v58 = vor.u32 %v4133_v51, %v2961_v52  ;;  %v4128_v59 = vld [vmem:[#allocation2 + $0x44] sm:$0xf] }
  0x13   :  { %v2959_v60 = vld [vmem:[#allocation2 + $0x68] sm:$0xf]  ;;  %v4135_v61 = vld [vmem:[#allocation2 + $0x74] sm:$0xf0]  ;;  %v2937_v62 = vld [vmem:[#allocation2 + $0x50] sm:$0xf0]  ;;  %v2936_v1 = vor.u32 %v4130_v56, %v2935_v55 }
  0x14   :  { %227 = vmatpush.bf16.msra.mxu0 %v2968_v41  ;;  %252 = vmatpush.bf16.msra.mxu2 %v2992_v42  ;;  %v4129_v63 = vld [vmem:[#allocation2 + $0x4c] sm:$0xf]  ;;  %v2945_v0 = vld [vmem:[#allocation2 + $0x58] sm:$0xf0]  ;;  %v2960_v2 = vor.u32 %v4135_v61, %v2959_v60  ;;  %v2919_v3 = vld [vmem:[#allocation2 + $0x20] sm:$0xf]  ;;  %v2940_v5 = vor.u32 %v4128_v59, %v2937_v62 }
  0x15   :  { %240 = vmatpush.bf16.msra.mxu1 %v2972_v45  ;;  %v4126_v4 = vld [vmem:[#allocation2 + $0x2c] sm:$0xf0]  ;;  %v2948_v6 = vor.u32 %v4129_v63, %v2945_v0  ;;  %v4124_v7 = vld [vmem:[#allocation2 + $0x24] sm:$0xf]  ;;  %v2943_v8 = vld [vmem:[#allocation2 + $0x48] sm:$0xf] }
  0x16   :  { %266 = vmatpush.bf16.msra.mxu3 %v2980_v46  ;;  %v4131_v9 = vld [vmem:[#allocation2 + $0x54] sm:$0xf0]  ;;  %v2921_v10 = vld [vmem:[#allocation2 + $0x30] sm:$0xf0]  ;;  %v4125_v11 = vld [vmem:[#allocation2 + $0x2c] sm:$0xf]  ;;  %v2920_v13 = vor.u32 %v4126_v4, %v2919_v3 }
  0x17   :  { %v2929_v12 = vld [vmem:[#allocation2 + $0x38] sm:$0xf0]  ;;  %v2944_v14 = vor.u32 %v4131_v9, %v2943_v8  ;;  %v2903_v15 = vld [vmem:[#allocation2] sm:$0xf]  ;;  %v4122_v16 = vld [vmem:[#allocation2 + $0xc] sm:$0xf0]  ;;  %v2924_v17 = vor.u32 %v4124_v7, %v2921_v10 }
  0x18   :  { %228 = vmatpush.bf16.msra.mxu0 %v2952_v53  ;;  %253 = vmatpush.bf16.msra.mxu2 %v2976_v54  ;;  %v2932_v18 = vor.u32 %v4125_v11, %v2929_v12  ;;  %v4120_v19 = vld [vmem:[#allocation2 + $0x4] sm:$0xf]  ;;  %v2927_v20 = vld [vmem:[#allocation2 + $0x28] sm:$0xf]  ;;  %v4127_v21 = vld [vmem:[#allocation2 + $0x34] sm:$0xf0]  ;;  %v2904_v25 = vor.u32 %v4122_v16, %v2903_v15 }
  0x19   :  { %241 = vmatpush.bf16.msra.mxu1 %v2956_v57  ;;  %v2905_v22 = vld [vmem:[#allocation2 + $0x10] sm:$0xf0]  ;;  %v4121_v23 = vld [vmem:[#allocation2 + $0xc] sm:$0xf]  ;;  %v2913_v24 = vld [vmem:[#allocation2 + $0x18] sm:$0xf0]  ;;  %v2928_v26 = vor.u32 %v4127_v21, %v2927_v20 }
  0x1a   :  { %267 = vmatpush.bf16.msra.mxu3 %v2964_v58  ;;  %v2908_v27 = vor.u32 %v4120_v19, %v2905_v22  ;;  %v2916_v28 = vor.u32 %v4121_v23, %v2913_v24  ;;  %v2911_v29 = vld [vmem:[#allocation2 + $0x8] sm:$0xf]  ;;  %v4123_v30 = vld [vmem:[#allocation2 + $0x14] sm:$0xf0]  ;;  %v4585_v32 = vmov 0   ;;  %v28_v16 = vld [vmem:[%s4771_s0] sm:$0xff] }
  0x1b   :  { %v2912_v31 = vor.u32 %v4123_v30, %v2911_v29  ;;  %v3150_v33 = vld [vmem:[#allocation2 + $0xe0] sm:$0xf]  ;;  %v4182_v34 = vld [vmem:[#allocation2 + $0xec] sm:$0xf0]  ;;  %v4180_v35 = vld [vmem:[#allocation2 + $0xe4] sm:$0xf] }
  0x1c   :  { %229 = vmatpush.bf16.msra.mxu0 %v2936_v1  ;;  %254 = vmatpush.bf16.msra.mxu2 %v2960_v2  ;;  %v3151_v36 = vor.u32 %v4182_v34, %v3150_v33  ;;  %v3152_v37 = vld [vmem:[#allocation2 + $0xf0] sm:$0xf0]  ;;  %v3158_v38 = vld [vmem:[#allocation2 + $0xe8] sm:$0xf]  ;;  %v4183_v39 = vld [vmem:[#allocation2 + $0xf4] sm:$0xf0] }
  0x1d   :  { %242 = vmatpush.bf16.msra.mxu1 %v2940_v5  ;;  %v3155_v40 = vor.u32 %v4180_v35, %v3152_v37  ;;  %v3159_v41 = vor.u32 %v4183_v39, %v3158_v38  ;;  %v4181_v42 = vld [vmem:[#allocation2 + $0xec] sm:$0xf]  ;;  %v3160_v43 = vld [vmem:[#allocation2 + $0xf8] sm:$0xf0]  ;;  %v3134_v45 = vld [vmem:[#allocation2 + $0xc0] sm:$0xf] }
  0x1e   :  { %268 = vmatpush.bf16.msra.mxu3 %v2948_v6  ;;  %v3163_v44 = vor.u32 %v4181_v42, %v3160_v43  ;;  %v4178_v46 = vld [vmem:[#allocation2 + $0xcc] sm:$0xf0]  ;;  %v4176_v47 = vld [vmem:[#allocation2 + $0xc4] sm:$0xf]  ;;  %v3136_v49 = vld [vmem:[#allocation2 + $0xd0] sm:$0xf0] }
  0x1f   :  { %v3135_v48 = vor.u32 %v4178_v46, %v3134_v45  ;;  %v3142_v50 = vld [vmem:[#allocation2 + $0xc8] sm:$0xf]  ;;  %v4179_v51 = vld [vmem:[#allocation2 + $0xd4] sm:$0xf0]  ;;  %v3139_v52 = vor.u32 %v4176_v47, %v3136_v49  ;;  %v4177_v54 = vld [vmem:[#allocation2 + $0xcc] sm:$0xf] }
  0x20   :  { %230 = vmatpush.bf16.msra.mxu0 %v2920_v13  ;;  %255 = vmatpush.bf16.msra.mxu2 %v2944_v14  ;;  %v3143_v53 = vor.u32 %v4179_v51, %v3142_v50  ;;  %v3144_v55 = vld [vmem:[#allocation2 + $0xd8] sm:$0xf0]  ;;  %v3118_v57 = vld [vmem:[#allocation2 + $0xa0] sm:$0xf]  ;;  %v4174_v58 = vld [vmem:[#allocation2 + $0xac] sm:$0xf0] }
  0x21   :  { %243 = vmatpush.bf16.msra.mxu1 %v2924_v17  ;;  %v3147_v56 = vor.u32 %v4177_v54, %v3144_v55  ;;  %v4172_v59 = vld [vmem:[#allocation2 + $0xa4] sm:$0xf]  ;;  %v3119_v60 = vor.u32 %v4174_v58, %v3118_v57  ;;  %v3120_v61 = vld [vmem:[#allocation2 + $0xb0] sm:$0xf0]  ;;  %v3126_v62 = vld [vmem:[#allocation2 + $0xa8] sm:$0xf] }
  0x22   :  { %269 = vmatpush.bf16.msra.mxu3 %v2932_v18  ;;  %v3123_v63 = vor.u32 %v4172_v59, %v3120_v61  ;;  %v4175_v0 = vld [vmem:[#allocation2 + $0xb4] sm:$0xf0]  ;;  %v4173_v1 = vld [vmem:[#allocation2 + $0xac] sm:$0xf]  ;;  %v3128_v2 = vld [vmem:[#allocation2 + $0xb8] sm:$0xf0] }
  0x23   :  { %v3127_v3 = vor.u32 %v4175_v0, %v3126_v62  ;;  %v3131_v4 = vor.u32 %v4173_v1, %v3128_v2  ;;  %v3102_v5 = vld [vmem:[#allocation2 + $0x80] sm:$0xf]  ;;  %v4170_v6 = vld [vmem:[#allocation2 + $0x8c] sm:$0xf0]  ;;  %v4168_v7 = vld [vmem:[#allocation2 + $0x84] sm:$0xf] }
  0x24   :  { %231 = vmatpush.bf16.msra.mxu0 %v2904_v25  ;;  %256 = vmatpush.bf16.msra.mxu2 %v2928_v26  ;;  %v3103_v8 = vor.u32 %v4170_v6, %v3102_v5  ;;  %v3104_v9 = vld [vmem:[#allocation2 + $0x90] sm:$0xf0]  ;;  %v3110_v10 = vld [vmem:[#allocation2 + $0x88] sm:$0xf]  ;;  %v4171_v11 = vld [vmem:[#allocation2 + $0x94] sm:$0xf0] }
  0x25   :  { %244 = vmatpush.bf16.msra.mxu1 %v2908_v27  ;;  %v3107_v12 = vor.u32 %v4168_v7, %v3104_v9  ;;  %v3111_v13 = vor.u32 %v4171_v11, %v3110_v10  ;;  %v4169_v14 = vld [vmem:[#allocation2 + $0x8c] sm:$0xf]  ;;  %v3112_v15 = vld [vmem:[#allocation2 + $0x98] sm:$0xf0]  ;;  %v3086_v18 = vld [vmem:[#allocation2 + $0x60] sm:$0xf] }
  0x26   :  { %270 = vmatpush.bf16.msra.mxu3 %v2916_v28  ;;  %v3115_v17 = vor.u32 %v4169_v14, %v3112_v15  ;;  %v4166_v19 = vld [vmem:[#allocation2 + $0x6c] sm:$0xf0]  ;;  %v4164_v20 = vld [vmem:[#allocation2 + $0x64] sm:$0xf]  ;;  %v3088_v22 = vld [vmem:[#allocation2 + $0x70] sm:$0xf0] }
  0x27   :  { %232 = vmatmul.bf16.vlgmr.msra.gmra.mxu0 %v4585_v32  ;;  %v3087_v21 = vor.u32 %v4166_v19, %v3086_v18  ;;  %v3094_v23 = vld [vmem:[#allocation2 + $0x68] sm:$0xf]  ;;  %v4167_v24 = vld [vmem:[#allocation2 + $0x74] sm:$0xf0]  ;;  %v3091_v26 = vor.u32 %v4164_v20, %v3088_v22  ;;  %v4165_v28 = vld [vmem:[#allocation2 + $0x6c] sm:$0xf] }
  0x28   :  { %245 = vmatmul.bf16.vlgmr.msra.gmra.mxu1 %v4585_v32  ;;  %257 = vmatpush.bf16.msra.mxu2 %v2912_v31  ;;  %v29_v25 = vld [vmem:[%s4771_s0 + $0x8] sm:$0xff]  ;;  %v3095_v27 = vor.u32 %v4167_v24, %v3094_v23  ;;  %v3096_v29 = vld [vmem:[#allocation2 + $0x78] sm:$0xf0]  ;;  %v3070_v34 = vld [vmem:[#allocation2 + $0x40] sm:$0xf] }
  0x29   :  { %271 = vmatmul.bf16.vlgmr.msra.gmra.mxu3 %v4585_v32  ;;  %542 = vmatpush.bf16.msrb.mxu0 %v3151_v36  ;;  %v3099_v31 = vor.u32 %v4165_v28, %v3096_v29  ;;  %v4162_v35 = vld [vmem:[#allocation2 + $0x4c] sm:$0xf0]  ;;  %v4160_v36 = vld [vmem:[#allocation2 + $0x44] sm:$0xf]  ;;  %v3072_v39 = vld [vmem:[#allocation2 + $0x50] sm:$0xf0] }
  0x2a   :  { %555 = vmatpush.bf16.msrb.mxu1 %v3155_v40  ;;  %581 = vmatpush.bf16.msrb.mxu3 %v3163_v44  ;;  %v3071_v38 = vor.u32 %v4162_v35, %v3070_v34  ;;  %v3078_v40 = vld [vmem:[#allocation2 + $0x48] sm:$0xf]  ;;  %v31_v43 = vld [vmem:[%s4771_s0 + $0x18] sm:$0xff]  ;;  %v3075_v44 = vor.u32 %v4160_v36, %v3072_v39  ;;  %v4161_v46 = vld [vmem:[#allocation2 + $0x4c] sm:$0xf] }
  0x2b   :  { %258 = vmatmul.bf16.vlgmr.msra.gmra.mxu2 %v4585_v32  ;;  %v3080_v47 = vld [vmem:[#allocation2 + $0x58] sm:$0xf0]  ;;  %v3054_v50 = vld [vmem:[#allocation2 + $0x20] sm:$0xf]  ;;  %v4158_v51 = vld [vmem:[#allocation2 + $0x2c] sm:$0xf0] }
  0x2c   :  { %568 = vmatpush.bf16.msrb.mxu2 %v3159_v41  ;;  %v4163_v41 = vld [vmem:[#allocation2 + $0x54] sm:$0xf0]  ;;  %v3083_v49 = vor.u32 %v4161_v46, %v3080_v47  ;;  %v3056_v54 = vld [vmem:[#allocation2 + $0x30] sm:$0xf0]  ;;  %v3062_v55 = vld [vmem:[#allocation2 + $0x28] sm:$0xf] }
  0x2d   :  { %543 = vmatpush.bf16.msrb.mxu0 %v3135_v48  ;;  %v3079_v45 = vor.u32 %v4163_v41, %v3078_v40  ;;  %v4159_v57 = vld [vmem:[#allocation2 + $0x34] sm:$0xf0]  ;;  %v4157_v58 = vld [vmem:[#allocation2 + $0x2c] sm:$0xf]  ;;  %v3064_v59 = vld [vmem:[#allocation2 + $0x38] sm:$0xf0] }
  0x2e   :  { %556 = vmatpush.bf16.msrb.mxu1 %v3139_v52  ;;  %582 = vmatpush.bf16.msrb.mxu3 %v3147_v56  ;;  %v3055_v52 = vor.u32 %v4158_v51, %v3054_v50  ;;  %v3063_v61 = vor.u32 %v4159_v57, %v3062_v55  ;;  %v3067_v62 = vor.u32 %v4157_v58, %v3064_v59  ;;  %v4154_v0 = vld [vmem:[#allocation2 + $0xc] sm:$0xf0]  ;;  %v4152_v1 = vld [vmem:[#allocation2 + $0x4] sm:$0xf]  ;;  %v3040_v5 = vld [vmem:[#allocation2 + $0x10] sm:$0xf0] }
  0x2f   :  { %v3046_v6 = vld [vmem:[#allocation2 + $0x8] sm:$0xf]  ;;  %v4155_v7 = vld [vmem:[#allocation2 + $0x14] sm:$0xf0]  ;;  %v3043_v9 = vor.u32 %v4152_v1, %v3040_v5  ;;  %v4153_v10 = vld [vmem:[#allocation2 + $0xc] sm:$0xf] }
  0x30   :  { %569 = vmatpush.bf16.msrb.mxu2 %v3143_v53  ;;  %v4156_v53 = vld [vmem:[#allocation2 + $0x24] sm:$0xf]  ;;  %v3048_v11 = vld [vmem:[#allocation2 + $0x18] sm:$0xf0]  ;;  %v30_v20 = vld [vmem:[%s4771_s0 + $0x10] sm:$0xff] }
  0x31   :  { %544 = vmatpush.bf16.msrb.mxu0 %v3119_v60  ;;  %v3059_v56 = vor.u32 %v4156_v53, %v3056_v54  ;;  %v3051_v14 = vor.u32 %v4153_v10, %v3048_v11  ;;  %v4212_v1 = vld [vmem:[#allocation2 + $0xe4] sm:$0xf]  ;;  %v4215_v5 = vld [vmem:[#allocation2 + $0xf4] sm:$0xf0]  ;;  %v3270_v11 = vld [vmem:[#allocation2 + $0xc0] sm:$0xf] }
  0x32   :  { %557 = vmatpush.bf16.msrb.mxu1 %v3123_v63  ;;  %583 = vmatpush.bf16.msrb.mxu3 %v3131_v4  ;;  %v3038_v63 = vld [vmem:[#allocation2] sm:$0xf] }
  0x33   :  { %v3039_v4 = vor.u32 %v4154_v0, %v3038_v63  ;;  %v3286_v63 = vld [vmem:[#allocation2 + $0xe0] sm:$0xf]  ;;  %v4214_v0 = vld [vmem:[#allocation2 + $0xec] sm:$0xf0] }
  0x34   :  { %570 = vmatpush.bf16.msrb.mxu2 %v3127_v3 }
  0x35   :  { %545 = vmatpush.bf16.msrb.mxu0 %v3103_v8 }
  0x36   :  { %558 = vmatpush.bf16.msrb.mxu1 %v3107_v12  ;;  %584 = vmatpush.bf16.msrb.mxu3 %v3115_v17 }
  0x38   :  { %571 = vmatpush.bf16.msrb.mxu2 %v3111_v13  ;;  %v3047_v13 = vor.u32 %v4155_v7, %v3046_v6 }
  0x39   :  { %546 = vmatpush.bf16.msrb.mxu0 %v3087_v21 }
  0x3a   :  { %559 = vmatpush.bf16.msrb.mxu1 %v3091_v26  ;;  %585 = vmatpush.bf16.msrb.mxu3 %v3099_v31 }
  0x3c   :  { %572 = vmatpush.bf16.msrb.mxu2 %v3095_v27 }
  0x3d   :  { %547 = vmatpush.bf16.msrb.mxu0 %v3071_v38 }
  0x3e   :  { %560 = vmatpush.bf16.msrb.mxu1 %v3075_v44  ;;  %586 = vmatpush.bf16.msrb.mxu3 %v3083_v49 }
  0x40   :  { %573 = vmatpush.bf16.msrb.mxu2 %v3079_v45 }
  0x41   :  { %548 = vmatpush.bf16.msrb.mxu0 %v3055_v52 }
  0x42   :  { %561 = vmatpush.bf16.msrb.mxu1 %v3059_v56  ;;  %587 = vmatpush.bf16.msrb.mxu3 %v3067_v62 }
  0x44   :  { %574 = vmatpush.bf16.msrb.mxu2 %v3063_v61 }
  0x45   :  { %549 = vmatpush.bf16.msrb.mxu0 %v3039_v4  ;;  %v3294_v4 = vld [vmem:[#allocation2 + $0xe8] sm:$0xf] }
  0x46   :  { %562 = vmatpush.bf16.msrb.mxu1 %v3043_v9  ;;  %588 = vmatpush.bf16.msrb.mxu3 %v3051_v14  ;;  %v3295_v7 = vor.u32 %v4215_v5, %v3294_v4  ;;  %v3296_v9 = vld [vmem:[#allocation2 + $0xf8] sm:$0xf0]  ;;  %v4192_v4 = vld [vmem:[#allocation2 + $0x44] sm:$0xf] }
  0x48   :  { %575 = vmatpush.bf16.msrb.mxu2 %v3047_v13  ;;  %v4208_v13 = vld [vmem:[#allocation2 + $0xc4] sm:$0xf] }
  0x4c   :  { %887 = vmatpush.bf16.msra.mxu2 %v3295_v7  ;;  %v3214_v7 = vld [vmem:[#allocation2 + $0x48] sm:$0xf] }
  0xa4   :  { %v233_v30 = vpop.f32.mrf.mxu0 }
  0xa5   :  { %v276_v32 = vadd.f32 %v233_v30, %v28_v16  ;;  %v246_v33 = vpop.f32.mrf.mxu1 }
  0xa6   :  { %v277_v37 = vadd.f32 %v246_v33, %v29_v25 }
  0xa7   :  { %v3029_v42 = vmul.f32 -1.442695, %v276_v32 }
  0xa8   :  { %v3030_v48 = vmul.f32 -1.442695, %v277_v37 }
  0xa9   :  { %4412 = vpow2.f32 %v3029_v42 }
  0xaa   :  { %4414 = vpow2.f32 %v3030_v48 }
  0xac   :  { %v272_v60 = vpop.f32.mrf.mxu3  ;;  %v235_v3 = vpop.f32.mrf.mxu0 }
  0xad   :  { %v279_v2 = vadd.f32 %v272_v60, %v31_v43  ;;  %v248_v8 = vpop.f32.mrf.mxu1  ;;  %v3288_v3 = vld [vmem:[#allocation2 + $0xf0] sm:$0xf0] }
  0xae   :  { %v259_v16 = vpop.f32.mrf.mxu2  ;;  %v3291_v6 = vor.u32 %v4212_v1, %v3288_v3  ;;  %v4213_v8 = vld [vmem:[#allocation2 + $0xec] sm:$0xf]  ;;  %v4194_v3 = vld [vmem:[#allocation2 + $0x4c] sm:$0xf0] }
  0xaf   :  { %v3031_v12 = vmul.f32 -1.442695, %v279_v2  ;;  %v4413_v15 = vpop.eup %4412  ;;  %v278_v23 = vadd.f32 %v259_v16, %v30_v20  ;;  %v3287_v2 = vor.u32 %v4214_v0, %v3286_v63  ;;  %v3299_v10 = vor.u32 %v4213_v8, %v3296_v9  ;;  %v3278_v16 = vld [vmem:[#allocation2 + $0xc8] sm:$0xf]  ;;  %v4209_v20 = vld [vmem:[#allocation2 + $0xcc] sm:$0xf] }
  0xb0   :  { %v4415_v17 = vpop.eup %4414  ;;  %v283_v18 = vadd.f32 1.0, %v4413_v15  ;;  %874 = vmatpush.bf16.msra.mxu1 %v3291_v6  ;;  %v3272_v15 = vld [vmem:[#allocation2 + $0xd0] sm:$0xf0]  ;;  %v4195_v8 = vld [vmem:[#allocation2 + $0x54] sm:$0xf0] }
  0xb1   :  { %4416 = vpow2.f32 %v3031_v12  ;;  %v302_v19 = vadd.f32 1.0, %v4415_v17  ;;  %861 = vmatpush.bf16.msra.mxu0 %v3287_v2  ;;  %v4210_v12 = vld [vmem:[#allocation2 + $0xcc] sm:$0xf0]  ;;  %900 = vmatpush.bf16.msra.mxu3 %v3299_v10  ;;  %v4211_v17 = vld [vmem:[#allocation2 + $0xd4] sm:$0xf0] }
  0xb2   :  { %4418 = vrcp.f32 %v283_v18  ;;  %v295_v32 = vand.u32 2147483648, %v283_v18  ;;  %v293_v35 = vand.u32 2147483647, %v283_v18  ;;  %vm289_vm2 = vweird.f32 %v283_v18  ;;  %v3206_v2 = vld [vmem:[#allocation2 + $0x40] sm:$0xf] }
  0xb3   :  { %4420 = vrcp.f32 %v302_v19  ;;  %v314_v33 = vand.u32 2147483648, %v302_v19  ;;  %v312_v37 = vand.u32 2147483647, %v302_v19  ;;  %vm308_vm3 = vweird.f32 %v302_v19  ;;  %v3208_v6 = vld [vmem:[#allocation2 + $0x50] sm:$0xf0] }
  0xb4   :  { %v274_v21 = vpop.f32.mrf.mxu3  ;;  %v296_v42 = vor.u32 1.1754944e-38, %v295_v32  ;;  %vm294_vm5 = vcmp.eq.f32.partialorder %v293_v35, 8.507059e+37  ;;  %v3271_v14 = vor.u32 %v4210_v12, %v3270_v11  ;;  %v4205_v32 = vld [vmem:[#allocation2 + $0xac] sm:$0xf]  ;;  %v3238_v35 = vld [vmem:[#allocation2 + $0x80] sm:$0xf]  ;;  %v3207_v5 = vor.u32 %v4194_v3, %v3206_v2 }
  0xb5   :  { %v315_v44 = vor.u32 1.1754944e-38, %v314_v33  ;;  %vm313_vm7 = vcmp.eq.f32.partialorder %v312_v37, 8.507059e+37  ;;  %v3280_v21 = vld [vmem:[#allocation2 + $0xd8] sm:$0xf0]  ;;  %v4200_v37 = vld [vmem:[#allocation2 + $0x84] sm:$0xf]  ;;  %v3211_v12 = vor.u32 %v4192_v4, %v3208_v6 }
  0xb6   :  { %v261_v25 = vpop.f32.mrf.mxu2  ;;  %862 = vmatpush.bf16.msra.mxu0 %v3271_v14  ;;  %v3264_v33 = vld [vmem:[#allocation2 + $0xb8] sm:$0xf0]  ;;  %v4193_v14 = vld [vmem:[#allocation2 + $0x4c] sm:$0xf] }
  0xb7   :  { %v4417_v22 = vpop.eup %4416  ;;  %v4204_v25 = vld [vmem:[#allocation2 + $0xa4] sm:$0xf]  ;;  %v3035_v11 = vld [vmem:[%s4771_s0 + $0x38] sm:$0xff] }
  0xb8   :  { %v322_v24 = vadd.f32 1.0, %v4417_v22  ;;  %v4419_v26 = vpop.eup %4418  ;;  %v3283_v22 = vor.u32 %v4209_v20, %v3280_v21  ;;  %v4188_v20 = vld [vmem:[#allocation2 + $0x24] sm:$0xf]  ;;  %v3192_v21 = vld [vmem:[#allocation2 + $0x30] sm:$0xf0] }
  0xb9   :  { %v4421_v27 = vpop.eup %4420  ;;  %v285_v28 = vmul.f32 %v4419_v26, %v283_v18  ;;  %vm290_vm0 = vweird.f32 %v4419_v26  ;;  %v3275_v18 = vor.u32 %v4208_v13, %v3272_v15  ;;  %v3215_v13 = vor.u32 %v4195_v8, %v3214_v7  ;;  %v3216_v15 = vld [vmem:[#allocation2 + $0x58] sm:$0xf0] }
  0xba   :  { %4422 = vrcp.f32 %v322_v24  ;;  %v304_v29 = vmul.f32 %v4421_v27, %v302_v19  ;;  %vm309_vm1 = vweird.f32 %v4421_v27  ;;  %vm291_vm4 = vmor %vm289_vm2, %vm290_vm0  ;;  %v334_v55 = vand.u32 2147483648, %v322_v24  ;;  %901 = vmatpush.bf16.msra.mxu3 %v3283_v22  ;;  %v3198_v22 = vld [vmem:[#allocation2 + $0x28] sm:$0xf] }
  0xbb   :  { %4424 = vtanh.f32 %v278_v23  ;;  %v286_v30 = vsub.f32 1.0, %v285_v28  ;;  %vm310_vm6 = vmor %vm308_vm3, %vm309_vm1  ;;  %vm328_vm9 = vweird.f32 %v322_v24  ;;  %v332_v56 = vand.u32 2147483647, %v322_v24  ;;  %875 = vmatpush.bf16.msra.mxu1 %v3275_v18  ;;  %v3254_v23 = vld [vmem:[#allocation2 + $0xa0] sm:$0xf] }
  0xbc   :  { %v305_v31 = vsub.f32 1.0, %v304_v29  ;;  %v335_v58 = vor.u32 1.1754944e-38, %v334_v55  ;;  %v3279_v19 = vor.u32 %v4211_v17, %v3278_v16  ;;  %v3262_v28 = vld [vmem:[#allocation2 + $0xa8] sm:$0xf]  ;;  %v4207_v29 = vld [vmem:[#allocation2 + $0xb4] sm:$0xf0]  ;;  %v3219_v18 = vor.u32 %v4193_v14, %v3216_v15 }
  0xbd   :  { %v287_v34 = vmul.f32 %v4419_v26, %v286_v30  ;;  %vm333_vm11 = vcmp.eq.f32.partialorder %v332_v56, 8.507059e+37  ;;  %v3230_v55 = vld [vmem:[#allocation2 + $0x68] sm:$0xf]  ;;  %v4199_v56 = vld [vmem:[#allocation2 + $0x74] sm:$0xf0] }
  0xbe   :  { %v306_v36 = vmul.f32 %v4421_v27, %v305_v31  ;;  %888 = vmatpush.bf16.msra.mxu2 %v3279_v19  ;;  %v3263_v31 = vor.u32 %v4207_v29, %v3262_v28  ;;  %v3190_v16 = vld [vmem:[#allocation2 + $0x20] sm:$0xf]  ;;  %v4190_v17 = vld [vmem:[#allocation2 + $0x2c] sm:$0xf0] }
  0xbf   :  { %v288_v39 = vadd.f32 %v4419_v26, %v287_v34  ;;  %v3267_v34 = vor.u32 %v4205_v32, %v3264_v33  ;;  %v3191_v19 = vor.u32 %v4190_v17, %v3190_v16  ;;  %v4186_v32 = vld [vmem:[#allocation2 + $0xc] sm:$0xf0]  ;;  %v4184_v33 = vld [vmem:[#allocation2 + $0x4] sm:$0xf] }
  0xc0   :  { %v4423_v38 = vpop.eup %4422  ;;  %v307_v43 = vadd.f32 %v4421_v27, %v306_v36  ;;  %v4202_v36 = vld [vmem:[#allocation2 + $0x8c] sm:$0xf0] }
  0xc1   :  { %v4425_v40 = vpop.eup %4424  ;;  %v324_v41 = vmul.f32 %v4423_v38, %v322_v24  ;;  %v292_v45 = vsel %vm291_vm4, %v4419_v26, %v288_v39  ;;  %vm329_vm8 = vweird.f32 %v4423_v38  ;;  %v4206_v24 = vld [vmem:[#allocation2 + $0xac] sm:$0xf0]  ;;  %902 = vmatpush.bf16.msra.mxu3 %v3267_v34  ;;  %v3240_v39 = vld [vmem:[#allocation2 + $0x90] sm:$0xf0] }
  0xc2   :  { %v297_v47 = vsel %vm294_vm5, %v296_v42, %v292_v45  ;;  %v311_v48 = vsel %vm310_vm6, %v4421_v27, %v307_v43  ;;  %vm330_vm10 = vmor %vm328_vm9, %vm329_vm8  ;;  %v3255_v26 = vor.u32 %v4206_v24, %v3254_v23  ;;  %v3256_v27 = vld [vmem:[#allocation2 + $0xb0] sm:$0xf0]  ;;  %889 = vmatpush.bf16.msra.mxu2 %v3263_v31  ;;  %v3243_v42 = vor.u32 %v4200_v37, %v3240_v39  ;;  %v3248_v45 = vld [vmem:[#allocation2 + $0x98] sm:$0xf0] }
  0xc3   :  { %v325_v46 = vsub.f32 1.0, %v324_v41  ;;  %v316_v49 = vsel %vm313_vm7, %v315_v44, %v311_v48  ;;  %v339_v50 = vmul.f32 %v4425_v40, %v297_v47  ;;  %v3259_v30 = vor.u32 %v4204_v25, %v3256_v27  ;;  %v3246_v40 = vld [vmem:[#allocation2 + $0x88] sm:$0xf]  ;;  %v4203_v41 = vld [vmem:[#allocation2 + $0x94] sm:$0xf0] }
  0xc4   :  { %v338_v52 = vmul.f32 0.0, %v316_v49  ;;  %863 = vmatpush.bf16.msra.mxu0 %v3255_v26  ;;  %v3247_v43 = vor.u32 %v4203_v41, %v3246_v40  ;;  %v4201_v44 = vld [vmem:[#allocation2 + $0x8c] sm:$0xf]  ;;  %v3222_v49 = vld [vmem:[#allocation2 + $0x60] sm:$0xf]  ;;  %v3195_v23 = vor.u32 %v4188_v20, %v3192_v21 }
  0xc5   :  { %v326_v51 = vmul.f32 %v4423_v38, %v325_v46  ;;  %876 = vmatpush.bf16.msra.mxu1 %v3259_v30  ;;  %v3032_v46 = vld [vmem:[%s4771_s0 + $0x20] sm:$0xff]  ;;  %v3033_v47 = vld [vmem:[%s4771_s0 + $0x28] sm:$0xff]  ;;  %v3251_v48 = vor.u32 %v4201_v44, %v3248_v45  ;;  %v4191_v24 = vld [vmem:[#allocation2 + $0x34] sm:$0xf0] }
  0xc6   :  { %v4616_v53 = vadd.f32 %v339_v50, %v338_v52  ;;  %890 = vmatpush.bf16.msra.mxu2 %v3247_v43  ;;  %v4198_v50 = vld [vmem:[#allocation2 + $0x6c] sm:$0xf0]  ;;  %v4189_v25 = vld [vmem:[#allocation2 + $0x2c] sm:$0xf]  ;;  %v3200_v26 = vld [vmem:[#allocation2 + $0x38] sm:$0xf0]  ;;  %v3199_v29 = vor.u32 %v4191_v24, %v3198_v22 }
  0xc7   :  { %v327_v54 = vadd.f32 %v4423_v38, %v326_v51  ;;  %v4196_v51 = vld [vmem:[#allocation2 + $0x64] sm:$0xf]  ;;  %903 = vmatpush.bf16.msra.mxu3 %v3251_v48  ;;  %v3223_v52 = vor.u32 %v4198_v50, %v3222_v49  ;;  %v3203_v30 = vor.u32 %v4189_v25, %v3200_v26  ;;  %v3174_v31 = vld [vmem:[#allocation2] sm:$0xf]  ;;  %v3182_v39 = vld [vmem:[#allocation2 + $0x8] sm:$0xf] }
  0xc8   :  { %4426 = vtanh.f32 %v4616_v53  ;;  %v3175_v37 = vor.u32 %v4186_v32, %v3174_v31  ;;  %v4187_v40 = vld [vmem:[#allocation2 + $0x14] sm:$0xf0]  ;;  %v4185_v43 = vld [vmem:[#allocation2 + $0xc] sm:$0xf]  ;;  %v3184_v44 = vld [vmem:[#allocation2 + $0x18] sm:$0xf0] }
  0xc9   :  { %v331_v57 = vsel %vm330_vm10, %v4423_v38, %v327_v54  ;;  %v3239_v38 = vor.u32 %v4202_v36, %v3238_v35  ;;  %877 = vmatpush.bf16.msra.mxu1 %v3243_v42  ;;  %v3224_v54 = vld [vmem:[#allocation2 + $0x70] sm:$0xf0]  ;;  %v3183_v42 = vor.u32 %v4187_v40, %v3182_v39  ;;  %v4246_v31 = vld [vmem:[#allocation2 + $0xec] sm:$0xf0]  ;;  %v4244_v32 = vld [vmem:[#allocation2 + $0xe4] sm:$0xf] }
  0xca   :  { %v336_v60 = vsel %vm333_vm11, %v335_v58, %v331_v57  ;;  %v3227_v57 = vor.u32 %v4196_v51, %v3224_v54  ;;  %v3231_v58 = vor.u32 %v4199_v56, %v3230_v55  ;;  %v3034_v54 = vld [vmem:[%s4771_s0 + $0x30] sm:$0xff]  ;;  %v4245_v39 = vld [vmem:[#allocation2 + $0xec] sm:$0xf]  ;;  %v3432_v40 = vld [vmem:[#allocation2 + $0xf8] sm:$0xf0] }
  0xcb   :  { %864 = vmatpush.bf16.msra.mxu0 %v3239_v38  ;;  %v3176_v38 = vld [vmem:[#allocation2 + $0x10] sm:$0xf0] }
  0xcc   :  { %891 = vmatpush.bf16.msra.mxu2 %v3231_v58  ;;  %v3179_v41 = vor.u32 %v4184_v33, %v3176_v38 }
  0xcd   :  { %878 = vmatpush.bf16.msra.mxu1 %v3227_v57 }
  0xce   :  { %v4427_v59 = vpop.eup %4426 }
  0xcf   :  { %v342_v61 = vmul.f32 %v4427_v59, %v336_v60  ;;  %v4197_v59 = vld [vmem:[#allocation2 + $0x6c] sm:$0xf]  ;;  %v3232_v60 = vld [vmem:[#allocation2 + $0x78] sm:$0xf0]  ;;  %865 = vmatpush.bf16.msra.mxu0 %v3223_v52 }
  0xd0   :  { %v3235_v63 = vor.u32 %v4197_v59, %v3232_v60  ;;  %892 = vmatpush.bf16.msra.mxu2 %v3215_v13 }
  0xd1   :  { %343 = vst [vmem:[%s4773_s2] sm:$0xff] %v342_v61  ;;  %v349_v62 = vpack.c.bf16 %v342_v61, %v342_v61  ;;  %879 = vmatpush.bf16.msra.mxu1 %v3211_v12 }
  0xd2   :  { %904 = vmatpush.bf16.msra.mxu3 %v3235_v63 }
  0xd3   :  { %550 = vmatmul.bf16.vlgmr.msrb.gmra.mxu0 %v349_v62  ;;  %563 = vmatmul.bf16.vlgmr.msrb.gmra.mxu1 %v349_v62 }
  0xd4   :  { %576 = vmatmul.bf16.vlgmr.msrb.gmra.mxu2 %v349_v62  ;;  %589 = vmatmul.bf16.vlgmr.msrb.gmra.mxu3 %v349_v62 }
  0xd5   :  { %866 = vmatpush.bf16.msra.mxu0 %v3207_v5  ;;  %880 = vmatpush.bf16.msra.mxu1 %v3195_v23 }
  0xd6   :  { %905 = vmatpush.bf16.msra.mxu3 %v3219_v18  ;;  %893 = vmatpush.bf16.msra.mxu2 %v3199_v29 }
  0xd9   :  { %867 = vmatpush.bf16.msra.mxu0 %v3191_v19  ;;  %881 = vmatpush.bf16.msra.mxu1 %v3179_v41  ;;  %v3435_v41 = vor.u32 %v4245_v39, %v3432_v40  ;;  %v4227_v39 = vld [vmem:[#allocation2 + $0x54] sm:$0xf0] }
  0xda   :  { %906 = vmatpush.bf16.msra.mxu3 %v3203_v30  ;;  %894 = vmatpush.bf16.msra.mxu2 %v3183_v42  ;;  %v3422_v30 = vld [vmem:[#allocation2 + $0xe0] sm:$0xf] }
  0xdb   :  { %v3423_v33 = vor.u32 %v4246_v31, %v3422_v30  ;;  %v3406_v42 = vld [vmem:[#allocation2 + $0xc0] sm:$0xf] }
  0xdd   :  { %868 = vmatpush.bf16.msra.mxu0 %v3175_v37 }
  0xe1   :  { %1180 = vmatpush.bf16.msrb.mxu0 %v3423_v33  ;;  %v3342_v33 = vld [vmem:[#allocation2 + $0x40] sm:$0xf] }
 0x150   :  { %v551_v61 = vpop.f32.mrf.mxu0  ;;  %v564_v62 = vpop.f32.mrf.mxu1 }
 0x151   :  { %v594_v0 = vadd.f32 %v3032_v46, %v551_v61  ;;  %v595_v1 = vadd.f32 %v3033_v47, %v564_v62  ;;  %v3187_v47 = vor.u32 %v4185_v43, %v3184_v44  ;;  %v4242_v43 = vld [vmem:[#allocation2 + $0xcc] sm:$0xf0]  ;;  %v4240_v44 = vld [vmem:[#allocation2 + $0xc4] sm:$0xf] }
 0x153   :  { %v3164_v9 = vmul.f32 -1.442695, %v594_v0  ;;  %v3165_v10 = vmul.f32 -1.442695, %v595_v1  ;;  %907 = vmatpush.bf16.msra.mxu3 %v3187_v47  ;;  %v3414_v47 = vld [vmem:[#allocation2 + $0xc8] sm:$0xf] }
 0x155   :  { %4428 = vpow2.f32 %v3164_v9 }
 0x156   :  { %4430 = vpow2.f32 %v3165_v10 }
 0x157   :  { %v577_v27 = vpop.f32.mrf.mxu2  ;;  %v590_v28 = vpop.f32.mrf.mxu3  ;;  %1219 = vmatpush.bf16.msrb.mxu3 %v3435_v41 }
 0x158   :  { %v597_v34 = vadd.f32 %v3035_v11, %v590_v28  ;;  %v553_v35 = vpop.f32.mrf.mxu0  ;;  %v566_v36 = vpop.f32.mrf.mxu1  ;;  %v596_v58 = vadd.f32 %v3034_v54, %v577_v27 }
 0x159   :  { %v3430_v35 = vld [vmem:[#allocation2 + $0xe8] sm:$0xf]  ;;  %v4247_v36 = vld [vmem:[#allocation2 + $0xf4] sm:$0xf0] }
 0x15a   :  { %v3166_v45 = vmul.f32 -1.442695, %v597_v34  ;;  %v3424_v34 = vld [vmem:[#allocation2 + $0xf0] sm:$0xf0]  ;;  %v3431_v38 = vor.u32 %v4247_v36, %v3430_v35  ;;  %v4224_v35 = vld [vmem:[#allocation2 + $0x44] sm:$0xf] }
 0x15b   :  { %v4429_v46 = vpop.eup %4428  ;;  %v3427_v37 = vor.u32 %v4244_v32, %v3424_v34  ;;  %v4226_v34 = vld [vmem:[#allocation2 + $0x4c] sm:$0xf0] }
 0x15c   :  { %v4431_v48 = vpop.eup %4430  ;;  %v601_v49 = vadd.f32 1.0, %v4429_v46  ;;  %4432 = vpow2.f32 %v3166_v45  ;;  %1206 = vmatpush.bf16.msrb.mxu2 %v3431_v38  ;;  %v3407_v45 = vor.u32 %v4242_v43, %v3406_v42  ;;  %v3408_v46 = vld [vmem:[#allocation2 + $0xd0] sm:$0xf0]  ;;  %v3343_v36 = vor.u32 %v4226_v34, %v3342_v33  ;;  %v3350_v38 = vld [vmem:[#allocation2 + $0x48] sm:$0xf]  ;;  %v3171_v42 = vld [vmem:[%s4771_s0 + $0x58] sm:$0xff] }
 0x15d   :  { %v620_v50 = vadd.f32 1.0, %v4431_v48  ;;  %1193 = vmatpush.bf16.msrb.mxu1 %v3427_v37  ;;  %v4243_v48 = vld [vmem:[#allocation2 + $0xd4] sm:$0xf0]  ;;  %v3344_v37 = vld [vmem:[#allocation2 + $0x50] sm:$0xf0] }
 0x15e   :  { %4434 = vrcp.f32 %v601_v49  ;;  %v613_v0 = vand.u32 2147483648, %v601_v49  ;;  %v611_v3 = vand.u32 2147483647, %v601_v49  ;;  %vm607_vm14 = vweird.f32 %v601_v49  ;;  %1181 = vmatpush.bf16.msrb.mxu0 %v3407_v45  ;;  %v4225_v45 = vld [vmem:[#allocation2 + $0x4c] sm:$0xf] }
 0x15f   :  { %4436 = vrcp.f32 %v620_v50  ;;  %v579_v51 = vpop.f32.mrf.mxu2  ;;  %v592_v52 = vpop.f32.mrf.mxu3  ;;  %v632_v1 = vand.u32 2147483648, %v620_v50  ;;  %v630_v5 = vand.u32 2147483647, %v620_v50  ;;  %vm626_vm15 = vweird.f32 %v620_v50 }
 0x160   :  { %v614_v8 = vor.u32 1.1754944e-38, %v613_v0  ;;  %vm612_vm2 = vcmp.eq.f32.partialorder %v611_v3, 8.507059e+37  ;;  %v4241_v51 = vld [vmem:[#allocation2 + $0xcc] sm:$0xf]  ;;  %v3416_v52 = vld [vmem:[#allocation2 + $0xd8] sm:$0xf0]  ;;  %v3347_v43 = vor.u32 %v4224_v35, %v3344_v37 }
 0x161   :  { %v633_v11 = vor.u32 1.1754944e-38, %v632_v1  ;;  %vm631_vm3 = vcmp.eq.f32.partialorder %v630_v5, 8.507059e+37  ;;  %v3419_v54 = vor.u32 %v4241_v51, %v3416_v52  ;;  %v4237_v0 = vld [vmem:[#allocation2 + $0xac] sm:$0xf]  ;;  %v3400_v1 = vld [vmem:[#allocation2 + $0xb8] sm:$0xf0] }
 0x162   :  { %v4433_v55 = vpop.eup %4432  ;;  %v3374_v3 = vld [vmem:[#allocation2 + $0x80] sm:$0xf]  ;;  %v4232_v5 = vld [vmem:[#allocation2 + $0x84] sm:$0xf]  ;;  %v3328_v52 = vld [vmem:[#allocation2 + $0x30] sm:$0xf0] }
 0x163   :  { %v640_v56 = vadd.f32 1.0, %v4433_v55  ;;  %v3390_v55 = vld [vmem:[#allocation2 + $0xa0] sm:$0xf]  ;;  %1220 = vmatpush.bf16.msrb.mxu3 %v3419_v54  ;;  %v4220_v51 = vld [vmem:[#allocation2 + $0x24] sm:$0xf] }
 0x164   :  { %v4435_v57 = vpop.eup %4434  ;;  %v3334_v54 = vld [vmem:[#allocation2 + $0x28] sm:$0xf] }
 0x165   :  { %v4437_v59 = vpop.eup %4436  ;;  %v603_v60 = vmul.f32 %v4435_v57, %v601_v49  ;;  %4438 = vrcp.f32 %v640_v56  ;;  %vm608_vm12 = vweird.f32 %v4435_v57  ;;  %v652_v23 = vand.u32 2147483648, %v640_v56 }
 0x166   :  { %v622_v61 = vmul.f32 %v4437_v59, %v620_v50  ;;  %4440 = vtanh.f32 %v596_v58  ;;  %vm627_vm13 = vweird.f32 %v4437_v59  ;;  %vm609_vm0 = vmor %vm607_vm14, %vm608_vm12  ;;  %vm646_vm5 = vweird.f32 %v640_v56 }
 0x167   :  { %v604_v62 = vsub.f32 1.0, %v603_v60  ;;  %vm628_vm1 = vmor %vm626_vm15, %vm627_vm13  ;;  %v650_v24 = vand.u32 2147483647, %v640_v56  ;;  %v653_v26 = vor.u32 1.1754944e-38, %v652_v23  ;;  %v3411_v49 = vor.u32 %v4240_v44, %v3408_v46  ;;  %v3398_v60 = vld [vmem:[#allocation2 + $0xa8] sm:$0xf] }
 0x168   :  { %v623_v63 = vsub.f32 1.0, %v622_v61  ;;  %v3415_v50 = vor.u32 %v4243_v48, %v3414_v47  ;;  %v4239_v61 = vld [vmem:[#allocation2 + $0xb4] sm:$0xf0]  ;;  %v3366_v23 = vld [vmem:[#allocation2 + $0x68] sm:$0xf]  ;;  %v3351_v44 = vor.u32 %v4227_v39, %v3350_v38 }
 0x169   :  { %v605_v2 = vmul.f32 %v4435_v57, %v604_v62  ;;  %vm651_vm7 = vcmp.eq.f32.partialorder %v650_v24, 8.507059e+37  ;;  %1194 = vmatpush.bf16.msrb.mxu1 %v3411_v49  ;;  %v4231_v24 = vld [vmem:[#allocation2 + $0x74] sm:$0xf0]  ;;  %v3352_v46 = vld [vmem:[#allocation2 + $0x58] sm:$0xf0] }
 0x16a   :  { %v624_v4 = vmul.f32 %v4437_v59, %v623_v63  ;;  %1207 = vmatpush.bf16.msrb.mxu2 %v3415_v50  ;;  %v3399_v63 = vor.u32 %v4239_v61, %v3398_v60  ;;  %v3326_v47 = vld [vmem:[#allocation2 + $0x20] sm:$0xf]  ;;  %v4222_v48 = vld [vmem:[#allocation2 + $0x2c] sm:$0xf0]  ;;  %v3355_v49 = vor.u32 %v4225_v45, %v3352_v46 }
 0x16b   :  { %v4439_v6 = vpop.eup %4438  ;;  %v606_v7 = vadd.f32 %v4435_v57, %v605_v2  ;;  %v3403_v2 = vor.u32 %v4237_v0, %v3400_v1  ;;  %v3327_v50 = vor.u32 %v4222_v48, %v3326_v47  ;;  %v4218_v0 = vld [vmem:[#allocation2 + $0xc] sm:$0xf0]  ;;  %v4216_v1 = vld [vmem:[#allocation2 + $0x4] sm:$0xf] }
 0x16c   :  { %v625_v9 = vadd.f32 %v4437_v59, %v624_v4  ;;  %v642_v10 = vmul.f32 %v4439_v6, %v640_v56  ;;  %v4441_v13 = vpop.eup %4440  ;;  %vm647_vm4 = vweird.f32 %v4439_v6  ;;  %v4238_v56 = vld [vmem:[#allocation2 + $0xac] sm:$0xf0] }
 0x16d   :  { %v610_v12 = vsel %vm609_vm0, %v4435_v57, %v606_v7  ;;  %vm648_vm6 = vmor %vm646_vm5, %vm647_vm4  ;;  %v4236_v57 = vld [vmem:[#allocation2 + $0xa4] sm:$0xf]  ;;  %v3391_v58 = vor.u32 %v4238_v56, %v3390_v55  ;;  %v4234_v4 = vld [vmem:[#allocation2 + $0x8c] sm:$0xf0]  ;;  %1221 = vmatpush.bf16.msrb.mxu3 %v3403_v2  ;;  %v3331_v55 = vor.u32 %v4220_v51, %v3328_v52 }
 0x16e   :  { %v615_v14 = vsel %vm612_vm2, %v614_v8, %v610_v12  ;;  %v629_v15 = vsel %vm628_vm1, %v4437_v59, %v625_v9  ;;  %v643_v16 = vsub.f32 1.0, %v642_v10  ;;  %v3392_v59 = vld [vmem:[#allocation2 + $0xb0] sm:$0xf0]  ;;  %1208 = vmatpush.bf16.msrb.mxu2 %v3399_v63  ;;  %v3382_v8 = vld [vmem:[#allocation2 + $0x88] sm:$0xf] }
 0x16f   :  { %v634_v17 = vsel %vm631_vm3, %v633_v11, %v629_v15  ;;  %v657_v18 = vmul.f32 %v4441_v13, %v615_v14  ;;  %v3395_v62 = vor.u32 %v4236_v57, %v3392_v59  ;;  %1182 = vmatpush.bf16.msrb.mxu0 %v3391_v58  ;;  %v3376_v7 = vld [vmem:[#allocation2 + $0x90] sm:$0xf0]  ;;  %v4235_v9 = vld [vmem:[#allocation2 + $0x94] sm:$0xf0]  ;;  %v4233_v12 = vld [vmem:[#allocation2 + $0x8c] sm:$0xf] }
 0x170   :  { %v656_v19 = vmul.f32 %v634_v17, %v4616_v53  ;;  %v644_v20 = vmul.f32 %v4439_v6, %v643_v16  ;;  %v3379_v10 = vor.u32 %v4232_v5, %v3376_v7  ;;  %v3383_v11 = vor.u32 %v4235_v9, %v3382_v8  ;;  %v3384_v13 = vld [vmem:[#allocation2 + $0x98] sm:$0xf0]  ;;  %v3168_v14 = vld [vmem:[%s4771_s0 + $0x40] sm:$0xff]  ;;  %v3169_v15 = vld [vmem:[%s4771_s0 + $0x48] sm:$0xff] }
 0x171   :  { %1195 = vmatpush.bf16.msrb.mxu1 %v3395_v62  ;;  %v3387_v16 = vor.u32 %v4233_v12, %v3384_v13  ;;  %v3358_v17 = vld [vmem:[#allocation2 + $0x60] sm:$0xf]  ;;  %v4223_v56 = vld [vmem:[#allocation2 + $0x34] sm:$0xf0]  ;;  %v4221_v57 = vld [vmem:[#allocation2 + $0x2c] sm:$0xf] }
 0x172   :  { %v4635_v21 = vadd.f32 %v657_v18, %v656_v19  ;;  %v645_v22 = vadd.f32 %v4439_v6, %v644_v20  ;;  %1209 = vmatpush.bf16.msrb.mxu2 %v3383_v11  ;;  %v4230_v18 = vld [vmem:[#allocation2 + $0x6c] sm:$0xf0]  ;;  %v4228_v19 = vld [vmem:[#allocation2 + $0x64] sm:$0xf]  ;;  %v3336_v58 = vld [vmem:[#allocation2 + $0x38] sm:$0xf0]  ;;  %v3335_v61 = vor.u32 %v4223_v56, %v3334_v54 }
 0x173   :  { %1222 = vmatpush.bf16.msrb.mxu3 %v3387_v16  ;;  %v3359_v20 = vor.u32 %v4230_v18, %v3358_v17  ;;  %v3339_v62 = vor.u32 %v4221_v57, %v3336_v58  ;;  %v3310_v63 = vld [vmem:[#allocation2] sm:$0xf]  ;;  %v3318_v7 = vld [vmem:[#allocation2 + $0x8] sm:$0xf]  ;;  %v4219_v8 = vld [vmem:[#allocation2 + $0x14] sm:$0xf0] }
 0x174   :  { %4442 = vtanh.f32 %v4635_v21  ;;  %v649_v25 = vsel %vm648_vm6, %v4439_v6, %v645_v22  ;;  %v3375_v6 = vor.u32 %v4234_v4, %v3374_v3  ;;  %v3360_v22 = vld [vmem:[#allocation2 + $0x70] sm:$0xf0]  ;;  %v3311_v5 = vor.u32 %v4218_v0, %v3310_v63  ;;  %v4217_v11 = vld [vmem:[#allocation2 + $0xc] sm:$0xf]  ;;  %v3320_v12 = vld [vmem:[#allocation2 + $0x18] sm:$0xf0] }
 0x175   :  { %v654_v28 = vsel %vm651_vm7, %v653_v26, %v649_v25  ;;  %1196 = vmatpush.bf16.msrb.mxu1 %v3379_v10  ;;  %v3363_v25 = vor.u32 %v4228_v19, %v3360_v22  ;;  %v3367_v26 = vor.u32 %v4231_v24, %v3366_v23  ;;  %v3319_v10 = vor.u32 %v4219_v8, %v3318_v7  ;;  %v3170_v22 = vld [vmem:[%s4771_s0 + $0x50] sm:$0xff]  ;;  %v4276_v0 = vld [vmem:[#allocation2 + $0xe4] sm:$0xf]  ;;  %v4277_v7 = vld [vmem:[#allocation2 + $0xec] sm:$0xf] }
 0x176   :  { %1183 = vmatpush.bf16.msrb.mxu0 %v3375_v6  ;;  %v3312_v6 = vld [vmem:[#allocation2 + $0x10] sm:$0xf0]  ;;  %v4278_v63 = vld [vmem:[#allocation2 + $0xec] sm:$0xf0]  ;;  %v3568_v8 = vld [vmem:[#allocation2 + $0xf8] sm:$0xf0] }
 0x177   :  { %1210 = vmatpush.bf16.msrb.mxu2 %v3367_v26  ;;  %v3315_v9 = vor.u32 %v4216_v1, %v3312_v6 }
 0x179   :  { %1197 = vmatpush.bf16.msrb.mxu1 %v3363_v25 }
 0x17a   :  { %v4443_v27 = vpop.eup %4442  ;;  %1184 = vmatpush.bf16.msrb.mxu0 %v3359_v20 }
 0x17b   :  { %v660_v29 = vmul.f32 %v4443_v27, %v654_v28  ;;  %v4229_v27 = vld [vmem:[#allocation2 + $0x6c] sm:$0xf]  ;;  %v3368_v28 = vld [vmem:[#allocation2 + $0x78] sm:$0xf0]  ;;  %1211 = vmatpush.bf16.msrb.mxu2 %v3351_v44 }
 0x17c   :  { %v3371_v30 = vor.u32 %v4229_v27, %v3368_v28 }
 0x17d   :  { %3167 = vst [vmem:[%s4773_s2 + $0x8] sm:$0xff] %v660_v29  ;;  %v668_v53 = vpack.c.bf16 %v660_v29, %v660_v29  ;;  %1198 = vmatpush.bf16.msrb.mxu1 %v3347_v43 }
 0x17e   :  { %1223 = vmatpush.bf16.msrb.mxu3 %v3371_v30  ;;  %1185 = vmatpush.bf16.msrb.mxu0 %v3343_v36 }
 0x17f   :  { %869 = vmatmul.bf16.vlgmr.msra.gmra.mxu0 %v668_v53  ;;  %882 = vmatmul.bf16.vlgmr.msra.gmra.mxu1 %v668_v53 }
 0x180   :  { %895 = vmatmul.bf16.vlgmr.msra.gmra.mxu2 %v668_v53  ;;  %908 = vmatmul.bf16.vlgmr.msra.gmra.mxu3 %v668_v53 }
 0x181   :  { %1199 = vmatpush.bf16.msrb.mxu1 %v3331_v55  ;;  %1212 = vmatpush.bf16.msrb.mxu2 %v3335_v61 }
 0x182   :  { %1224 = vmatpush.bf16.msrb.mxu3 %v3355_v49  ;;  %1186 = vmatpush.bf16.msrb.mxu0 %v3327_v50 }
 0x185   :  { %1200 = vmatpush.bf16.msrb.mxu1 %v3315_v9  ;;  %1213 = vmatpush.bf16.msrb.mxu2 %v3319_v10  ;;  %v3571_v9 = vor.u32 %v4277_v7, %v3568_v8  ;;  %v3542_v10 = vld [vmem:[#allocation2 + $0xc0] sm:$0xf]  ;;  %v4259_v7 = vld [vmem:[#allocation2 + $0x54] sm:$0xf0] }
 0x186   :  { %1225 = vmatpush.bf16.msrb.mxu3 %v3339_v62  ;;  %1187 = vmatpush.bf16.msrb.mxu0 %v3311_v5  ;;  %v3558_v62 = vld [vmem:[#allocation2 + $0xe0] sm:$0xf] }
 0x187   :  { %v3559_v1 = vor.u32 %v4278_v63, %v3558_v62 }
 0x18a   :  { %1499 = vmatpush.bf16.msra.mxu0 %v3559_v1  ;;  %v3478_v1 = vld [vmem:[#allocation2 + $0x40] sm:$0xf] }
 0x1fc   :  { %v870_v29 = vpop.f32.mrf.mxu0  ;;  %v883_v53 = vpop.f32.mrf.mxu1 }
 0x1fd   :  { %v913_v31 = vadd.f32 %v3168_v14, %v870_v29  ;;  %v914_v32 = vadd.f32 %v3169_v15, %v883_v53  ;;  %v3323_v15 = vor.u32 %v4217_v11, %v3320_v12  ;;  %v4274_v11 = vld [vmem:[#allocation2 + $0xcc] sm:$0xf0]  ;;  %v4272_v12 = vld [vmem:[#allocation2 + $0xc4] sm:$0xf] }
 0x1ff   :  { %v3300_v40 = vmul.f32 -1.442695, %v913_v31  ;;  %v3301_v41 = vmul.f32 -1.442695, %v914_v32  ;;  %1226 = vmatpush.bf16.msrb.mxu3 %v3323_v15  ;;  %v3550_v15 = vld [vmem:[#allocation2 + $0xc8] sm:$0xf] }
 0x201   :  { %4444 = vpow2.f32 %v3300_v40 }
 0x202   :  { %4446 = vpow2.f32 %v3301_v41 }
 0x203   :  { %v896_v59 = vpop.f32.mrf.mxu2  ;;  %v909_v60 = vpop.f32.mrf.mxu3  ;;  %1538 = vmatpush.bf16.msra.mxu3 %v3571_v9 }
 0x204   :  { %v916_v2 = vadd.f32 %v3171_v42, %v909_v60  ;;  %v872_v3 = vpop.f32.mrf.mxu0  ;;  %v885_v4 = vpop.f32.mrf.mxu1  ;;  %v915_v26 = vadd.f32 %v3170_v22, %v896_v59 }
 0x205   :  { %v3566_v3 = vld [vmem:[#allocation2 + $0xe8] sm:$0xf]  ;;  %v4279_v4 = vld [vmem:[#allocation2 + $0xf4] sm:$0xf0] }
 0x206   :  { %v3302_v13 = vmul.f32 -1.442695, %v916_v2  ;;  %v3560_v2 = vld [vmem:[#allocation2 + $0xf0] sm:$0xf0]  ;;  %v3567_v6 = vor.u32 %v4279_v4, %v3566_v3  ;;  %v4256_v3 = vld [vmem:[#allocation2 + $0x44] sm:$0xf] }
 0x207   :  { %v4445_v14 = vpop.eup %4444  ;;  %v3563_v5 = vor.u32 %v4276_v0, %v3560_v2  ;;  %v4258_v2 = vld [vmem:[#allocation2 + $0x4c] sm:$0xf0] }
 0x208   :  { %v4447_v16 = vpop.eup %4446  ;;  %v920_v17 = vadd.f32 1.0, %v4445_v14  ;;  %4448 = vpow2.f32 %v3302_v13  ;;  %1525 = vmatpush.bf16.msra.mxu2 %v3567_v6  ;;  %v3543_v13 = vor.u32 %v4274_v11, %v3542_v10  ;;  %v3544_v14 = vld [vmem:[#allocation2 + $0xd0] sm:$0xf0]  ;;  %v3479_v4 = vor.u32 %v4258_v2, %v3478_v1  ;;  %v3486_v6 = vld [vmem:[#allocation2 + $0x48] sm:$0xf]  ;;  %v3307_v10 = vld [vmem:[%s4771_s0 + $0x78] sm:$0xff] }
 0x209   :  { %v939_v18 = vadd.f32 1.0, %v4447_v16  ;;  %1512 = vmatpush.bf16.msra.mxu1 %v3563_v5  ;;  %v4275_v16 = vld [vmem:[#allocation2 + $0xd4] sm:$0xf0]  ;;  %v3480_v5 = vld [vmem:[#allocation2 + $0x50] sm:$0xf0] }
 0x20a   :  { %4450 = vrcp.f32 %v920_v17  ;;  %v932_v31 = vand.u32 2147483648, %v920_v17  ;;  %v930_v34 = vand.u32 2147483647, %v920_v17  ;;  %vm926_vm10 = vweird.f32 %v920_v17  ;;  %1500 = vmatpush.bf16.msra.mxu0 %v3543_v13  ;;  %v4257_v13 = vld [vmem:[#allocation2 + $0x4c] sm:$0xf] }
 0x20b   :  { %4452 = vrcp.f32 %v939_v18  ;;  %v898_v19 = vpop.f32.mrf.mxu2  ;;  %v911_v20 = vpop.f32.mrf.mxu3  ;;  %v951_v32 = vand.u32 2147483648, %v939_v18  ;;  %v949_v36 = vand.u32 2147483647, %v939_v18  ;;  %vm945_vm11 = vweird.f32 %v939_v18 }
 0x20c   :  { %v933_v39 = vor.u32 1.1754944e-38, %v932_v31  ;;  %vm931_vm14 = vcmp.eq.f32.partialorder %v930_v34, 8.507059e+37  ;;  %v4273_v19 = vld [vmem:[#allocation2 + $0xcc] sm:$0xf]  ;;  %v3552_v20 = vld [vmem:[#allocation2 + $0xd8] sm:$0xf0]  ;;  %v3483_v11 = vor.u32 %v4256_v3, %v3480_v5 }
 0x20d   :  { %v952_v42 = vor.u32 1.1754944e-38, %v951_v32  ;;  %vm950_vm15 = vcmp.eq.f32.partialorder %v949_v36, 8.507059e+37  ;;  %v3555_v22 = vor.u32 %v4273_v19, %v3552_v20  ;;  %v4269_v31 = vld [vmem:[#allocation2 + $0xac] sm:$0xf]  ;;  %v3536_v32 = vld [vmem:[#allocation2 + $0xb8] sm:$0xf0] }
 0x20e   :  { %v4449_v23 = vpop.eup %4448  ;;  %v3510_v34 = vld [vmem:[#allocation2 + $0x80] sm:$0xf]  ;;  %v4264_v36 = vld [vmem:[#allocation2 + $0x84] sm:$0xf]  ;;  %v3464_v20 = vld [vmem:[#allocation2 + $0x30] sm:$0xf0] }
 0x20f   :  { %v959_v24 = vadd.f32 1.0, %v4449_v23  ;;  %v3526_v23 = vld [vmem:[#allocation2 + $0xa0] sm:$0xf]  ;;  %1539 = vmatpush.bf16.msra.mxu3 %v3555_v22  ;;  %v4252_v19 = vld [vmem:[#allocation2 + $0x24] sm:$0xf] }
 0x210   :  { %v4451_v25 = vpop.eup %4450  ;;  %v3470_v22 = vld [vmem:[#allocation2 + $0x28] sm:$0xf] }
 0x211   :  { %v4453_v27 = vpop.eup %4452  ;;  %v922_v28 = vmul.f32 %v4451_v25, %v920_v17  ;;  %4454 = vrcp.f32 %v959_v24  ;;  %vm927_vm8 = vweird.f32 %v4451_v25  ;;  %v971_v55 = vand.u32 2147483648, %v959_v24 }
 0x212   :  { %v941_v29 = vmul.f32 %v4453_v27, %v939_v18  ;;  %4456 = vtanh.f32 %v915_v26  ;;  %vm946_vm9 = vweird.f32 %v4453_v27  ;;  %vm928_vm12 = vmor %vm926_vm10, %vm927_vm8  ;;  %vm965_vm1 = vweird.f32 %v959_v24 }
 0x213   :  { %v923_v53 = vsub.f32 1.0, %v922_v28  ;;  %vm947_vm13 = vmor %vm945_vm11, %vm946_vm9  ;;  %v969_v56 = vand.u32 2147483647, %v959_v24  ;;  %v972_v58 = vor.u32 1.1754944e-38, %v971_v55  ;;  %v3547_v17 = vor.u32 %v4272_v12, %v3544_v14  ;;  %v3534_v28 = vld [vmem:[#allocation2 + $0xa8] sm:$0xf] }
 0x214   :  { %v942_v30 = vsub.f32 1.0, %v941_v29  ;;  %v3551_v18 = vor.u32 %v4275_v16, %v3550_v15  ;;  %v4271_v29 = vld [vmem:[#allocation2 + $0xb4] sm:$0xf0]  ;;  %v3502_v55 = vld [vmem:[#allocation2 + $0x68] sm:$0xf]  ;;  %v3487_v12 = vor.u32 %v4259_v7, %v3486_v6 }
 0x215   :  { %v924_v33 = vmul.f32 %v4451_v25, %v923_v53  ;;  %vm970_vm3 = vcmp.eq.f32.partialorder %v969_v56, 8.507059e+37  ;;  %1513 = vmatpush.bf16.msra.mxu1 %v3547_v17  ;;  %v4263_v56 = vld [vmem:[#allocation2 + $0x74] sm:$0xf0]  ;;  %v3488_v14 = vld [vmem:[#allocation2 + $0x58] sm:$0xf0] }
 0x216   :  { %v943_v35 = vmul.f32 %v4453_v27, %v942_v30  ;;  %1526 = vmatpush.bf16.msra.mxu2 %v3551_v18  ;;  %v3535_v30 = vor.u32 %v4271_v29, %v3534_v28  ;;  %v3462_v15 = vld [vmem:[#allocation2 + $0x20] sm:$0xf]  ;;  %v4254_v16 = vld [vmem:[#allocation2 + $0x2c] sm:$0xf0]  ;;  %v3491_v17 = vor.u32 %v4257_v13, %v3488_v14 }
 0x217   :  { %v4455_v37 = vpop.eup %4454  ;;  %v925_v38 = vadd.f32 %v4451_v25, %v924_v33  ;;  %v3539_v33 = vor.u32 %v4269_v31, %v3536_v32  ;;  %v3463_v18 = vor.u32 %v4254_v16, %v3462_v15  ;;  %v4250_v31 = vld [vmem:[#allocation2 + $0xc] sm:$0xf0]  ;;  %v4248_v32 = vld [vmem:[#allocation2 + $0x4] sm:$0xf] }
 0x218   :  { %v944_v40 = vadd.f32 %v4453_v27, %v943_v35  ;;  %v961_v41 = vmul.f32 %v4455_v37, %v959_v24  ;;  %v4457_v44 = vpop.eup %4456  ;;  %vm966_vm0 = vweird.f32 %v4455_v37  ;;  %v4270_v24 = vld [vmem:[#allocation2 + $0xac] sm:$0xf0] }
 0x219   :  { %v929_v43 = vsel %vm928_vm12, %v4451_v25, %v925_v38  ;;  %vm967_vm2 = vmor %vm965_vm1, %vm966_vm0  ;;  %v4268_v25 = vld [vmem:[#allocation2 + $0xa4] sm:$0xf]  ;;  %v3527_v26 = vor.u32 %v4270_v24, %v3526_v23  ;;  %v4266_v35 = vld [vmem:[#allocation2 + $0x8c] sm:$0xf0]  ;;  %1540 = vmatpush.bf16.msra.mxu3 %v3539_v33  ;;  %v3467_v23 = vor.u32 %v4252_v19, %v3464_v20 }
 0x21a   :  { %v934_v45 = vsel %vm931_vm14, %v933_v39, %v929_v43  ;;  %v948_v46 = vsel %vm947_vm13, %v4453_v27, %v944_v40  ;;  %v962_v47 = vsub.f32 1.0, %v961_v41  ;;  %v3528_v27 = vld [vmem:[#allocation2 + $0xb0] sm:$0xf0]  ;;  %1527 = vmatpush.bf16.msra.mxu2 %v3535_v30  ;;  %v3518_v39 = vld [vmem:[#allocation2 + $0x88] sm:$0xf] }
 0x21b   :  { %v953_v48 = vsel %vm950_vm15, %v952_v42, %v948_v46  ;;  %v976_v49 = vmul.f32 %v4457_v44, %v934_v45  ;;  %v3531_v53 = vor.u32 %v4268_v25, %v3528_v27  ;;  %1501 = vmatpush.bf16.msra.mxu0 %v3527_v26  ;;  %v3512_v38 = vld [vmem:[#allocation2 + $0x90] sm:$0xf0]  ;;  %v4267_v40 = vld [vmem:[#allocation2 + $0x94] sm:$0xf0]  ;;  %v4265_v43 = vld [vmem:[#allocation2 + $0x8c] sm:$0xf] }
 0x21c   :  { %v975_v50 = vmul.f32 %v953_v48, %v4635_v21  ;;  %v963_v51 = vmul.f32 %v4455_v37, %v962_v47  ;;  %v3515_v41 = vor.u32 %v4264_v36, %v3512_v38  ;;  %v3519_v42 = vor.u32 %v4267_v40, %v3518_v39  ;;  %v3520_v44 = vld [vmem:[#allocation2 + $0x98] sm:$0xf0]  ;;  %v3304_v45 = vld [vmem:[%s4771_s0 + $0x60] sm:$0xff]  ;;  %v3305_v46 = vld [vmem:[%s4771_s0 + $0x68] sm:$0xff] }
 0x21d   :  { %1514 = vmatpush.bf16.msra.mxu1 %v3531_v53  ;;  %v3523_v47 = vor.u32 %v4265_v43, %v3520_v44  ;;  %v3494_v48 = vld [vmem:[#allocation2 + $0x60] sm:$0xf]  ;;  %v4255_v24 = vld [vmem:[#allocation2 + $0x34] sm:$0xf0]  ;;  %v4253_v25 = vld [vmem:[#allocation2 + $0x2c] sm:$0xf] }
 0x21e   :  { %v4654_v52 = vadd.f32 %v976_v49, %v975_v50  ;;  %v964_v54 = vadd.f32 %v4455_v37, %v963_v51  ;;  %1528 = vmatpush.bf16.msra.mxu2 %v3519_v42  ;;  %v4262_v49 = vld [vmem:[#allocation2 + $0x6c] sm:$0xf0]  ;;  %v4260_v50 = vld [vmem:[#allocation2 + $0x64] sm:$0xf]  ;;  %v3472_v26 = vld [vmem:[#allocation2 + $0x38] sm:$0xf0]  ;;  %v3471_v29 = vor.u32 %v4255_v24, %v3470_v22 }
 0x21f   :  { %1541 = vmatpush.bf16.msra.mxu3 %v3523_v47  ;;  %v3495_v51 = vor.u32 %v4262_v49, %v3494_v48  ;;  %v3475_v53 = vor.u32 %v4253_v25, %v3472_v26  ;;  %v3446_v30 = vld [vmem:[#allocation2] sm:$0xf]  ;;  %v3454_v38 = vld [vmem:[#allocation2 + $0x8] sm:$0xf]  ;;  %v4251_v39 = vld [vmem:[#allocation2 + $0x14] sm:$0xf0] }
 0x220   :  { %4458 = vtanh.f32 %v4654_v52  ;;  %v968_v57 = vsel %vm967_vm2, %v4455_v37, %v964_v54  ;;  %v3511_v37 = vor.u32 %v4266_v35, %v3510_v34  ;;  %v3496_v54 = vld [vmem:[#allocation2 + $0x70] sm:$0xf0]  ;;  %v3447_v36 = vor.u32 %v4250_v31, %v3446_v30  ;;  %v4249_v42 = vld [vmem:[#allocation2 + $0xc] sm:$0xf]  ;;  %v3456_v43 = vld [vmem:[#allocation2 + $0x18] sm:$0xf0] }
 0x221   :  { %v973_v60 = vsel %vm970_vm3, %v972_v58, %v968_v57  ;;  %1515 = vmatpush.bf16.msra.mxu1 %v3515_v41  ;;  %v3499_v57 = vor.u32 %v4260_v50, %v3496_v54  ;;  %v3503_v58 = vor.u32 %v4263_v56, %v3502_v55  ;;  %v3455_v41 = vor.u32 %v4251_v39, %v3454_v38  ;;  %v3306_v54 = vld [vmem:[%s4771_s0 + $0x70] sm:$0xff]  ;;  %v4308_v31 = vld [vmem:[#allocation2 + $0xe4] sm:$0xf]  ;;  %v4309_v38 = vld [vmem:[#allocation2 + $0xec] sm:$0xf] }
 0x222   :  { %1502 = vmatpush.bf16.msra.mxu0 %v3511_v37  ;;  %v3448_v37 = vld [vmem:[#allocation2 + $0x10] sm:$0xf0]  ;;  %v4310_v30 = vld [vmem:[#allocation2 + $0xec] sm:$0xf0]  ;;  %v3704_v39 = vld [vmem:[#allocation2 + $0xf8] sm:$0xf0] }
 0x223   :  { %1529 = vmatpush.bf16.msra.mxu2 %v3503_v58  ;;  %v3451_v40 = vor.u32 %v4248_v32, %v3448_v37 }
 0x225   :  { %1516 = vmatpush.bf16.msra.mxu1 %v3499_v57 }
 0x226   :  { %v4459_v59 = vpop.eup %4458  ;;  %1503 = vmatpush.bf16.msra.mxu0 %v3495_v51 }
 0x227   :  { %v979_v61 = vmul.f32 %v4459_v59, %v973_v60  ;;  %v4261_v59 = vld [vmem:[#allocation2 + $0x6c] sm:$0xf]  ;;  %v3504_v60 = vld [vmem:[#allocation2 + $0x78] sm:$0xf0]  ;;  %1530 = vmatpush.bf16.msra.mxu2 %v3487_v12 }
 0x228   :  { %v3507_v62 = vor.u32 %v4261_v59, %v3504_v60 }
 0x229   :  { %3303 = vst [vmem:[%s4773_s2 + $0x10] sm:$0xff] %v979_v61  ;;  %v987_v21 = vpack.c.bf16 %v979_v61, %v979_v61  ;;  %1517 = vmatpush.bf16.msra.mxu1 %v3483_v11 }
 0x22a   :  { %1542 = vmatpush.bf16.msra.mxu3 %v3507_v62  ;;  %1504 = vmatpush.bf16.msra.mxu0 %v3479_v4 }
 0x22b   :  { %1188 = vmatmul.bf16.vlgmr.msrb.gmra.mxu0 %v987_v21  ;;  %1201 = vmatmul.bf16.vlgmr.msrb.gmra.mxu1 %v987_v21 }
 0x22c   :  { %1214 = vmatmul.bf16.vlgmr.msrb.gmra.mxu2 %v987_v21  ;;  %1227 = vmatmul.bf16.vlgmr.msrb.gmra.mxu3 %v987_v21 }
 0x22d   :  { %1518 = vmatpush.bf16.msra.mxu1 %v3467_v23  ;;  %1531 = vmatpush.bf16.msra.mxu2 %v3471_v29 }
 0x22e   :  { %1543 = vmatpush.bf16.msra.mxu3 %v3491_v17  ;;  %1505 = vmatpush.bf16.msra.mxu0 %v3463_v18 }
 0x231   :  { %1519 = vmatpush.bf16.msra.mxu1 %v3451_v40  ;;  %1532 = vmatpush.bf16.msra.mxu2 %v3455_v41  ;;  %v3707_v40 = vor.u32 %v4309_v38, %v3704_v39  ;;  %v3678_v41 = vld [vmem:[#allocation2 + $0xc0] sm:$0xf]  ;;  %v4291_v38 = vld [vmem:[#allocation2 + $0x54] sm:$0xf0] }
 0x232   :  { %1544 = vmatpush.bf16.msra.mxu3 %v3475_v53  ;;  %1506 = vmatpush.bf16.msra.mxu0 %v3447_v36  ;;  %v3694_v53 = vld [vmem:[#allocation2 + $0xe0] sm:$0xf] }
 0x233   :  { %v3695_v32 = vor.u32 %v4310_v30, %v3694_v53 }
 0x236   :  { %1818 = vmatpush.bf16.msrb.mxu0 %v3695_v32  ;;  %v3614_v32 = vld [vmem:[#allocation2 + $0x40] sm:$0xf] }
 0x2a8   :  { %v1189_v61 = vpop.f32.mrf.mxu0  ;;  %v1202_v21 = vpop.f32.mrf.mxu1 }
 0x2a9   :  { %v1232_v63 = vadd.f32 %v3304_v45, %v1189_v61  ;;  %v1233_v0 = vadd.f32 %v3305_v46, %v1202_v21  ;;  %v3459_v46 = vor.u32 %v4249_v42, %v3456_v43  ;;  %v4306_v42 = vld [vmem:[#allocation2 + $0xcc] sm:$0xf0]  ;;  %v4304_v43 = vld [vmem:[#allocation2 + $0xc4] sm:$0xf] }
 0x2ab   :  { %v3436_v8 = vmul.f32 -1.442695, %v1232_v63  ;;  %v3437_v9 = vmul.f32 -1.442695, %v1233_v0  ;;  %1545 = vmatpush.bf16.msra.mxu3 %v3459_v46  ;;  %v3686_v46 = vld [vmem:[#allocation2 + $0xc8] sm:$0xf] }
 0x2ad   :  { %4460 = vpow2.f32 %v3436_v8 }
 0x2ae   :  { %4462 = vpow2.f32 %v3437_v9 }
 0x2af   :  { %v1215_v27 = vpop.f32.mrf.mxu2  ;;  %v1228_v28 = vpop.f32.mrf.mxu3  ;;  %1857 = vmatpush.bf16.msrb.mxu3 %v3707_v40 }
 0x2b0   :  { %v1235_v33 = vadd.f32 %v3307_v10, %v1228_v28  ;;  %v1191_v34 = vpop.f32.mrf.mxu0  ;;  %v1204_v35 = vpop.f32.mrf.mxu1  ;;  %v1234_v58 = vadd.f32 %v3306_v54, %v1215_v27 }
 0x2b1   :  { %v3702_v34 = vld [vmem:[#allocation2 + $0xe8] sm:$0xf]  ;;  %v4311_v35 = vld [vmem:[#allocation2 + $0xf4] sm:$0xf0] }
 0x2b2   :  { %v3438_v44 = vmul.f32 -1.442695, %v1235_v33  ;;  %v3696_v33 = vld [vmem:[#allocation2 + $0xf0] sm:$0xf0]  ;;  %v3703_v37 = vor.u32 %v4311_v35, %v3702_v34  ;;  %v4288_v34 = vld [vmem:[#allocation2 + $0x44] sm:$0xf] }
 0x2b3   :  { %v4461_v45 = vpop.eup %4460  ;;  %v3699_v36 = vor.u32 %v4308_v31, %v3696_v33  ;;  %v4290_v33 = vld [vmem:[#allocation2 + $0x4c] sm:$0xf0] }
 0x2b4   :  { %v4463_v47 = vpop.eup %4462  ;;  %v1239_v48 = vadd.f32 1.0, %v4461_v45  ;;  %4464 = vpow2.f32 %v3438_v44  ;;  %1844 = vmatpush.bf16.msrb.mxu2 %v3703_v37  ;;  %v3679_v44 = vor.u32 %v4306_v42, %v3678_v41  ;;  %v3680_v45 = vld [vmem:[#allocation2 + $0xd0] sm:$0xf0]  ;;  %v3615_v35 = vor.u32 %v4290_v33, %v3614_v32  ;;  %v3622_v37 = vld [vmem:[#allocation2 + $0x48] sm:$0xf]  ;;  %v3443_v41 = vld [vmem:[%s4771_s0 + $0x98] sm:$0xff] }
 0x2b5   :  { %v1258_v49 = vadd.f32 1.0, %v4463_v47  ;;  %1831 = vmatpush.bf16.msrb.mxu1 %v3699_v36  ;;  %v4307_v47 = vld [vmem:[#allocation2 + $0xd4] sm:$0xf0]  ;;  %v3616_v36 = vld [vmem:[#allocation2 + $0x50] sm:$0xf0] }
 0x2b6   :  { %4466 = vrcp.f32 %v1239_v48  ;;  %v1251_v63 = vand.u32 2147483648, %v1239_v48  ;;  %v1249_v2 = vand.u32 2147483647, %v1239_v48  ;;  %vm1245_vm6 = vweird.f32 %v1239_v48  ;;  %1819 = vmatpush.bf16.msrb.mxu0 %v3679_v44  ;;  %v4289_v44 = vld [vmem:[#allocation2 + $0x4c] sm:$0xf] }
 0x2b7   :  { %4468 = vrcp.f32 %v1258_v49  ;;  %v1217_v50 = vpop.f32.mrf.mxu2  ;;  %v1230_v51 = vpop.f32.mrf.mxu3  ;;  %v1270_v0 = vand.u32 2147483648, %v1258_v49  ;;  %v1268_v4 = vand.u32 2147483647, %v1258_v49  ;;  %vm1264_vm7 = vweird.f32 %v1258_v49 }
 0x2b8   :  { %v1252_v7 = vor.u32 1.1754944e-38, %v1251_v63  ;;  %vm1250_vm10 = vcmp.eq.f32.partialorder %v1249_v2, 8.507059e+37  ;;  %v4305_v50 = vld [vmem:[#allocation2 + $0xcc] sm:$0xf]  ;;  %v3688_v51 = vld [vmem:[#allocation2 + $0xd8] sm:$0xf0]  ;;  %v3619_v42 = vor.u32 %v4288_v34, %v3616_v36 }
 0x2b9   :  { %v1271_v10 = vor.u32 1.1754944e-38, %v1270_v0  ;;  %vm1269_vm11 = vcmp.eq.f32.partialorder %v1268_v4, 8.507059e+37  ;;  %v3691_v54 = vor.u32 %v4305_v50, %v3688_v51  ;;  %v4301_v63 = vld [vmem:[#allocation2 + $0xac] sm:$0xf]  ;;  %v3672_v0 = vld [vmem:[#allocation2 + $0xb8] sm:$0xf0] }
 0x2ba   :  { %v4465_v55 = vpop.eup %4464  ;;  %v3646_v2 = vld [vmem:[#allocation2 + $0x80] sm:$0xf]  ;;  %v4296_v4 = vld [vmem:[#allocation2 + $0x84] sm:$0xf]  ;;  %v3600_v51 = vld [vmem:[#allocation2 + $0x30] sm:$0xf0] }
 0x2bb   :  { %v1278_v56 = vadd.f32 1.0, %v4465_v55  ;;  %v3662_v55 = vld [vmem:[#allocation2 + $0xa0] sm:$0xf]  ;;  %1858 = vmatpush.bf16.msrb.mxu3 %v3691_v54  ;;  %v4284_v50 = vld [vmem:[#allocation2 + $0x24] sm:$0xf] }
 0x2bc   :  { %v4467_v57 = vpop.eup %4466  ;;  %v3606_v54 = vld [vmem:[#allocation2 + $0x28] sm:$0xf] }
 0x2bd   :  { %v4469_v59 = vpop.eup %4468  ;;  %v1241_v60 = vmul.f32 %v4467_v57, %v1239_v48  ;;  %4470 = vrcp.f32 %v1278_v56  ;;  %vm1246_vm4 = vweird.f32 %v4467_v57  ;;  %v1290_v23 = vand.u32 2147483648, %v1278_v56 }
 0x2be   :  { %v1260_v61 = vmul.f32 %v4469_v59, %v1258_v49  ;;  %4472 = vtanh.f32 %v1234_v58  ;;  %vm1265_vm5 = vweird.f32 %v4469_v59  ;;  %vm1247_vm8 = vmor %vm1245_vm6, %vm1246_vm4  ;;  %vm1284_vm13 = vweird.f32 %v1278_v56 }
 0x2bf   :  { %v1242_v21 = vsub.f32 1.0, %v1241_v60  ;;  %vm1266_vm9 = vmor %vm1264_vm7, %vm1265_vm5  ;;  %v1288_v24 = vand.u32 2147483647, %v1278_v56  ;;  %v1291_v26 = vor.u32 1.1754944e-38, %v1290_v23  ;;  %v3683_v48 = vor.u32 %v4304_v43, %v3680_v45  ;;  %v3670_v60 = vld [vmem:[#allocation2 + $0xa8] sm:$0xf] }
 0x2c0   :  { %v1261_v62 = vsub.f32 1.0, %v1260_v61  ;;  %v3687_v49 = vor.u32 %v4307_v47, %v3686_v46  ;;  %v4303_v61 = vld [vmem:[#allocation2 + $0xb4] sm:$0xf0]  ;;  %v3638_v23 = vld [vmem:[#allocation2 + $0x68] sm:$0xf]  ;;  %v3623_v43 = vor.u32 %v4291_v38, %v3622_v37 }
 0x2c1   :  { %v1243_v1 = vmul.f32 %v4467_v57, %v1242_v21  ;;  %vm1289_vm15 = vcmp.eq.f32.partialorder %v1288_v24, 8.507059e+37  ;;  %1832 = vmatpush.bf16.msrb.mxu1 %v3683_v48  ;;  %v4295_v24 = vld [vmem:[#allocation2 + $0x74] sm:$0xf0]  ;;  %v3624_v45 = vld [vmem:[#allocation2 + $0x58] sm:$0xf0] }
 0x2c2   :  { %v1262_v3 = vmul.f32 %v4469_v59, %v1261_v62  ;;  %1845 = vmatpush.bf16.msrb.mxu2 %v3687_v49  ;;  %v3671_v62 = vor.u32 %v4303_v61, %v3670_v60  ;;  %v3598_v46 = vld [vmem:[#allocation2 + $0x20] sm:$0xf]  ;;  %v4286_v47 = vld [vmem:[#allocation2 + $0x2c] sm:$0xf0]  ;;  %v3627_v48 = vor.u32 %v4289_v44, %v3624_v45 }
 0x2c3   :  { %v4471_v5 = vpop.eup %4470  ;;  %v1244_v6 = vadd.f32 %v4467_v57, %v1243_v1  ;;  %v3675_v1 = vor.u32 %v4301_v63, %v3672_v0  ;;  %v3599_v49 = vor.u32 %v4286_v47, %v3598_v46  ;;  %v4282_v63 = vld [vmem:[#allocation2 + $0xc] sm:$0xf0]  ;;  %v4280_v0 = vld [vmem:[#allocation2 + $0x4] sm:$0xf] }
 0x2c4   :  { %v1263_v8 = vadd.f32 %v4469_v59, %v1262_v3  ;;  %v1280_v9 = vmul.f32 %v4471_v5, %v1278_v56  ;;  %v4473_v12 = vpop.eup %4472  ;;  %vm1285_vm12 = vweird.f32 %v4471_v5  ;;  %v4302_v56 = vld [vmem:[#allocation2 + $0xac] sm:$0xf0] }
 0x2c5   :  { %v1248_v11 = vsel %vm1247_vm8, %v4467_v57, %v1244_v6  ;;  %vm1286_vm14 = vmor %vm1284_vm13, %vm1285_vm12  ;;  %v4300_v57 = vld [vmem:[#allocation2 + $0xa4] sm:$0xf]  ;;  %v3663_v58 = vor.u32 %v4302_v56, %v3662_v55  ;;  %v4298_v3 = vld [vmem:[#allocation2 + $0x8c] sm:$0xf0]  ;;  %1859 = vmatpush.bf16.msrb.mxu3 %v3675_v1  ;;  %v3603_v55 = vor.u32 %v4284_v50, %v3600_v51 }
 0x2c6   :  { %v1253_v13 = vsel %vm1250_vm10, %v1252_v7, %v1248_v11  ;;  %v1267_v14 = vsel %vm1266_vm9, %v4469_v59, %v1263_v8  ;;  %v1281_v15 = vsub.f32 1.0, %v1280_v9  ;;  %v3664_v59 = vld [vmem:[#allocation2 + $0xb0] sm:$0xf0]  ;;  %1846 = vmatpush.bf16.msrb.mxu2 %v3671_v62  ;;  %v3654_v7 = vld [vmem:[#allocation2 + $0x88] sm:$0xf] }
 0x2c7   :  { %v1272_v16 = vsel %vm1269_vm11, %v1271_v10, %v1267_v14  ;;  %v1295_v17 = vmul.f32 %v4473_v12, %v1253_v13  ;;  %v3667_v21 = vor.u32 %v4300_v57, %v3664_v59  ;;  %1820 = vmatpush.bf16.msrb.mxu0 %v3663_v58  ;;  %v3648_v6 = vld [vmem:[#allocation2 + $0x90] sm:$0xf0]  ;;  %v4299_v8 = vld [vmem:[#allocation2 + $0x94] sm:$0xf0]  ;;  %v4297_v11 = vld [vmem:[#allocation2 + $0x8c] sm:$0xf] }
 0x2c8   :  { %v1294_v18 = vmul.f32 %v1272_v16, %v4654_v52  ;;  %v1282_v19 = vmul.f32 %v4471_v5, %v1281_v15  ;;  %v3651_v9 = vor.u32 %v4296_v4, %v3648_v6  ;;  %v3655_v10 = vor.u32 %v4299_v8, %v3654_v7  ;;  %v3656_v12 = vld [vmem:[#allocation2 + $0x98] sm:$0xf0]  ;;  %v3440_v13 = vld [vmem:[%s4771_s0 + $0x80] sm:$0xff]  ;;  %v3441_v14 = vld [vmem:[%s4771_s0 + $0x88] sm:$0xff] }
 0x2c9   :  { %1833 = vmatpush.bf16.msrb.mxu1 %v3667_v21  ;;  %v3659_v15 = vor.u32 %v4297_v11, %v3656_v12  ;;  %v3630_v16 = vld [vmem:[#allocation2 + $0x60] sm:$0xf]  ;;  %v4287_v56 = vld [vmem:[#allocation2 + $0x34] sm:$0xf0]  ;;  %v4285_v57 = vld [vmem:[#allocation2 + $0x2c] sm:$0xf] }
 0x2ca   :  { %v4673_v20 = vadd.f32 %v1295_v17, %v1294_v18  ;;  %v1283_v22 = vadd.f32 %v4471_v5, %v1282_v19  ;;  %1847 = vmatpush.bf16.msrb.mxu2 %v3655_v10  ;;  %v4294_v17 = vld [vmem:[#allocation2 + $0x6c] sm:$0xf0]  ;;  %v4292_v18 = vld [vmem:[#allocation2 + $0x64] sm:$0xf]  ;;  %v3608_v58 = vld [vmem:[#allocation2 + $0x38] sm:$0xf0]  ;;  %v3607_v61 = vor.u32 %v4287_v56, %v3606_v54 }
 0x2cb   :  { %1860 = vmatpush.bf16.msrb.mxu3 %v3659_v15  ;;  %v3631_v19 = vor.u32 %v4294_v17, %v3630_v16  ;;  %v3611_v21 = vor.u32 %v4285_v57, %v3608_v58  ;;  %v3582_v62 = vld [vmem:[#allocation2] sm:$0xf]  ;;  %v3590_v6 = vld [vmem:[#allocation2 + $0x8] sm:$0xf]  ;;  %v4283_v7 = vld [vmem:[#allocation2 + $0x14] sm:$0xf0] }
 0x2cc   :  { %4474 = vtanh.f32 %v4673_v20  ;;  %v1287_v25 = vsel %vm1286_vm14, %v4471_v5, %v1283_v22  ;;  %v3647_v5 = vor.u32 %v4298_v3, %v3646_v2  ;;  %v3632_v22 = vld [vmem:[#allocation2 + $0x70] sm:$0xf0]  ;;  %v3583_v4 = vor.u32 %v4282_v63, %v3582_v62  ;;  %v4281_v10 = vld [vmem:[#allocation2 + $0xc] sm:$0xf]  ;;  %v3592_v11 = vld [vmem:[#allocation2 + $0x18] sm:$0xf0] }
 0x2cd   :  { %v1292_v28 = vsel %vm1289_vm15, %v1291_v26, %v1287_v25  ;;  %1834 = vmatpush.bf16.msrb.mxu1 %v3651_v9  ;;  %v3635_v25 = vor.u32 %v4292_v18, %v3632_v22  ;;  %v3639_v26 = vor.u32 %v4295_v24, %v3638_v23  ;;  %v3591_v9 = vor.u32 %v4283_v7, %v3590_v6  ;;  %v3442_v22 = vld [vmem:[%s4771_s0 + $0x90] sm:$0xff]  ;;  %v4340_v63 = vld [vmem:[#allocation2 + $0xe4] sm:$0xf]  ;;  %v4341_v6 = vld [vmem:[#allocation2 + $0xec] sm:$0xf] }
 0x2ce   :  { %1821 = vmatpush.bf16.msrb.mxu0 %v3647_v5  ;;  %v3584_v5 = vld [vmem:[#allocation2 + $0x10] sm:$0xf0]  ;;  %v4342_v62 = vld [vmem:[#allocation2 + $0xec] sm:$0xf0]  ;;  %v3840_v7 = vld [vmem:[#allocation2 + $0xf8] sm:$0xf0] }
 0x2cf   :  { %1848 = vmatpush.bf16.msrb.mxu2 %v3639_v26  ;;  %v3587_v8 = vor.u32 %v4280_v0, %v3584_v5 }
 0x2d1   :  { %1835 = vmatpush.bf16.msrb.mxu1 %v3635_v25 }
 0x2d2   :  { %v4475_v27 = vpop.eup %4474  ;;  %1822 = vmatpush.bf16.msrb.mxu0 %v3631_v19 }
 0x2d3   :  { %v1298_v29 = vmul.f32 %v4475_v27, %v1292_v28  ;;  %v4293_v27 = vld [vmem:[#allocation2 + $0x6c] sm:$0xf]  ;;  %v3640_v28 = vld [vmem:[#allocation2 + $0x78] sm:$0xf0]  ;;  %1849 = vmatpush.bf16.msrb.mxu2 %v3623_v43 }
 0x2d4   :  { %v3643_v53 = vor.u32 %v4293_v27, %v3640_v28 }
 0x2d5   :  { %3439 = vst [vmem:[%s4773_s2 + $0x18] sm:$0xff] %v1298_v29  ;;  %v1306_v52 = vpack.c.bf16 %v1298_v29, %v1298_v29  ;;  %1836 = vmatpush.bf16.msrb.mxu1 %v3619_v42 }
 0x2d6   :  { %1861 = vmatpush.bf16.msrb.mxu3 %v3643_v53  ;;  %1823 = vmatpush.bf16.msrb.mxu0 %v3615_v35 }
 0x2d7   :  { %1507 = vmatmul.bf16.vlgmr.msra.gmra.mxu0 %v1306_v52  ;;  %1520 = vmatmul.bf16.vlgmr.msra.gmra.mxu1 %v1306_v52 }
 0x2d8   :  { %1533 = vmatmul.bf16.vlgmr.msra.gmra.mxu2 %v1306_v52  ;;  %1546 = vmatmul.bf16.vlgmr.msra.gmra.mxu3 %v1306_v52 }
 0x2d9   :  { %1837 = vmatpush.bf16.msrb.mxu1 %v3603_v55  ;;  %1850 = vmatpush.bf16.msrb.mxu2 %v3607_v61 }
 0x2da   :  { %1862 = vmatpush.bf16.msrb.mxu3 %v3627_v48  ;;  %1824 = vmatpush.bf16.msrb.mxu0 %v3599_v49 }
 0x2dd   :  { %1838 = vmatpush.bf16.msrb.mxu1 %v3587_v8  ;;  %1851 = vmatpush.bf16.msrb.mxu2 %v3591_v9  ;;  %v3843_v8 = vor.u32 %v4341_v6, %v3840_v7  ;;  %v3814_v9 = vld [vmem:[#allocation2 + $0xc0] sm:$0xf]  ;;  %v4323_v6 = vld [vmem:[#allocation2 + $0x54] sm:$0xf0] }
 0x2de   :  { %1863 = vmatpush.bf16.msrb.mxu3 %v3611_v21  ;;  %1825 = vmatpush.bf16.msrb.mxu0 %v3583_v4  ;;  %v3830_v21 = vld [vmem:[#allocation2 + $0xe0] sm:$0xf] }
 0x2df   :  { %v3831_v0 = vor.u32 %v4342_v62, %v3830_v21 }
 0x2e2   :  { %2137 = vmatpush.bf16.msra.mxu0 %v3831_v0  ;;  %v3750_v0 = vld [vmem:[#allocation2 + $0x40] sm:$0xf] }
 0x354   :  { %v1508_v29 = vpop.f32.mrf.mxu0  ;;  %v1521_v52 = vpop.f32.mrf.mxu1 }
 0x355   :  { %v1551_v30 = vadd.f32 %v3440_v13, %v1508_v29  ;;  %v1552_v31 = vadd.f32 %v3441_v14, %v1521_v52  ;;  %v3595_v14 = vor.u32 %v4281_v10, %v3592_v11  ;;  %v4338_v10 = vld [vmem:[#allocation2 + $0xcc] sm:$0xf0]  ;;  %v4336_v11 = vld [vmem:[#allocation2 + $0xc4] sm:$0xf] }
 0x357   :  { %v3572_v39 = vmul.f32 -1.442695, %v1551_v30  ;;  %v3573_v40 = vmul.f32 -1.442695, %v1552_v31  ;;  %1864 = vmatpush.bf16.msrb.mxu3 %v3595_v14  ;;  %v3822_v14 = vld [vmem:[#allocation2 + $0xc8] sm:$0xf] }
 0x359   :  { %4476 = vpow2.f32 %v3572_v39 }
 0x35a   :  { %4478 = vpow2.f32 %v3573_v40 }
 0x35b   :  { %v1534_v59 = vpop.f32.mrf.mxu2  ;;  %v1547_v60 = vpop.f32.mrf.mxu3  ;;  %2176 = vmatpush.bf16.msra.mxu3 %v3843_v8 }
 0x35c   :  { %v1554_v1 = vadd.f32 %v3443_v41, %v1547_v60  ;;  %v1510_v2 = vpop.f32.mrf.mxu0  ;;  %v1523_v3 = vpop.f32.mrf.mxu1  ;;  %v1553_v26 = vadd.f32 %v3442_v22, %v1534_v59 }
 0x35d   :  { %v3838_v2 = vld [vmem:[#allocation2 + $0xe8] sm:$0xf]  ;;  %v4343_v3 = vld [vmem:[#allocation2 + $0xf4] sm:$0xf0] }
 0x35e   :  { %v3574_v12 = vmul.f32 -1.442695, %v1554_v1  ;;  %v3832_v1 = vld [vmem:[#allocation2 + $0xf0] sm:$0xf0]  ;;  %v3839_v5 = vor.u32 %v4343_v3, %v3838_v2  ;;  %v4320_v2 = vld [vmem:[#allocation2 + $0x44] sm:$0xf] }
 0x35f   :  { %v4477_v13 = vpop.eup %4476  ;;  %v3835_v4 = vor.u32 %v4340_v63, %v3832_v1  ;;  %v4322_v1 = vld [vmem:[#allocation2 + $0x4c] sm:$0xf0] }
 0x360   :  { %v4479_v15 = vpop.eup %4478  ;;  %v1558_v16 = vadd.f32 1.0, %v4477_v13  ;;  %4480 = vpow2.f32 %v3574_v12  ;;  %2163 = vmatpush.bf16.msra.mxu2 %v3839_v5  ;;  %v3815_v12 = vor.u32 %v4338_v10, %v3814_v9  ;;  %v3816_v13 = vld [vmem:[#allocation2 + $0xd0] sm:$0xf0]  ;;  %v3751_v3 = vor.u32 %v4322_v1, %v3750_v0  ;;  %v3758_v5 = vld [vmem:[#allocation2 + $0x48] sm:$0xf]  ;;  %v3579_v9 = vld [vmem:[%s4771_s0 + $0xb8] sm:$0xff] }
 0x361   :  { %v1577_v17 = vadd.f32 1.0, %v4479_v15  ;;  %2150 = vmatpush.bf16.msra.mxu1 %v3835_v4  ;;  %v4339_v15 = vld [vmem:[#allocation2 + $0xd4] sm:$0xf0]  ;;  %v3752_v4 = vld [vmem:[#allocation2 + $0x50] sm:$0xf0] }
 0x362   :  { %4482 = vrcp.f32 %v1558_v16  ;;  %v1570_v30 = vand.u32 2147483648, %v1558_v16  ;;  %v1568_v33 = vand.u32 2147483647, %v1558_v16  ;;  %vm1564_vm2 = vweird.f32 %v1558_v16  ;;  %2138 = vmatpush.bf16.msra.mxu0 %v3815_v12  ;;  %v4321_v12 = vld [vmem:[#allocation2 + $0x4c] sm:$0xf] }
 0x363   :  { %4484 = vrcp.f32 %v1577_v17  ;;  %v1536_v18 = vpop.f32.mrf.mxu2  ;;  %v1549_v19 = vpop.f32.mrf.mxu3  ;;  %v1589_v31 = vand.u32 2147483648, %v1577_v17  ;;  %v1587_v35 = vand.u32 2147483647, %v1577_v17  ;;  %vm1583_vm3 = vweird.f32 %v1577_v17 }
 0x364   :  { %v1571_v38 = vor.u32 1.1754944e-38, %v1570_v30  ;;  %vm1569_vm6 = vcmp.eq.f32.partialorder %v1568_v33, 8.507059e+37  ;;  %v4337_v18 = vld [vmem:[#allocation2 + $0xcc] sm:$0xf]  ;;  %v3824_v19 = vld [vmem:[#allocation2 + $0xd8] sm:$0xf0]  ;;  %v3755_v10 = vor.u32 %v4320_v2, %v3752_v4 }
 0x365   :  { %v1590_v41 = vor.u32 1.1754944e-38, %v1589_v31  ;;  %vm1588_vm7 = vcmp.eq.f32.partialorder %v1587_v35, 8.507059e+37  ;;  %v3827_v22 = vor.u32 %v4337_v18, %v3824_v19  ;;  %v4333_v30 = vld [vmem:[#allocation2 + $0xac] sm:$0xf]  ;;  %v3808_v31 = vld [vmem:[#allocation2 + $0xb8] sm:$0xf0] }
 0x366   :  { %v4481_v23 = vpop.eup %4480  ;;  %v3782_v33 = vld [vmem:[#allocation2 + $0x80] sm:$0xf]  ;;  %v4328_v35 = vld [vmem:[#allocation2 + $0x84] sm:$0xf]  ;;  %v3736_v19 = vld [vmem:[#allocation2 + $0x30] sm:$0xf0] }
 0x367   :  { %v1597_v24 = vadd.f32 1.0, %v4481_v23  ;;  %v3798_v23 = vld [vmem:[#allocation2 + $0xa0] sm:$0xf]  ;;  %2177 = vmatpush.bf16.msra.mxu3 %v3827_v22  ;;  %v4316_v18 = vld [vmem:[#allocation2 + $0x24] sm:$0xf] }
 0x368   :  { %v4483_v25 = vpop.eup %4482  ;;  %v3742_v22 = vld [vmem:[#allocation2 + $0x28] sm:$0xf] }
 0x369   :  { %v4485_v27 = vpop.eup %4484  ;;  %v1560_v28 = vmul.f32 %v4483_v25, %v1558_v16  ;;  %4486 = vrcp.f32 %v1597_v24  ;;  %vm1565_vm0 = vweird.f32 %v4483_v25  ;;  %v1609_v55 = vand.u32 2147483648, %v1597_v24 }
 0x36a   :  { %v1579_v29 = vmul.f32 %v4485_v27, %v1577_v17  ;;  %4488 = vtanh.f32 %v1553_v26  ;;  %vm1584_vm1 = vweird.f32 %v4485_v27  ;;  %vm1566_vm4 = vmor %vm1564_vm2, %vm1565_vm0  ;;  %vm1603_vm9 = vweird.f32 %v1597_v24 }
 0x36b   :  { %v1561_v52 = vsub.f32 1.0, %v1560_v28  ;;  %vm1585_vm5 = vmor %vm1583_vm3, %vm1584_vm1  ;;  %v1607_v56 = vand.u32 2147483647, %v1597_v24  ;;  %v1610_v58 = vor.u32 1.1754944e-38, %v1609_v55  ;;  %v3819_v16 = vor.u32 %v4336_v11, %v3816_v13  ;;  %v3806_v28 = vld [vmem:[#allocation2 + $0xa8] sm:$0xf] }
 0x36c   :  { %v1580_v53 = vsub.f32 1.0, %v1579_v29  ;;  %v3823_v17 = vor.u32 %v4339_v15, %v3822_v14  ;;  %v4335_v29 = vld [vmem:[#allocation2 + $0xb4] sm:$0xf0]  ;;  %v3774_v55 = vld [vmem:[#allocation2 + $0x68] sm:$0xf]  ;;  %v3759_v11 = vor.u32 %v4323_v6, %v3758_v5 }
 0x36d   :  { %v1562_v32 = vmul.f32 %v4483_v25, %v1561_v52  ;;  %vm1608_vm11 = vcmp.eq.f32.partialorder %v1607_v56, 8.507059e+37  ;;  %2151 = vmatpush.bf16.msra.mxu1 %v3819_v16  ;;  %v4327_v56 = vld [vmem:[#allocation2 + $0x74] sm:$0xf0]  ;;  %v3760_v13 = vld [vmem:[#allocation2 + $0x58] sm:$0xf0] }
 0x36e   :  { %v1581_v34 = vmul.f32 %v4485_v27, %v1580_v53  ;;  %2164 = vmatpush.bf16.msra.mxu2 %v3823_v17  ;;  %v3807_v53 = vor.u32 %v4335_v29, %v3806_v28  ;;  %v3734_v14 = vld [vmem:[#allocation2 + $0x20] sm:$0xf]  ;;  %v4318_v15 = vld [vmem:[#allocation2 + $0x2c] sm:$0xf0]  ;;  %v3763_v16 = vor.u32 %v4321_v12, %v3760_v13 }
 0x36f   :  { %v4487_v36 = vpop.eup %4486  ;;  %v1563_v37 = vadd.f32 %v4483_v25, %v1562_v32  ;;  %v3811_v32 = vor.u32 %v4333_v30, %v3808_v31  ;;  %v3735_v17 = vor.u32 %v4318_v15, %v3734_v14  ;;  %v4314_v30 = vld [vmem:[#allocation2 + $0xc] sm:$0xf0]  ;;  %v4312_v31 = vld [vmem:[#allocation2 + $0x4] sm:$0xf] }
 0x370   :  { %v1582_v39 = vadd.f32 %v4485_v27, %v1581_v34  ;;  %v1599_v40 = vmul.f32 %v4487_v36, %v1597_v24  ;;  %v4489_v43 = vpop.eup %4488  ;;  %vm1604_vm8 = vweird.f32 %v4487_v36  ;;  %v4334_v24 = vld [vmem:[#allocation2 + $0xac] sm:$0xf0] }
 0x371   :  { %v1567_v42 = vsel %vm1566_vm4, %v4483_v25, %v1563_v37  ;;  %vm1605_vm10 = vmor %vm1603_vm9, %vm1604_vm8  ;;  %v4332_v25 = vld [vmem:[#allocation2 + $0xa4] sm:$0xf]  ;;  %v3799_v26 = vor.u32 %v4334_v24, %v3798_v23  ;;  %v4330_v34 = vld [vmem:[#allocation2 + $0x8c] sm:$0xf0]  ;;  %2178 = vmatpush.bf16.msra.mxu3 %v3811_v32  ;;  %v3739_v23 = vor.u32 %v4316_v18, %v3736_v19 }
 0x372   :  { %v1572_v44 = vsel %vm1569_vm6, %v1571_v38, %v1567_v42  ;;  %v1586_v45 = vsel %vm1585_vm5, %v4485_v27, %v1582_v39  ;;  %v1600_v46 = vsub.f32 1.0, %v1599_v40  ;;  %v3800_v27 = vld [vmem:[#allocation2 + $0xb0] sm:$0xf0]  ;;  %2165 = vmatpush.bf16.msra.mxu2 %v3807_v53  ;;  %v3790_v38 = vld [vmem:[#allocation2 + $0x88] sm:$0xf] }
 0x373   :  { %v1591_v47 = vsel %vm1588_vm7, %v1590_v41, %v1586_v45  ;;  %v1614_v48 = vmul.f32 %v4489_v43, %v1572_v44  ;;  %v3803_v52 = vor.u32 %v4332_v25, %v3800_v27  ;;  %2139 = vmatpush.bf16.msra.mxu0 %v3799_v26  ;;  %v3784_v37 = vld [vmem:[#allocation2 + $0x90] sm:$0xf0]  ;;  %v4331_v39 = vld [vmem:[#allocation2 + $0x94] sm:$0xf0]  ;;  %v4329_v42 = vld [vmem:[#allocation2 + $0x8c] sm:$0xf] }
 0x374   :  { %v1613_v49 = vmul.f32 %v1591_v47, %v4673_v20  ;;  %v1601_v50 = vmul.f32 %v4487_v36, %v1600_v46  ;;  %v3787_v40 = vor.u32 %v4328_v35, %v3784_v37  ;;  %v3791_v41 = vor.u32 %v4331_v39, %v3790_v38  ;;  %v3792_v43 = vld [vmem:[#allocation2 + $0x98] sm:$0xf0]  ;;  %v3576_v44 = vld [vmem:[%s4771_s0 + $0xa0] sm:$0xff]  ;;  %v3577_v45 = vld [vmem:[%s4771_s0 + $0xa8] sm:$0xff] }
 0x375   :  { %2152 = vmatpush.bf16.msra.mxu1 %v3803_v52  ;;  %v3795_v46 = vor.u32 %v4329_v42, %v3792_v43  ;;  %v3766_v47 = vld [vmem:[#allocation2 + $0x60] sm:$0xf]  ;;  %v4319_v24 = vld [vmem:[#allocation2 + $0x34] sm:$0xf0]  ;;  %v4317_v25 = vld [vmem:[#allocation2 + $0x2c] sm:$0xf] }
 0x376   :  { %v4692_v51 = vadd.f32 %v1614_v48, %v1613_v49  ;;  %v1602_v54 = vadd.f32 %v4487_v36, %v1601_v50  ;;  %2166 = vmatpush.bf16.msra.mxu2 %v3791_v41  ;;  %v4326_v48 = vld [vmem:[#allocation2 + $0x6c] sm:$0xf0]  ;;  %v4324_v49 = vld [vmem:[#allocation2 + $0x64] sm:$0xf]  ;;  %v3744_v26 = vld [vmem:[#allocation2 + $0x38] sm:$0xf0]  ;;  %v3743_v29 = vor.u32 %v4319_v24, %v3742_v22 }
 0x377   :  { %2179 = vmatpush.bf16.msra.mxu3 %v3795_v46  ;;  %v3767_v50 = vor.u32 %v4326_v48, %v3766_v47  ;;  %v3747_v52 = vor.u32 %v4317_v25, %v3744_v26  ;;  %v3718_v53 = vld [vmem:[#allocation2] sm:$0xf]  ;;  %v3726_v37 = vld [vmem:[#allocation2 + $0x8] sm:$0xf]  ;;  %v4315_v38 = vld [vmem:[#allocation2 + $0x14] sm:$0xf0] }
 0x378   :  { %4490 = vtanh.f32 %v4692_v51  ;;  %v1606_v57 = vsel %vm1605_vm10, %v4487_v36, %v1602_v54  ;;  %v3783_v36 = vor.u32 %v4330_v34, %v3782_v33  ;;  %v3768_v54 = vld [vmem:[#allocation2 + $0x70] sm:$0xf0]  ;;  %v3719_v35 = vor.u32 %v4314_v30, %v3718_v53  ;;  %v4313_v41 = vld [vmem:[#allocation2 + $0xc] sm:$0xf]  ;;  %v3728_v42 = vld [vmem:[#allocation2 + $0x18] sm:$0xf0] }
 0x379   :  { %v1611_v60 = vsel %vm1608_vm11, %v1610_v58, %v1606_v57  ;;  %2153 = vmatpush.bf16.msra.mxu1 %v3787_v40  ;;  %v3771_v57 = vor.u32 %v4324_v49, %v3768_v54  ;;  %v3775_v58 = vor.u32 %v4327_v56, %v3774_v55  ;;  %v3727_v40 = vor.u32 %v4315_v38, %v3726_v37  ;;  %v3578_v54 = vld [vmem:[%s4771_s0 + $0xb0] sm:$0xff]  ;;  %v4372_v30 = vld [vmem:[#allocation2 + $0xe4] sm:$0xf]  ;;  %v4373_v37 = vld [vmem:[#allocation2 + $0xec] sm:$0xf] }
 0x37a   :  { %2140 = vmatpush.bf16.msra.mxu0 %v3783_v36  ;;  %v3720_v36 = vld [vmem:[#allocation2 + $0x10] sm:$0xf0]  ;;  %v4374_v53 = vld [vmem:[#allocation2 + $0xec] sm:$0xf0]  ;;  %v3976_v38 = vld [vmem:[#allocation2 + $0xf8] sm:$0xf0] }
 0x37b   :  { %2167 = vmatpush.bf16.msra.mxu2 %v3775_v58  ;;  %v3723_v39 = vor.u32 %v4312_v31, %v3720_v36 }
 0x37d   :  { %2154 = vmatpush.bf16.msra.mxu1 %v3771_v57 }
 0x37e   :  { %v4491_v59 = vpop.eup %4490  ;;  %2141 = vmatpush.bf16.msra.mxu0 %v3767_v50 }
 0x37f   :  { %v1617_v61 = vmul.f32 %v4491_v59, %v1611_v60  ;;  %v4325_v59 = vld [vmem:[#allocation2 + $0x6c] sm:$0xf]  ;;  %v3776_v60 = vld [vmem:[#allocation2 + $0x78] sm:$0xf0]  ;;  %2168 = vmatpush.bf16.msra.mxu2 %v3759_v11 }
 0x380   :  { %v3779_v21 = vor.u32 %v4325_v59, %v3776_v60 }
 0x381   :  { %3575 = vst [vmem:[%s4773_s2 + $0x20] sm:$0xff] %v1617_v61  ;;  %v1625_v20 = vpack.c.bf16 %v1617_v61, %v1617_v61  ;;  %2155 = vmatpush.bf16.msra.mxu1 %v3755_v10 }
 0x382   :  { %2180 = vmatpush.bf16.msra.mxu3 %v3779_v21  ;;  %2142 = vmatpush.bf16.msra.mxu0 %v3751_v3 }
 0x383   :  { %1826 = vmatmul.bf16.vlgmr.msrb.gmra.mxu0 %v1625_v20  ;;  %1839 = vmatmul.bf16.vlgmr.msrb.gmra.mxu1 %v1625_v20 }
 0x384   :  { %1852 = vmatmul.bf16.vlgmr.msrb.gmra.mxu2 %v1625_v20  ;;  %1865 = vmatmul.bf16.vlgmr.msrb.gmra.mxu3 %v1625_v20 }
 0x385   :  { %2156 = vmatpush.bf16.msra.mxu1 %v3739_v23  ;;  %2169 = vmatpush.bf16.msra.mxu2 %v3743_v29 }
 0x386   :  { %2181 = vmatpush.bf16.msra.mxu3 %v3763_v16  ;;  %2143 = vmatpush.bf16.msra.mxu0 %v3735_v17 }
 0x389   :  { %2157 = vmatpush.bf16.msra.mxu1 %v3723_v39  ;;  %2170 = vmatpush.bf16.msra.mxu2 %v3727_v40  ;;  %v3979_v39 = vor.u32 %v4373_v37, %v3976_v38  ;;  %v3950_v40 = vld [vmem:[#allocation2 + $0xc0] sm:$0xf]  ;;  %v4355_v37 = vld [vmem:[#allocation2 + $0x54] sm:$0xf0] }
 0x38a   :  { %2182 = vmatpush.bf16.msra.mxu3 %v3747_v52  ;;  %2144 = vmatpush.bf16.msra.mxu0 %v3719_v35  ;;  %v3966_v52 = vld [vmem:[#allocation2 + $0xe0] sm:$0xf] }
 0x38b   :  { %v3967_v31 = vor.u32 %v4374_v53, %v3966_v52 }
 0x38e   :  { %2456 = vmatpush.bf16.msrb.mxu0 %v3967_v31  ;;  %v3886_v31 = vld [vmem:[#allocation2 + $0x40] sm:$0xf] }
 0x400   :  { %v1827_v61 = vpop.f32.mrf.mxu0  ;;  %v1840_v20 = vpop.f32.mrf.mxu1 }
 0x401   :  { %v1870_v62 = vadd.f32 %v3576_v44, %v1827_v61  ;;  %v1871_v63 = vadd.f32 %v3577_v45, %v1840_v20  ;;  %v3731_v45 = vor.u32 %v4313_v41, %v3728_v42  ;;  %v4370_v41 = vld [vmem:[#allocation2 + $0xcc] sm:$0xf0]  ;;  %v4368_v42 = vld [vmem:[#allocation2 + $0xc4] sm:$0xf] }
 0x403   :  { %v3708_v7 = vmul.f32 -1.442695, %v1870_v62  ;;  %v3709_v8 = vmul.f32 -1.442695, %v1871_v63  ;;  %2183 = vmatpush.bf16.msra.mxu3 %v3731_v45  ;;  %v3958_v45 = vld [vmem:[#allocation2 + $0xc8] sm:$0xf] }
 0x405   :  { %4492 = vpow2.f32 %v3708_v7 }
 0x406   :  { %4494 = vpow2.f32 %v3709_v8 }
 0x407   :  { %v1853_v27 = vpop.f32.mrf.mxu2  ;;  %v1866_v28 = vpop.f32.mrf.mxu3  ;;  %2495 = vmatpush.bf16.msrb.mxu3 %v3979_v39 }
 0x408   :  { %v1873_v32 = vadd.f32 %v3579_v9, %v1866_v28  ;;  %v1829_v33 = vpop.f32.mrf.mxu0  ;;  %v1842_v34 = vpop.f32.mrf.mxu1  ;;  %v1872_v58 = vadd.f32 %v3578_v54, %v1853_v27 }
 0x409   :  { %v3974_v33 = vld [vmem:[#allocation2 + $0xe8] sm:$0xf]  ;;  %v4375_v34 = vld [vmem:[#allocation2 + $0xf4] sm:$0xf0] }
 0x40a   :  { %v3710_v43 = vmul.f32 -1.442695, %v1873_v32  ;;  %v3968_v32 = vld [vmem:[#allocation2 + $0xf0] sm:$0xf0]  ;;  %v3975_v36 = vor.u32 %v4375_v34, %v3974_v33  ;;  %v4352_v33 = vld [vmem:[#allocation2 + $0x44] sm:$0xf] }
 0x40b   :  { %v4493_v44 = vpop.eup %4492  ;;  %v3971_v35 = vor.u32 %v4372_v30, %v3968_v32  ;;  %v4354_v32 = vld [vmem:[#allocation2 + $0x4c] sm:$0xf0] }
 0x40c   :  { %v4495_v46 = vpop.eup %4494  ;;  %v1877_v47 = vadd.f32 1.0, %v4493_v44  ;;  %4496 = vpow2.f32 %v3710_v43  ;;  %2482 = vmatpush.bf16.msrb.mxu2 %v3975_v36  ;;  %v3951_v43 = vor.u32 %v4370_v41, %v3950_v40  ;;  %v3952_v44 = vld [vmem:[#allocation2 + $0xd0] sm:$0xf0]  ;;  %v3887_v34 = vor.u32 %v4354_v32, %v3886_v31  ;;  %v3894_v36 = vld [vmem:[#allocation2 + $0x48] sm:$0xf]  ;;  %v3715_v40 = vld [vmem:[%s4771_s0 + $0xd8] sm:$0xff] }
 0x40d   :  { %v1896_v48 = vadd.f32 1.0, %v4495_v46  ;;  %2469 = vmatpush.bf16.msrb.mxu1 %v3971_v35  ;;  %v4371_v46 = vld [vmem:[#allocation2 + $0xd4] sm:$0xf0]  ;;  %v3888_v35 = vld [vmem:[#allocation2 + $0x50] sm:$0xf0] }
 0x40e   :  { %4498 = vrcp.f32 %v1877_v47  ;;  %v1889_v62 = vand.u32 2147483648, %v1877_v47  ;;  %v1887_v1 = vand.u32 2147483647, %v1877_v47  ;;  %vm1883_vm14 = vweird.f32 %v1877_v47  ;;  %2457 = vmatpush.bf16.msrb.mxu0 %v3951_v43  ;;  %v4353_v43 = vld [vmem:[#allocation2 + $0x4c] sm:$0xf] }
 0x40f   :  { %4500 = vrcp.f32 %v1896_v48  ;;  %v1855_v49 = vpop.f32.mrf.mxu2  ;;  %v1868_v50 = vpop.f32.mrf.mxu3  ;;  %v1908_v63 = vand.u32 2147483648, %v1896_v48  ;;  %v1906_v3 = vand.u32 2147483647, %v1896_v48  ;;  %vm1902_vm15 = vweird.f32 %v1896_v48 }
 0x410   :  { %v1890_v6 = vor.u32 1.1754944e-38, %v1889_v62  ;;  %vm1888_vm2 = vcmp.eq.f32.partialorder %v1887_v1, 8.507059e+37  ;;  %v4369_v49 = vld [vmem:[#allocation2 + $0xcc] sm:$0xf]  ;;  %v3960_v50 = vld [vmem:[#allocation2 + $0xd8] sm:$0xf0]  ;;  %v3891_v41 = vor.u32 %v4352_v33, %v3888_v35 }
 0x411   :  { %v1909_v9 = vor.u32 1.1754944e-38, %v1908_v63  ;;  %vm1907_vm3 = vcmp.eq.f32.partialorder %v1906_v3, 8.507059e+37  ;;  %v3963_v54 = vor.u32 %v4369_v49, %v3960_v50  ;;  %v4365_v62 = vld [vmem:[#allocation2 + $0xac] sm:$0xf]  ;;  %v3944_v63 = vld [vmem:[#allocation2 + $0xb8] sm:$0xf0] }
 0x412   :  { %v4497_v55 = vpop.eup %4496  ;;  %v3918_v1 = vld [vmem:[#allocation2 + $0x80] sm:$0xf]  ;;  %v4360_v3 = vld [vmem:[#allocation2 + $0x84] sm:$0xf]  ;;  %v3872_v50 = vld [vmem:[#allocation2 + $0x30] sm:$0xf0] }
 0x413   :  { %v1916_v56 = vadd.f32 1.0, %v4497_v55  ;;  %v3934_v55 = vld [vmem:[#allocation2 + $0xa0] sm:$0xf]  ;;  %2496 = vmatpush.bf16.msrb.mxu3 %v3963_v54  ;;  %v4348_v49 = vld [vmem:[#allocation2 + $0x24] sm:$0xf] }
 0x414   :  { %v4499_v57 = vpop.eup %4498  ;;  %v3878_v54 = vld [vmem:[#allocation2 + $0x28] sm:$0xf] }
 0x415   :  { %v4501_v59 = vpop.eup %4500  ;;  %v1879_v60 = vmul.f32 %v4499_v57, %v1877_v47  ;;  %4502 = vrcp.f32 %v1916_v56  ;;  %vm1884_vm12 = vweird.f32 %v4499_v57  ;;  %v1928_v23 = vand.u32 2147483648, %v1916_v56 }
 0x416   :  { %v1898_v61 = vmul.f32 %v4501_v59, %v1896_v48  ;;  %4504 = vtanh.f32 %v1872_v58  ;;  %vm1903_vm13 = vweird.f32 %v4501_v59  ;;  %vm1885_vm0 = vmor %vm1883_vm14, %vm1884_vm12  ;;  %vm1922_vm5 = vweird.f32 %v1916_v56 }
 0x417   :  { %v1880_v20 = vsub.f32 1.0, %v1879_v60  ;;  %vm1904_vm1 = vmor %vm1902_vm15, %vm1903_vm13  ;;  %v1926_v24 = vand.u32 2147483647, %v1916_v56  ;;  %v1929_v26 = vor.u32 1.1754944e-38, %v1928_v23  ;;  %v3955_v47 = vor.u32 %v4368_v42, %v3952_v44  ;;  %v3942_v60 = vld [vmem:[#allocation2 + $0xa8] sm:$0xf] }
 0x418   :  { %v1899_v21 = vsub.f32 1.0, %v1898_v61  ;;  %v3959_v48 = vor.u32 %v4371_v46, %v3958_v45  ;;  %v4367_v61 = vld [vmem:[#allocation2 + $0xb4] sm:$0xf0]  ;;  %v3910_v23 = vld [vmem:[#allocation2 + $0x68] sm:$0xf]  ;;  %v3895_v42 = vor.u32 %v4355_v37, %v3894_v36 }
 0x419   :  { %v1881_v0 = vmul.f32 %v4499_v57, %v1880_v20  ;;  %vm1927_vm7 = vcmp.eq.f32.partialorder %v1926_v24, 8.507059e+37  ;;  %2470 = vmatpush.bf16.msrb.mxu1 %v3955_v47  ;;  %v4359_v24 = vld [vmem:[#allocation2 + $0x74] sm:$0xf0]  ;;  %v3896_v44 = vld [vmem:[#allocation2 + $0x58] sm:$0xf0] }
 0x41a   :  { %v1900_v2 = vmul.f32 %v4501_v59, %v1899_v21  ;;  %2483 = vmatpush.bf16.msrb.mxu2 %v3959_v48  ;;  %v3943_v21 = vor.u32 %v4367_v61, %v3942_v60  ;;  %v3870_v45 = vld [vmem:[#allocation2 + $0x20] sm:$0xf]  ;;  %v4350_v46 = vld [vmem:[#allocation2 + $0x2c] sm:$0xf0]  ;;  %v3899_v47 = vor.u32 %v4353_v43, %v3896_v44 }
 0x41b   :  { %v4503_v4 = vpop.eup %4502  ;;  %v1882_v5 = vadd.f32 %v4499_v57, %v1881_v0  ;;  %v3947_v0 = vor.u32 %v4365_v62, %v3944_v63  ;;  %v3871_v48 = vor.u32 %v4350_v46, %v3870_v45  ;;  %v4346_v62 = vld [vmem:[#allocation2 + $0xc] sm:$0xf0]  ;;  %v4344_v63 = vld [vmem:[#allocation2 + $0x4] sm:$0xf] }
 0x41c   :  { %v1901_v7 = vadd.f32 %v4501_v59, %v1900_v2  ;;  %v1918_v8 = vmul.f32 %v4503_v4, %v1916_v56  ;;  %v4505_v11 = vpop.eup %4504  ;;  %vm1923_vm4 = vweird.f32 %v4503_v4  ;;  %v4366_v56 = vld [vmem:[#allocation2 + $0xac] sm:$0xf0] }
 0x41d   :  { %v1886_v10 = vsel %vm1885_vm0, %v4499_v57, %v1882_v5  ;;  %vm1924_vm6 = vmor %vm1922_vm5, %vm1923_vm4  ;;  %v4364_v57 = vld [vmem:[#allocation2 + $0xa4] sm:$0xf]  ;;  %v3935_v58 = vor.u32 %v4366_v56, %v3934_v55  ;;  %v4362_v2 = vld [vmem:[#allocation2 + $0x8c] sm:$0xf0]  ;;  %2497 = vmatpush.bf16.msrb.mxu3 %v3947_v0  ;;  %v3875_v55 = vor.u32 %v4348_v49, %v3872_v50 }
 0x41e   :  { %v1891_v12 = vsel %vm1888_vm2, %v1890_v6, %v1886_v10  ;;  %v1905_v13 = vsel %vm1904_vm1, %v4501_v59, %v1901_v7  ;;  %v1919_v14 = vsub.f32 1.0, %v1918_v8  ;;  %v3936_v59 = vld [vmem:[#allocation2 + $0xb0] sm:$0xf0]  ;;  %2484 = vmatpush.bf16.msrb.mxu2 %v3943_v21  ;;  %v3926_v6 = vld [vmem:[#allocation2 + $0x88] sm:$0xf] }
 0x41f   :  { %v1910_v15 = vsel %vm1907_vm3, %v1909_v9, %v1905_v13  ;;  %v1933_v16 = vmul.f32 %v4505_v11, %v1891_v12  ;;  %v3939_v20 = vor.u32 %v4364_v57, %v3936_v59  ;;  %2458 = vmatpush.bf16.msrb.mxu0 %v3935_v58  ;;  %v3920_v5 = vld [vmem:[#allocation2 + $0x90] sm:$0xf0]  ;;  %v4363_v7 = vld [vmem:[#allocation2 + $0x94] sm:$0xf0]  ;;  %v4361_v10 = vld [vmem:[#allocation2 + $0x8c] sm:$0xf] }
 0x420   :  { %v1932_v17 = vmul.f32 %v1910_v15, %v4692_v51  ;;  %v1920_v18 = vmul.f32 %v4503_v4, %v1919_v14  ;;  %v3923_v8 = vor.u32 %v4360_v3, %v3920_v5  ;;  %v3927_v9 = vor.u32 %v4363_v7, %v3926_v6  ;;  %v3928_v11 = vld [vmem:[#allocation2 + $0x98] sm:$0xf0]  ;;  %v3712_v12 = vld [vmem:[%s4771_s0 + $0xc0] sm:$0xff]  ;;  %v3713_v13 = vld [vmem:[%s4771_s0 + $0xc8] sm:$0xff] }
 0x421   :  { %2471 = vmatpush.bf16.msrb.mxu1 %v3939_v20  ;;  %v3931_v14 = vor.u32 %v4361_v10, %v3928_v11  ;;  %v3902_v15 = vld [vmem:[#allocation2 + $0x60] sm:$0xf]  ;;  %v4351_v56 = vld [vmem:[#allocation2 + $0x34] sm:$0xf0]  ;;  %v4349_v57 = vld [vmem:[#allocation2 + $0x2c] sm:$0xf] }
 0x422   :  { %v4711_v19 = vadd.f32 %v1933_v16, %v1932_v17  ;;  %v1921_v22 = vadd.f32 %v4503_v4, %v1920_v18  ;;  %2485 = vmatpush.bf16.msrb.mxu2 %v3927_v9  ;;  %v4358_v16 = vld [vmem:[#allocation2 + $0x6c] sm:$0xf0]  ;;  %v4356_v17 = vld [vmem:[#allocation2 + $0x64] sm:$0xf]  ;;  %v3880_v58 = vld [vmem:[#allocation2 + $0x38] sm:$0xf0]  ;;  %v3879_v61 = vor.u32 %v4351_v56, %v3878_v54 }
 0x423   :  { %2498 = vmatpush.bf16.msrb.mxu3 %v3931_v14  ;;  %v3903_v18 = vor.u32 %v4358_v16, %v3902_v15  ;;  %v3883_v20 = vor.u32 %v4349_v57, %v3880_v58  ;;  %v3854_v21 = vld [vmem:[#allocation2] sm:$0xf]  ;;  %v3862_v5 = vld [vmem:[#allocation2 + $0x8] sm:$0xf]  ;;  %v4347_v6 = vld [vmem:[#allocation2 + $0x14] sm:$0xf0] }
 0x424   :  { %4506 = vtanh.f32 %v4711_v19  ;;  %v1925_v25 = vsel %vm1924_vm6, %v4503_v4, %v1921_v22  ;;  %v3919_v4 = vor.u32 %v4362_v2, %v3918_v1  ;;  %v3904_v22 = vld [vmem:[#allocation2 + $0x70] sm:$0xf0]  ;;  %v3855_v3 = vor.u32 %v4346_v62, %v3854_v21  ;;  %v4345_v9 = vld [vmem:[#allocation2 + $0xc] sm:$0xf]  ;;  %v3864_v10 = vld [vmem:[#allocation2 + $0x18] sm:$0xf0] }
 0x425   :  { %v1930_v28 = vsel %vm1927_vm7, %v1929_v26, %v1925_v25  ;;  %2472 = vmatpush.bf16.msrb.mxu1 %v3923_v8  ;;  %v3907_v25 = vor.u32 %v4356_v17, %v3904_v22  ;;  %v3911_v26 = vor.u32 %v4359_v24, %v3910_v23  ;;  %v3863_v8 = vor.u32 %v4347_v6, %v3862_v5  ;;  %v3714_v22 = vld [vmem:[%s4771_s0 + $0xd0] sm:$0xff]  ;;  %v4404_v62 = vld [vmem:[#allocation2 + $0xe4] sm:$0xf]  ;;  %v4405_v5 = vld [vmem:[#allocation2 + $0xec] sm:$0xf] }
 0x426   :  { %2459 = vmatpush.bf16.msrb.mxu0 %v3919_v4  ;;  %v3856_v4 = vld [vmem:[#allocation2 + $0x10] sm:$0xf0]  ;;  %v4406_v21 = vld [vmem:[#allocation2 + $0xec] sm:$0xf0]  ;;  %v4112_v6 = vld [vmem:[#allocation2 + $0xf8] sm:$0xf0] }
 0x427   :  { %2486 = vmatpush.bf16.msrb.mxu2 %v3911_v26  ;;  %v3859_v7 = vor.u32 %v4344_v63, %v3856_v4 }
 0x429   :  { %2473 = vmatpush.bf16.msrb.mxu1 %v3907_v25 }
 0x42a   :  { %v4507_v27 = vpop.eup %4506  ;;  %2460 = vmatpush.bf16.msrb.mxu0 %v3903_v18 }
 0x42b   :  { %v1936_v29 = vmul.f32 %v4507_v27, %v1930_v28  ;;  %v4357_v27 = vld [vmem:[#allocation2 + $0x6c] sm:$0xf]  ;;  %v3912_v28 = vld [vmem:[#allocation2 + $0x78] sm:$0xf0]  ;;  %2487 = vmatpush.bf16.msrb.mxu2 %v3895_v42 }
 0x42c   :  { %v3915_v52 = vor.u32 %v4357_v27, %v3912_v28 }
 0x42d   :  { %3711 = vst [vmem:[%s4773_s2 + $0x28] sm:$0xff] %v1936_v29  ;;  %v1944_v51 = vpack.c.bf16 %v1936_v29, %v1936_v29  ;;  %2474 = vmatpush.bf16.msrb.mxu1 %v3891_v41 }
 0x42e   :  { %2499 = vmatpush.bf16.msrb.mxu3 %v3915_v52  ;;  %2461 = vmatpush.bf16.msrb.mxu0 %v3887_v34 }
 0x42f   :  { %2145 = vmatmul.bf16.vlgmr.msra.gmra.mxu0 %v1944_v51  ;;  %2158 = vmatmul.bf16.vlgmr.msra.gmra.mxu1 %v1944_v51 }
 0x430   :  { %2171 = vmatmul.bf16.vlgmr.msra.gmra.mxu2 %v1944_v51  ;;  %2184 = vmatmul.bf16.vlgmr.msra.gmra.mxu3 %v1944_v51 }
 0x431   :  { %2475 = vmatpush.bf16.msrb.mxu1 %v3875_v55  ;;  %2488 = vmatpush.bf16.msrb.mxu2 %v3879_v61 }
 0x432   :  { %2500 = vmatpush.bf16.msrb.mxu3 %v3899_v47  ;;  %2462 = vmatpush.bf16.msrb.mxu0 %v3871_v48 }
 0x435   :  { %2476 = vmatpush.bf16.msrb.mxu1 %v3859_v7  ;;  %2489 = vmatpush.bf16.msrb.mxu2 %v3863_v8  ;;  %v4115_v7 = vor.u32 %v4405_v5, %v4112_v6  ;;  %v4086_v8 = vld [vmem:[#allocation2 + $0xc0] sm:$0xf]  ;;  %v4387_v5 = vld [vmem:[#allocation2 + $0x54] sm:$0xf0] }
 0x436   :  { %2501 = vmatpush.bf16.msrb.mxu3 %v3883_v20  ;;  %2463 = vmatpush.bf16.msrb.mxu0 %v3855_v3  ;;  %v4102_v20 = vld [vmem:[#allocation2 + $0xe0] sm:$0xf] }
 0x437   :  { %v4103_v63 = vor.u32 %v4406_v21, %v4102_v20 }
 0x43a   :  { %2775 = vmatpush.bf16.msra.mxu0 %v4103_v63  ;;  %v4022_v63 = vld [vmem:[#allocation2 + $0x40] sm:$0xf] }
 0x4ac   :  { %v2146_v29 = vpop.f32.mrf.mxu0  ;;  %v2159_v51 = vpop.f32.mrf.mxu1 }
 0x4ad   :  { %v2189_v53 = vadd.f32 %v3712_v12, %v2146_v29  ;;  %v2190_v30 = vadd.f32 %v3713_v13, %v2159_v51  ;;  %v3867_v13 = vor.u32 %v4345_v9, %v3864_v10  ;;  %v4402_v9 = vld [vmem:[#allocation2 + $0xcc] sm:$0xf0]  ;;  %v4400_v10 = vld [vmem:[#allocation2 + $0xc4] sm:$0xf] }
 0x4af   :  { %v3844_v38 = vmul.f32 -1.442695, %v2189_v53  ;;  %v3845_v39 = vmul.f32 -1.442695, %v2190_v30  ;;  %2502 = vmatpush.bf16.msrb.mxu3 %v3867_v13  ;;  %v4094_v13 = vld [vmem:[#allocation2 + $0xc8] sm:$0xf] }
 0x4b1   :  { %4508 = vpow2.f32 %v3844_v38 }
 0x4b2   :  { %4510 = vpow2.f32 %v3845_v39 }
 0x4b3   :  { %v2172_v59 = vpop.f32.mrf.mxu2  ;;  %v2185_v60 = vpop.f32.mrf.mxu3  ;;  %2814 = vmatpush.bf16.msra.mxu3 %v4115_v7 }
 0x4b4   :  { %v2192_v0 = vadd.f32 %v3715_v40, %v2185_v60  ;;  %v2148_v1 = vpop.f32.mrf.mxu0  ;;  %v2161_v2 = vpop.f32.mrf.mxu1  ;;  %v2191_v26 = vadd.f32 %v3714_v22, %v2172_v59 }
 0x4b5   :  { %v4110_v1 = vld [vmem:[#allocation2 + $0xe8] sm:$0xf]  ;;  %v4407_v2 = vld [vmem:[#allocation2 + $0xf4] sm:$0xf0] }
 0x4b6   :  { %v3846_v11 = vmul.f32 -1.442695, %v2192_v0  ;;  %v4104_v0 = vld [vmem:[#allocation2 + $0xf0] sm:$0xf0]  ;;  %v4111_v4 = vor.u32 %v4407_v2, %v4110_v1  ;;  %v4384_v1 = vld [vmem:[#allocation2 + $0x44] sm:$0xf] }
 0x4b7   :  { %v4509_v12 = vpop.eup %4508  ;;  %v4107_v3 = vor.u32 %v4404_v62, %v4104_v0  ;;  %v4386_v0 = vld [vmem:[#allocation2 + $0x4c] sm:$0xf0] }
 0x4b8   :  { %v4511_v14 = vpop.eup %4510  ;;  %v2196_v15 = vadd.f32 1.0, %v4509_v12  ;;  %4512 = vpow2.f32 %v3846_v11  ;;  %2801 = vmatpush.bf16.msra.mxu2 %v4111_v4  ;;  %v4087_v11 = vor.u32 %v4402_v9, %v4086_v8  ;;  %v4088_v12 = vld [vmem:[#allocation2 + $0xd0] sm:$0xf0]  ;;  %v4023_v2 = vor.u32 %v4386_v0, %v4022_v63  ;;  %v4030_v4 = vld [vmem:[#allocation2 + $0x48] sm:$0xf]  ;;  %v3851_v8 = vld [vmem:[%s4771_s0 + $0xf8] sm:$0xff] }
 0x4b9   :  { %v2215_v16 = vadd.f32 1.0, %v4511_v14  ;;  %2788 = vmatpush.bf16.msra.mxu1 %v4107_v3  ;;  %v4403_v14 = vld [vmem:[#allocation2 + $0xd4] sm:$0xf0]  ;;  %v4024_v3 = vld [vmem:[#allocation2 + $0x50] sm:$0xf0] }
 0x4ba   :  { %4514 = vrcp.f32 %v2196_v15  ;;  %v2208_v53 = vand.u32 2147483648, %v2196_v15  ;;  %v2206_v32 = vand.u32 2147483647, %v2196_v15  ;;  %vm2202_vm10 = vweird.f32 %v2196_v15  ;;  %2776 = vmatpush.bf16.msra.mxu0 %v4087_v11  ;;  %v4385_v11 = vld [vmem:[#allocation2 + $0x4c] sm:$0xf] }
 0x4bb   :  { %4516 = vrcp.f32 %v2215_v16  ;;  %v2174_v17 = vpop.f32.mrf.mxu2  ;;  %v2187_v18 = vpop.f32.mrf.mxu3  ;;  %v2227_v30 = vand.u32 2147483648, %v2215_v16  ;;  %v2225_v34 = vand.u32 2147483647, %v2215_v16  ;;  %vm2221_vm11 = vweird.f32 %v2215_v16 }
 0x4bc   :  { %v2209_v37 = vor.u32 1.1754944e-38, %v2208_v53  ;;  %vm2207_vm14 = vcmp.eq.f32.partialorder %v2206_v32, 8.507059e+37  ;;  %v4401_v17 = vld [vmem:[#allocation2 + $0xcc] sm:$0xf]  ;;  %v4096_v18 = vld [vmem:[#allocation2 + $0xd8] sm:$0xf0]  ;;  %v4027_v9 = vor.u32 %v4384_v1, %v4024_v3 }
 0x4bd   :  { %v2228_v40 = vor.u32 1.1754944e-38, %v2227_v30  ;;  %vm2226_vm15 = vcmp.eq.f32.partialorder %v2225_v34, 8.507059e+37  ;;  %v4099_v22 = vor.u32 %v4401_v17, %v4096_v18  ;;  %v4397_v53 = vld [vmem:[#allocation2 + $0xac] sm:$0xf]  ;;  %v4080_v30 = vld [vmem:[#allocation2 + $0xb8] sm:$0xf0] }
 0x4be   :  { %v4513_v23 = vpop.eup %4512  ;;  %v4054_v32 = vld [vmem:[#allocation2 + $0x80] sm:$0xf]  ;;  %v4392_v34 = vld [vmem:[#allocation2 + $0x84] sm:$0xf]  ;;  %v4008_v18 = vld [vmem:[#allocation2 + $0x30] sm:$0xf0] }
 0x4bf   :  { %v2235_v24 = vadd.f32 1.0, %v4513_v23  ;;  %v4070_v23 = vld [vmem:[#allocation2 + $0xa0] sm:$0xf]  ;;  %2815 = vmatpush.bf16.msra.mxu3 %v4099_v22  ;;  %v4380_v17 = vld [vmem:[#allocation2 + $0x24] sm:$0xf] }
 0x4c0   :  { %v4515_v25 = vpop.eup %4514  ;;  %v4014_v22 = vld [vmem:[#allocation2 + $0x28] sm:$0xf] }
 0x4c1   :  { %v4517_v27 = vpop.eup %4516  ;;  %v2198_v28 = vmul.f32 %v4515_v25, %v2196_v15  ;;  %4518 = vrcp.f32 %v2235_v24  ;;  %vm2203_vm8 = vweird.f32 %v4515_v25  ;;  %v2247_v55 = vand.u32 2147483648, %v2235_v24 }
 0x4c2   :  { %v2217_v29 = vmul.f32 %v4517_v27, %v2215_v16  ;;  %4520 = vtanh.f32 %v2191_v26  ;;  %vm2222_vm9 = vweird.f32 %v4517_v27  ;;  %vm2204_vm12 = vmor %vm2202_vm10, %vm2203_vm8  ;;  %vm2241_vm1 = vweird.f32 %v2235_v24 }
 0x4c3   :  { %v2199_v51 = vsub.f32 1.0, %v2198_v28  ;;  %vm2223_vm13 = vmor %vm2221_vm11, %vm2222_vm9  ;;  %v2245_v56 = vand.u32 2147483647, %v2235_v24  ;;  %v2248_v58 = vor.u32 1.1754944e-38, %v2247_v55  ;;  %v4091_v15 = vor.u32 %v4400_v10, %v4088_v12  ;;  %v4078_v28 = vld [vmem:[#allocation2 + $0xa8] sm:$0xf] }
 0x4c4   :  { %v2218_v52 = vsub.f32 1.0, %v2217_v29  ;;  %v4095_v16 = vor.u32 %v4403_v14, %v4094_v13  ;;  %v4399_v29 = vld [vmem:[#allocation2 + $0xb4] sm:$0xf0]  ;;  %v4046_v55 = vld [vmem:[#allocation2 + $0x68] sm:$0xf]  ;;  %v4031_v10 = vor.u32 %v4387_v5, %v4030_v4 }
 0x4c5   :  { %v2200_v31 = vmul.f32 %v4515_v25, %v2199_v51  ;;  %vm2246_vm3 = vcmp.eq.f32.partialorder %v2245_v56, 8.507059e+37  ;;  %2789 = vmatpush.bf16.msra.mxu1 %v4091_v15  ;;  %v4391_v56 = vld [vmem:[#allocation2 + $0x74] sm:$0xf0]  ;;  %v4032_v12 = vld [vmem:[#allocation2 + $0x58] sm:$0xf0] }
 0x4c6   :  { %v2219_v33 = vmul.f32 %v4517_v27, %v2218_v52  ;;  %2802 = vmatpush.bf16.msra.mxu2 %v4095_v16  ;;  %v4079_v52 = vor.u32 %v4399_v29, %v4078_v28  ;;  %v4006_v13 = vld [vmem:[#allocation2 + $0x20] sm:$0xf]  ;;  %v4382_v14 = vld [vmem:[#allocation2 + $0x2c] sm:$0xf0]  ;;  %v4035_v15 = vor.u32 %v4385_v11, %v4032_v12 }
 0x4c7   :  { %v4519_v35 = vpop.eup %4518  ;;  %v2201_v36 = vadd.f32 %v4515_v25, %v2200_v31  ;;  %v4083_v31 = vor.u32 %v4397_v53, %v4080_v30  ;;  %v4007_v16 = vor.u32 %v4382_v14, %v4006_v13  ;;  %v4378_v53 = vld [vmem:[#allocation2 + $0xc] sm:$0xf0]  ;;  %v4376_v30 = vld [vmem:[#allocation2 + $0x4] sm:$0xf] }
 0x4c8   :  { %v2220_v38 = vadd.f32 %v4517_v27, %v2219_v33  ;;  %v2237_v39 = vmul.f32 %v4519_v35, %v2235_v24  ;;  %v4521_v42 = vpop.eup %4520  ;;  %vm2242_vm0 = vweird.f32 %v4519_v35  ;;  %v4398_v24 = vld [vmem:[#allocation2 + $0xac] sm:$0xf0] }
 0x4c9   :  { %v2205_v41 = vsel %vm2204_vm12, %v4515_v25, %v2201_v36  ;;  %vm2243_vm2 = vmor %vm2241_vm1, %vm2242_vm0  ;;  %v4396_v25 = vld [vmem:[#allocation2 + $0xa4] sm:$0xf]  ;;  %v4071_v26 = vor.u32 %v4398_v24, %v4070_v23  ;;  %v4394_v33 = vld [vmem:[#allocation2 + $0x8c] sm:$0xf0]  ;;  %2816 = vmatpush.bf16.msra.mxu3 %v4083_v31  ;;  %v4011_v23 = vor.u32 %v4380_v17, %v4008_v18 }
 0x4ca   :  { %v2210_v43 = vsel %vm2207_vm14, %v2209_v37, %v2205_v41  ;;  %v2224_v44 = vsel %vm2223_vm13, %v4517_v27, %v2220_v38  ;;  %v2238_v45 = vsub.f32 1.0, %v2237_v39  ;;  %v4072_v27 = vld [vmem:[#allocation2 + $0xb0] sm:$0xf0]  ;;  %2803 = vmatpush.bf16.msra.mxu2 %v4079_v52  ;;  %v4062_v37 = vld [vmem:[#allocation2 + $0x88] sm:$0xf] }
 0x4cb   :  { %v2229_v46 = vsel %vm2226_vm15, %v2228_v40, %v2224_v44  ;;  %v2252_v47 = vmul.f32 %v4521_v42, %v2210_v43  ;;  %v4075_v51 = vor.u32 %v4396_v25, %v4072_v27  ;;  %2777 = vmatpush.bf16.msra.mxu0 %v4071_v26  ;;  %v4056_v36 = vld [vmem:[#allocation2 + $0x90] sm:$0xf0]  ;;  %v4395_v38 = vld [vmem:[#allocation2 + $0x94] sm:$0xf0]  ;;  %v4393_v41 = vld [vmem:[#allocation2 + $0x8c] sm:$0xf] }
 0x4cc   :  { %v2251_v48 = vmul.f32 %v2229_v46, %v4711_v19  ;;  %v2239_v49 = vmul.f32 %v4519_v35, %v2238_v45  ;;  %v4059_v39 = vor.u32 %v4392_v34, %v4056_v36  ;;  %v4063_v40 = vor.u32 %v4395_v38, %v4062_v37  ;;  %v4064_v42 = vld [vmem:[#allocation2 + $0x98] sm:$0xf0]  ;;  %v3848_v43 = vld [vmem:[%s4771_s0 + $0xe0] sm:$0xff]  ;;  %v3849_v44 = vld [vmem:[%s4771_s0 + $0xe8] sm:$0xff] }
 0x4cd   :  { %2790 = vmatpush.bf16.msra.mxu1 %v4075_v51  ;;  %v4067_v45 = vor.u32 %v4393_v41, %v4064_v42  ;;  %v4038_v46 = vld [vmem:[#allocation2 + $0x60] sm:$0xf]  ;;  %v4383_v24 = vld [vmem:[#allocation2 + $0x34] sm:$0xf0]  ;;  %v4381_v25 = vld [vmem:[#allocation2 + $0x2c] sm:$0xf] }
 0x4ce   :  { %v4730_v50 = vadd.f32 %v2252_v47, %v2251_v48  ;;  %v2240_v54 = vadd.f32 %v4519_v35, %v2239_v49  ;;  %2804 = vmatpush.bf16.msra.mxu2 %v4063_v40  ;;  %v4390_v47 = vld [vmem:[#allocation2 + $0x6c] sm:$0xf0]  ;;  %v4388_v48 = vld [vmem:[#allocation2 + $0x64] sm:$0xf]  ;;  %v4016_v26 = vld [vmem:[#allocation2 + $0x38] sm:$0xf0]  ;;  %v4015_v29 = vor.u32 %v4383_v24, %v4014_v22 }
 0x4cf   :  { %2817 = vmatpush.bf16.msra.mxu3 %v4067_v45  ;;  %v4039_v49 = vor.u32 %v4390_v47, %v4038_v46  ;;  %v4019_v51 = vor.u32 %v4381_v25, %v4016_v26  ;;  %v3990_v52 = vld [vmem:[#allocation2] sm:$0xf]  ;;  %v3998_v36 = vld [vmem:[#allocation2 + $0x8] sm:$0xf]  ;;  %v4379_v37 = vld [vmem:[#allocation2 + $0x14] sm:$0xf0] }
 0x4d0   :  { %4522 = vtanh.f32 %v4730_v50  ;;  %v2244_v57 = vsel %vm2243_vm2, %v4519_v35, %v2240_v54  ;;  %v4055_v35 = vor.u32 %v4394_v33, %v4054_v32  ;;  %v4040_v54 = vld [vmem:[#allocation2 + $0x70] sm:$0xf0]  ;;  %v3991_v34 = vor.u32 %v4378_v53, %v3990_v52  ;;  %v4377_v40 = vld [vmem:[#allocation2 + $0xc] sm:$0xf]  ;;  %v4000_v41 = vld [vmem:[#allocation2 + $0x18] sm:$0xf0] }
 0x4d1   :  { %v2249_v60 = vsel %vm2246_vm3, %v2248_v58, %v2244_v57  ;;  %2791 = vmatpush.bf16.msra.mxu1 %v4059_v39  ;;  %v4043_v57 = vor.u32 %v4388_v48, %v4040_v54  ;;  %v4047_v58 = vor.u32 %v4391_v56, %v4046_v55  ;;  %v3999_v39 = vor.u32 %v4379_v37, %v3998_v36  ;;  %v3850_v54 = vld [vmem:[%s4771_s0 + $0xf0] sm:$0xff]  ;;  %v3985_v52 = vld [vmem:[%s4771_s0 + $0x108] sm:$0xff] }
 0x4d2   :  { %2778 = vmatpush.bf16.msra.mxu0 %v4055_v35  ;;  %v3992_v35 = vld [vmem:[#allocation2 + $0x10] sm:$0xf0] }
 0x4d3   :  { %2805 = vmatpush.bf16.msra.mxu2 %v4047_v58  ;;  %v3995_v38 = vor.u32 %v4376_v30, %v3992_v35  ;;  %v3987_v35 = vld [vmem:[%s4771_s0 + $0x118] sm:$0xff] }
 0x4d5   :  { %2792 = vmatpush.bf16.msra.mxu1 %v4043_v57 }
 0x4d6   :  { %v4523_v59 = vpop.eup %4522  ;;  %2779 = vmatpush.bf16.msra.mxu0 %v4039_v49 }
 0x4d7   :  { %v2255_v61 = vmul.f32 %v4523_v59, %v2249_v60  ;;  %v4389_v59 = vld [vmem:[#allocation2 + $0x6c] sm:$0xf]  ;;  %v4048_v60 = vld [vmem:[#allocation2 + $0x78] sm:$0xf0]  ;;  %2806 = vmatpush.bf16.msra.mxu2 %v4031_v10 }
 0x4d8   :  { %v4051_v20 = vor.u32 %v4389_v59, %v4048_v60 }
 0x4d9   :  { %3847 = vst [vmem:[%s4773_s2 + $0x30] sm:$0xff] %v2255_v61  ;;  %v2263_v19 = vpack.c.bf16 %v2255_v61, %v2255_v61  ;;  %2793 = vmatpush.bf16.msra.mxu1 %v4027_v9 }
 0x4da   :  { %2818 = vmatpush.bf16.msra.mxu3 %v4051_v20  ;;  %2780 = vmatpush.bf16.msra.mxu0 %v4023_v2 }
 0x4db   :  { %2464 = vmatmul.bf16.vlgmr.msrb.gmra.mxu0 %v2263_v19  ;;  %2477 = vmatmul.bf16.vlgmr.msrb.gmra.mxu1 %v2263_v19 }
 0x4dc   :  { %2490 = vmatmul.bf16.vlgmr.msrb.gmra.mxu2 %v2263_v19  ;;  %2503 = vmatmul.bf16.vlgmr.msrb.gmra.mxu3 %v2263_v19 }
 0x4dd   :  { %2794 = vmatpush.bf16.msra.mxu1 %v4011_v23  ;;  %2807 = vmatpush.bf16.msra.mxu2 %v4015_v29 }
 0x4de   :  { %2819 = vmatpush.bf16.msra.mxu3 %v4035_v15  ;;  %2781 = vmatpush.bf16.msra.mxu0 %v4007_v16 }
 0x4e1   :  { %2795 = vmatpush.bf16.msra.mxu1 %v3995_v38  ;;  %2808 = vmatpush.bf16.msra.mxu2 %v3999_v39 }
 0x4e2   :  { %2820 = vmatpush.bf16.msra.mxu3 %v4019_v51  ;;  %2782 = vmatpush.bf16.msra.mxu0 %v3991_v34  ;;  %v3984_v51 = vld [vmem:[%s4771_s0 + $0x100] sm:$0xff] }
 0x558   :  { %v2465_v61 = vpop.f32.mrf.mxu0  ;;  %v2478_v19 = vpop.f32.mrf.mxu1 }
 0x559   :  { %v2508_v21 = vadd.f32 %v3848_v43, %v2465_v61  ;;  %v2509_v62 = vadd.f32 %v3849_v44, %v2478_v19  ;;  %v4003_v44 = vor.u32 %v4377_v40, %v4000_v41 }
 0x55b   :  { %v3980_v6 = vmul.f32 -1.442695, %v2508_v21  ;;  %v3981_v7 = vmul.f32 -1.442695, %v2509_v62  ;;  %2821 = vmatpush.bf16.msra.mxu3 %v4003_v44 }
 0x55d   :  { %4524 = vpow2.f32 %v3980_v6 }
 0x55e   :  { %4526 = vpow2.f32 %v3981_v7 }
 0x55f   :  { %v2491_v27 = vpop.f32.mrf.mxu2  ;;  %v2504_v28 = vpop.f32.mrf.mxu3 }
 0x560   :  { %v2511_v31 = vadd.f32 %v3851_v8, %v2504_v28  ;;  %v2467_v32 = vpop.f32.mrf.mxu0  ;;  %v2480_v33 = vpop.f32.mrf.mxu1  ;;  %v2510_v58 = vadd.f32 %v3850_v54, %v2491_v27 }
 0x562   :  { %v3982_v42 = vmul.f32 -1.442695, %v2511_v31 }
 0x563   :  { %v4525_v43 = vpop.eup %4524 }
 0x564   :  { %v4527_v45 = vpop.eup %4526  ;;  %v2515_v46 = vadd.f32 1.0, %v4525_v43  ;;  %4528 = vpow2.f32 %v3982_v42 }
 0x565   :  { %v2534_v47 = vadd.f32 1.0, %v4527_v45 }
 0x566   :  { %4530 = vrcp.f32 %v2515_v46  ;;  %v2527_v21 = vand.u32 2147483648, %v2515_v46  ;;  %v2525_v0 = vand.u32 2147483647, %v2515_v46  ;;  %vm2521_vm6 = vweird.f32 %v2515_v46 }
 0x567   :  { %4532 = vrcp.f32 %v2534_v47  ;;  %v2493_v48 = vpop.f32.mrf.mxu2  ;;  %v2506_v49 = vpop.f32.mrf.mxu3  ;;  %v2546_v62 = vand.u32 2147483648, %v2534_v47  ;;  %v2544_v2 = vand.u32 2147483647, %v2534_v47  ;;  %vm2540_vm7 = vweird.f32 %v2534_v47 }
 0x568   :  { %v2528_v5 = vor.u32 1.1754944e-38, %v2527_v21  ;;  %vm2526_vm10 = vcmp.eq.f32.partialorder %v2525_v0, 8.507059e+37  ;;  %v3986_v48 = vld [vmem:[%s4771_s0 + $0x110] sm:$0xff] }
 0x569   :  { %v2547_v8 = vor.u32 1.1754944e-38, %v2546_v62  ;;  %vm2545_vm11 = vcmp.eq.f32.partialorder %v2544_v2, 8.507059e+37 }
 0x56a   :  { %v4529_v55 = vpop.eup %4528 }
 0x56b   :  { %v2554_v56 = vadd.f32 1.0, %v4529_v55 }
 0x56c   :  { %v4531_v57 = vpop.eup %4530 }
 0x56d   :  { %v4533_v59 = vpop.eup %4532  ;;  %v2517_v60 = vmul.f32 %v4531_v57, %v2515_v46  ;;  %4534 = vrcp.f32 %v2554_v56  ;;  %vm2522_vm4 = vweird.f32 %v4531_v57  ;;  %v2566_v23 = vand.u32 2147483648, %v2554_v56 }
 0x56e   :  { %v2536_v61 = vmul.f32 %v4533_v59, %v2534_v47  ;;  %4536 = vtanh.f32 %v2510_v58  ;;  %vm2541_vm5 = vweird.f32 %v4533_v59  ;;  %vm2523_vm8 = vmor %vm2521_vm6, %vm2522_vm4  ;;  %vm2560_vm13 = vweird.f32 %v2554_v56 }
 0x56f   :  { %v2518_v19 = vsub.f32 1.0, %v2517_v60  ;;  %vm2542_vm9 = vmor %vm2540_vm7, %vm2541_vm5  ;;  %v2564_v24 = vand.u32 2147483647, %v2554_v56  ;;  %v2567_v26 = vor.u32 1.1754944e-38, %v2566_v23 }
 0x570   :  { %v2537_v20 = vsub.f32 1.0, %v2536_v61 }
 0x571   :  { %v2519_v63 = vmul.f32 %v4531_v57, %v2518_v19  ;;  %vm2565_vm15 = vcmp.eq.f32.partialorder %v2564_v24, 8.507059e+37 }
 0x572   :  { %v2538_v1 = vmul.f32 %v4533_v59, %v2537_v20 }
 0x573   :  { %v4535_v3 = vpop.eup %4534  ;;  %v2520_v4 = vadd.f32 %v4531_v57, %v2519_v63 }
 0x574   :  { %v2539_v6 = vadd.f32 %v4533_v59, %v2538_v1  ;;  %v2556_v7 = vmul.f32 %v4535_v3, %v2554_v56  ;;  %v4537_v10 = vpop.eup %4536  ;;  %vm2561_vm12 = vweird.f32 %v4535_v3 }
 0x575   :  { %v2524_v9 = vsel %vm2523_vm8, %v4531_v57, %v2520_v4  ;;  %vm2562_vm14 = vmor %vm2560_vm13, %vm2561_vm12 }
 0x576   :  { %v2529_v11 = vsel %vm2526_vm10, %v2528_v5, %v2524_v9  ;;  %v2543_v12 = vsel %vm2542_vm9, %v4533_v59, %v2539_v6  ;;  %v2557_v13 = vsub.f32 1.0, %v2556_v7 }
 0x577   :  { %v2548_v14 = vsel %vm2545_vm11, %v2547_v8, %v2543_v12  ;;  %v2571_v15 = vmul.f32 %v4537_v10, %v2529_v11 }
 0x578   :  { %v2570_v16 = vmul.f32 %v2548_v14, %v4730_v50  ;;  %v2558_v17 = vmul.f32 %v4535_v3, %v2557_v13 }
 0x57a   :  { %v4749_v18 = vadd.f32 %v2571_v15, %v2570_v16  ;;  %v2559_v22 = vadd.f32 %v4535_v3, %v2558_v17 }
 0x57c   :  { %4538 = vtanh.f32 %v4749_v18  ;;  %v2563_v25 = vsel %vm2562_vm14, %v4535_v3, %v2559_v22 }
 0x57d   :  { %v2568_v28 = vsel %vm2565_vm15, %v2567_v26, %v2563_v25 }
 0x582   :  { %v4539_v27 = vpop.eup %4538 }
 0x583   :  { %v2574_v29 = vmul.f32 %v4539_v27, %v2568_v28 }
 0x585   :  { %3983 = vst [vmem:[%s4773_s2 + $0x38] sm:$0xff] %v2574_v29  ;;  %v2582_v50 = vpack.c.bf16 %v2574_v29, %v2574_v29 }
 0x587   :  { %2783 = vmatmul.bf16.vlgmr.msra.gmra.mxu0 %v2582_v50  ;;  %2796 = vmatmul.bf16.vlgmr.msra.gmra.mxu1 %v2582_v50 }
 0x588   :  { %2809 = vmatmul.bf16.vlgmr.msra.gmra.mxu2 %v2582_v50  ;;  %2822 = vmatmul.bf16.vlgmr.msra.gmra.mxu3 %v2582_v50 }
 0x604   :  { %v2784_v53 = vpop.f32.mrf.mxu0  ;;  %v2797_v30 = vpop.f32.mrf.mxu1 }
 0x605   :  { %v2827_v31 = vadd.f32 %v3984_v51, %v2784_v53  ;;  %v2828_v32 = vadd.f32 %v3985_v52, %v2797_v30 }
 0x607   :  { %v4116_v33 = vmul.f32 -1.442695, %v2827_v31  ;;  %v4117_v34 = vmul.f32 -1.442695, %v2828_v32 }
 0x609   :  { %4540 = vpow2.f32 %v4116_v33 }
 0x60a   :  { %4542 = vpow2.f32 %v4117_v34 }
 0x60b   :  { %v2810_v36 = vpop.f32.mrf.mxu2  ;;  %v2823_v37 = vpop.f32.mrf.mxu3 }
 0x60c   :  { %v2830_v38 = vadd.f32 %v3987_v35, %v2823_v37  ;;  %v2786_v39 = vpop.f32.mrf.mxu0  ;;  %v2799_v40 = vpop.f32.mrf.mxu1  ;;  %v2829_v56 = vadd.f32 %v3986_v48, %v2810_v36 }
 0x60e   :  { %v4118_v41 = vmul.f32 -1.442695, %v2830_v38 }
 0x60f   :  { %v4541_v42 = vpop.eup %4540 }
 0x610   :  { %v4543_v43 = vpop.eup %4542  ;;  %v2834_v44 = vadd.f32 1.0, %v4541_v42  ;;  %4544 = vpow2.f32 %v4118_v41 }
 0x611   :  { %v2853_v45 = vadd.f32 1.0, %v4543_v43 }
 0x612   :  { %4546 = vrcp.f32 %v2834_v44  ;;  %v2846_v19 = vand.u32 2147483648, %v2834_v44  ;;  %v2844_v62 = vand.u32 2147483647, %v2834_v44  ;;  %vm2840_vm2 = vweird.f32 %v2834_v44 }
 0x613   :  { %4548 = vrcp.f32 %v2853_v45  ;;  %v2812_v46 = vpop.f32.mrf.mxu2  ;;  %v2825_v47 = vpop.f32.mrf.mxu3  ;;  %v2865_v20 = vand.u32 2147483648, %v2853_v45  ;;  %v2863_v0 = vand.u32 2147483647, %v2853_v45  ;;  %vm2859_vm3 = vweird.f32 %v2853_v45 }
 0x614   :  { %v2847_v3 = vor.u32 1.1754944e-38, %v2846_v19  ;;  %vm2845_vm6 = vcmp.eq.f32.partialorder %v2844_v62, 8.507059e+37 }
 0x615   :  { %v2866_v6 = vor.u32 1.1754944e-38, %v2865_v20  ;;  %vm2864_vm7 = vcmp.eq.f32.partialorder %v2863_v0, 8.507059e+37 }
 0x616   :  { %v4545_v49 = vpop.eup %4544 }
 0x617   :  { %v2873_v54 = vadd.f32 1.0, %v4545_v49 }
 0x618   :  { %v4547_v55 = vpop.eup %4546 }
 0x619   :  { %v4549_v57 = vpop.eup %4548  ;;  %v2836_v58 = vmul.f32 %v4547_v55, %v2834_v44  ;;  %4550 = vrcp.f32 %v2873_v54  ;;  %vm2841_vm0 = vweird.f32 %v4547_v55  ;;  %v2885_v22 = vand.u32 2147483648, %v2873_v54 }
 0x61a   :  { %v2855_v59 = vmul.f32 %v4549_v57, %v2853_v45  ;;  %4552 = vtanh.f32 %v2829_v56  ;;  %vm2860_vm1 = vweird.f32 %v4549_v57  ;;  %vm2842_vm4 = vmor %vm2840_vm2, %vm2841_vm0  ;;  %vm2879_vm9 = vweird.f32 %v2873_v54 }
 0x61b   :  { %v2837_v60 = vsub.f32 1.0, %v2836_v58  ;;  %vm2861_vm5 = vmor %vm2859_vm3, %vm2860_vm1  ;;  %v2883_v23 = vand.u32 2147483647, %v2873_v54  ;;  %v2886_v25 = vor.u32 1.1754944e-38, %v2885_v22 }
 0x61c   :  { %v2856_v61 = vsub.f32 1.0, %v2855_v59 }
 0x61d   :  { %v2838_v21 = vmul.f32 %v4547_v55, %v2837_v60  ;;  %vm2884_vm11 = vcmp.eq.f32.partialorder %v2883_v23, 8.507059e+37 }
 0x61e   :  { %v2857_v63 = vmul.f32 %v4549_v57, %v2856_v61 }
 0x61f   :  { %v4551_v1 = vpop.eup %4550  ;;  %v2839_v2 = vadd.f32 %v4547_v55, %v2838_v21 }
 0x620   :  { %v2858_v4 = vadd.f32 %v4549_v57, %v2857_v63  ;;  %v2875_v5 = vmul.f32 %v4551_v1, %v2873_v54  ;;  %v4553_v8 = vpop.eup %4552  ;;  %vm2880_vm8 = vweird.f32 %v4551_v1 }
 0x621   :  { %v2843_v7 = vsel %vm2842_vm4, %v4547_v55, %v2839_v2  ;;  %vm2881_vm10 = vmor %vm2879_vm9, %vm2880_vm8 }
 0x622   :  { %v2848_v9 = vsel %vm2845_vm6, %v2847_v3, %v2843_v7  ;;  %v2862_v10 = vsel %vm2861_vm5, %v4549_v57, %v2858_v4  ;;  %v2876_v11 = vsub.f32 1.0, %v2875_v5 }
 0x623   :  { %v2867_v12 = vsel %vm2864_vm7, %v2866_v6, %v2862_v10  ;;  %v2890_v13 = vmul.f32 %v4553_v8, %v2848_v9 }
 0x624   :  { %v2889_v14 = vmul.f32 %v2867_v12, %v4749_v18  ;;  %v2877_v15 = vmul.f32 %v4551_v1, %v2876_v11 }
 0x626   :  { %v2891_v16 = vadd.f32 %v2890_v13, %v2889_v14  ;;  %v2878_v17 = vadd.f32 %v4551_v1, %v2877_v15 }
 0x628   :  { %4554 = vtanh.f32 %v2891_v16  ;;  %v2882_v24 = vsel %vm2881_vm10, %v4551_v1, %v2878_v17 }
 0x629   :  { %v2887_v27 = vsel %vm2884_vm11, %v2886_v25, %v2882_v24 }
 0x62e   :  { %v4555_v26 = vpop.eup %4554 }
 0x62f   :  { %v2893_v28 = vmul.f32 %v4555_v26, %v2887_v27 }
 0x631   :  { %4119 = vst [vmem:[%s4773_s2 + $0x40] sm:$0xff] %v2893_v28 }
 0x632   :  { %2900 = vsyncpa [#allocation3], 1 }

// kernel: decoder_lstm_forward.6
= control target key start
LH: loop header
LB: loop body
LE: loop exit
PB: predicated region body
PF: predicated region fallthrough
CT: control target
= control target key end

     0   :  { %s6447_s1 = inlined_call_operand.vmem [shape: bf16[128,512], index: 1, kind: input, shape index: {}]   ;;  %s6448_s0 = inlined_call_operand.vmem [shape: f32[9,8,512], index: 0, kind: input, shape index: {}]   ;;  %s6449_s2 = inlined_call_operand.vmem [shape: f32[9,8,128], index: 2, kind: output, shape index: {}]  }
   0x1   :  { %v2998_v0 = vld [vmem:[%s6447_s1 + $0xe0] sm:$0xf]  ;;  %v4133_v1 = vld [vmem:[%s6447_s1 + $0xec] sm:$0xf0]  ;;  %v4131_v2 = vld [vmem:[%s6447_s1 + $0xe4] sm:$0xf] }
   0x2   :  { %v2999_v3 = vor.u32 %v4133_v1, %v2998_v0  ;;  %v3000_v4 = vld [vmem:[%s6447_s1 + $0xf0] sm:$0xf0]  ;;  %v4132_v5 = vld [vmem:[%s6447_s1 + $0xec] sm:$0xf]  ;;  %v3008_v6 = vld [vmem:[%s6447_s1 + $0xf8] sm:$0xf0] }
   0x3   :  { %v3003_v7 = vor.u32 %v4131_v2, %v3000_v4  ;;  %v3011_v8 = vor.u32 %v4132_v5, %v3008_v6  ;;  %v2982_v9 = vld [vmem:[%s6447_s1 + $0xc0] sm:$0xf]  ;;  %v4129_v10 = vld [vmem:[%s6447_s1 + $0xcc] sm:$0xf0]  ;;  %v4127_v11 = vld [vmem:[%s6447_s1 + $0xc4] sm:$0xf] }
   0x4   :  { %208 = vmatpush.bf16.msra.mxu0 %v2999_v3  ;;  %v2983_v12 = vor.u32 %v4129_v10, %v2982_v9  ;;  %v2984_v13 = vld [vmem:[%s6447_s1 + $0xd0] sm:$0xf0]  ;;  %v4128_v14 = vld [vmem:[%s6447_s1 + $0xcc] sm:$0xf]  ;;  %v2992_v15 = vld [vmem:[%s6447_s1 + $0xd8] sm:$0xf0] }
   0x5   :  { %221 = vmatpush.bf16.msra.mxu1 %v3003_v7  ;;  %247 = vmatpush.bf16.msra.mxu3 %v3011_v8  ;;  %v2987_v16 = vor.u32 %v4127_v11, %v2984_v13  ;;  %v2995_v17 = vor.u32 %v4128_v14, %v2992_v15  ;;  %v3006_v18 = vld [vmem:[%s6447_s1 + $0xe8] sm:$0xf]  ;;  %v4134_v19 = vld [vmem:[%s6447_s1 + $0xf4] sm:$0xf0]  ;;  %v2966_v20 = vld [vmem:[%s6447_s1 + $0xa0] sm:$0xf] }
   0x6   :  { %v3007_v21 = vor.u32 %v4134_v19, %v3006_v18  ;;  %v4125_v22 = vld [vmem:[%s6447_s1 + $0xac] sm:$0xf0]  ;;  %v4123_v23 = vld [vmem:[%s6447_s1 + $0xa4] sm:$0xf]  ;;  %v2968_v24 = vld [vmem:[%s6447_s1 + $0xb0] sm:$0xf0] }
   0x7   :  { %v4124_v25 = vld [vmem:[%s6447_s1 + $0xac] sm:$0xf]  ;;  %v2976_v26 = vld [vmem:[%s6447_s1 + $0xb8] sm:$0xf0]  ;;  %v2990_v27 = vld [vmem:[%s6447_s1 + $0xc8] sm:$0xf]  ;;  %v2967_v28 = vor.u32 %v4125_v22, %v2966_v20  ;;  %v2971_v32 = vor.u32 %v4123_v23, %v2968_v24 }
   0x8   :  { %209 = vmatpush.bf16.msra.mxu0 %v2983_v12  ;;  %234 = vmatpush.bf16.msra.mxu2 %v3007_v21  ;;  %v4130_v29 = vld [vmem:[%s6447_s1 + $0xd4] sm:$0xf0]  ;;  %v2950_v30 = vld [vmem:[%s6447_s1 + $0x80] sm:$0xf]  ;;  %v4121_v31 = vld [vmem:[%s6447_s1 + $0x8c] sm:$0xf0]  ;;  %v2979_v33 = vor.u32 %v4124_v25, %v2976_v26 }
   0x9   :  { %222 = vmatpush.bf16.msra.mxu1 %v2987_v16  ;;  %248 = vmatpush.bf16.msra.mxu3 %v2995_v17  ;;  %v2991_v34 = vor.u32 %v4130_v29, %v2990_v27  ;;  %v4119_v35 = vld [vmem:[%s6447_s1 + $0x84] sm:$0xf]  ;;  %v2952_v36 = vld [vmem:[%s6447_s1 + $0x90] sm:$0xf0]  ;;  %v4120_v37 = vld [vmem:[%s6447_s1 + $0x8c] sm:$0xf]  ;;  %v2951_v41 = vor.u32 %v4121_v31, %v2950_v30 }
   0xa   :  { %v2960_v38 = vld [vmem:[%s6447_s1 + $0x98] sm:$0xf0]  ;;  %v2974_v39 = vld [vmem:[%s6447_s1 + $0xa8] sm:$0xf]  ;;  %v4126_v40 = vld [vmem:[%s6447_s1 + $0xb4] sm:$0xf0]  ;;  %v2955_v45 = vor.u32 %v4119_v35, %v2952_v36 }
   0xb   :  { %v2975_v42 = vor.u32 %v4126_v40, %v2974_v39  ;;  %v2934_v43 = vld [vmem:[%s6447_s1 + $0x60] sm:$0xf]  ;;  %v4117_v44 = vld [vmem:[%s6447_s1 + $0x6c] sm:$0xf0]  ;;  %v2963_v46 = vor.u32 %v4120_v37, %v2960_v38  ;;  %v4115_v47 = vld [vmem:[%s6447_s1 + $0x64] sm:$0xf] }
   0xc   :  { %210 = vmatpush.bf16.msra.mxu0 %v2967_v28  ;;  %235 = vmatpush.bf16.msra.mxu2 %v2991_v34  ;;  %v2958_v48 = vld [vmem:[%s6447_s1 + $0x88] sm:$0xf]  ;;  %v4122_v49 = vld [vmem:[%s6447_s1 + $0x94] sm:$0xf0]  ;;  %v2936_v50 = vld [vmem:[%s6447_s1 + $0x70] sm:$0xf0]  ;;  %v2935_v53 = vor.u32 %v4117_v44, %v2934_v43 }
   0xd   :  { %223 = vmatpush.bf16.msra.mxu1 %v2971_v32  ;;  %249 = vmatpush.bf16.msra.mxu3 %v2979_v33  ;;  %v4116_v51 = vld [vmem:[%s6447_s1 + $0x6c] sm:$0xf]  ;;  %v2944_v52 = vld [vmem:[%s6447_s1 + $0x78] sm:$0xf0]  ;;  %v2959_v54 = vor.u32 %v4122_v49, %v2958_v48  ;;  %v2918_v55 = vld [vmem:[%s6447_s1 + $0x40] sm:$0xf]  ;;  %v2939_v57 = vor.u32 %v4115_v47, %v2936_v50 }
   0xe   :  { %v4113_v56 = vld [vmem:[%s6447_s1 + $0x4c] sm:$0xf0]  ;;  %v2947_v58 = vor.u32 %v4116_v51, %v2944_v52  ;;  %v4111_v59 = vld [vmem:[%s6447_s1 + $0x44] sm:$0xf]  ;;  %v2942_v60 = vld [vmem:[%s6447_s1 + $0x68] sm:$0xf] }
   0xf   :  { %v4118_v61 = vld [vmem:[%s6447_s1 + $0x74] sm:$0xf0]  ;;  %v2920_v62 = vld [vmem:[%s6447_s1 + $0x50] sm:$0xf0]  ;;  %v4112_v63 = vld [vmem:[%s6447_s1 + $0x4c] sm:$0xf]  ;;  %v2919_v1 = vor.u32 %v4113_v56, %v2918_v55 }
  0x10   :  { %211 = vmatpush.bf16.msra.mxu0 %v2951_v41  ;;  %236 = vmatpush.bf16.msra.mxu2 %v2975_v42  ;;  %v2928_v0 = vld [vmem:[%s6447_s1 + $0x58] sm:$0xf0]  ;;  %v2943_v2 = vor.u32 %v4118_v61, %v2942_v60  ;;  %v2902_v3 = vld [vmem:[%s6447_s1 + $0x20] sm:$0xf]  ;;  %v4109_v4 = vld [vmem:[%s6447_s1 + $0x2c] sm:$0xf0]  ;;  %v2923_v5 = vor.u32 %v4111_v59, %v2920_v62 }
  0x11   :  { %224 = vmatpush.bf16.msra.mxu1 %v2955_v45  ;;  %250 = vmatpush.bf16.msra.mxu3 %v2963_v46  ;;  %v2931_v6 = vor.u32 %v4112_v63, %v2928_v0  ;;  %v4107_v7 = vld [vmem:[%s6447_s1 + $0x24] sm:$0xf]  ;;  %v2926_v8 = vld [vmem:[%s6447_s1 + $0x48] sm:$0xf]  ;;  %v4114_v9 = vld [vmem:[%s6447_s1 + $0x54] sm:$0xf0]  ;;  %v2903_v13 = vor.u32 %v4109_v4, %v2902_v3 }
  0x12   :  { %v2904_v10 = vld [vmem:[%s6447_s1 + $0x30] sm:$0xf0]  ;;  %v4108_v11 = vld [vmem:[%s6447_s1 + $0x2c] sm:$0xf]  ;;  %v2912_v12 = vld [vmem:[%s6447_s1 + $0x38] sm:$0xf0]  ;;  %v2927_v14 = vor.u32 %v4114_v9, %v2926_v8 }
  0x13   :  { %v2886_v15 = vld [vmem:[%s6447_s1] sm:$0xf]  ;;  %v4105_v16 = vld [vmem:[%s6447_s1 + $0xc] sm:$0xf0]  ;;  %v2907_v17 = vor.u32 %v4107_v7, %v2904_v10  ;;  %v2915_v18 = vor.u32 %v4108_v11, %v2912_v12  ;;  %v4103_v19 = vld [vmem:[%s6447_s1 + $0x4] sm:$0xf] }
  0x14   :  { %212 = vmatpush.bf16.msra.mxu0 %v2935_v53  ;;  %237 = vmatpush.bf16.msra.mxu2 %v2959_v54  ;;  %v2910_v20 = vld [vmem:[%s6447_s1 + $0x28] sm:$0xf]  ;;  %v4110_v21 = vld [vmem:[%s6447_s1 + $0x34] sm:$0xf0]  ;;  %v2888_v22 = vld [vmem:[%s6447_s1 + $0x10] sm:$0xf0]  ;;  %v2887_v25 = vor.u32 %v4105_v16, %v2886_v15 }
  0x15   :  { %225 = vmatpush.bf16.msra.mxu1 %v2939_v57  ;;  %251 = vmatpush.bf16.msra.mxu3 %v2947_v58  ;;  %v4104_v23 = vld [vmem:[%s6447_s1 + $0xc] sm:$0xf]  ;;  %v2896_v24 = vld [vmem:[%s6447_s1 + $0x18] sm:$0xf0]  ;;  %v2911_v26 = vor.u32 %v4110_v21, %v2910_v20  ;;  %v2891_v27 = vor.u32 %v4103_v19, %v2888_v22  ;;  %v2894_v29 = vld [vmem:[%s6447_s1 + $0x8] sm:$0xf] }
  0x16   :  { %v2899_v28 = vor.u32 %v4104_v23, %v2896_v24  ;;  %v4106_v30 = vld [vmem:[%s6447_s1 + $0x14] sm:$0xf0]  ;;  %v4536_v32 = vmov 0   ;;  %v3133_v33 = vld [vmem:[%s6447_s1 + $0xe0] sm:$0xf] }
  0x17   :  { %v2895_v31 = vor.u32 %v4106_v30, %v2894_v29  ;;  %v4165_v34 = vld [vmem:[%s6447_s1 + $0xec] sm:$0xf0]  ;;  %v4163_v35 = vld [vmem:[%s6447_s1 + $0xe4] sm:$0xf]  ;;  %v3135_v37 = vld [vmem:[%s6447_s1 + $0xf0] sm:$0xf0] }
  0x18   :  { %213 = vmatpush.bf16.msra.mxu0 %v2919_v1  ;;  %238 = vmatpush.bf16.msra.mxu2 %v2943_v2  ;;  %v3134_v36 = vor.u32 %v4165_v34, %v3133_v33  ;;  %v3141_v38 = vld [vmem:[%s6447_s1 + $0xe8] sm:$0xf]  ;;  %v4166_v39 = vld [vmem:[%s6447_s1 + $0xf4] sm:$0xf0]  ;;  %v3138_v40 = vor.u32 %v4163_v35, %v3135_v37  ;;  %v4164_v42 = vld [vmem:[%s6447_s1 + $0xec] sm:$0xf] }
  0x19   :  { %226 = vmatpush.bf16.msra.mxu1 %v2923_v5  ;;  %252 = vmatpush.bf16.msra.mxu3 %v2931_v6  ;;  %v3142_v41 = vor.u32 %v4166_v39, %v3141_v38  ;;  %v3143_v43 = vld [vmem:[%s6447_s1 + $0xf8] sm:$0xf0]  ;;  %v3117_v45 = vld [vmem:[%s6447_s1 + $0xc0] sm:$0xf]  ;;  %v4161_v46 = vld [vmem:[%s6447_s1 + $0xcc] sm:$0xf0] }
  0x1a   :  { %v3146_v44 = vor.u32 %v4164_v42, %v3143_v43  ;;  %v4159_v47 = vld [vmem:[%s6447_s1 + $0xc4] sm:$0xf]  ;;  %v3118_v48 = vor.u32 %v4161_v46, %v3117_v45  ;;  %v3119_v49 = vld [vmem:[%s6447_s1 + $0xd0] sm:$0xf0]  ;;  %v3125_v50 = vld [vmem:[%s6447_s1 + $0xc8] sm:$0xf] }
  0x1b   :  { %v4162_v51 = vld [vmem:[%s6447_s1 + $0xd4] sm:$0xf0]  ;;  %v3122_v52 = vor.u32 %v4159_v47, %v3119_v49  ;;  %v4160_v54 = vld [vmem:[%s6447_s1 + $0xcc] sm:$0xf]  ;;  %v3127_v55 = vld [vmem:[%s6447_s1 + $0xd8] sm:$0xf0] }
  0x1c   :  { %214 = vmatpush.bf16.msra.mxu0 %v2903_v13  ;;  %239 = vmatpush.bf16.msra.mxu2 %v2927_v14  ;;  %v3126_v53 = vor.u32 %v4162_v51, %v3125_v50  ;;  %v3130_v56 = vor.u32 %v4160_v54, %v3127_v55  ;;  %v3101_v57 = vld [vmem:[%s6447_s1 + $0xa0] sm:$0xf]  ;;  %v4157_v58 = vld [vmem:[%s6447_s1 + $0xac] sm:$0xf0]  ;;  %v4155_v59 = vld [vmem:[%s6447_s1 + $0xa4] sm:$0xf] }
  0x1d   :  { %227 = vmatpush.bf16.msra.mxu1 %v2907_v17  ;;  %253 = vmatpush.bf16.msra.mxu3 %v2915_v18  ;;  %v3102_v60 = vor.u32 %v4157_v58, %v3101_v57  ;;  %v3103_v61 = vld [vmem:[%s6447_s1 + $0xb0] sm:$0xf0]  ;;  %v3109_v62 = vld [vmem:[%s6447_s1 + $0xa8] sm:$0xf]  ;;  %v4158_v0 = vld [vmem:[%s6447_s1 + $0xb4] sm:$0xf0] }
  0x1e   :  { %v3106_v63 = vor.u32 %v4155_v59, %v3103_v61  ;;  %v4156_v1 = vld [vmem:[%s6447_s1 + $0xac] sm:$0xf]  ;;  %v3111_v2 = vld [vmem:[%s6447_s1 + $0xb8] sm:$0xf0]  ;;  %v3110_v3 = vor.u32 %v4158_v0, %v3109_v62  ;;  %v3085_v5 = vld [vmem:[%s6447_s1 + $0x80] sm:$0xf] }
  0x1f   :  { %v3114_v4 = vor.u32 %v4156_v1, %v3111_v2  ;;  %v4153_v6 = vld [vmem:[%s6447_s1 + $0x8c] sm:$0xf0]  ;;  %v4151_v7 = vld [vmem:[%s6447_s1 + $0x84] sm:$0xf]  ;;  %v3087_v9 = vld [vmem:[%s6447_s1 + $0x90] sm:$0xf0] }
  0x20   :  { %215 = vmatpush.bf16.msra.mxu0 %v2887_v25  ;;  %240 = vmatpush.bf16.msra.mxu2 %v2911_v26  ;;  %v3086_v8 = vor.u32 %v4153_v6, %v3085_v5  ;;  %v3093_v10 = vld [vmem:[%s6447_s1 + $0x88] sm:$0xf]  ;;  %v4154_v11 = vld [vmem:[%s6447_s1 + $0x94] sm:$0xf0]  ;;  %v3090_v12 = vor.u32 %v4151_v7, %v3087_v9  ;;  %v4152_v14 = vld [vmem:[%s6447_s1 + $0x8c] sm:$0xf] }
  0x21   :  { %228 = vmatpush.bf16.msra.mxu1 %v2891_v27  ;;  %254 = vmatpush.bf16.msra.mxu3 %v2899_v28  ;;  %v3094_v13 = vor.u32 %v4154_v11, %v3093_v10  ;;  %v3095_v15 = vld [vmem:[%s6447_s1 + $0x98] sm:$0xf0]  ;;  %v12_v16 = vld [vmem:[%s6448_s0] sm:$0xff]  ;;  %v4149_v19 = vld [vmem:[%s6447_s1 + $0x6c] sm:$0xf0] }
  0x22   :  { %v3098_v17 = vor.u32 %v4152_v14, %v3095_v15  ;;  %v3069_v18 = vld [vmem:[%s6447_s1 + $0x60] sm:$0xf]  ;;  %v4147_v20 = vld [vmem:[%s6447_s1 + $0x64] sm:$0xf]  ;;  %v3071_v22 = vld [vmem:[%s6447_s1 + $0x70] sm:$0xf0] }
  0x23   :  { %216 = vmatmul.bf16.vlgmr.msra.gmra.mxu0 %v4536_v32  ;;  %v3070_v21 = vor.u32 %v4149_v19, %v3069_v18  ;;  %v3077_v23 = vld [vmem:[%s6447_s1 + $0x68] sm:$0xf]  ;;  %v4150_v24 = vld [vmem:[%s6447_s1 + $0x74] sm:$0xf0]  ;;  %v3074_v26 = vor.u32 %v4147_v20, %v3071_v22  ;;  %v4148_v28 = vld [vmem:[%s6447_s1 + $0x6c] sm:$0xf] }
  0x24   :  { %229 = vmatmul.bf16.vlgmr.msra.gmra.mxu1 %v4536_v32  ;;  %255 = vmatmul.bf16.vlgmr.msra.gmra.mxu3 %v4536_v32  ;;  %v13_v25 = vld [vmem:[%s6448_s0 + $0x8] sm:$0xff]  ;;  %v3078_v27 = vor.u32 %v4150_v24, %v3077_v23  ;;  %v3079_v29 = vld [vmem:[%s6447_s1 + $0x78] sm:$0xf0]  ;;  %v3053_v34 = vld [vmem:[%s6447_s1 + $0x40] sm:$0xf] }
  0x25   :  { %241 = vmatpush.bf16.msra.mxu2 %v2895_v31  ;;  %526 = vmatpush.bf16.msrb.mxu0 %v3134_v36  ;;  %v3082_v31 = vor.u32 %v4148_v28, %v3079_v29  ;;  %v4145_v35 = vld [vmem:[%s6447_s1 + $0x4c] sm:$0xf0]  ;;  %v4143_v36 = vld [vmem:[%s6447_s1 + $0x44] sm:$0xf]  ;;  %v3055_v39 = vld [vmem:[%s6447_s1 + $0x50] sm:$0xf0] }
  0x26   :  { %539 = vmatpush.bf16.msrb.mxu1 %v3138_v40  ;;  %565 = vmatpush.bf16.msrb.mxu3 %v3146_v44  ;;  %v3054_v38 = vor.u32 %v4145_v35, %v3053_v34  ;;  %v3061_v40 = vld [vmem:[%s6447_s1 + $0x48] sm:$0xf]  ;;  %v15_v43 = vld [vmem:[%s6448_s0 + $0x18] sm:$0xff]  ;;  %v3058_v44 = vor.u32 %v4143_v36, %v3055_v39  ;;  %v4144_v46 = vld [vmem:[%s6447_s1 + $0x4c] sm:$0xf] }
  0x27   :  { %v3063_v47 = vld [vmem:[%s6447_s1 + $0x58] sm:$0xf0]  ;;  %v3037_v50 = vld [vmem:[%s6447_s1 + $0x20] sm:$0xf]  ;;  %v4141_v51 = vld [vmem:[%s6447_s1 + $0x2c] sm:$0xf0] }
  0x28   :  { %242 = vmatmul.bf16.vlgmr.msra.gmra.mxu2 %v4536_v32  ;;  %v3066_v49 = vor.u32 %v4144_v46, %v3063_v47  ;;  %v3039_v54 = vld [vmem:[%s6447_s1 + $0x30] sm:$0xf0]  ;;  %v3045_v55 = vld [vmem:[%s6447_s1 + $0x28] sm:$0xf]  ;;  %v4142_v57 = vld [vmem:[%s6447_s1 + $0x34] sm:$0xf0] }
  0x29   :  { %552 = vmatpush.bf16.msrb.mxu2 %v3142_v41  ;;  %527 = vmatpush.bf16.msrb.mxu0 %v3118_v48  ;;  %v4146_v41 = vld [vmem:[%s6447_s1 + $0x54] sm:$0xf0]  ;;  %v4140_v58 = vld [vmem:[%s6447_s1 + $0x2c] sm:$0xf]  ;;  %v3047_v59 = vld [vmem:[%s6447_s1 + $0x38] sm:$0xf0]  ;;  %v3046_v61 = vor.u32 %v4142_v57, %v3045_v55 }
  0x2a   :  { %540 = vmatpush.bf16.msrb.mxu1 %v3122_v52  ;;  %566 = vmatpush.bf16.msrb.mxu3 %v3130_v56  ;;  %v3062_v45 = vor.u32 %v4146_v41, %v3061_v40  ;;  %v3038_v52 = vor.u32 %v4141_v51, %v3037_v50  ;;  %v3050_v62 = vor.u32 %v4140_v58, %v3047_v59  ;;  %v4137_v0 = vld [vmem:[%s6447_s1 + $0xc] sm:$0xf0]  ;;  %v4135_v1 = vld [vmem:[%s6447_s1 + $0x4] sm:$0xf]  ;;  %v3023_v5 = vld [vmem:[%s6447_s1 + $0x10] sm:$0xf0] }
  0x2b   :  { %v3029_v6 = vld [vmem:[%s6447_s1 + $0x8] sm:$0xf]  ;;  %v4138_v7 = vld [vmem:[%s6447_s1 + $0x14] sm:$0xf0]  ;;  %v3026_v9 = vor.u32 %v4135_v1, %v3023_v5  ;;  %v4136_v10 = vld [vmem:[%s6447_s1 + $0xc] sm:$0xf] }
  0x2c   :  { %v3031_v11 = vld [vmem:[%s6447_s1 + $0x18] sm:$0xf0]  ;;  %v14_v20 = vld [vmem:[%s6448_s0 + $0x10] sm:$0xff]  ;;  %v4195_v1 = vld [vmem:[%s6447_s1 + $0xe4] sm:$0xf] }
  0x2d   :  { %553 = vmatpush.bf16.msrb.mxu2 %v3126_v53  ;;  %528 = vmatpush.bf16.msrb.mxu0 %v3102_v60  ;;  %v4139_v53 = vld [vmem:[%s6447_s1 + $0x24] sm:$0xf]  ;;  %v3034_v14 = vor.u32 %v4136_v10, %v3031_v11  ;;  %v4198_v5 = vld [vmem:[%s6447_s1 + $0xf4] sm:$0xf0]  ;;  %v3253_v11 = vld [vmem:[%s6447_s1 + $0xc0] sm:$0xf] }
  0x2e   :  { %541 = vmatpush.bf16.msrb.mxu1 %v3106_v63  ;;  %567 = vmatpush.bf16.msrb.mxu3 %v3114_v4  ;;  %v3042_v56 = vor.u32 %v4139_v53, %v3039_v54  ;;  %v3021_v63 = vld [vmem:[%s6447_s1] sm:$0xf] }
  0x2f   :  { %v3022_v4 = vor.u32 %v4137_v0, %v3021_v63  ;;  %v3269_v63 = vld [vmem:[%s6447_s1 + $0xe0] sm:$0xf]  ;;  %v4197_v0 = vld [vmem:[%s6447_s1 + $0xec] sm:$0xf0] }
  0x31   :  { %554 = vmatpush.bf16.msrb.mxu2 %v3110_v3  ;;  %529 = vmatpush.bf16.msrb.mxu0 %v3086_v8 }
  0x32   :  { %542 = vmatpush.bf16.msrb.mxu1 %v3090_v12  ;;  %568 = vmatpush.bf16.msrb.mxu3 %v3098_v17 }
  0x35   :  { %555 = vmatpush.bf16.msrb.mxu2 %v3094_v13  ;;  %530 = vmatpush.bf16.msrb.mxu0 %v3070_v21  ;;  %v3030_v13 = vor.u32 %v4138_v7, %v3029_v6 }
  0x36   :  { %543 = vmatpush.bf16.msrb.mxu1 %v3074_v26  ;;  %569 = vmatpush.bf16.msrb.mxu3 %v3082_v31 }
  0x39   :  { %556 = vmatpush.bf16.msrb.mxu2 %v3078_v27  ;;  %531 = vmatpush.bf16.msrb.mxu0 %v3054_v38 }
  0x3a   :  { %544 = vmatpush.bf16.msrb.mxu1 %v3058_v44  ;;  %570 = vmatpush.bf16.msrb.mxu3 %v3066_v49 }
  0x3d   :  { %557 = vmatpush.bf16.msrb.mxu2 %v3062_v45  ;;  %532 = vmatpush.bf16.msrb.mxu0 %v3038_v52 }
  0x3e   :  { %545 = vmatpush.bf16.msrb.mxu1 %v3042_v56  ;;  %571 = vmatpush.bf16.msrb.mxu3 %v3050_v62 }
  0x41   :  { %558 = vmatpush.bf16.msrb.mxu2 %v3046_v61  ;;  %533 = vmatpush.bf16.msrb.mxu0 %v3022_v4  ;;  %v3277_v4 = vld [vmem:[%s6447_s1 + $0xe8] sm:$0xf] }
  0x42   :  { %546 = vmatpush.bf16.msrb.mxu1 %v3026_v9  ;;  %572 = vmatpush.bf16.msrb.mxu3 %v3034_v14  ;;  %v3278_v7 = vor.u32 %v4198_v5, %v3277_v4  ;;  %v3279_v9 = vld [vmem:[%s6447_s1 + $0xf8] sm:$0xf0]  ;;  %v4175_v4 = vld [vmem:[%s6447_s1 + $0x44] sm:$0xf] }
  0x45   :  { %559 = vmatpush.bf16.msrb.mxu2 %v3030_v13  ;;  %v4191_v13 = vld [vmem:[%s6447_s1 + $0xc4] sm:$0xf] }
  0x49   :  { %871 = vmatpush.bf16.msra.mxu2 %v3278_v7  ;;  %v3197_v7 = vld [vmem:[%s6447_s1 + $0x48] sm:$0xf] }
  0xa0   :  { %v217_v30 = vpop.f32.mrf.mxu0 }
  0xa1   :  { %v260_v32 = vadd.f32 %v217_v30, %v12_v16  ;;  %v230_v33 = vpop.f32.mrf.mxu1 }
  0xa2   :  { %v261_v37 = vadd.f32 %v230_v33, %v13_v25 }
  0xa3   :  { %v3012_v42 = vmul.f32 -1.442695, %v260_v32 }
  0xa4   :  { %v3013_v48 = vmul.f32 -1.442695, %v261_v37 }
  0xa5   :  { %4392 = vpow2.f32 %v3012_v42 }
  0xa6   :  { %4394 = vpow2.f32 %v3013_v48 }
  0xa7   :  { %v256_v60 = vpop.f32.mrf.mxu3 }
  0xa8   :  { %v263_v2 = vadd.f32 %v256_v60, %v15_v43  ;;  %v219_v3 = vpop.f32.mrf.mxu0 }
  0xa9   :  { %v232_v8 = vpop.f32.mrf.mxu1  ;;  %v3271_v3 = vld [vmem:[%s6447_s1 + $0xf0] sm:$0xf0] }
  0xaa   :  { %v3014_v12 = vmul.f32 -1.442695, %v263_v2  ;;  %v3270_v2 = vor.u32 %v4197_v0, %v3269_v63  ;;  %v3274_v6 = vor.u32 %v4195_v1, %v3271_v3  ;;  %v4196_v8 = vld [vmem:[%s6447_s1 + $0xec] sm:$0xf]  ;;  %v4177_v3 = vld [vmem:[%s6447_s1 + $0x4c] sm:$0xf0] }
  0xab   :  { %v4393_v15 = vpop.eup %4392  ;;  %v243_v16 = vpop.f32.mrf.mxu2  ;;  %v3282_v10 = vor.u32 %v4196_v8, %v3279_v9  ;;  %v4178_v8 = vld [vmem:[%s6447_s1 + $0x54] sm:$0xf0] }
  0xac   :  { %v4395_v17 = vpop.eup %4394  ;;  %v267_v18 = vadd.f32 1.0, %v4393_v15  ;;  %4396 = vpow2.f32 %v3014_v12  ;;  %v262_v23 = vadd.f32 %v243_v16, %v14_v20  ;;  %845 = vmatpush.bf16.msra.mxu0 %v3270_v2  ;;  %858 = vmatpush.bf16.msra.mxu1 %v3274_v6  ;;  %v4193_v12 = vld [vmem:[%s6447_s1 + $0xcc] sm:$0xf0]  ;;  %v3255_v15 = vld [vmem:[%s6447_s1 + $0xd0] sm:$0xf0] }
  0xad   :  { %v286_v19 = vadd.f32 1.0, %v4395_v17  ;;  %884 = vmatpush.bf16.msra.mxu3 %v3282_v10  ;;  %v3254_v14 = vor.u32 %v4193_v12, %v3253_v11  ;;  %v3261_v16 = vld [vmem:[%s6447_s1 + $0xc8] sm:$0xf]  ;;  %v4194_v17 = vld [vmem:[%s6447_s1 + $0xd4] sm:$0xf0] }
  0xae   :  { %4398 = vrcp.f32 %v267_v18  ;;  %v279_v32 = vand.u32 2147483648, %v267_v18  ;;  %v277_v35 = vand.u32 2147483647, %v267_v18  ;;  %vm273_vm2 = vweird.f32 %v267_v18  ;;  %v4192_v20 = vld [vmem:[%s6447_s1 + $0xcc] sm:$0xf]  ;;  %v3018_v11 = vld [vmem:[%s6448_s0 + $0x38] sm:$0xff] }
  0xaf   :  { %4400 = vrcp.f32 %v286_v19  ;;  %v258_v21 = vpop.f32.mrf.mxu3  ;;  %v298_v33 = vand.u32 2147483648, %v286_v19  ;;  %v296_v37 = vand.u32 2147483647, %v286_v19  ;;  %vm292_vm3 = vweird.f32 %v286_v19  ;;  %v3189_v2 = vld [vmem:[%s6447_s1 + $0x40] sm:$0xf] }
  0xb0   :  { %v280_v42 = vor.u32 1.1754944e-38, %v279_v32  ;;  %vm278_vm5 = vcmp.eq.f32.partialorder %v277_v35, 8.507059e+37  ;;  %v3263_v21 = vld [vmem:[%s6447_s1 + $0xd8] sm:$0xf0]  ;;  %846 = vmatpush.bf16.msra.mxu0 %v3254_v14  ;;  %v4188_v32 = vld [vmem:[%s6447_s1 + $0xac] sm:$0xf]  ;;  %v3190_v5 = vor.u32 %v4177_v3, %v3189_v2 }
  0xb1   :  { %v299_v44 = vor.u32 1.1754944e-38, %v298_v33  ;;  %vm297_vm7 = vcmp.eq.f32.partialorder %v296_v37, 8.507059e+37  ;;  %v3247_v33 = vld [vmem:[%s6447_s1 + $0xb8] sm:$0xf0]  ;;  %v3221_v35 = vld [vmem:[%s6447_s1 + $0x80] sm:$0xf] }
  0xb2   :  { %v4397_v22 = vpop.eup %4396  ;;  %v4183_v37 = vld [vmem:[%s6447_s1 + $0x84] sm:$0xf]  ;;  %v3191_v6 = vld [vmem:[%s6447_s1 + $0x50] sm:$0xf0]  ;;  %v4176_v14 = vld [vmem:[%s6447_s1 + $0x4c] sm:$0xf] }
  0xb3   :  { %v306_v24 = vadd.f32 1.0, %v4397_v22  ;;  %v245_v25 = vpop.f32.mrf.mxu2  ;;  %v3266_v22 = vor.u32 %v4192_v20, %v3263_v21  ;;  %v3194_v12 = vor.u32 %v4175_v4, %v3191_v6  ;;  %v4171_v20 = vld [vmem:[%s6447_s1 + $0x24] sm:$0xf]  ;;  %v3175_v21 = vld [vmem:[%s6447_s1 + $0x30] sm:$0xf0] }
  0xb4   :  { %v4399_v26 = vpop.eup %4398  ;;  %v4187_v25 = vld [vmem:[%s6447_s1 + $0xa4] sm:$0xf] }
  0xb5   :  { %v4401_v27 = vpop.eup %4400  ;;  %v269_v28 = vmul.f32 %v4399_v26, %v267_v18  ;;  %4402 = vrcp.f32 %v306_v24  ;;  %vm274_vm0 = vweird.f32 %v4399_v26  ;;  %v318_v55 = vand.u32 2147483648, %v306_v24  ;;  %885 = vmatpush.bf16.msra.mxu3 %v3266_v22  ;;  %v3181_v22 = vld [vmem:[%s6447_s1 + $0x28] sm:$0xf] }
  0xb6   :  { %v288_v29 = vmul.f32 %v4401_v27, %v286_v19  ;;  %4404 = vtanh.f32 %v262_v23  ;;  %vm293_vm1 = vweird.f32 %v4401_v27  ;;  %vm275_vm4 = vmor %vm273_vm2, %vm274_vm0  ;;  %vm312_vm9 = vweird.f32 %v306_v24  ;;  %v3237_v23 = vld [vmem:[%s6447_s1 + $0xa0] sm:$0xf] }
  0xb7   :  { %v270_v30 = vsub.f32 1.0, %v269_v28  ;;  %vm294_vm6 = vmor %vm292_vm3, %vm293_vm1  ;;  %v316_v56 = vand.u32 2147483647, %v306_v24  ;;  %v319_v58 = vor.u32 1.1754944e-38, %v318_v55  ;;  %v3258_v18 = vor.u32 %v4191_v13, %v3255_v15  ;;  %v3245_v28 = vld [vmem:[%s6447_s1 + $0xa8] sm:$0xf] }
  0xb8   :  { %v289_v31 = vsub.f32 1.0, %v288_v29  ;;  %v3262_v19 = vor.u32 %v4194_v17, %v3261_v16  ;;  %v4190_v29 = vld [vmem:[%s6447_s1 + $0xb4] sm:$0xf0]  ;;  %v3213_v55 = vld [vmem:[%s6447_s1 + $0x68] sm:$0xf]  ;;  %v3198_v13 = vor.u32 %v4178_v8, %v3197_v7 }
  0xb9   :  { %v271_v34 = vmul.f32 %v4399_v26, %v270_v30  ;;  %vm317_vm11 = vcmp.eq.f32.partialorder %v316_v56, 8.507059e+37  ;;  %859 = vmatpush.bf16.msra.mxu1 %v3258_v18  ;;  %v4182_v56 = vld [vmem:[%s6447_s1 + $0x74] sm:$0xf0]  ;;  %v3199_v15 = vld [vmem:[%s6447_s1 + $0x58] sm:$0xf0] }
  0xba   :  { %v290_v36 = vmul.f32 %v4401_v27, %v289_v31  ;;  %872 = vmatpush.bf16.msra.mxu2 %v3262_v19  ;;  %v3246_v31 = vor.u32 %v4190_v29, %v3245_v28  ;;  %v3173_v16 = vld [vmem:[%s6447_s1 + $0x20] sm:$0xf]  ;;  %v4173_v17 = vld [vmem:[%s6447_s1 + $0x2c] sm:$0xf0]  ;;  %v3202_v18 = vor.u32 %v4176_v14, %v3199_v15 }
  0xbb   :  { %v4403_v38 = vpop.eup %4402  ;;  %v272_v39 = vadd.f32 %v4399_v26, %v271_v34  ;;  %v3250_v34 = vor.u32 %v4188_v32, %v3247_v33  ;;  %v3174_v19 = vor.u32 %v4173_v17, %v3173_v16  ;;  %v4169_v32 = vld [vmem:[%s6447_s1 + $0xc] sm:$0xf0]  ;;  %v4167_v33 = vld [vmem:[%s6447_s1 + $0x4] sm:$0xf] }
  0xbc   :  { %v4405_v40 = vpop.eup %4404  ;;  %v308_v41 = vmul.f32 %v4403_v38, %v306_v24  ;;  %v291_v43 = vadd.f32 %v4401_v27, %v290_v36  ;;  %vm313_vm8 = vweird.f32 %v4403_v38  ;;  %v4189_v24 = vld [vmem:[%s6447_s1 + $0xac] sm:$0xf0] }
  0xbd   :  { %v276_v45 = vsel %vm275_vm4, %v4399_v26, %v272_v39  ;;  %vm314_vm10 = vmor %vm312_vm9, %vm313_vm8  ;;  %v3238_v26 = vor.u32 %v4189_v24, %v3237_v23  ;;  %v4185_v36 = vld [vmem:[%s6447_s1 + $0x8c] sm:$0xf0]  ;;  %886 = vmatpush.bf16.msra.mxu3 %v3250_v34  ;;  %v3223_v39 = vld [vmem:[%s6447_s1 + $0x90] sm:$0xf0]  ;;  %v3178_v23 = vor.u32 %v4171_v20, %v3175_v21 }
  0xbe   :  { %v309_v46 = vsub.f32 1.0, %v308_v41  ;;  %v281_v47 = vsel %vm278_vm5, %v280_v42, %v276_v45  ;;  %v295_v48 = vsel %vm294_vm6, %v4401_v27, %v291_v43  ;;  %v3239_v27 = vld [vmem:[%s6447_s1 + $0xb0] sm:$0xf0]  ;;  %873 = vmatpush.bf16.msra.mxu2 %v3246_v31  ;;  %v4186_v41 = vld [vmem:[%s6447_s1 + $0x94] sm:$0xf0]  ;;  %v3226_v42 = vor.u32 %v4183_v37, %v3223_v39 }
  0xbf   :  { %v300_v49 = vsel %vm297_vm7, %v299_v44, %v295_v48  ;;  %v323_v50 = vmul.f32 %v4405_v40, %v281_v47  ;;  %v3242_v30 = vor.u32 %v4187_v25, %v3239_v27  ;;  %847 = vmatpush.bf16.msra.mxu0 %v3238_v26  ;;  %v3229_v40 = vld [vmem:[%s6447_s1 + $0x88] sm:$0xf]  ;;  %v4184_v44 = vld [vmem:[%s6447_s1 + $0x8c] sm:$0xf]  ;;  %v3231_v45 = vld [vmem:[%s6447_s1 + $0x98] sm:$0xf0] }
  0xc0   :  { %v310_v51 = vmul.f32 %v4403_v38, %v309_v46  ;;  %v322_v52 = vmul.f32 0.0, %v300_v49  ;;  %v3230_v43 = vor.u32 %v4186_v41, %v3229_v40  ;;  %v3015_v46 = vld [vmem:[%s6448_s0 + $0x20] sm:$0xff]  ;;  %v3016_v47 = vld [vmem:[%s6448_s0 + $0x28] sm:$0xff]  ;;  %v3234_v48 = vor.u32 %v4184_v44, %v3231_v45  ;;  %v4174_v24 = vld [vmem:[%s6447_s1 + $0x34] sm:$0xf0] }
  0xc1   :  { %860 = vmatpush.bf16.msra.mxu1 %v3242_v30  ;;  %v3205_v49 = vld [vmem:[%s6447_s1 + $0x60] sm:$0xf]  ;;  %v4172_v25 = vld [vmem:[%s6447_s1 + $0x2c] sm:$0xf]  ;;  %v3183_v26 = vld [vmem:[%s6447_s1 + $0x38] sm:$0xf0]  ;;  %v3182_v29 = vor.u32 %v4174_v24, %v3181_v22 }
  0xc2   :  { %v4948_v53 = vadd.f32 %v323_v50, %v322_v52  ;;  %v311_v54 = vadd.f32 %v4403_v38, %v310_v51  ;;  %874 = vmatpush.bf16.msra.mxu2 %v3230_v43  ;;  %v4181_v50 = vld [vmem:[%s6447_s1 + $0x6c] sm:$0xf0]  ;;  %v4179_v51 = vld [vmem:[%s6447_s1 + $0x64] sm:$0xf]  ;;  %887 = vmatpush.bf16.msra.mxu3 %v3234_v48  ;;  %v3186_v30 = vor.u32 %v4172_v25, %v3183_v26  ;;  %v3157_v31 = vld [vmem:[%s6447_s1] sm:$0xf] }
  0xc3   :  { %v3206_v52 = vor.u32 %v4181_v50, %v3205_v49  ;;  %v3158_v37 = vor.u32 %v4169_v32, %v3157_v31  ;;  %v3165_v39 = vld [vmem:[%s6447_s1 + $0x8] sm:$0xf]  ;;  %v4170_v40 = vld [vmem:[%s6447_s1 + $0x14] sm:$0xf0]  ;;  %v4168_v43 = vld [vmem:[%s6447_s1 + $0xc] sm:$0xf] }
  0xc4   :  { %4406 = vtanh.f32 %v4948_v53  ;;  %v315_v57 = vsel %vm314_vm10, %v4403_v38, %v311_v54  ;;  %v3222_v38 = vor.u32 %v4185_v36, %v3221_v35  ;;  %v3207_v54 = vld [vmem:[%s6447_s1 + $0x70] sm:$0xf0]  ;;  %v3167_v44 = vld [vmem:[%s6447_s1 + $0x18] sm:$0xf0]  ;;  %v4229_v31 = vld [vmem:[%s6447_s1 + $0xec] sm:$0xf0] }
  0xc5   :  { %v320_v60 = vsel %vm317_vm11, %v319_v58, %v315_v57  ;;  %861 = vmatpush.bf16.msra.mxu1 %v3226_v42  ;;  %v3210_v57 = vor.u32 %v4179_v51, %v3207_v54  ;;  %v3214_v58 = vor.u32 %v4182_v56, %v3213_v55  ;;  %v3166_v42 = vor.u32 %v4170_v40, %v3165_v39  ;;  %v3017_v54 = vld [vmem:[%s6448_s0 + $0x30] sm:$0xff]  ;;  %v4227_v32 = vld [vmem:[%s6447_s1 + $0xe4] sm:$0xf]  ;;  %v4228_v39 = vld [vmem:[%s6447_s1 + $0xec] sm:$0xf] }
  0xc6   :  { %848 = vmatpush.bf16.msra.mxu0 %v3222_v38  ;;  %v3159_v38 = vld [vmem:[%s6447_s1 + $0x10] sm:$0xf0]  ;;  %v3415_v40 = vld [vmem:[%s6447_s1 + $0xf8] sm:$0xf0] }
  0xc7   :  { %875 = vmatpush.bf16.msra.mxu2 %v3214_v58  ;;  %v3162_v41 = vor.u32 %v4167_v33, %v3159_v38 }
  0xc9   :  { %862 = vmatpush.bf16.msra.mxu1 %v3210_v57 }
  0xca   :  { %v4407_v59 = vpop.eup %4406  ;;  %849 = vmatpush.bf16.msra.mxu0 %v3206_v52 }
  0xcb   :  { %v326_v61 = vmul.f32 %v4407_v59, %v320_v60  ;;  %v4180_v59 = vld [vmem:[%s6447_s1 + $0x6c] sm:$0xf]  ;;  %v3215_v60 = vld [vmem:[%s6447_s1 + $0x78] sm:$0xf0]  ;;  %876 = vmatpush.bf16.msra.mxu2 %v3198_v13 }
  0xcc   :  { %v3218_v63 = vor.u32 %v4180_v59, %v3215_v60 }
  0xcd   :  { %327 = vst [vmem:[%s6449_s2] sm:$0xff] %v326_v61  ;;  %v333_v62 = vpack.c.bf16 %v326_v61, %v326_v61  ;;  %863 = vmatpush.bf16.msra.mxu1 %v3194_v12 }
  0xce   :  { %888 = vmatpush.bf16.msra.mxu3 %v3218_v63  ;;  %850 = vmatpush.bf16.msra.mxu0 %v3190_v5 }
  0xcf   :  { %534 = vmatmul.bf16.vlgmr.msrb.gmra.mxu0 %v333_v62  ;;  %547 = vmatmul.bf16.vlgmr.msrb.gmra.mxu1 %v333_v62 }
  0xd0   :  { %560 = vmatmul.bf16.vlgmr.msrb.gmra.mxu2 %v333_v62  ;;  %573 = vmatmul.bf16.vlgmr.msrb.gmra.mxu3 %v333_v62 }
  0xd1   :  { %864 = vmatpush.bf16.msra.mxu1 %v3178_v23  ;;  %877 = vmatpush.bf16.msra.mxu2 %v3182_v29 }
  0xd2   :  { %889 = vmatpush.bf16.msra.mxu3 %v3202_v18  ;;  %851 = vmatpush.bf16.msra.mxu0 %v3174_v19 }
  0xd5   :  { %865 = vmatpush.bf16.msra.mxu1 %v3162_v41  ;;  %878 = vmatpush.bf16.msra.mxu2 %v3166_v42  ;;  %v3418_v41 = vor.u32 %v4228_v39, %v3415_v40  ;;  %v3389_v42 = vld [vmem:[%s6447_s1 + $0xc0] sm:$0xf]  ;;  %v4210_v39 = vld [vmem:[%s6447_s1 + $0x54] sm:$0xf0] }
  0xd6   :  { %890 = vmatpush.bf16.msra.mxu3 %v3186_v30  ;;  %852 = vmatpush.bf16.msra.mxu0 %v3158_v37  ;;  %v3405_v30 = vld [vmem:[%s6447_s1 + $0xe0] sm:$0xf] }
  0xd7   :  { %v3406_v33 = vor.u32 %v4229_v31, %v3405_v30 }
  0xda   :  { %1164 = vmatpush.bf16.msrb.mxu0 %v3406_v33  ;;  %v3325_v33 = vld [vmem:[%s6447_s1 + $0x40] sm:$0xf] }
 0x14c   :  { %v535_v61 = vpop.f32.mrf.mxu0  ;;  %v548_v62 = vpop.f32.mrf.mxu1 }
 0x14d   :  { %v578_v0 = vadd.f32 %v3015_v46, %v535_v61  ;;  %v579_v1 = vadd.f32 %v3016_v47, %v548_v62  ;;  %v3170_v47 = vor.u32 %v4168_v43, %v3167_v44  ;;  %v4225_v43 = vld [vmem:[%s6447_s1 + $0xcc] sm:$0xf0]  ;;  %v4223_v44 = vld [vmem:[%s6447_s1 + $0xc4] sm:$0xf] }
 0x14f   :  { %v3147_v9 = vmul.f32 -1.442695, %v578_v0  ;;  %v3148_v10 = vmul.f32 -1.442695, %v579_v1  ;;  %891 = vmatpush.bf16.msra.mxu3 %v3170_v47  ;;  %v3397_v47 = vld [vmem:[%s6447_s1 + $0xc8] sm:$0xf] }
 0x151   :  { %4408 = vpow2.f32 %v3147_v9 }
 0x152   :  { %4410 = vpow2.f32 %v3148_v10 }
 0x153   :  { %v561_v27 = vpop.f32.mrf.mxu2  ;;  %v574_v28 = vpop.f32.mrf.mxu3  ;;  %1203 = vmatpush.bf16.msrb.mxu3 %v3418_v41 }
 0x154   :  { %v581_v34 = vadd.f32 %v3018_v11, %v574_v28  ;;  %v537_v35 = vpop.f32.mrf.mxu0  ;;  %v550_v36 = vpop.f32.mrf.mxu1  ;;  %v580_v58 = vadd.f32 %v3017_v54, %v561_v27 }
 0x155   :  { %v3413_v35 = vld [vmem:[%s6447_s1 + $0xe8] sm:$0xf]  ;;  %v4230_v36 = vld [vmem:[%s6447_s1 + $0xf4] sm:$0xf0] }
 0x156   :  { %v3149_v45 = vmul.f32 -1.442695, %v581_v34  ;;  %v3407_v34 = vld [vmem:[%s6447_s1 + $0xf0] sm:$0xf0]  ;;  %v3414_v38 = vor.u32 %v4230_v36, %v3413_v35  ;;  %v4207_v35 = vld [vmem:[%s6447_s1 + $0x44] sm:$0xf] }
 0x157   :  { %v4409_v46 = vpop.eup %4408  ;;  %v3410_v37 = vor.u32 %v4227_v32, %v3407_v34  ;;  %v4209_v34 = vld [vmem:[%s6447_s1 + $0x4c] sm:$0xf0] }
 0x158   :  { %v4411_v48 = vpop.eup %4410  ;;  %v585_v49 = vadd.f32 1.0, %v4409_v46  ;;  %4412 = vpow2.f32 %v3149_v45  ;;  %1190 = vmatpush.bf16.msrb.mxu2 %v3414_v38  ;;  %v3390_v45 = vor.u32 %v4225_v43, %v3389_v42  ;;  %v3391_v46 = vld [vmem:[%s6447_s1 + $0xd0] sm:$0xf0]  ;;  %v3326_v36 = vor.u32 %v4209_v34, %v3325_v33  ;;  %v3333_v38 = vld [vmem:[%s6447_s1 + $0x48] sm:$0xf]  ;;  %v3154_v42 = vld [vmem:[%s6448_s0 + $0x58] sm:$0xff] }
 0x159   :  { %v604_v50 = vadd.f32 1.0, %v4411_v48  ;;  %1177 = vmatpush.bf16.msrb.mxu1 %v3410_v37  ;;  %v4226_v48 = vld [vmem:[%s6447_s1 + $0xd4] sm:$0xf0]  ;;  %v3327_v37 = vld [vmem:[%s6447_s1 + $0x50] sm:$0xf0] }
 0x15a   :  { %4414 = vrcp.f32 %v585_v49  ;;  %v597_v0 = vand.u32 2147483648, %v585_v49  ;;  %v595_v3 = vand.u32 2147483647, %v585_v49  ;;  %vm591_vm14 = vweird.f32 %v585_v49  ;;  %1165 = vmatpush.bf16.msrb.mxu0 %v3390_v45  ;;  %v4208_v45 = vld [vmem:[%s6447_s1 + $0x4c] sm:$0xf] }
 0x15b   :  { %4416 = vrcp.f32 %v604_v50  ;;  %v563_v51 = vpop.f32.mrf.mxu2  ;;  %v576_v52 = vpop.f32.mrf.mxu3  ;;  %v616_v1 = vand.u32 2147483648, %v604_v50  ;;  %v614_v5 = vand.u32 2147483647, %v604_v50  ;;  %vm610_vm15 = vweird.f32 %v604_v50 }
 0x15c   :  { %v598_v8 = vor.u32 1.1754944e-38, %v597_v0  ;;  %vm596_vm2 = vcmp.eq.f32.partialorder %v595_v3, 8.507059e+37  ;;  %v4224_v51 = vld [vmem:[%s6447_s1 + $0xcc] sm:$0xf]  ;;  %v3399_v52 = vld [vmem:[%s6447_s1 + $0xd8] sm:$0xf0]  ;;  %v3330_v43 = vor.u32 %v4207_v35, %v3327_v37 }
 0x15d   :  { %v617_v11 = vor.u32 1.1754944e-38, %v616_v1  ;;  %vm615_vm3 = vcmp.eq.f32.partialorder %v614_v5, 8.507059e+37  ;;  %v3402_v54 = vor.u32 %v4224_v51, %v3399_v52  ;;  %v4220_v0 = vld [vmem:[%s6447_s1 + $0xac] sm:$0xf]  ;;  %v3383_v1 = vld [vmem:[%s6447_s1 + $0xb8] sm:$0xf0] }
 0x15e   :  { %v4413_v55 = vpop.eup %4412  ;;  %v3357_v3 = vld [vmem:[%s6447_s1 + $0x80] sm:$0xf]  ;;  %v4215_v5 = vld [vmem:[%s6447_s1 + $0x84] sm:$0xf]  ;;  %v3311_v52 = vld [vmem:[%s6447_s1 + $0x30] sm:$0xf0] }
 0x15f   :  { %v624_v56 = vadd.f32 1.0, %v4413_v55  ;;  %v3373_v55 = vld [vmem:[%s6447_s1 + $0xa0] sm:$0xf]  ;;  %1204 = vmatpush.bf16.msrb.mxu3 %v3402_v54  ;;  %v4203_v51 = vld [vmem:[%s6447_s1 + $0x24] sm:$0xf] }
 0x160   :  { %v4415_v57 = vpop.eup %4414  ;;  %v3317_v54 = vld [vmem:[%s6447_s1 + $0x28] sm:$0xf] }
 0x161   :  { %v4417_v59 = vpop.eup %4416  ;;  %v587_v60 = vmul.f32 %v4415_v57, %v585_v49  ;;  %4418 = vrcp.f32 %v624_v56  ;;  %vm592_vm12 = vweird.f32 %v4415_v57  ;;  %v636_v23 = vand.u32 2147483648, %v624_v56 }
 0x162   :  { %v606_v61 = vmul.f32 %v4417_v59, %v604_v50  ;;  %4420 = vtanh.f32 %v580_v58  ;;  %vm611_vm13 = vweird.f32 %v4417_v59  ;;  %vm593_vm0 = vmor %vm591_vm14, %vm592_vm12  ;;  %vm630_vm5 = vweird.f32 %v624_v56 }
 0x163   :  { %v588_v62 = vsub.f32 1.0, %v587_v60  ;;  %vm612_vm1 = vmor %vm610_vm15, %vm611_vm13  ;;  %v634_v24 = vand.u32 2147483647, %v624_v56  ;;  %v637_v26 = vor.u32 1.1754944e-38, %v636_v23  ;;  %v3394_v49 = vor.u32 %v4223_v44, %v3391_v46  ;;  %v3381_v60 = vld [vmem:[%s6447_s1 + $0xa8] sm:$0xf] }
 0x164   :  { %v607_v63 = vsub.f32 1.0, %v606_v61  ;;  %v3398_v50 = vor.u32 %v4226_v48, %v3397_v47  ;;  %v4222_v61 = vld [vmem:[%s6447_s1 + $0xb4] sm:$0xf0]  ;;  %v3349_v23 = vld [vmem:[%s6447_s1 + $0x68] sm:$0xf]  ;;  %v3334_v44 = vor.u32 %v4210_v39, %v3333_v38 }
 0x165   :  { %v589_v2 = vmul.f32 %v4415_v57, %v588_v62  ;;  %vm635_vm7 = vcmp.eq.f32.partialorder %v634_v24, 8.507059e+37  ;;  %1178 = vmatpush.bf16.msrb.mxu1 %v3394_v49  ;;  %v4214_v24 = vld [vmem:[%s6447_s1 + $0x74] sm:$0xf0]  ;;  %v3335_v46 = vld [vmem:[%s6447_s1 + $0x58] sm:$0xf0] }
 0x166   :  { %v608_v4 = vmul.f32 %v4417_v59, %v607_v63  ;;  %1191 = vmatpush.bf16.msrb.mxu2 %v3398_v50  ;;  %v3382_v63 = vor.u32 %v4222_v61, %v3381_v60  ;;  %v3309_v47 = vld [vmem:[%s6447_s1 + $0x20] sm:$0xf]  ;;  %v4205_v48 = vld [vmem:[%s6447_s1 + $0x2c] sm:$0xf0]  ;;  %v3338_v49 = vor.u32 %v4208_v45, %v3335_v46 }
 0x167   :  { %v4419_v6 = vpop.eup %4418  ;;  %v590_v7 = vadd.f32 %v4415_v57, %v589_v2  ;;  %v3386_v2 = vor.u32 %v4220_v0, %v3383_v1  ;;  %v3310_v50 = vor.u32 %v4205_v48, %v3309_v47  ;;  %v4201_v0 = vld [vmem:[%s6447_s1 + $0xc] sm:$0xf0]  ;;  %v4199_v1 = vld [vmem:[%s6447_s1 + $0x4] sm:$0xf] }
 0x168   :  { %v609_v9 = vadd.f32 %v4417_v59, %v608_v4  ;;  %v626_v10 = vmul.f32 %v4419_v6, %v624_v56  ;;  %v4421_v13 = vpop.eup %4420  ;;  %vm631_vm4 = vweird.f32 %v4419_v6  ;;  %v4221_v56 = vld [vmem:[%s6447_s1 + $0xac] sm:$0xf0] }
 0x169   :  { %v594_v12 = vsel %vm593_vm0, %v4415_v57, %v590_v7  ;;  %vm632_vm6 = vmor %vm630_vm5, %vm631_vm4  ;;  %v4219_v57 = vld [vmem:[%s6447_s1 + $0xa4] sm:$0xf]  ;;  %v3374_v58 = vor.u32 %v4221_v56, %v3373_v55  ;;  %v4217_v4 = vld [vmem:[%s6447_s1 + $0x8c] sm:$0xf0]  ;;  %1205 = vmatpush.bf16.msrb.mxu3 %v3386_v2  ;;  %v3314_v55 = vor.u32 %v4203_v51, %v3311_v52 }
 0x16a   :  { %v599_v14 = vsel %vm596_vm2, %v598_v8, %v594_v12  ;;  %v613_v15 = vsel %vm612_vm1, %v4417_v59, %v609_v9  ;;  %v627_v16 = vsub.f32 1.0, %v626_v10  ;;  %v3375_v59 = vld [vmem:[%s6447_s1 + $0xb0] sm:$0xf0]  ;;  %1192 = vmatpush.bf16.msrb.mxu2 %v3382_v63  ;;  %v3365_v8 = vld [vmem:[%s6447_s1 + $0x88] sm:$0xf] }
 0x16b   :  { %v618_v17 = vsel %vm615_vm3, %v617_v11, %v613_v15  ;;  %v641_v18 = vmul.f32 %v4421_v13, %v599_v14  ;;  %v3378_v62 = vor.u32 %v4219_v57, %v3375_v59  ;;  %1166 = vmatpush.bf16.msrb.mxu0 %v3374_v58  ;;  %v3359_v7 = vld [vmem:[%s6447_s1 + $0x90] sm:$0xf0]  ;;  %v4218_v9 = vld [vmem:[%s6447_s1 + $0x94] sm:$0xf0]  ;;  %v4216_v12 = vld [vmem:[%s6447_s1 + $0x8c] sm:$0xf] }
 0x16c   :  { %v640_v19 = vmul.f32 %v618_v17, %v4948_v53  ;;  %v628_v20 = vmul.f32 %v4419_v6, %v627_v16  ;;  %v3362_v10 = vor.u32 %v4215_v5, %v3359_v7  ;;  %v3366_v11 = vor.u32 %v4218_v9, %v3365_v8  ;;  %v3367_v13 = vld [vmem:[%s6447_s1 + $0x98] sm:$0xf0]  ;;  %v3151_v14 = vld [vmem:[%s6448_s0 + $0x40] sm:$0xff]  ;;  %v3152_v15 = vld [vmem:[%s6448_s0 + $0x48] sm:$0xff] }
 0x16d   :  { %1179 = vmatpush.bf16.msrb.mxu1 %v3378_v62  ;;  %v3370_v16 = vor.u32 %v4216_v12, %v3367_v13  ;;  %v3341_v17 = vld [vmem:[%s6447_s1 + $0x60] sm:$0xf]  ;;  %v4206_v56 = vld [vmem:[%s6447_s1 + $0x34] sm:$0xf0]  ;;  %v4204_v57 = vld [vmem:[%s6447_s1 + $0x2c] sm:$0xf] }
 0x16e   :  { %v5159_v21 = vadd.f32 %v641_v18, %v640_v19  ;;  %v629_v22 = vadd.f32 %v4419_v6, %v628_v20  ;;  %1193 = vmatpush.bf16.msrb.mxu2 %v3366_v11  ;;  %v4213_v18 = vld [vmem:[%s6447_s1 + $0x6c] sm:$0xf0]  ;;  %v4211_v19 = vld [vmem:[%s6447_s1 + $0x64] sm:$0xf]  ;;  %v3319_v58 = vld [vmem:[%s6447_s1 + $0x38] sm:$0xf0]  ;;  %v3318_v61 = vor.u32 %v4206_v56, %v3317_v54 }
 0x16f   :  { %1206 = vmatpush.bf16.msrb.mxu3 %v3370_v16  ;;  %v3342_v20 = vor.u32 %v4213_v18, %v3341_v17  ;;  %v3322_v62 = vor.u32 %v4204_v57, %v3319_v58  ;;  %v3293_v63 = vld [vmem:[%s6447_s1] sm:$0xf]  ;;  %v3301_v7 = vld [vmem:[%s6447_s1 + $0x8] sm:$0xf]  ;;  %v4202_v8 = vld [vmem:[%s6447_s1 + $0x14] sm:$0xf0] }
 0x170   :  { %4422 = vtanh.f32 %v5159_v21  ;;  %v633_v25 = vsel %vm632_vm6, %v4419_v6, %v629_v22  ;;  %v3358_v6 = vor.u32 %v4217_v4, %v3357_v3  ;;  %v3343_v22 = vld [vmem:[%s6447_s1 + $0x70] sm:$0xf0]  ;;  %v3294_v5 = vor.u32 %v4201_v0, %v3293_v63  ;;  %v4200_v11 = vld [vmem:[%s6447_s1 + $0xc] sm:$0xf]  ;;  %v3303_v12 = vld [vmem:[%s6447_s1 + $0x18] sm:$0xf0] }
 0x171   :  { %v638_v28 = vsel %vm635_vm7, %v637_v26, %v633_v25  ;;  %1180 = vmatpush.bf16.msrb.mxu1 %v3362_v10  ;;  %v3346_v25 = vor.u32 %v4211_v19, %v3343_v22  ;;  %v3350_v26 = vor.u32 %v4214_v24, %v3349_v23  ;;  %v3302_v10 = vor.u32 %v4202_v8, %v3301_v7  ;;  %v3153_v22 = vld [vmem:[%s6448_s0 + $0x50] sm:$0xff]  ;;  %v4259_v0 = vld [vmem:[%s6447_s1 + $0xe4] sm:$0xf]  ;;  %v4260_v7 = vld [vmem:[%s6447_s1 + $0xec] sm:$0xf] }
 0x172   :  { %1167 = vmatpush.bf16.msrb.mxu0 %v3358_v6  ;;  %v3295_v6 = vld [vmem:[%s6447_s1 + $0x10] sm:$0xf0]  ;;  %v4261_v63 = vld [vmem:[%s6447_s1 + $0xec] sm:$0xf0]  ;;  %v3551_v8 = vld [vmem:[%s6447_s1 + $0xf8] sm:$0xf0] }
 0x173   :  { %1194 = vmatpush.bf16.msrb.mxu2 %v3350_v26  ;;  %v3298_v9 = vor.u32 %v4199_v1, %v3295_v6 }
 0x175   :  { %1181 = vmatpush.bf16.msrb.mxu1 %v3346_v25 }
 0x176   :  { %v4423_v27 = vpop.eup %4422  ;;  %1168 = vmatpush.bf16.msrb.mxu0 %v3342_v20 }
 0x177   :  { %v644_v29 = vmul.f32 %v4423_v27, %v638_v28  ;;  %v4212_v27 = vld [vmem:[%s6447_s1 + $0x6c] sm:$0xf]  ;;  %v3351_v28 = vld [vmem:[%s6447_s1 + $0x78] sm:$0xf0]  ;;  %1195 = vmatpush.bf16.msrb.mxu2 %v3334_v44 }
 0x178   :  { %v3354_v30 = vor.u32 %v4212_v27, %v3351_v28 }
 0x179   :  { %3150 = vst [vmem:[%s6449_s2 + $0x8] sm:$0xff] %v644_v29  ;;  %v652_v53 = vpack.c.bf16 %v644_v29, %v644_v29  ;;  %1182 = vmatpush.bf16.msrb.mxu1 %v3330_v43 }
 0x17a   :  { %1207 = vmatpush.bf16.msrb.mxu3 %v3354_v30  ;;  %1169 = vmatpush.bf16.msrb.mxu0 %v3326_v36 }
 0x17b   :  { %853 = vmatmul.bf16.vlgmr.msra.gmra.mxu0 %v652_v53  ;;  %866 = vmatmul.bf16.vlgmr.msra.gmra.mxu1 %v652_v53 }
 0x17c   :  { %879 = vmatmul.bf16.vlgmr.msra.gmra.mxu2 %v652_v53  ;;  %892 = vmatmul.bf16.vlgmr.msra.gmra.mxu3 %v652_v53 }
 0x17d   :  { %1183 = vmatpush.bf16.msrb.mxu1 %v3314_v55  ;;  %1196 = vmatpush.bf16.msrb.mxu2 %v3318_v61 }
 0x17e   :  { %1208 = vmatpush.bf16.msrb.mxu3 %v3338_v49  ;;  %1170 = vmatpush.bf16.msrb.mxu0 %v3310_v50 }
 0x181   :  { %1184 = vmatpush.bf16.msrb.mxu1 %v3298_v9  ;;  %1197 = vmatpush.bf16.msrb.mxu2 %v3302_v10  ;;  %v3554_v9 = vor.u32 %v4260_v7, %v3551_v8  ;;  %v3525_v10 = vld [vmem:[%s6447_s1 + $0xc0] sm:$0xf]  ;;  %v4242_v7 = vld [vmem:[%s6447_s1 + $0x54] sm:$0xf0] }
 0x182   :  { %1209 = vmatpush.bf16.msrb.mxu3 %v3322_v62  ;;  %1171 = vmatpush.bf16.msrb.mxu0 %v3294_v5  ;;  %v3541_v62 = vld [vmem:[%s6447_s1 + $0xe0] sm:$0xf] }
 0x183   :  { %v3542_v1 = vor.u32 %v4261_v63, %v3541_v62 }
 0x186   :  { %1483 = vmatpush.bf16.msra.mxu0 %v3542_v1  ;;  %v3461_v1 = vld [vmem:[%s6447_s1 + $0x40] sm:$0xf] }
 0x1f8   :  { %v854_v29 = vpop.f32.mrf.mxu0  ;;  %v867_v53 = vpop.f32.mrf.mxu1 }
 0x1f9   :  { %v897_v31 = vadd.f32 %v3151_v14, %v854_v29  ;;  %v898_v32 = vadd.f32 %v3152_v15, %v867_v53  ;;  %v3306_v15 = vor.u32 %v4200_v11, %v3303_v12  ;;  %v4257_v11 = vld [vmem:[%s6447_s1 + $0xcc] sm:$0xf0]  ;;  %v4255_v12 = vld [vmem:[%s6447_s1 + $0xc4] sm:$0xf] }
 0x1fb   :  { %v3283_v40 = vmul.f32 -1.442695, %v897_v31  ;;  %v3284_v41 = vmul.f32 -1.442695, %v898_v32  ;;  %1210 = vmatpush.bf16.msrb.mxu3 %v3306_v15  ;;  %v3533_v15 = vld [vmem:[%s6447_s1 + $0xc8] sm:$0xf] }
 0x1fd   :  { %4424 = vpow2.f32 %v3283_v40 }
 0x1fe   :  { %4426 = vpow2.f32 %v3284_v41 }
 0x1ff   :  { %v880_v59 = vpop.f32.mrf.mxu2  ;;  %v893_v60 = vpop.f32.mrf.mxu3  ;;  %1522 = vmatpush.bf16.msra.mxu3 %v3554_v9 }
 0x200   :  { %v900_v2 = vadd.f32 %v3154_v42, %v893_v60  ;;  %v856_v3 = vpop.f32.mrf.mxu0  ;;  %v869_v4 = vpop.f32.mrf.mxu1  ;;  %v899_v26 = vadd.f32 %v3153_v22, %v880_v59 }
 0x201   :  { %v3549_v3 = vld [vmem:[%s6447_s1 + $0xe8] sm:$0xf]  ;;  %v4262_v4 = vld [vmem:[%s6447_s1 + $0xf4] sm:$0xf0] }
 0x202   :  { %v3285_v13 = vmul.f32 -1.442695, %v900_v2  ;;  %v3543_v2 = vld [vmem:[%s6447_s1 + $0xf0] sm:$0xf0]  ;;  %v3550_v6 = vor.u32 %v4262_v4, %v3549_v3  ;;  %v4239_v3 = vld [vmem:[%s6447_s1 + $0x44] sm:$0xf] }
 0x203   :  { %v4425_v14 = vpop.eup %4424  ;;  %v3546_v5 = vor.u32 %v4259_v0, %v3543_v2  ;;  %v4241_v2 = vld [vmem:[%s6447_s1 + $0x4c] sm:$0xf0] }
 0x204   :  { %v4427_v16 = vpop.eup %4426  ;;  %v904_v17 = vadd.f32 1.0, %v4425_v14  ;;  %4428 = vpow2.f32 %v3285_v13  ;;  %1509 = vmatpush.bf16.msra.mxu2 %v3550_v6  ;;  %v3526_v13 = vor.u32 %v4257_v11, %v3525_v10  ;;  %v3527_v14 = vld [vmem:[%s6447_s1 + $0xd0] sm:$0xf0]  ;;  %v3462_v4 = vor.u32 %v4241_v2, %v3461_v1  ;;  %v3469_v6 = vld [vmem:[%s6447_s1 + $0x48] sm:$0xf]  ;;  %v3290_v10 = vld [vmem:[%s6448_s0 + $0x78] sm:$0xff] }
 0x205   :  { %v923_v18 = vadd.f32 1.0, %v4427_v16  ;;  %1496 = vmatpush.bf16.msra.mxu1 %v3546_v5  ;;  %v4258_v16 = vld [vmem:[%s6447_s1 + $0xd4] sm:$0xf0]  ;;  %v3463_v5 = vld [vmem:[%s6447_s1 + $0x50] sm:$0xf0] }
 0x206   :  { %4430 = vrcp.f32 %v904_v17  ;;  %v916_v31 = vand.u32 2147483648, %v904_v17  ;;  %v914_v34 = vand.u32 2147483647, %v904_v17  ;;  %vm910_vm10 = vweird.f32 %v904_v17  ;;  %1484 = vmatpush.bf16.msra.mxu0 %v3526_v13  ;;  %v4240_v13 = vld [vmem:[%s6447_s1 + $0x4c] sm:$0xf] }
 0x207   :  { %4432 = vrcp.f32 %v923_v18  ;;  %v882_v19 = vpop.f32.mrf.mxu2  ;;  %v895_v20 = vpop.f32.mrf.mxu3  ;;  %v935_v32 = vand.u32 2147483648, %v923_v18  ;;  %v933_v36 = vand.u32 2147483647, %v923_v18  ;;  %vm929_vm11 = vweird.f32 %v923_v18 }
 0x208   :  { %v917_v39 = vor.u32 1.1754944e-38, %v916_v31  ;;  %vm915_vm14 = vcmp.eq.f32.partialorder %v914_v34, 8.507059e+37  ;;  %v4256_v19 = vld [vmem:[%s6447_s1 + $0xcc] sm:$0xf]  ;;  %v3535_v20 = vld [vmem:[%s6447_s1 + $0xd8] sm:$0xf0]  ;;  %v3466_v11 = vor.u32 %v4239_v3, %v3463_v5 }
 0x209   :  { %v936_v42 = vor.u32 1.1754944e-38, %v935_v32  ;;  %vm934_vm15 = vcmp.eq.f32.partialorder %v933_v36, 8.507059e+37  ;;  %v3538_v22 = vor.u32 %v4256_v19, %v3535_v20  ;;  %v4252_v31 = vld [vmem:[%s6447_s1 + $0xac] sm:$0xf]  ;;  %v3519_v32 = vld [vmem:[%s6447_s1 + $0xb8] sm:$0xf0] }
 0x20a   :  { %v4429_v23 = vpop.eup %4428  ;;  %v3493_v34 = vld [vmem:[%s6447_s1 + $0x80] sm:$0xf]  ;;  %v4247_v36 = vld [vmem:[%s6447_s1 + $0x84] sm:$0xf]  ;;  %v3447_v20 = vld [vmem:[%s6447_s1 + $0x30] sm:$0xf0] }
 0x20b   :  { %v943_v24 = vadd.f32 1.0, %v4429_v23  ;;  %v3509_v23 = vld [vmem:[%s6447_s1 + $0xa0] sm:$0xf]  ;;  %1523 = vmatpush.bf16.msra.mxu3 %v3538_v22  ;;  %v4235_v19 = vld [vmem:[%s6447_s1 + $0x24] sm:$0xf] }
 0x20c   :  { %v4431_v25 = vpop.eup %4430  ;;  %v3453_v22 = vld [vmem:[%s6447_s1 + $0x28] sm:$0xf] }
 0x20d   :  { %v4433_v27 = vpop.eup %4432  ;;  %v906_v28 = vmul.f32 %v4431_v25, %v904_v17  ;;  %4434 = vrcp.f32 %v943_v24  ;;  %vm911_vm8 = vweird.f32 %v4431_v25  ;;  %v955_v55 = vand.u32 2147483648, %v943_v24 }
 0x20e   :  { %v925_v29 = vmul.f32 %v4433_v27, %v923_v18  ;;  %4436 = vtanh.f32 %v899_v26  ;;  %vm930_vm9 = vweird.f32 %v4433_v27  ;;  %vm912_vm12 = vmor %vm910_vm10, %vm911_vm8  ;;  %vm949_vm1 = vweird.f32 %v943_v24 }
 0x20f   :  { %v907_v53 = vsub.f32 1.0, %v906_v28  ;;  %vm931_vm13 = vmor %vm929_vm11, %vm930_vm9  ;;  %v953_v56 = vand.u32 2147483647, %v943_v24  ;;  %v956_v58 = vor.u32 1.1754944e-38, %v955_v55  ;;  %v3530_v17 = vor.u32 %v4255_v12, %v3527_v14  ;;  %v3517_v28 = vld [vmem:[%s6447_s1 + $0xa8] sm:$0xf] }
 0x210   :  { %v926_v30 = vsub.f32 1.0, %v925_v29  ;;  %v3534_v18 = vor.u32 %v4258_v16, %v3533_v15  ;;  %v4254_v29 = vld [vmem:[%s6447_s1 + $0xb4] sm:$0xf0]  ;;  %v3485_v55 = vld [vmem:[%s6447_s1 + $0x68] sm:$0xf]  ;;  %v3470_v12 = vor.u32 %v4242_v7, %v3469_v6 }
 0x211   :  { %v908_v33 = vmul.f32 %v4431_v25, %v907_v53  ;;  %vm954_vm3 = vcmp.eq.f32.partialorder %v953_v56, 8.507059e+37  ;;  %1497 = vmatpush.bf16.msra.mxu1 %v3530_v17  ;;  %v4246_v56 = vld [vmem:[%s6447_s1 + $0x74] sm:$0xf0]  ;;  %v3471_v14 = vld [vmem:[%s6447_s1 + $0x58] sm:$0xf0] }
 0x212   :  { %v927_v35 = vmul.f32 %v4433_v27, %v926_v30  ;;  %1510 = vmatpush.bf16.msra.mxu2 %v3534_v18  ;;  %v3518_v30 = vor.u32 %v4254_v29, %v3517_v28  ;;  %v3445_v15 = vld [vmem:[%s6447_s1 + $0x20] sm:$0xf]  ;;  %v4237_v16 = vld [vmem:[%s6447_s1 + $0x2c] sm:$0xf0]  ;;  %v3474_v17 = vor.u32 %v4240_v13, %v3471_v14 }
 0x213   :  { %v4435_v37 = vpop.eup %4434  ;;  %v909_v38 = vadd.f32 %v4431_v25, %v908_v33  ;;  %v3522_v33 = vor.u32 %v4252_v31, %v3519_v32  ;;  %v3446_v18 = vor.u32 %v4237_v16, %v3445_v15  ;;  %v4233_v31 = vld [vmem:[%s6447_s1 + $0xc] sm:$0xf0]  ;;  %v4231_v32 = vld [vmem:[%s6447_s1 + $0x4] sm:$0xf] }
 0x214   :  { %v928_v40 = vadd.f32 %v4433_v27, %v927_v35  ;;  %v945_v41 = vmul.f32 %v4435_v37, %v943_v24  ;;  %v4437_v44 = vpop.eup %4436  ;;  %vm950_vm0 = vweird.f32 %v4435_v37  ;;  %v4253_v24 = vld [vmem:[%s6447_s1 + $0xac] sm:$0xf0] }
 0x215   :  { %v913_v43 = vsel %vm912_vm12, %v4431_v25, %v909_v38  ;;  %vm951_vm2 = vmor %vm949_vm1, %vm950_vm0  ;;  %v4251_v25 = vld [vmem:[%s6447_s1 + $0xa4] sm:$0xf]  ;;  %v3510_v26 = vor.u32 %v4253_v24, %v3509_v23  ;;  %v4249_v35 = vld [vmem:[%s6447_s1 + $0x8c] sm:$0xf0]  ;;  %1524 = vmatpush.bf16.msra.mxu3 %v3522_v33  ;;  %v3450_v23 = vor.u32 %v4235_v19, %v3447_v20 }
 0x216   :  { %v918_v45 = vsel %vm915_vm14, %v917_v39, %v913_v43  ;;  %v932_v46 = vsel %vm931_vm13, %v4433_v27, %v928_v40  ;;  %v946_v47 = vsub.f32 1.0, %v945_v41  ;;  %v3511_v27 = vld [vmem:[%s6447_s1 + $0xb0] sm:$0xf0]  ;;  %1511 = vmatpush.bf16.msra.mxu2 %v3518_v30  ;;  %v3501_v39 = vld [vmem:[%s6447_s1 + $0x88] sm:$0xf] }
 0x217   :  { %v937_v48 = vsel %vm934_vm15, %v936_v42, %v932_v46  ;;  %v960_v49 = vmul.f32 %v4437_v44, %v918_v45  ;;  %v3514_v53 = vor.u32 %v4251_v25, %v3511_v27  ;;  %1485 = vmatpush.bf16.msra.mxu0 %v3510_v26  ;;  %v3495_v38 = vld [vmem:[%s6447_s1 + $0x90] sm:$0xf0]  ;;  %v4250_v40 = vld [vmem:[%s6447_s1 + $0x94] sm:$0xf0]  ;;  %v4248_v43 = vld [vmem:[%s6447_s1 + $0x8c] sm:$0xf] }
 0x218   :  { %v959_v50 = vmul.f32 %v937_v48, %v5159_v21  ;;  %v947_v51 = vmul.f32 %v4435_v37, %v946_v47  ;;  %v3498_v41 = vor.u32 %v4247_v36, %v3495_v38  ;;  %v3502_v42 = vor.u32 %v4250_v40, %v3501_v39  ;;  %v3503_v44 = vld [vmem:[%s6447_s1 + $0x98] sm:$0xf0]  ;;  %v3287_v45 = vld [vmem:[%s6448_s0 + $0x60] sm:$0xff]  ;;  %v3288_v46 = vld [vmem:[%s6448_s0 + $0x68] sm:$0xff] }
 0x219   :  { %1498 = vmatpush.bf16.msra.mxu1 %v3514_v53  ;;  %v3506_v47 = vor.u32 %v4248_v43, %v3503_v44  ;;  %v3477_v48 = vld [vmem:[%s6447_s1 + $0x60] sm:$0xf]  ;;  %v4238_v24 = vld [vmem:[%s6447_s1 + $0x34] sm:$0xf0]  ;;  %v4236_v25 = vld [vmem:[%s6447_s1 + $0x2c] sm:$0xf] }
 0x21a   :  { %v5370_v52 = vadd.f32 %v960_v49, %v959_v50  ;;  %v948_v54 = vadd.f32 %v4435_v37, %v947_v51  ;;  %1512 = vmatpush.bf16.msra.mxu2 %v3502_v42  ;;  %v4245_v49 = vld [vmem:[%s6447_s1 + $0x6c] sm:$0xf0]  ;;  %v4243_v50 = vld [vmem:[%s6447_s1 + $0x64] sm:$0xf]  ;;  %v3455_v26 = vld [vmem:[%s6447_s1 + $0x38] sm:$0xf0]  ;;  %v3454_v29 = vor.u32 %v4238_v24, %v3453_v22 }
 0x21b   :  { %1525 = vmatpush.bf16.msra.mxu3 %v3506_v47  ;;  %v3478_v51 = vor.u32 %v4245_v49, %v3477_v48  ;;  %v3458_v53 = vor.u32 %v4236_v25, %v3455_v26  ;;  %v3429_v30 = vld [vmem:[%s6447_s1] sm:$0xf]  ;;  %v3437_v38 = vld [vmem:[%s6447_s1 + $0x8] sm:$0xf]  ;;  %v4234_v39 = vld [vmem:[%s6447_s1 + $0x14] sm:$0xf0] }
 0x21c   :  { %4438 = vtanh.f32 %v5370_v52  ;;  %v952_v57 = vsel %vm951_vm2, %v4435_v37, %v948_v54  ;;  %v3494_v37 = vor.u32 %v4249_v35, %v3493_v34  ;;  %v3479_v54 = vld [vmem:[%s6447_s1 + $0x70] sm:$0xf0]  ;;  %v3430_v36 = vor.u32 %v4233_v31, %v3429_v30  ;;  %v4232_v42 = vld [vmem:[%s6447_s1 + $0xc] sm:$0xf]  ;;  %v3439_v43 = vld [vmem:[%s6447_s1 + $0x18] sm:$0xf0] }
 0x21d   :  { %v957_v60 = vsel %vm954_vm3, %v956_v58, %v952_v57  ;;  %1499 = vmatpush.bf16.msra.mxu1 %v3498_v41  ;;  %v3482_v57 = vor.u32 %v4243_v50, %v3479_v54  ;;  %v3486_v58 = vor.u32 %v4246_v56, %v3485_v55  ;;  %v3438_v41 = vor.u32 %v4234_v39, %v3437_v38  ;;  %v3289_v54 = vld [vmem:[%s6448_s0 + $0x70] sm:$0xff]  ;;  %v4291_v31 = vld [vmem:[%s6447_s1 + $0xe4] sm:$0xf]  ;;  %v4292_v38 = vld [vmem:[%s6447_s1 + $0xec] sm:$0xf] }
 0x21e   :  { %1486 = vmatpush.bf16.msra.mxu0 %v3494_v37  ;;  %v3431_v37 = vld [vmem:[%s6447_s1 + $0x10] sm:$0xf0]  ;;  %v4293_v30 = vld [vmem:[%s6447_s1 + $0xec] sm:$0xf0]  ;;  %v3687_v39 = vld [vmem:[%s6447_s1 + $0xf8] sm:$0xf0] }
 0x21f   :  { %1513 = vmatpush.bf16.msra.mxu2 %v3486_v58  ;;  %v3434_v40 = vor.u32 %v4231_v32, %v3431_v37 }
 0x221   :  { %1500 = vmatpush.bf16.msra.mxu1 %v3482_v57 }
 0x222   :  { %v4439_v59 = vpop.eup %4438  ;;  %1487 = vmatpush.bf16.msra.mxu0 %v3478_v51 }
 0x223   :  { %v963_v61 = vmul.f32 %v4439_v59, %v957_v60  ;;  %v4244_v59 = vld [vmem:[%s6447_s1 + $0x6c] sm:$0xf]  ;;  %v3487_v60 = vld [vmem:[%s6447_s1 + $0x78] sm:$0xf0]  ;;  %1514 = vmatpush.bf16.msra.mxu2 %v3470_v12 }
 0x224   :  { %v3490_v62 = vor.u32 %v4244_v59, %v3487_v60 }
 0x225   :  { %3286 = vst [vmem:[%s6449_s2 + $0x10] sm:$0xff] %v963_v61  ;;  %v971_v21 = vpack.c.bf16 %v963_v61, %v963_v61  ;;  %1501 = vmatpush.bf16.msra.mxu1 %v3466_v11 }
 0x226   :  { %1526 = vmatpush.bf16.msra.mxu3 %v3490_v62  ;;  %1488 = vmatpush.bf16.msra.mxu0 %v3462_v4 }
 0x227   :  { %1172 = vmatmul.bf16.vlgmr.msrb.gmra.mxu0 %v971_v21  ;;  %1185 = vmatmul.bf16.vlgmr.msrb.gmra.mxu1 %v971_v21 }
 0x228   :  { %1198 = vmatmul.bf16.vlgmr.msrb.gmra.mxu2 %v971_v21  ;;  %1211 = vmatmul.bf16.vlgmr.msrb.gmra.mxu3 %v971_v21 }
 0x229   :  { %1502 = vmatpush.bf16.msra.mxu1 %v3450_v23  ;;  %1515 = vmatpush.bf16.msra.mxu2 %v3454_v29 }
 0x22a   :  { %1527 = vmatpush.bf16.msra.mxu3 %v3474_v17  ;;  %1489 = vmatpush.bf16.msra.mxu0 %v3446_v18 }
 0x22d   :  { %1503 = vmatpush.bf16.msra.mxu1 %v3434_v40  ;;  %1516 = vmatpush.bf16.msra.mxu2 %v3438_v41  ;;  %v3690_v40 = vor.u32 %v4292_v38, %v3687_v39  ;;  %v3661_v41 = vld [vmem:[%s6447_s1 + $0xc0] sm:$0xf]  ;;  %v4274_v38 = vld [vmem:[%s6447_s1 + $0x54] sm:$0xf0] }
 0x22e   :  { %1528 = vmatpush.bf16.msra.mxu3 %v3458_v53  ;;  %1490 = vmatpush.bf16.msra.mxu0 %v3430_v36  ;;  %v3677_v53 = vld [vmem:[%s6447_s1 + $0xe0] sm:$0xf] }
 0x22f   :  { %v3678_v32 = vor.u32 %v4293_v30, %v3677_v53 }
 0x232   :  { %1802 = vmatpush.bf16.msrb.mxu0 %v3678_v32  ;;  %v3597_v32 = vld [vmem:[%s6447_s1 + $0x40] sm:$0xf] }
 0x2a4   :  { %v1173_v61 = vpop.f32.mrf.mxu0  ;;  %v1186_v21 = vpop.f32.mrf.mxu1 }
 0x2a5   :  { %v1216_v63 = vadd.f32 %v3287_v45, %v1173_v61  ;;  %v1217_v0 = vadd.f32 %v3288_v46, %v1186_v21  ;;  %v3442_v46 = vor.u32 %v4232_v42, %v3439_v43  ;;  %v4289_v42 = vld [vmem:[%s6447_s1 + $0xcc] sm:$0xf0]  ;;  %v4287_v43 = vld [vmem:[%s6447_s1 + $0xc4] sm:$0xf] }
 0x2a7   :  { %v3419_v8 = vmul.f32 -1.442695, %v1216_v63  ;;  %v3420_v9 = vmul.f32 -1.442695, %v1217_v0  ;;  %1529 = vmatpush.bf16.msra.mxu3 %v3442_v46  ;;  %v3669_v46 = vld [vmem:[%s6447_s1 + $0xc8] sm:$0xf] }
 0x2a9   :  { %4440 = vpow2.f32 %v3419_v8 }
 0x2aa   :  { %4442 = vpow2.f32 %v3420_v9 }
 0x2ab   :  { %v1199_v27 = vpop.f32.mrf.mxu2  ;;  %v1212_v28 = vpop.f32.mrf.mxu3  ;;  %1841 = vmatpush.bf16.msrb.mxu3 %v3690_v40 }
 0x2ac   :  { %v1219_v33 = vadd.f32 %v3290_v10, %v1212_v28  ;;  %v1175_v34 = vpop.f32.mrf.mxu0  ;;  %v1188_v35 = vpop.f32.mrf.mxu1  ;;  %v1218_v58 = vadd.f32 %v3289_v54, %v1199_v27 }
 0x2ad   :  { %v3685_v34 = vld [vmem:[%s6447_s1 + $0xe8] sm:$0xf]  ;;  %v4294_v35 = vld [vmem:[%s6447_s1 + $0xf4] sm:$0xf0] }
 0x2ae   :  { %v3421_v44 = vmul.f32 -1.442695, %v1219_v33  ;;  %v3679_v33 = vld [vmem:[%s6447_s1 + $0xf0] sm:$0xf0]  ;;  %v3686_v37 = vor.u32 %v4294_v35, %v3685_v34  ;;  %v4271_v34 = vld [vmem:[%s6447_s1 + $0x44] sm:$0xf] }
 0x2af   :  { %v4441_v45 = vpop.eup %4440  ;;  %v3682_v36 = vor.u32 %v4291_v31, %v3679_v33  ;;  %v4273_v33 = vld [vmem:[%s6447_s1 + $0x4c] sm:$0xf0] }
 0x2b0   :  { %v4443_v47 = vpop.eup %4442  ;;  %v1223_v48 = vadd.f32 1.0, %v4441_v45  ;;  %4444 = vpow2.f32 %v3421_v44  ;;  %1828 = vmatpush.bf16.msrb.mxu2 %v3686_v37  ;;  %v3662_v44 = vor.u32 %v4289_v42, %v3661_v41  ;;  %v3663_v45 = vld [vmem:[%s6447_s1 + $0xd0] sm:$0xf0]  ;;  %v3598_v35 = vor.u32 %v4273_v33, %v3597_v32  ;;  %v3605_v37 = vld [vmem:[%s6447_s1 + $0x48] sm:$0xf]  ;;  %v3426_v41 = vld [vmem:[%s6448_s0 + $0x98] sm:$0xff] }
 0x2b1   :  { %v1242_v49 = vadd.f32 1.0, %v4443_v47  ;;  %1815 = vmatpush.bf16.msrb.mxu1 %v3682_v36  ;;  %v4290_v47 = vld [vmem:[%s6447_s1 + $0xd4] sm:$0xf0]  ;;  %v3599_v36 = vld [vmem:[%s6447_s1 + $0x50] sm:$0xf0] }
 0x2b2   :  { %4446 = vrcp.f32 %v1223_v48  ;;  %v1235_v63 = vand.u32 2147483648, %v1223_v48  ;;  %v1233_v2 = vand.u32 2147483647, %v1223_v48  ;;  %vm1229_vm6 = vweird.f32 %v1223_v48  ;;  %1803 = vmatpush.bf16.msrb.mxu0 %v3662_v44  ;;  %v4272_v44 = vld [vmem:[%s6447_s1 + $0x4c] sm:$0xf] }
 0x2b3   :  { %4448 = vrcp.f32 %v1242_v49  ;;  %v1201_v50 = vpop.f32.mrf.mxu2  ;;  %v1214_v51 = vpop.f32.mrf.mxu3  ;;  %v1254_v0 = vand.u32 2147483648, %v1242_v49  ;;  %v1252_v4 = vand.u32 2147483647, %v1242_v49  ;;  %vm1248_vm7 = vweird.f32 %v1242_v49 }
 0x2b4   :  { %v1236_v7 = vor.u32 1.1754944e-38, %v1235_v63  ;;  %vm1234_vm10 = vcmp.eq.f32.partialorder %v1233_v2, 8.507059e+37  ;;  %v4288_v50 = vld [vmem:[%s6447_s1 + $0xcc] sm:$0xf]  ;;  %v3671_v51 = vld [vmem:[%s6447_s1 + $0xd8] sm:$0xf0]  ;;  %v3602_v42 = vor.u32 %v4271_v34, %v3599_v36 }
 0x2b5   :  { %v1255_v10 = vor.u32 1.1754944e-38, %v1254_v0  ;;  %vm1253_vm11 = vcmp.eq.f32.partialorder %v1252_v4, 8.507059e+37  ;;  %v3674_v54 = vor.u32 %v4288_v50, %v3671_v51  ;;  %v4284_v63 = vld [vmem:[%s6447_s1 + $0xac] sm:$0xf]  ;;  %v3655_v0 = vld [vmem:[%s6447_s1 + $0xb8] sm:$0xf0] }
 0x2b6   :  { %v4445_v55 = vpop.eup %4444  ;;  %v3629_v2 = vld [vmem:[%s6447_s1 + $0x80] sm:$0xf]  ;;  %v4279_v4 = vld [vmem:[%s6447_s1 + $0x84] sm:$0xf]  ;;  %v3583_v51 = vld [vmem:[%s6447_s1 + $0x30] sm:$0xf0] }
 0x2b7   :  { %v1262_v56 = vadd.f32 1.0, %v4445_v55  ;;  %v3645_v55 = vld [vmem:[%s6447_s1 + $0xa0] sm:$0xf]  ;;  %1842 = vmatpush.bf16.msrb.mxu3 %v3674_v54  ;;  %v4267_v50 = vld [vmem:[%s6447_s1 + $0x24] sm:$0xf] }
 0x2b8   :  { %v4447_v57 = vpop.eup %4446  ;;  %v3589_v54 = vld [vmem:[%s6447_s1 + $0x28] sm:$0xf] }
 0x2b9   :  { %v4449_v59 = vpop.eup %4448  ;;  %v1225_v60 = vmul.f32 %v4447_v57, %v1223_v48  ;;  %4450 = vrcp.f32 %v1262_v56  ;;  %vm1230_vm4 = vweird.f32 %v4447_v57  ;;  %v1274_v23 = vand.u32 2147483648, %v1262_v56 }
 0x2ba   :  { %v1244_v61 = vmul.f32 %v4449_v59, %v1242_v49  ;;  %4452 = vtanh.f32 %v1218_v58  ;;  %vm1249_vm5 = vweird.f32 %v4449_v59  ;;  %vm1231_vm8 = vmor %vm1229_vm6, %vm1230_vm4  ;;  %vm1268_vm13 = vweird.f32 %v1262_v56 }
 0x2bb   :  { %v1226_v21 = vsub.f32 1.0, %v1225_v60  ;;  %vm1250_vm9 = vmor %vm1248_vm7, %vm1249_vm5  ;;  %v1272_v24 = vand.u32 2147483647, %v1262_v56  ;;  %v1275_v26 = vor.u32 1.1754944e-38, %v1274_v23  ;;  %v3666_v48 = vor.u32 %v4287_v43, %v3663_v45  ;;  %v3653_v60 = vld [vmem:[%s6447_s1 + $0xa8] sm:$0xf] }
 0x2bc   :  { %v1245_v62 = vsub.f32 1.0, %v1244_v61  ;;  %v3670_v49 = vor.u32 %v4290_v47, %v3669_v46  ;;  %v4286_v61 = vld [vmem:[%s6447_s1 + $0xb4] sm:$0xf0]  ;;  %v3621_v23 = vld [vmem:[%s6447_s1 + $0x68] sm:$0xf]  ;;  %v3606_v43 = vor.u32 %v4274_v38, %v3605_v37 }
 0x2bd   :  { %v1227_v1 = vmul.f32 %v4447_v57, %v1226_v21  ;;  %vm1273_vm15 = vcmp.eq.f32.partialorder %v1272_v24, 8.507059e+37  ;;  %1816 = vmatpush.bf16.msrb.mxu1 %v3666_v48  ;;  %v4278_v24 = vld [vmem:[%s6447_s1 + $0x74] sm:$0xf0]  ;;  %v3607_v45 = vld [vmem:[%s6447_s1 + $0x58] sm:$0xf0] }
 0x2be   :  { %v1246_v3 = vmul.f32 %v4449_v59, %v1245_v62  ;;  %1829 = vmatpush.bf16.msrb.mxu2 %v3670_v49  ;;  %v3654_v62 = vor.u32 %v4286_v61, %v3653_v60  ;;  %v3581_v46 = vld [vmem:[%s6447_s1 + $0x20] sm:$0xf]  ;;  %v4269_v47 = vld [vmem:[%s6447_s1 + $0x2c] sm:$0xf0]  ;;  %v3610_v48 = vor.u32 %v4272_v44, %v3607_v45 }
 0x2bf   :  { %v4451_v5 = vpop.eup %4450  ;;  %v1228_v6 = vadd.f32 %v4447_v57, %v1227_v1  ;;  %v3658_v1 = vor.u32 %v4284_v63, %v3655_v0  ;;  %v3582_v49 = vor.u32 %v4269_v47, %v3581_v46  ;;  %v4265_v63 = vld [vmem:[%s6447_s1 + $0xc] sm:$0xf0]  ;;  %v4263_v0 = vld [vmem:[%s6447_s1 + $0x4] sm:$0xf] }
 0x2c0   :  { %v1247_v8 = vadd.f32 %v4449_v59, %v1246_v3  ;;  %v1264_v9 = vmul.f32 %v4451_v5, %v1262_v56  ;;  %v4453_v12 = vpop.eup %4452  ;;  %vm1269_vm12 = vweird.f32 %v4451_v5  ;;  %v4285_v56 = vld [vmem:[%s6447_s1 + $0xac] sm:$0xf0] }
 0x2c1   :  { %v1232_v11 = vsel %vm1231_vm8, %v4447_v57, %v1228_v6  ;;  %vm1270_vm14 = vmor %vm1268_vm13, %vm1269_vm12  ;;  %v4283_v57 = vld [vmem:[%s6447_s1 + $0xa4] sm:$0xf]  ;;  %v3646_v58 = vor.u32 %v4285_v56, %v3645_v55  ;;  %v4281_v3 = vld [vmem:[%s6447_s1 + $0x8c] sm:$0xf0]  ;;  %1843 = vmatpush.bf16.msrb.mxu3 %v3658_v1  ;;  %v3586_v55 = vor.u32 %v4267_v50, %v3583_v51 }
 0x2c2   :  { %v1237_v13 = vsel %vm1234_vm10, %v1236_v7, %v1232_v11  ;;  %v1251_v14 = vsel %vm1250_vm9, %v4449_v59, %v1247_v8  ;;  %v1265_v15 = vsub.f32 1.0, %v1264_v9  ;;  %v3647_v59 = vld [vmem:[%s6447_s1 + $0xb0] sm:$0xf0]  ;;  %1830 = vmatpush.bf16.msrb.mxu2 %v3654_v62  ;;  %v3637_v7 = vld [vmem:[%s6447_s1 + $0x88] sm:$0xf] }
 0x2c3   :  { %v1256_v16 = vsel %vm1253_vm11, %v1255_v10, %v1251_v14  ;;  %v1279_v17 = vmul.f32 %v4453_v12, %v1237_v13  ;;  %v3650_v21 = vor.u32 %v4283_v57, %v3647_v59  ;;  %1804 = vmatpush.bf16.msrb.mxu0 %v3646_v58  ;;  %v3631_v6 = vld [vmem:[%s6447_s1 + $0x90] sm:$0xf0]  ;;  %v4282_v8 = vld [vmem:[%s6447_s1 + $0x94] sm:$0xf0]  ;;  %v4280_v11 = vld [vmem:[%s6447_s1 + $0x8c] sm:$0xf] }
 0x2c4   :  { %v1278_v18 = vmul.f32 %v1256_v16, %v5370_v52  ;;  %v1266_v19 = vmul.f32 %v4451_v5, %v1265_v15  ;;  %v3634_v9 = vor.u32 %v4279_v4, %v3631_v6  ;;  %v3638_v10 = vor.u32 %v4282_v8, %v3637_v7  ;;  %v3639_v12 = vld [vmem:[%s6447_s1 + $0x98] sm:$0xf0]  ;;  %v3423_v13 = vld [vmem:[%s6448_s0 + $0x80] sm:$0xff]  ;;  %v3424_v14 = vld [vmem:[%s6448_s0 + $0x88] sm:$0xff] }
 0x2c5   :  { %1817 = vmatpush.bf16.msrb.mxu1 %v3650_v21  ;;  %v3642_v15 = vor.u32 %v4280_v11, %v3639_v12  ;;  %v3613_v16 = vld [vmem:[%s6447_s1 + $0x60] sm:$0xf]  ;;  %v4270_v56 = vld [vmem:[%s6447_s1 + $0x34] sm:$0xf0]  ;;  %v4268_v57 = vld [vmem:[%s6447_s1 + $0x2c] sm:$0xf] }
 0x2c6   :  { %v5581_v20 = vadd.f32 %v1279_v17, %v1278_v18  ;;  %v1267_v22 = vadd.f32 %v4451_v5, %v1266_v19  ;;  %1831 = vmatpush.bf16.msrb.mxu2 %v3638_v10  ;;  %v4277_v17 = vld [vmem:[%s6447_s1 + $0x6c] sm:$0xf0]  ;;  %v4275_v18 = vld [vmem:[%s6447_s1 + $0x64] sm:$0xf]  ;;  %v3591_v58 = vld [vmem:[%s6447_s1 + $0x38] sm:$0xf0]  ;;  %v3590_v61 = vor.u32 %v4270_v56, %v3589_v54 }
 0x2c7   :  { %1844 = vmatpush.bf16.msrb.mxu3 %v3642_v15  ;;  %v3614_v19 = vor.u32 %v4277_v17, %v3613_v16  ;;  %v3594_v21 = vor.u32 %v4268_v57, %v3591_v58  ;;  %v3565_v62 = vld [vmem:[%s6447_s1] sm:$0xf]  ;;  %v3573_v6 = vld [vmem:[%s6447_s1 + $0x8] sm:$0xf]  ;;  %v4266_v7 = vld [vmem:[%s6447_s1 + $0x14] sm:$0xf0] }
 0x2c8   :  { %4454 = vtanh.f32 %v5581_v20  ;;  %v1271_v25 = vsel %vm1270_vm14, %v4451_v5, %v1267_v22  ;;  %v3630_v5 = vor.u32 %v4281_v3, %v3629_v2  ;;  %v3615_v22 = vld [vmem:[%s6447_s1 + $0x70] sm:$0xf0]  ;;  %v3566_v4 = vor.u32 %v4265_v63, %v3565_v62  ;;  %v4264_v10 = vld [vmem:[%s6447_s1 + $0xc] sm:$0xf]  ;;  %v3575_v11 = vld [vmem:[%s6447_s1 + $0x18] sm:$0xf0] }
 0x2c9   :  { %v1276_v28 = vsel %vm1273_vm15, %v1275_v26, %v1271_v25  ;;  %1818 = vmatpush.bf16.msrb.mxu1 %v3634_v9  ;;  %v3618_v25 = vor.u32 %v4275_v18, %v3615_v22  ;;  %v3622_v26 = vor.u32 %v4278_v24, %v3621_v23  ;;  %v3574_v9 = vor.u32 %v4266_v7, %v3573_v6  ;;  %v3425_v22 = vld [vmem:[%s6448_s0 + $0x90] sm:$0xff]  ;;  %v4323_v63 = vld [vmem:[%s6447_s1 + $0xe4] sm:$0xf]  ;;  %v4324_v6 = vld [vmem:[%s6447_s1 + $0xec] sm:$0xf] }
 0x2ca   :  { %1805 = vmatpush.bf16.msrb.mxu0 %v3630_v5  ;;  %v3567_v5 = vld [vmem:[%s6447_s1 + $0x10] sm:$0xf0]  ;;  %v4325_v62 = vld [vmem:[%s6447_s1 + $0xec] sm:$0xf0]  ;;  %v3823_v7 = vld [vmem:[%s6447_s1 + $0xf8] sm:$0xf0] }
 0x2cb   :  { %1832 = vmatpush.bf16.msrb.mxu2 %v3622_v26  ;;  %v3570_v8 = vor.u32 %v4263_v0, %v3567_v5 }
 0x2cd   :  { %1819 = vmatpush.bf16.msrb.mxu1 %v3618_v25 }
 0x2ce   :  { %v4455_v27 = vpop.eup %4454  ;;  %1806 = vmatpush.bf16.msrb.mxu0 %v3614_v19 }
 0x2cf   :  { %v1282_v29 = vmul.f32 %v4455_v27, %v1276_v28  ;;  %v4276_v27 = vld [vmem:[%s6447_s1 + $0x6c] sm:$0xf]  ;;  %v3623_v28 = vld [vmem:[%s6447_s1 + $0x78] sm:$0xf0]  ;;  %1833 = vmatpush.bf16.msrb.mxu2 %v3606_v43 }
 0x2d0   :  { %v3626_v53 = vor.u32 %v4276_v27, %v3623_v28 }
 0x2d1   :  { %3422 = vst [vmem:[%s6449_s2 + $0x18] sm:$0xff] %v1282_v29  ;;  %v1290_v52 = vpack.c.bf16 %v1282_v29, %v1282_v29  ;;  %1820 = vmatpush.bf16.msrb.mxu1 %v3602_v42 }
 0x2d2   :  { %1845 = vmatpush.bf16.msrb.mxu3 %v3626_v53  ;;  %1807 = vmatpush.bf16.msrb.mxu0 %v3598_v35 }
 0x2d3   :  { %1491 = vmatmul.bf16.vlgmr.msra.gmra.mxu0 %v1290_v52  ;;  %1504 = vmatmul.bf16.vlgmr.msra.gmra.mxu1 %v1290_v52 }
 0x2d4   :  { %1517 = vmatmul.bf16.vlgmr.msra.gmra.mxu2 %v1290_v52  ;;  %1530 = vmatmul.bf16.vlgmr.msra.gmra.mxu3 %v1290_v52 }
 0x2d5   :  { %1821 = vmatpush.bf16.msrb.mxu1 %v3586_v55  ;;  %1834 = vmatpush.bf16.msrb.mxu2 %v3590_v61 }
 0x2d6   :  { %1846 = vmatpush.bf16.msrb.mxu3 %v3610_v48  ;;  %1808 = vmatpush.bf16.msrb.mxu0 %v3582_v49 }
 0x2d9   :  { %1822 = vmatpush.bf16.msrb.mxu1 %v3570_v8  ;;  %1835 = vmatpush.bf16.msrb.mxu2 %v3574_v9  ;;  %v3826_v8 = vor.u32 %v4324_v6, %v3823_v7  ;;  %v3797_v9 = vld [vmem:[%s6447_s1 + $0xc0] sm:$0xf]  ;;  %v4306_v6 = vld [vmem:[%s6447_s1 + $0x54] sm:$0xf0] }
 0x2da   :  { %1847 = vmatpush.bf16.msrb.mxu3 %v3594_v21  ;;  %1809 = vmatpush.bf16.msrb.mxu0 %v3566_v4  ;;  %v3813_v21 = vld [vmem:[%s6447_s1 + $0xe0] sm:$0xf] }
 0x2db   :  { %v3814_v0 = vor.u32 %v4325_v62, %v3813_v21 }
 0x2de   :  { %2121 = vmatpush.bf16.msra.mxu0 %v3814_v0  ;;  %v3733_v0 = vld [vmem:[%s6447_s1 + $0x40] sm:$0xf] }
 0x350   :  { %v1492_v29 = vpop.f32.mrf.mxu0  ;;  %v1505_v52 = vpop.f32.mrf.mxu1 }
 0x351   :  { %v1535_v30 = vadd.f32 %v3423_v13, %v1492_v29  ;;  %v1536_v31 = vadd.f32 %v3424_v14, %v1505_v52  ;;  %v3578_v14 = vor.u32 %v4264_v10, %v3575_v11  ;;  %v4321_v10 = vld [vmem:[%s6447_s1 + $0xcc] sm:$0xf0]  ;;  %v4319_v11 = vld [vmem:[%s6447_s1 + $0xc4] sm:$0xf] }
 0x353   :  { %v3555_v39 = vmul.f32 -1.442695, %v1535_v30  ;;  %v3556_v40 = vmul.f32 -1.442695, %v1536_v31  ;;  %1848 = vmatpush.bf16.msrb.mxu3 %v3578_v14  ;;  %v3805_v14 = vld [vmem:[%s6447_s1 + $0xc8] sm:$0xf] }
 0x355   :  { %4456 = vpow2.f32 %v3555_v39 }
 0x356   :  { %4458 = vpow2.f32 %v3556_v40 }
 0x357   :  { %v1518_v59 = vpop.f32.mrf.mxu2  ;;  %v1531_v60 = vpop.f32.mrf.mxu3  ;;  %2160 = vmatpush.bf16.msra.mxu3 %v3826_v8 }
 0x358   :  { %v1538_v1 = vadd.f32 %v3426_v41, %v1531_v60  ;;  %v1494_v2 = vpop.f32.mrf.mxu0  ;;  %v1507_v3 = vpop.f32.mrf.mxu1  ;;  %v1537_v26 = vadd.f32 %v3425_v22, %v1518_v59 }
 0x359   :  { %v3821_v2 = vld [vmem:[%s6447_s1 + $0xe8] sm:$0xf]  ;;  %v4326_v3 = vld [vmem:[%s6447_s1 + $0xf4] sm:$0xf0] }
 0x35a   :  { %v3557_v12 = vmul.f32 -1.442695, %v1538_v1  ;;  %v3815_v1 = vld [vmem:[%s6447_s1 + $0xf0] sm:$0xf0]  ;;  %v3822_v5 = vor.u32 %v4326_v3, %v3821_v2  ;;  %v4303_v2 = vld [vmem:[%s6447_s1 + $0x44] sm:$0xf] }
 0x35b   :  { %v4457_v13 = vpop.eup %4456  ;;  %v3818_v4 = vor.u32 %v4323_v63, %v3815_v1  ;;  %v4305_v1 = vld [vmem:[%s6447_s1 + $0x4c] sm:$0xf0] }
 0x35c   :  { %v4459_v15 = vpop.eup %4458  ;;  %v1542_v16 = vadd.f32 1.0, %v4457_v13  ;;  %4460 = vpow2.f32 %v3557_v12  ;;  %2147 = vmatpush.bf16.msra.mxu2 %v3822_v5  ;;  %v3798_v12 = vor.u32 %v4321_v10, %v3797_v9  ;;  %v3799_v13 = vld [vmem:[%s6447_s1 + $0xd0] sm:$0xf0]  ;;  %v3734_v3 = vor.u32 %v4305_v1, %v3733_v0  ;;  %v3741_v5 = vld [vmem:[%s6447_s1 + $0x48] sm:$0xf]  ;;  %v3562_v9 = vld [vmem:[%s6448_s0 + $0xb8] sm:$0xff] }
 0x35d   :  { %v1561_v17 = vadd.f32 1.0, %v4459_v15  ;;  %2134 = vmatpush.bf16.msra.mxu1 %v3818_v4  ;;  %v4322_v15 = vld [vmem:[%s6447_s1 + $0xd4] sm:$0xf0]  ;;  %v3735_v4 = vld [vmem:[%s6447_s1 + $0x50] sm:$0xf0] }
 0x35e   :  { %4462 = vrcp.f32 %v1542_v16  ;;  %v1554_v30 = vand.u32 2147483648, %v1542_v16  ;;  %v1552_v33 = vand.u32 2147483647, %v1542_v16  ;;  %vm1548_vm2 = vweird.f32 %v1542_v16  ;;  %2122 = vmatpush.bf16.msra.mxu0 %v3798_v12  ;;  %v4304_v12 = vld [vmem:[%s6447_s1 + $0x4c] sm:$0xf] }
 0x35f   :  { %4464 = vrcp.f32 %v1561_v17  ;;  %v1520_v18 = vpop.f32.mrf.mxu2  ;;  %v1533_v19 = vpop.f32.mrf.mxu3  ;;  %v1573_v31 = vand.u32 2147483648, %v1561_v17  ;;  %v1571_v35 = vand.u32 2147483647, %v1561_v17  ;;  %vm1567_vm3 = vweird.f32 %v1561_v17 }
 0x360   :  { %v1555_v38 = vor.u32 1.1754944e-38, %v1554_v30  ;;  %vm1553_vm6 = vcmp.eq.f32.partialorder %v1552_v33, 8.507059e+37  ;;  %v4320_v18 = vld [vmem:[%s6447_s1 + $0xcc] sm:$0xf]  ;;  %v3807_v19 = vld [vmem:[%s6447_s1 + $0xd8] sm:$0xf0]  ;;  %v3738_v10 = vor.u32 %v4303_v2, %v3735_v4 }
 0x361   :  { %v1574_v41 = vor.u32 1.1754944e-38, %v1573_v31  ;;  %vm1572_vm7 = vcmp.eq.f32.partialorder %v1571_v35, 8.507059e+37  ;;  %v3810_v22 = vor.u32 %v4320_v18, %v3807_v19  ;;  %v4316_v30 = vld [vmem:[%s6447_s1 + $0xac] sm:$0xf]  ;;  %v3791_v31 = vld [vmem:[%s6447_s1 + $0xb8] sm:$0xf0] }
 0x362   :  { %v4461_v23 = vpop.eup %4460  ;;  %v3765_v33 = vld [vmem:[%s6447_s1 + $0x80] sm:$0xf]  ;;  %v4311_v35 = vld [vmem:[%s6447_s1 + $0x84] sm:$0xf]  ;;  %v3719_v19 = vld [vmem:[%s6447_s1 + $0x30] sm:$0xf0] }
 0x363   :  { %v1581_v24 = vadd.f32 1.0, %v4461_v23  ;;  %v3781_v23 = vld [vmem:[%s6447_s1 + $0xa0] sm:$0xf]  ;;  %2161 = vmatpush.bf16.msra.mxu3 %v3810_v22  ;;  %v4299_v18 = vld [vmem:[%s6447_s1 + $0x24] sm:$0xf] }
 0x364   :  { %v4463_v25 = vpop.eup %4462  ;;  %v3725_v22 = vld [vmem:[%s6447_s1 + $0x28] sm:$0xf] }
 0x365   :  { %v4465_v27 = vpop.eup %4464  ;;  %v1544_v28 = vmul.f32 %v4463_v25, %v1542_v16  ;;  %4466 = vrcp.f32 %v1581_v24  ;;  %vm1549_vm0 = vweird.f32 %v4463_v25  ;;  %v1593_v55 = vand.u32 2147483648, %v1581_v24 }
 0x366   :  { %v1563_v29 = vmul.f32 %v4465_v27, %v1561_v17  ;;  %4468 = vtanh.f32 %v1537_v26  ;;  %vm1568_vm1 = vweird.f32 %v4465_v27  ;;  %vm1550_vm4 = vmor %vm1548_vm2, %vm1549_vm0  ;;  %vm1587_vm9 = vweird.f32 %v1581_v24 }
 0x367   :  { %v1545_v52 = vsub.f32 1.0, %v1544_v28  ;;  %vm1569_vm5 = vmor %vm1567_vm3, %vm1568_vm1  ;;  %v1591_v56 = vand.u32 2147483647, %v1581_v24  ;;  %v1594_v58 = vor.u32 1.1754944e-38, %v1593_v55  ;;  %v3802_v16 = vor.u32 %v4319_v11, %v3799_v13  ;;  %v3789_v28 = vld [vmem:[%s6447_s1 + $0xa8] sm:$0xf] }
 0x368   :  { %v1564_v53 = vsub.f32 1.0, %v1563_v29  ;;  %v3806_v17 = vor.u32 %v4322_v15, %v3805_v14  ;;  %v4318_v29 = vld [vmem:[%s6447_s1 + $0xb4] sm:$0xf0]  ;;  %v3757_v55 = vld [vmem:[%s6447_s1 + $0x68] sm:$0xf]  ;;  %v3742_v11 = vor.u32 %v4306_v6, %v3741_v5 }
 0x369   :  { %v1546_v32 = vmul.f32 %v4463_v25, %v1545_v52  ;;  %vm1592_vm11 = vcmp.eq.f32.partialorder %v1591_v56, 8.507059e+37  ;;  %2135 = vmatpush.bf16.msra.mxu1 %v3802_v16  ;;  %v4310_v56 = vld [vmem:[%s6447_s1 + $0x74] sm:$0xf0]  ;;  %v3743_v13 = vld [vmem:[%s6447_s1 + $0x58] sm:$0xf0] }
 0x36a   :  { %v1565_v34 = vmul.f32 %v4465_v27, %v1564_v53  ;;  %2148 = vmatpush.bf16.msra.mxu2 %v3806_v17  ;;  %v3790_v53 = vor.u32 %v4318_v29, %v3789_v28  ;;  %v3717_v14 = vld [vmem:[%s6447_s1 + $0x20] sm:$0xf]  ;;  %v4301_v15 = vld [vmem:[%s6447_s1 + $0x2c] sm:$0xf0]  ;;  %v3746_v16 = vor.u32 %v4304_v12, %v3743_v13 }
 0x36b   :  { %v4467_v36 = vpop.eup %4466  ;;  %v1547_v37 = vadd.f32 %v4463_v25, %v1546_v32  ;;  %v3794_v32 = vor.u32 %v4316_v30, %v3791_v31  ;;  %v3718_v17 = vor.u32 %v4301_v15, %v3717_v14  ;;  %v4297_v30 = vld [vmem:[%s6447_s1 + $0xc] sm:$0xf0]  ;;  %v4295_v31 = vld [vmem:[%s6447_s1 + $0x4] sm:$0xf] }
 0x36c   :  { %v1566_v39 = vadd.f32 %v4465_v27, %v1565_v34  ;;  %v1583_v40 = vmul.f32 %v4467_v36, %v1581_v24  ;;  %v4469_v43 = vpop.eup %4468  ;;  %vm1588_vm8 = vweird.f32 %v4467_v36  ;;  %v4317_v24 = vld [vmem:[%s6447_s1 + $0xac] sm:$0xf0] }
 0x36d   :  { %v1551_v42 = vsel %vm1550_vm4, %v4463_v25, %v1547_v37  ;;  %vm1589_vm10 = vmor %vm1587_vm9, %vm1588_vm8  ;;  %v4315_v25 = vld [vmem:[%s6447_s1 + $0xa4] sm:$0xf]  ;;  %v3782_v26 = vor.u32 %v4317_v24, %v3781_v23  ;;  %v4313_v34 = vld [vmem:[%s6447_s1 + $0x8c] sm:$0xf0]  ;;  %2162 = vmatpush.bf16.msra.mxu3 %v3794_v32  ;;  %v3722_v23 = vor.u32 %v4299_v18, %v3719_v19 }
 0x36e   :  { %v1556_v44 = vsel %vm1553_vm6, %v1555_v38, %v1551_v42  ;;  %v1570_v45 = vsel %vm1569_vm5, %v4465_v27, %v1566_v39  ;;  %v1584_v46 = vsub.f32 1.0, %v1583_v40  ;;  %v3783_v27 = vld [vmem:[%s6447_s1 + $0xb0] sm:$0xf0]  ;;  %2149 = vmatpush.bf16.msra.mxu2 %v3790_v53  ;;  %v3773_v38 = vld [vmem:[%s6447_s1 + $0x88] sm:$0xf] }
 0x36f   :  { %v1575_v47 = vsel %vm1572_vm7, %v1574_v41, %v1570_v45  ;;  %v1598_v48 = vmul.f32 %v4469_v43, %v1556_v44  ;;  %v3786_v52 = vor.u32 %v4315_v25, %v3783_v27  ;;  %2123 = vmatpush.bf16.msra.mxu0 %v3782_v26  ;;  %v3767_v37 = vld [vmem:[%s6447_s1 + $0x90] sm:$0xf0]  ;;  %v4314_v39 = vld [vmem:[%s6447_s1 + $0x94] sm:$0xf0]  ;;  %v4312_v42 = vld [vmem:[%s6447_s1 + $0x8c] sm:$0xf] }
 0x370   :  { %v1597_v49 = vmul.f32 %v1575_v47, %v5581_v20  ;;  %v1585_v50 = vmul.f32 %v4467_v36, %v1584_v46  ;;  %v3770_v40 = vor.u32 %v4311_v35, %v3767_v37  ;;  %v3774_v41 = vor.u32 %v4314_v39, %v3773_v38  ;;  %v3775_v43 = vld [vmem:[%s6447_s1 + $0x98] sm:$0xf0]  ;;  %v3559_v44 = vld [vmem:[%s6448_s0 + $0xa0] sm:$0xff]  ;;  %v3560_v45 = vld [vmem:[%s6448_s0 + $0xa8] sm:$0xff] }
 0x371   :  { %2136 = vmatpush.bf16.msra.mxu1 %v3786_v52  ;;  %v3778_v46 = vor.u32 %v4312_v42, %v3775_v43  ;;  %v3749_v47 = vld [vmem:[%s6447_s1 + $0x60] sm:$0xf]  ;;  %v4302_v24 = vld [vmem:[%s6447_s1 + $0x34] sm:$0xf0]  ;;  %v4300_v25 = vld [vmem:[%s6447_s1 + $0x2c] sm:$0xf] }
 0x372   :  { %v5792_v51 = vadd.f32 %v1598_v48, %v1597_v49  ;;  %v1586_v54 = vadd.f32 %v4467_v36, %v1585_v50  ;;  %2150 = vmatpush.bf16.msra.mxu2 %v3774_v41  ;;  %v4309_v48 = vld [vmem:[%s6447_s1 + $0x6c] sm:$0xf0]  ;;  %v4307_v49 = vld [vmem:[%s6447_s1 + $0x64] sm:$0xf]  ;;  %v3727_v26 = vld [vmem:[%s6447_s1 + $0x38] sm:$0xf0]  ;;  %v3726_v29 = vor.u32 %v4302_v24, %v3725_v22 }
 0x373   :  { %2163 = vmatpush.bf16.msra.mxu3 %v3778_v46  ;;  %v3750_v50 = vor.u32 %v4309_v48, %v3749_v47  ;;  %v3730_v52 = vor.u32 %v4300_v25, %v3727_v26  ;;  %v3701_v53 = vld [vmem:[%s6447_s1] sm:$0xf]  ;;  %v3709_v37 = vld [vmem:[%s6447_s1 + $0x8] sm:$0xf]  ;;  %v4298_v38 = vld [vmem:[%s6447_s1 + $0x14] sm:$0xf0] }
 0x374   :  { %4470 = vtanh.f32 %v5792_v51  ;;  %v1590_v57 = vsel %vm1589_vm10, %v4467_v36, %v1586_v54  ;;  %v3766_v36 = vor.u32 %v4313_v34, %v3765_v33  ;;  %v3751_v54 = vld [vmem:[%s6447_s1 + $0x70] sm:$0xf0]  ;;  %v3702_v35 = vor.u32 %v4297_v30, %v3701_v53  ;;  %v4296_v41 = vld [vmem:[%s6447_s1 + $0xc] sm:$0xf]  ;;  %v3711_v42 = vld [vmem:[%s6447_s1 + $0x18] sm:$0xf0] }
 0x375   :  { %v1595_v60 = vsel %vm1592_vm11, %v1594_v58, %v1590_v57  ;;  %2137 = vmatpush.bf16.msra.mxu1 %v3770_v40  ;;  %v3754_v57 = vor.u32 %v4307_v49, %v3751_v54  ;;  %v3758_v58 = vor.u32 %v4310_v56, %v3757_v55  ;;  %v3710_v40 = vor.u32 %v4298_v38, %v3709_v37  ;;  %v3561_v54 = vld [vmem:[%s6448_s0 + $0xb0] sm:$0xff]  ;;  %v4355_v30 = vld [vmem:[%s6447_s1 + $0xe4] sm:$0xf]  ;;  %v4356_v37 = vld [vmem:[%s6447_s1 + $0xec] sm:$0xf] }
 0x376   :  { %2124 = vmatpush.bf16.msra.mxu0 %v3766_v36  ;;  %v3703_v36 = vld [vmem:[%s6447_s1 + $0x10] sm:$0xf0]  ;;  %v4357_v53 = vld [vmem:[%s6447_s1 + $0xec] sm:$0xf0]  ;;  %v3959_v38 = vld [vmem:[%s6447_s1 + $0xf8] sm:$0xf0] }
 0x377   :  { %2151 = vmatpush.bf16.msra.mxu2 %v3758_v58  ;;  %v3706_v39 = vor.u32 %v4295_v31, %v3703_v36 }
 0x379   :  { %2138 = vmatpush.bf16.msra.mxu1 %v3754_v57 }
 0x37a   :  { %v4471_v59 = vpop.eup %4470  ;;  %2125 = vmatpush.bf16.msra.mxu0 %v3750_v50 }
 0x37b   :  { %v1601_v61 = vmul.f32 %v4471_v59, %v1595_v60  ;;  %v4308_v59 = vld [vmem:[%s6447_s1 + $0x6c] sm:$0xf]  ;;  %v3759_v60 = vld [vmem:[%s6447_s1 + $0x78] sm:$0xf0]  ;;  %2152 = vmatpush.bf16.msra.mxu2 %v3742_v11 }
 0x37c   :  { %v3762_v21 = vor.u32 %v4308_v59, %v3759_v60 }
 0x37d   :  { %3558 = vst [vmem:[%s6449_s2 + $0x20] sm:$0xff] %v1601_v61  ;;  %v1609_v20 = vpack.c.bf16 %v1601_v61, %v1601_v61  ;;  %2139 = vmatpush.bf16.msra.mxu1 %v3738_v10 }
 0x37e   :  { %2164 = vmatpush.bf16.msra.mxu3 %v3762_v21  ;;  %2126 = vmatpush.bf16.msra.mxu0 %v3734_v3 }
 0x37f   :  { %1810 = vmatmul.bf16.vlgmr.msrb.gmra.mxu0 %v1609_v20  ;;  %1823 = vmatmul.bf16.vlgmr.msrb.gmra.mxu1 %v1609_v20 }
 0x380   :  { %1836 = vmatmul.bf16.vlgmr.msrb.gmra.mxu2 %v1609_v20  ;;  %1849 = vmatmul.bf16.vlgmr.msrb.gmra.mxu3 %v1609_v20 }
 0x381   :  { %2140 = vmatpush.bf16.msra.mxu1 %v3722_v23  ;;  %2153 = vmatpush.bf16.msra.mxu2 %v3726_v29 }
 0x382   :  { %2165 = vmatpush.bf16.msra.mxu3 %v3746_v16  ;;  %2127 = vmatpush.bf16.msra.mxu0 %v3718_v17 }
 0x385   :  { %2141 = vmatpush.bf16.msra.mxu1 %v3706_v39  ;;  %2154 = vmatpush.bf16.msra.mxu2 %v3710_v40  ;;  %v3962_v39 = vor.u32 %v4356_v37, %v3959_v38  ;;  %v3933_v40 = vld [vmem:[%s6447_s1 + $0xc0] sm:$0xf]  ;;  %v4338_v37 = vld [vmem:[%s6447_s1 + $0x54] sm:$0xf0] }
 0x386   :  { %2166 = vmatpush.bf16.msra.mxu3 %v3730_v52  ;;  %2128 = vmatpush.bf16.msra.mxu0 %v3702_v35  ;;  %v3949_v52 = vld [vmem:[%s6447_s1 + $0xe0] sm:$0xf] }
 0x387   :  { %v3950_v31 = vor.u32 %v4357_v53, %v3949_v52 }
 0x38a   :  { %2440 = vmatpush.bf16.msrb.mxu0 %v3950_v31  ;;  %v3869_v31 = vld [vmem:[%s6447_s1 + $0x40] sm:$0xf] }
 0x3fc   :  { %v1811_v61 = vpop.f32.mrf.mxu0  ;;  %v1824_v20 = vpop.f32.mrf.mxu1 }
 0x3fd   :  { %v1854_v62 = vadd.f32 %v3559_v44, %v1811_v61  ;;  %v1855_v63 = vadd.f32 %v3560_v45, %v1824_v20  ;;  %v3714_v45 = vor.u32 %v4296_v41, %v3711_v42  ;;  %v4353_v41 = vld [vmem:[%s6447_s1 + $0xcc] sm:$0xf0]  ;;  %v4351_v42 = vld [vmem:[%s6447_s1 + $0xc4] sm:$0xf] }
 0x3ff   :  { %v3691_v7 = vmul.f32 -1.442695, %v1854_v62  ;;  %v3692_v8 = vmul.f32 -1.442695, %v1855_v63  ;;  %2167 = vmatpush.bf16.msra.mxu3 %v3714_v45  ;;  %v3941_v45 = vld [vmem:[%s6447_s1 + $0xc8] sm:$0xf] }
 0x401   :  { %4472 = vpow2.f32 %v3691_v7 }
 0x402   :  { %4474 = vpow2.f32 %v3692_v8 }
 0x403   :  { %v1837_v27 = vpop.f32.mrf.mxu2  ;;  %v1850_v28 = vpop.f32.mrf.mxu3  ;;  %2479 = vmatpush.bf16.msrb.mxu3 %v3962_v39 }
 0x404   :  { %v1857_v32 = vadd.f32 %v3562_v9, %v1850_v28  ;;  %v1813_v33 = vpop.f32.mrf.mxu0  ;;  %v1826_v34 = vpop.f32.mrf.mxu1  ;;  %v1856_v58 = vadd.f32 %v3561_v54, %v1837_v27 }
 0x405   :  { %v3957_v33 = vld [vmem:[%s6447_s1 + $0xe8] sm:$0xf]  ;;  %v4358_v34 = vld [vmem:[%s6447_s1 + $0xf4] sm:$0xf0] }
 0x406   :  { %v3693_v43 = vmul.f32 -1.442695, %v1857_v32  ;;  %v3951_v32 = vld [vmem:[%s6447_s1 + $0xf0] sm:$0xf0]  ;;  %v3958_v36 = vor.u32 %v4358_v34, %v3957_v33  ;;  %v4335_v33 = vld [vmem:[%s6447_s1 + $0x44] sm:$0xf] }
 0x407   :  { %v4473_v44 = vpop.eup %4472  ;;  %v3954_v35 = vor.u32 %v4355_v30, %v3951_v32  ;;  %v4337_v32 = vld [vmem:[%s6447_s1 + $0x4c] sm:$0xf0] }
 0x408   :  { %v4475_v46 = vpop.eup %4474  ;;  %v1861_v47 = vadd.f32 1.0, %v4473_v44  ;;  %4476 = vpow2.f32 %v3693_v43  ;;  %2466 = vmatpush.bf16.msrb.mxu2 %v3958_v36  ;;  %v3934_v43 = vor.u32 %v4353_v41, %v3933_v40  ;;  %v3935_v44 = vld [vmem:[%s6447_s1 + $0xd0] sm:$0xf0]  ;;  %v3870_v34 = vor.u32 %v4337_v32, %v3869_v31  ;;  %v3877_v36 = vld [vmem:[%s6447_s1 + $0x48] sm:$0xf]  ;;  %v3698_v40 = vld [vmem:[%s6448_s0 + $0xd8] sm:$0xff] }
 0x409   :  { %v1880_v48 = vadd.f32 1.0, %v4475_v46  ;;  %2453 = vmatpush.bf16.msrb.mxu1 %v3954_v35  ;;  %v4354_v46 = vld [vmem:[%s6447_s1 + $0xd4] sm:$0xf0]  ;;  %v3871_v35 = vld [vmem:[%s6447_s1 + $0x50] sm:$0xf0] }
 0x40a   :  { %4478 = vrcp.f32 %v1861_v47  ;;  %v1873_v62 = vand.u32 2147483648, %v1861_v47  ;;  %v1871_v1 = vand.u32 2147483647, %v1861_v47  ;;  %vm1867_vm14 = vweird.f32 %v1861_v47  ;;  %2441 = vmatpush.bf16.msrb.mxu0 %v3934_v43  ;;  %v4336_v43 = vld [vmem:[%s6447_s1 + $0x4c] sm:$0xf] }
 0x40b   :  { %4480 = vrcp.f32 %v1880_v48  ;;  %v1839_v49 = vpop.f32.mrf.mxu2  ;;  %v1852_v50 = vpop.f32.mrf.mxu3  ;;  %v1892_v63 = vand.u32 2147483648, %v1880_v48  ;;  %v1890_v3 = vand.u32 2147483647, %v1880_v48  ;;  %vm1886_vm15 = vweird.f32 %v1880_v48 }
 0x40c   :  { %v1874_v6 = vor.u32 1.1754944e-38, %v1873_v62  ;;  %vm1872_vm2 = vcmp.eq.f32.partialorder %v1871_v1, 8.507059e+37  ;;  %v4352_v49 = vld [vmem:[%s6447_s1 + $0xcc] sm:$0xf]  ;;  %v3943_v50 = vld [vmem:[%s6447_s1 + $0xd8] sm:$0xf0]  ;;  %v3874_v41 = vor.u32 %v4335_v33, %v3871_v35 }
 0x40d   :  { %v1893_v9 = vor.u32 1.1754944e-38, %v1892_v63  ;;  %vm1891_vm3 = vcmp.eq.f32.partialorder %v1890_v3, 8.507059e+37  ;;  %v3946_v54 = vor.u32 %v4352_v49, %v3943_v50  ;;  %v4348_v62 = vld [vmem:[%s6447_s1 + $0xac] sm:$0xf]  ;;  %v3927_v63 = vld [vmem:[%s6447_s1 + $0xb8] sm:$0xf0] }
 0x40e   :  { %v4477_v55 = vpop.eup %4476  ;;  %v3901_v1 = vld [vmem:[%s6447_s1 + $0x80] sm:$0xf]  ;;  %v4343_v3 = vld [vmem:[%s6447_s1 + $0x84] sm:$0xf]  ;;  %v3855_v50 = vld [vmem:[%s6447_s1 + $0x30] sm:$0xf0] }
 0x40f   :  { %v1900_v56 = vadd.f32 1.0, %v4477_v55  ;;  %v3917_v55 = vld [vmem:[%s6447_s1 + $0xa0] sm:$0xf]  ;;  %2480 = vmatpush.bf16.msrb.mxu3 %v3946_v54  ;;  %v4331_v49 = vld [vmem:[%s6447_s1 + $0x24] sm:$0xf] }
 0x410   :  { %v4479_v57 = vpop.eup %4478  ;;  %v3861_v54 = vld [vmem:[%s6447_s1 + $0x28] sm:$0xf] }
 0x411   :  { %v4481_v59 = vpop.eup %4480  ;;  %v1863_v60 = vmul.f32 %v4479_v57, %v1861_v47  ;;  %4482 = vrcp.f32 %v1900_v56  ;;  %vm1868_vm12 = vweird.f32 %v4479_v57  ;;  %v1912_v23 = vand.u32 2147483648, %v1900_v56 }
 0x412   :  { %v1882_v61 = vmul.f32 %v4481_v59, %v1880_v48  ;;  %4484 = vtanh.f32 %v1856_v58  ;;  %vm1887_vm13 = vweird.f32 %v4481_v59  ;;  %vm1869_vm0 = vmor %vm1867_vm14, %vm1868_vm12  ;;  %vm1906_vm5 = vweird.f32 %v1900_v56 }
 0x413   :  { %v1864_v20 = vsub.f32 1.0, %v1863_v60  ;;  %vm1888_vm1 = vmor %vm1886_vm15, %vm1887_vm13  ;;  %v1910_v24 = vand.u32 2147483647, %v1900_v56  ;;  %v1913_v26 = vor.u32 1.1754944e-38, %v1912_v23  ;;  %v3938_v47 = vor.u32 %v4351_v42, %v3935_v44  ;;  %v3925_v60 = vld [vmem:[%s6447_s1 + $0xa8] sm:$0xf] }
 0x414   :  { %v1883_v21 = vsub.f32 1.0, %v1882_v61  ;;  %v3942_v48 = vor.u32 %v4354_v46, %v3941_v45  ;;  %v4350_v61 = vld [vmem:[%s6447_s1 + $0xb4] sm:$0xf0]  ;;  %v3893_v23 = vld [vmem:[%s6447_s1 + $0x68] sm:$0xf]  ;;  %v3878_v42 = vor.u32 %v4338_v37, %v3877_v36 }
 0x415   :  { %v1865_v0 = vmul.f32 %v4479_v57, %v1864_v20  ;;  %vm1911_vm7 = vcmp.eq.f32.partialorder %v1910_v24, 8.507059e+37  ;;  %2454 = vmatpush.bf16.msrb.mxu1 %v3938_v47  ;;  %v4342_v24 = vld [vmem:[%s6447_s1 + $0x74] sm:$0xf0]  ;;  %v3879_v44 = vld [vmem:[%s6447_s1 + $0x58] sm:$0xf0] }
 0x416   :  { %v1884_v2 = vmul.f32 %v4481_v59, %v1883_v21  ;;  %2467 = vmatpush.bf16.msrb.mxu2 %v3942_v48  ;;  %v3926_v21 = vor.u32 %v4350_v61, %v3925_v60  ;;  %v3853_v45 = vld [vmem:[%s6447_s1 + $0x20] sm:$0xf]  ;;  %v4333_v46 = vld [vmem:[%s6447_s1 + $0x2c] sm:$0xf0]  ;;  %v3882_v47 = vor.u32 %v4336_v43, %v3879_v44 }
 0x417   :  { %v4483_v4 = vpop.eup %4482  ;;  %v1866_v5 = vadd.f32 %v4479_v57, %v1865_v0  ;;  %v3930_v0 = vor.u32 %v4348_v62, %v3927_v63  ;;  %v3854_v48 = vor.u32 %v4333_v46, %v3853_v45  ;;  %v4329_v62 = vld [vmem:[%s6447_s1 + $0xc] sm:$0xf0]  ;;  %v4327_v63 = vld [vmem:[%s6447_s1 + $0x4] sm:$0xf] }
 0x418   :  { %v1885_v7 = vadd.f32 %v4481_v59, %v1884_v2  ;;  %v1902_v8 = vmul.f32 %v4483_v4, %v1900_v56  ;;  %v4485_v11 = vpop.eup %4484  ;;  %vm1907_vm4 = vweird.f32 %v4483_v4  ;;  %v4349_v56 = vld [vmem:[%s6447_s1 + $0xac] sm:$0xf0] }
 0x419   :  { %v1870_v10 = vsel %vm1869_vm0, %v4479_v57, %v1866_v5  ;;  %vm1908_vm6 = vmor %vm1906_vm5, %vm1907_vm4  ;;  %v4347_v57 = vld [vmem:[%s6447_s1 + $0xa4] sm:$0xf]  ;;  %v3918_v58 = vor.u32 %v4349_v56, %v3917_v55  ;;  %v4345_v2 = vld [vmem:[%s6447_s1 + $0x8c] sm:$0xf0]  ;;  %2481 = vmatpush.bf16.msrb.mxu3 %v3930_v0  ;;  %v3858_v55 = vor.u32 %v4331_v49, %v3855_v50 }
 0x41a   :  { %v1875_v12 = vsel %vm1872_vm2, %v1874_v6, %v1870_v10  ;;  %v1889_v13 = vsel %vm1888_vm1, %v4481_v59, %v1885_v7  ;;  %v1903_v14 = vsub.f32 1.0, %v1902_v8  ;;  %v3919_v59 = vld [vmem:[%s6447_s1 + $0xb0] sm:$0xf0]  ;;  %2468 = vmatpush.bf16.msrb.mxu2 %v3926_v21  ;;  %v3909_v6 = vld [vmem:[%s6447_s1 + $0x88] sm:$0xf] }
 0x41b   :  { %v1894_v15 = vsel %vm1891_vm3, %v1893_v9, %v1889_v13  ;;  %v1917_v16 = vmul.f32 %v4485_v11, %v1875_v12  ;;  %v3922_v20 = vor.u32 %v4347_v57, %v3919_v59  ;;  %2442 = vmatpush.bf16.msrb.mxu0 %v3918_v58  ;;  %v3903_v5 = vld [vmem:[%s6447_s1 + $0x90] sm:$0xf0]  ;;  %v4346_v7 = vld [vmem:[%s6447_s1 + $0x94] sm:$0xf0]  ;;  %v4344_v10 = vld [vmem:[%s6447_s1 + $0x8c] sm:$0xf] }
 0x41c   :  { %v1916_v17 = vmul.f32 %v1894_v15, %v5792_v51  ;;  %v1904_v18 = vmul.f32 %v4483_v4, %v1903_v14  ;;  %v3906_v8 = vor.u32 %v4343_v3, %v3903_v5  ;;  %v3910_v9 = vor.u32 %v4346_v7, %v3909_v6  ;;  %v3911_v11 = vld [vmem:[%s6447_s1 + $0x98] sm:$0xf0]  ;;  %v3695_v12 = vld [vmem:[%s6448_s0 + $0xc0] sm:$0xff]  ;;  %v3696_v13 = vld [vmem:[%s6448_s0 + $0xc8] sm:$0xff] }
 0x41d   :  { %2455 = vmatpush.bf16.msrb.mxu1 %v3922_v20  ;;  %v3914_v14 = vor.u32 %v4344_v10, %v3911_v11  ;;  %v3885_v15 = vld [vmem:[%s6447_s1 + $0x60] sm:$0xf]  ;;  %v4334_v56 = vld [vmem:[%s6447_s1 + $0x34] sm:$0xf0]  ;;  %v4332_v57 = vld [vmem:[%s6447_s1 + $0x2c] sm:$0xf] }
 0x41e   :  { %v6003_v19 = vadd.f32 %v1917_v16, %v1916_v17  ;;  %v1905_v22 = vadd.f32 %v4483_v4, %v1904_v18  ;;  %2469 = vmatpush.bf16.msrb.mxu2 %v3910_v9  ;;  %v4341_v16 = vld [vmem:[%s6447_s1 + $0x6c] sm:$0xf0]  ;;  %v4339_v17 = vld [vmem:[%s6447_s1 + $0x64] sm:$0xf]  ;;  %v3863_v58 = vld [vmem:[%s6447_s1 + $0x38] sm:$0xf0]  ;;  %v3862_v61 = vor.u32 %v4334_v56, %v3861_v54 }
 0x41f   :  { %2482 = vmatpush.bf16.msrb.mxu3 %v3914_v14  ;;  %v3886_v18 = vor.u32 %v4341_v16, %v3885_v15  ;;  %v3866_v20 = vor.u32 %v4332_v57, %v3863_v58  ;;  %v3837_v21 = vld [vmem:[%s6447_s1] sm:$0xf]  ;;  %v3845_v5 = vld [vmem:[%s6447_s1 + $0x8] sm:$0xf]  ;;  %v4330_v6 = vld [vmem:[%s6447_s1 + $0x14] sm:$0xf0] }
 0x420   :  { %4486 = vtanh.f32 %v6003_v19  ;;  %v1909_v25 = vsel %vm1908_vm6, %v4483_v4, %v1905_v22  ;;  %v3902_v4 = vor.u32 %v4345_v2, %v3901_v1  ;;  %v3887_v22 = vld [vmem:[%s6447_s1 + $0x70] sm:$0xf0]  ;;  %v3838_v3 = vor.u32 %v4329_v62, %v3837_v21  ;;  %v4328_v9 = vld [vmem:[%s6447_s1 + $0xc] sm:$0xf]  ;;  %v3847_v10 = vld [vmem:[%s6447_s1 + $0x18] sm:$0xf0] }
 0x421   :  { %v1914_v28 = vsel %vm1911_vm7, %v1913_v26, %v1909_v25  ;;  %2456 = vmatpush.bf16.msrb.mxu1 %v3906_v8  ;;  %v3890_v25 = vor.u32 %v4339_v17, %v3887_v22  ;;  %v3894_v26 = vor.u32 %v4342_v24, %v3893_v23  ;;  %v3846_v8 = vor.u32 %v4330_v6, %v3845_v5  ;;  %v3697_v22 = vld [vmem:[%s6448_s0 + $0xd0] sm:$0xff]  ;;  %v4387_v62 = vld [vmem:[%s6447_s1 + $0xe4] sm:$0xf]  ;;  %v4388_v5 = vld [vmem:[%s6447_s1 + $0xec] sm:$0xf] }
 0x422   :  { %2443 = vmatpush.bf16.msrb.mxu0 %v3902_v4  ;;  %v3839_v4 = vld [vmem:[%s6447_s1 + $0x10] sm:$0xf0]  ;;  %v4389_v21 = vld [vmem:[%s6447_s1 + $0xec] sm:$0xf0]  ;;  %v4095_v6 = vld [vmem:[%s6447_s1 + $0xf8] sm:$0xf0] }
 0x423   :  { %2470 = vmatpush.bf16.msrb.mxu2 %v3894_v26  ;;  %v3842_v7 = vor.u32 %v4327_v63, %v3839_v4 }
 0x425   :  { %2457 = vmatpush.bf16.msrb.mxu1 %v3890_v25 }
 0x426   :  { %v4487_v27 = vpop.eup %4486  ;;  %2444 = vmatpush.bf16.msrb.mxu0 %v3886_v18 }
 0x427   :  { %v1920_v29 = vmul.f32 %v4487_v27, %v1914_v28  ;;  %v4340_v27 = vld [vmem:[%s6447_s1 + $0x6c] sm:$0xf]  ;;  %v3895_v28 = vld [vmem:[%s6447_s1 + $0x78] sm:$0xf0]  ;;  %2471 = vmatpush.bf16.msrb.mxu2 %v3878_v42 }
 0x428   :  { %v3898_v52 = vor.u32 %v4340_v27, %v3895_v28 }
 0x429   :  { %3694 = vst [vmem:[%s6449_s2 + $0x28] sm:$0xff] %v1920_v29  ;;  %v1928_v51 = vpack.c.bf16 %v1920_v29, %v1920_v29  ;;  %2458 = vmatpush.bf16.msrb.mxu1 %v3874_v41 }
 0x42a   :  { %2483 = vmatpush.bf16.msrb.mxu3 %v3898_v52  ;;  %2445 = vmatpush.bf16.msrb.mxu0 %v3870_v34 }
 0x42b   :  { %2129 = vmatmul.bf16.vlgmr.msra.gmra.mxu0 %v1928_v51  ;;  %2142 = vmatmul.bf16.vlgmr.msra.gmra.mxu1 %v1928_v51 }
 0x42c   :  { %2155 = vmatmul.bf16.vlgmr.msra.gmra.mxu2 %v1928_v51  ;;  %2168 = vmatmul.bf16.vlgmr.msra.gmra.mxu3 %v1928_v51 }
 0x42d   :  { %2459 = vmatpush.bf16.msrb.mxu1 %v3858_v55  ;;  %2472 = vmatpush.bf16.msrb.mxu2 %v3862_v61 }
 0x42e   :  { %2484 = vmatpush.bf16.msrb.mxu3 %v3882_v47  ;;  %2446 = vmatpush.bf16.msrb.mxu0 %v3854_v48 }
 0x431   :  { %2460 = vmatpush.bf16.msrb.mxu1 %v3842_v7  ;;  %2473 = vmatpush.bf16.msrb.mxu2 %v3846_v8  ;;  %v4098_v7 = vor.u32 %v4388_v5, %v4095_v6  ;;  %v4069_v8 = vld [vmem:[%s6447_s1 + $0xc0] sm:$0xf]  ;;  %v4370_v5 = vld [vmem:[%s6447_s1 + $0x54] sm:$0xf0] }
 0x432   :  { %2485 = vmatpush.bf16.msrb.mxu3 %v3866_v20  ;;  %2447 = vmatpush.bf16.msrb.mxu0 %v3838_v3  ;;  %v4085_v20 = vld [vmem:[%s6447_s1 + $0xe0] sm:$0xf] }
 0x433   :  { %v4086_v63 = vor.u32 %v4389_v21, %v4085_v20 }
 0x436   :  { %2759 = vmatpush.bf16.msra.mxu0 %v4086_v63  ;;  %v4005_v63 = vld [vmem:[%s6447_s1 + $0x40] sm:$0xf] }
 0x4a8   :  { %v2130_v29 = vpop.f32.mrf.mxu0  ;;  %v2143_v51 = vpop.f32.mrf.mxu1 }
 0x4a9   :  { %v2173_v53 = vadd.f32 %v3695_v12, %v2130_v29  ;;  %v2174_v30 = vadd.f32 %v3696_v13, %v2143_v51  ;;  %v3850_v13 = vor.u32 %v4328_v9, %v3847_v10  ;;  %v4385_v9 = vld [vmem:[%s6447_s1 + $0xcc] sm:$0xf0]  ;;  %v4383_v10 = vld [vmem:[%s6447_s1 + $0xc4] sm:$0xf] }
 0x4ab   :  { %v3827_v38 = vmul.f32 -1.442695, %v2173_v53  ;;  %v3828_v39 = vmul.f32 -1.442695, %v2174_v30  ;;  %2486 = vmatpush.bf16.msrb.mxu3 %v3850_v13  ;;  %v4077_v13 = vld [vmem:[%s6447_s1 + $0xc8] sm:$0xf] }
 0x4ad   :  { %4488 = vpow2.f32 %v3827_v38 }
 0x4ae   :  { %4490 = vpow2.f32 %v3828_v39 }
 0x4af   :  { %v2156_v59 = vpop.f32.mrf.mxu2  ;;  %v2169_v60 = vpop.f32.mrf.mxu3  ;;  %2798 = vmatpush.bf16.msra.mxu3 %v4098_v7 }
 0x4b0   :  { %v2176_v0 = vadd.f32 %v3698_v40, %v2169_v60  ;;  %v2132_v1 = vpop.f32.mrf.mxu0  ;;  %v2145_v2 = vpop.f32.mrf.mxu1  ;;  %v2175_v26 = vadd.f32 %v3697_v22, %v2156_v59 }
 0x4b1   :  { %v4093_v1 = vld [vmem:[%s6447_s1 + $0xe8] sm:$0xf]  ;;  %v4390_v2 = vld [vmem:[%s6447_s1 + $0xf4] sm:$0xf0] }
 0x4b2   :  { %v3829_v11 = vmul.f32 -1.442695, %v2176_v0  ;;  %v4087_v0 = vld [vmem:[%s6447_s1 + $0xf0] sm:$0xf0]  ;;  %v4094_v4 = vor.u32 %v4390_v2, %v4093_v1  ;;  %v4367_v1 = vld [vmem:[%s6447_s1 + $0x44] sm:$0xf] }
 0x4b3   :  { %v4489_v12 = vpop.eup %4488  ;;  %v4090_v3 = vor.u32 %v4387_v62, %v4087_v0  ;;  %v4369_v0 = vld [vmem:[%s6447_s1 + $0x4c] sm:$0xf0] }
 0x4b4   :  { %v4491_v14 = vpop.eup %4490  ;;  %v2180_v15 = vadd.f32 1.0, %v4489_v12  ;;  %4492 = vpow2.f32 %v3829_v11  ;;  %2785 = vmatpush.bf16.msra.mxu2 %v4094_v4  ;;  %v4070_v11 = vor.u32 %v4385_v9, %v4069_v8  ;;  %v4071_v12 = vld [vmem:[%s6447_s1 + $0xd0] sm:$0xf0]  ;;  %v4006_v2 = vor.u32 %v4369_v0, %v4005_v63  ;;  %v4013_v4 = vld [vmem:[%s6447_s1 + $0x48] sm:$0xf]  ;;  %v3834_v8 = vld [vmem:[%s6448_s0 + $0xf8] sm:$0xff] }
 0x4b5   :  { %v2199_v16 = vadd.f32 1.0, %v4491_v14  ;;  %2772 = vmatpush.bf16.msra.mxu1 %v4090_v3  ;;  %v4386_v14 = vld [vmem:[%s6447_s1 + $0xd4] sm:$0xf0]  ;;  %v4007_v3 = vld [vmem:[%s6447_s1 + $0x50] sm:$0xf0] }
 0x4b6   :  { %4494 = vrcp.f32 %v2180_v15  ;;  %v2192_v53 = vand.u32 2147483648, %v2180_v15  ;;  %v2190_v32 = vand.u32 2147483647, %v2180_v15  ;;  %vm2186_vm10 = vweird.f32 %v2180_v15  ;;  %2760 = vmatpush.bf16.msra.mxu0 %v4070_v11  ;;  %v4368_v11 = vld [vmem:[%s6447_s1 + $0x4c] sm:$0xf] }
 0x4b7   :  { %4496 = vrcp.f32 %v2199_v16  ;;  %v2158_v17 = vpop.f32.mrf.mxu2  ;;  %v2171_v18 = vpop.f32.mrf.mxu3  ;;  %v2211_v30 = vand.u32 2147483648, %v2199_v16  ;;  %v2209_v34 = vand.u32 2147483647, %v2199_v16  ;;  %vm2205_vm11 = vweird.f32 %v2199_v16 }
 0x4b8   :  { %v2193_v37 = vor.u32 1.1754944e-38, %v2192_v53  ;;  %vm2191_vm14 = vcmp.eq.f32.partialorder %v2190_v32, 8.507059e+37  ;;  %v4384_v17 = vld [vmem:[%s6447_s1 + $0xcc] sm:$0xf]  ;;  %v4079_v18 = vld [vmem:[%s6447_s1 + $0xd8] sm:$0xf0]  ;;  %v4010_v9 = vor.u32 %v4367_v1, %v4007_v3 }
 0x4b9   :  { %v2212_v40 = vor.u32 1.1754944e-38, %v2211_v30  ;;  %vm2210_vm15 = vcmp.eq.f32.partialorder %v2209_v34, 8.507059e+37  ;;  %v4082_v22 = vor.u32 %v4384_v17, %v4079_v18  ;;  %v4380_v53 = vld [vmem:[%s6447_s1 + $0xac] sm:$0xf]  ;;  %v4063_v30 = vld [vmem:[%s6447_s1 + $0xb8] sm:$0xf0] }
 0x4ba   :  { %v4493_v23 = vpop.eup %4492  ;;  %v4037_v32 = vld [vmem:[%s6447_s1 + $0x80] sm:$0xf]  ;;  %v4375_v34 = vld [vmem:[%s6447_s1 + $0x84] sm:$0xf]  ;;  %v3991_v18 = vld [vmem:[%s6447_s1 + $0x30] sm:$0xf0] }
 0x4bb   :  { %v2219_v24 = vadd.f32 1.0, %v4493_v23  ;;  %v4053_v23 = vld [vmem:[%s6447_s1 + $0xa0] sm:$0xf]  ;;  %2799 = vmatpush.bf16.msra.mxu3 %v4082_v22  ;;  %v4363_v17 = vld [vmem:[%s6447_s1 + $0x24] sm:$0xf] }
 0x4bc   :  { %v4495_v25 = vpop.eup %4494  ;;  %v3997_v22 = vld [vmem:[%s6447_s1 + $0x28] sm:$0xf] }
 0x4bd   :  { %v4497_v27 = vpop.eup %4496  ;;  %v2182_v28 = vmul.f32 %v4495_v25, %v2180_v15  ;;  %4498 = vrcp.f32 %v2219_v24  ;;  %vm2187_vm8 = vweird.f32 %v4495_v25  ;;  %v2231_v55 = vand.u32 2147483648, %v2219_v24 }
 0x4be   :  { %v2201_v29 = vmul.f32 %v4497_v27, %v2199_v16  ;;  %4500 = vtanh.f32 %v2175_v26  ;;  %vm2206_vm9 = vweird.f32 %v4497_v27  ;;  %vm2188_vm12 = vmor %vm2186_vm10, %vm2187_vm8  ;;  %vm2225_vm1 = vweird.f32 %v2219_v24 }
 0x4bf   :  { %v2183_v51 = vsub.f32 1.0, %v2182_v28  ;;  %vm2207_vm13 = vmor %vm2205_vm11, %vm2206_vm9  ;;  %v2229_v56 = vand.u32 2147483647, %v2219_v24  ;;  %v2232_v58 = vor.u32 1.1754944e-38, %v2231_v55  ;;  %v4074_v15 = vor.u32 %v4383_v10, %v4071_v12  ;;  %v4061_v28 = vld [vmem:[%s6447_s1 + $0xa8] sm:$0xf] }
 0x4c0   :  { %v2202_v52 = vsub.f32 1.0, %v2201_v29  ;;  %v4078_v16 = vor.u32 %v4386_v14, %v4077_v13  ;;  %v4382_v29 = vld [vmem:[%s6447_s1 + $0xb4] sm:$0xf0]  ;;  %v4029_v55 = vld [vmem:[%s6447_s1 + $0x68] sm:$0xf]  ;;  %v4014_v10 = vor.u32 %v4370_v5, %v4013_v4 }
 0x4c1   :  { %v2184_v31 = vmul.f32 %v4495_v25, %v2183_v51  ;;  %vm2230_vm3 = vcmp.eq.f32.partialorder %v2229_v56, 8.507059e+37  ;;  %2773 = vmatpush.bf16.msra.mxu1 %v4074_v15  ;;  %v4374_v56 = vld [vmem:[%s6447_s1 + $0x74] sm:$0xf0]  ;;  %v4015_v12 = vld [vmem:[%s6447_s1 + $0x58] sm:$0xf0] }
 0x4c2   :  { %v2203_v33 = vmul.f32 %v4497_v27, %v2202_v52  ;;  %2786 = vmatpush.bf16.msra.mxu2 %v4078_v16  ;;  %v4062_v52 = vor.u32 %v4382_v29, %v4061_v28  ;;  %v3989_v13 = vld [vmem:[%s6447_s1 + $0x20] sm:$0xf]  ;;  %v4365_v14 = vld [vmem:[%s6447_s1 + $0x2c] sm:$0xf0]  ;;  %v4018_v15 = vor.u32 %v4368_v11, %v4015_v12 }
 0x4c3   :  { %v4499_v35 = vpop.eup %4498  ;;  %v2185_v36 = vadd.f32 %v4495_v25, %v2184_v31  ;;  %v4066_v31 = vor.u32 %v4380_v53, %v4063_v30  ;;  %v3990_v16 = vor.u32 %v4365_v14, %v3989_v13  ;;  %v4361_v53 = vld [vmem:[%s6447_s1 + $0xc] sm:$0xf0]  ;;  %v4359_v30 = vld [vmem:[%s6447_s1 + $0x4] sm:$0xf] }
 0x4c4   :  { %v2204_v38 = vadd.f32 %v4497_v27, %v2203_v33  ;;  %v2221_v39 = vmul.f32 %v4499_v35, %v2219_v24  ;;  %v4501_v42 = vpop.eup %4500  ;;  %vm2226_vm0 = vweird.f32 %v4499_v35  ;;  %v4381_v24 = vld [vmem:[%s6447_s1 + $0xac] sm:$0xf0] }
 0x4c5   :  { %v2189_v41 = vsel %vm2188_vm12, %v4495_v25, %v2185_v36  ;;  %vm2227_vm2 = vmor %vm2225_vm1, %vm2226_vm0  ;;  %v4379_v25 = vld [vmem:[%s6447_s1 + $0xa4] sm:$0xf]  ;;  %v4054_v26 = vor.u32 %v4381_v24, %v4053_v23  ;;  %v4377_v33 = vld [vmem:[%s6447_s1 + $0x8c] sm:$0xf0]  ;;  %2800 = vmatpush.bf16.msra.mxu3 %v4066_v31  ;;  %v3994_v23 = vor.u32 %v4363_v17, %v3991_v18 }
 0x4c6   :  { %v2194_v43 = vsel %vm2191_vm14, %v2193_v37, %v2189_v41  ;;  %v2208_v44 = vsel %vm2207_vm13, %v4497_v27, %v2204_v38  ;;  %v2222_v45 = vsub.f32 1.0, %v2221_v39  ;;  %v4055_v27 = vld [vmem:[%s6447_s1 + $0xb0] sm:$0xf0]  ;;  %2787 = vmatpush.bf16.msra.mxu2 %v4062_v52  ;;  %v4045_v37 = vld [vmem:[%s6447_s1 + $0x88] sm:$0xf] }
 0x4c7   :  { %v2213_v46 = vsel %vm2210_vm15, %v2212_v40, %v2208_v44  ;;  %v2236_v47 = vmul.f32 %v4501_v42, %v2194_v43  ;;  %v4058_v51 = vor.u32 %v4379_v25, %v4055_v27  ;;  %2761 = vmatpush.bf16.msra.mxu0 %v4054_v26  ;;  %v4039_v36 = vld [vmem:[%s6447_s1 + $0x90] sm:$0xf0]  ;;  %v4378_v38 = vld [vmem:[%s6447_s1 + $0x94] sm:$0xf0]  ;;  %v4376_v41 = vld [vmem:[%s6447_s1 + $0x8c] sm:$0xf] }
 0x4c8   :  { %v2235_v48 = vmul.f32 %v2213_v46, %v6003_v19  ;;  %v2223_v49 = vmul.f32 %v4499_v35, %v2222_v45  ;;  %v4042_v39 = vor.u32 %v4375_v34, %v4039_v36  ;;  %v4046_v40 = vor.u32 %v4378_v38, %v4045_v37  ;;  %v4047_v42 = vld [vmem:[%s6447_s1 + $0x98] sm:$0xf0]  ;;  %v3831_v43 = vld [vmem:[%s6448_s0 + $0xe0] sm:$0xff]  ;;  %v3832_v44 = vld [vmem:[%s6448_s0 + $0xe8] sm:$0xff] }
 0x4c9   :  { %2774 = vmatpush.bf16.msra.mxu1 %v4058_v51  ;;  %v4050_v45 = vor.u32 %v4376_v41, %v4047_v42  ;;  %v4021_v46 = vld [vmem:[%s6447_s1 + $0x60] sm:$0xf]  ;;  %v4366_v24 = vld [vmem:[%s6447_s1 + $0x34] sm:$0xf0]  ;;  %v4364_v25 = vld [vmem:[%s6447_s1 + $0x2c] sm:$0xf] }
 0x4ca   :  { %v6214_v50 = vadd.f32 %v2236_v47, %v2235_v48  ;;  %v2224_v54 = vadd.f32 %v4499_v35, %v2223_v49  ;;  %2788 = vmatpush.bf16.msra.mxu2 %v4046_v40  ;;  %v4373_v47 = vld [vmem:[%s6447_s1 + $0x6c] sm:$0xf0]  ;;  %v4371_v48 = vld [vmem:[%s6447_s1 + $0x64] sm:$0xf]  ;;  %v3999_v26 = vld [vmem:[%s6447_s1 + $0x38] sm:$0xf0]  ;;  %v3998_v29 = vor.u32 %v4366_v24, %v3997_v22 }
 0x4cb   :  { %2801 = vmatpush.bf16.msra.mxu3 %v4050_v45  ;;  %v4022_v49 = vor.u32 %v4373_v47, %v4021_v46  ;;  %v4002_v51 = vor.u32 %v4364_v25, %v3999_v26  ;;  %v3973_v52 = vld [vmem:[%s6447_s1] sm:$0xf]  ;;  %v3981_v36 = vld [vmem:[%s6447_s1 + $0x8] sm:$0xf]  ;;  %v4362_v37 = vld [vmem:[%s6447_s1 + $0x14] sm:$0xf0] }
 0x4cc   :  { %4502 = vtanh.f32 %v6214_v50  ;;  %v2228_v57 = vsel %vm2227_vm2, %v4499_v35, %v2224_v54  ;;  %v4038_v35 = vor.u32 %v4377_v33, %v4037_v32  ;;  %v4023_v54 = vld [vmem:[%s6447_s1 + $0x70] sm:$0xf0]  ;;  %v3974_v34 = vor.u32 %v4361_v53, %v3973_v52  ;;  %v4360_v40 = vld [vmem:[%s6447_s1 + $0xc] sm:$0xf]  ;;  %v3983_v41 = vld [vmem:[%s6447_s1 + $0x18] sm:$0xf0] }
 0x4cd   :  { %v2233_v60 = vsel %vm2230_vm3, %v2232_v58, %v2228_v57  ;;  %2775 = vmatpush.bf16.msra.mxu1 %v4042_v39  ;;  %v4026_v57 = vor.u32 %v4371_v48, %v4023_v54  ;;  %v4030_v58 = vor.u32 %v4374_v56, %v4029_v55  ;;  %v3982_v39 = vor.u32 %v4362_v37, %v3981_v36  ;;  %v3833_v54 = vld [vmem:[%s6448_s0 + $0xf0] sm:$0xff]  ;;  %v3968_v52 = vld [vmem:[%s6448_s0 + $0x108] sm:$0xff] }
 0x4ce   :  { %2762 = vmatpush.bf16.msra.mxu0 %v4038_v35  ;;  %v3975_v35 = vld [vmem:[%s6447_s1 + $0x10] sm:$0xf0] }
 0x4cf   :  { %2789 = vmatpush.bf16.msra.mxu2 %v4030_v58  ;;  %v3978_v38 = vor.u32 %v4359_v30, %v3975_v35  ;;  %v3970_v35 = vld [vmem:[%s6448_s0 + $0x118] sm:$0xff] }
 0x4d1   :  { %2776 = vmatpush.bf16.msra.mxu1 %v4026_v57 }
 0x4d2   :  { %v4503_v59 = vpop.eup %4502  ;;  %2763 = vmatpush.bf16.msra.mxu0 %v4022_v49 }
 0x4d3   :  { %v2239_v61 = vmul.f32 %v4503_v59, %v2233_v60  ;;  %v4372_v59 = vld [vmem:[%s6447_s1 + $0x6c] sm:$0xf]  ;;  %v4031_v60 = vld [vmem:[%s6447_s1 + $0x78] sm:$0xf0]  ;;  %2790 = vmatpush.bf16.msra.mxu2 %v4014_v10 }
 0x4d4   :  { %v4034_v20 = vor.u32 %v4372_v59, %v4031_v60 }
 0x4d5   :  { %3830 = vst [vmem:[%s6449_s2 + $0x30] sm:$0xff] %v2239_v61  ;;  %v2247_v19 = vpack.c.bf16 %v2239_v61, %v2239_v61  ;;  %2777 = vmatpush.bf16.msra.mxu1 %v4010_v9 }
 0x4d6   :  { %2802 = vmatpush.bf16.msra.mxu3 %v4034_v20  ;;  %2764 = vmatpush.bf16.msra.mxu0 %v4006_v2 }
 0x4d7   :  { %2448 = vmatmul.bf16.vlgmr.msrb.gmra.mxu0 %v2247_v19  ;;  %2461 = vmatmul.bf16.vlgmr.msrb.gmra.mxu1 %v2247_v19 }
 0x4d8   :  { %2474 = vmatmul.bf16.vlgmr.msrb.gmra.mxu2 %v2247_v19  ;;  %2487 = vmatmul.bf16.vlgmr.msrb.gmra.mxu3 %v2247_v19 }
 0x4d9   :  { %2778 = vmatpush.bf16.msra.mxu1 %v3994_v23  ;;  %2791 = vmatpush.bf16.msra.mxu2 %v3998_v29 }
 0x4da   :  { %2803 = vmatpush.bf16.msra.mxu3 %v4018_v15  ;;  %2765 = vmatpush.bf16.msra.mxu0 %v3990_v16 }
 0x4dd   :  { %2779 = vmatpush.bf16.msra.mxu1 %v3978_v38  ;;  %2792 = vmatpush.bf16.msra.mxu2 %v3982_v39 }
 0x4de   :  { %2804 = vmatpush.bf16.msra.mxu3 %v4002_v51  ;;  %2766 = vmatpush.bf16.msra.mxu0 %v3974_v34  ;;  %v3967_v51 = vld [vmem:[%s6448_s0 + $0x100] sm:$0xff] }
 0x554   :  { %v2449_v61 = vpop.f32.mrf.mxu0  ;;  %v2462_v19 = vpop.f32.mrf.mxu1 }
 0x555   :  { %v2492_v21 = vadd.f32 %v3831_v43, %v2449_v61  ;;  %v2493_v62 = vadd.f32 %v3832_v44, %v2462_v19  ;;  %v3986_v44 = vor.u32 %v4360_v40, %v3983_v41 }
 0x557   :  { %v3963_v6 = vmul.f32 -1.442695, %v2492_v21  ;;  %v3964_v7 = vmul.f32 -1.442695, %v2493_v62  ;;  %2805 = vmatpush.bf16.msra.mxu3 %v3986_v44 }
 0x559   :  { %4504 = vpow2.f32 %v3963_v6 }
 0x55a   :  { %4506 = vpow2.f32 %v3964_v7 }
 0x55b   :  { %v2475_v27 = vpop.f32.mrf.mxu2  ;;  %v2488_v28 = vpop.f32.mrf.mxu3 }
 0x55c   :  { %v2495_v31 = vadd.f32 %v3834_v8, %v2488_v28  ;;  %v2451_v32 = vpop.f32.mrf.mxu0  ;;  %v2464_v33 = vpop.f32.mrf.mxu1  ;;  %v2494_v58 = vadd.f32 %v3833_v54, %v2475_v27 }
 0x55e   :  { %v3965_v42 = vmul.f32 -1.442695, %v2495_v31 }
 0x55f   :  { %v4505_v43 = vpop.eup %4504 }
 0x560   :  { %v4507_v45 = vpop.eup %4506  ;;  %v2499_v46 = vadd.f32 1.0, %v4505_v43  ;;  %4508 = vpow2.f32 %v3965_v42 }
 0x561   :  { %v2518_v47 = vadd.f32 1.0, %v4507_v45 }
 0x562   :  { %4510 = vrcp.f32 %v2499_v46  ;;  %v2511_v21 = vand.u32 2147483648, %v2499_v46  ;;  %v2509_v0 = vand.u32 2147483647, %v2499_v46  ;;  %vm2505_vm6 = vweird.f32 %v2499_v46 }
 0x563   :  { %4512 = vrcp.f32 %v2518_v47  ;;  %v2477_v48 = vpop.f32.mrf.mxu2  ;;  %v2490_v49 = vpop.f32.mrf.mxu3  ;;  %v2530_v62 = vand.u32 2147483648, %v2518_v47  ;;  %v2528_v2 = vand.u32 2147483647, %v2518_v47  ;;  %vm2524_vm7 = vweird.f32 %v2518_v47 }
 0x564   :  { %v2512_v5 = vor.u32 1.1754944e-38, %v2511_v21  ;;  %vm2510_vm10 = vcmp.eq.f32.partialorder %v2509_v0, 8.507059e+37  ;;  %v3969_v48 = vld [vmem:[%s6448_s0 + $0x110] sm:$0xff] }
 0x565   :  { %v2531_v8 = vor.u32 1.1754944e-38, %v2530_v62  ;;  %vm2529_vm11 = vcmp.eq.f32.partialorder %v2528_v2, 8.507059e+37 }
 0x566   :  { %v4509_v55 = vpop.eup %4508 }
 0x567   :  { %v2538_v56 = vadd.f32 1.0, %v4509_v55 }
 0x568   :  { %v4511_v57 = vpop.eup %4510 }
 0x569   :  { %v4513_v59 = vpop.eup %4512  ;;  %v2501_v60 = vmul.f32 %v4511_v57, %v2499_v46  ;;  %4514 = vrcp.f32 %v2538_v56  ;;  %vm2506_vm4 = vweird.f32 %v4511_v57  ;;  %v2550_v23 = vand.u32 2147483648, %v2538_v56 }
 0x56a   :  { %v2520_v61 = vmul.f32 %v4513_v59, %v2518_v47  ;;  %4516 = vtanh.f32 %v2494_v58  ;;  %vm2525_vm5 = vweird.f32 %v4513_v59  ;;  %vm2507_vm8 = vmor %vm2505_vm6, %vm2506_vm4  ;;  %vm2544_vm13 = vweird.f32 %v2538_v56 }
 0x56b   :  { %v2502_v19 = vsub.f32 1.0, %v2501_v60  ;;  %vm2526_vm9 = vmor %vm2524_vm7, %vm2525_vm5  ;;  %v2548_v24 = vand.u32 2147483647, %v2538_v56  ;;  %v2551_v26 = vor.u32 1.1754944e-38, %v2550_v23 }
 0x56c   :  { %v2521_v20 = vsub.f32 1.0, %v2520_v61 }
 0x56d   :  { %v2503_v63 = vmul.f32 %v4511_v57, %v2502_v19  ;;  %vm2549_vm15 = vcmp.eq.f32.partialorder %v2548_v24, 8.507059e+37 }
 0x56e   :  { %v2522_v1 = vmul.f32 %v4513_v59, %v2521_v20 }
 0x56f   :  { %v4515_v3 = vpop.eup %4514  ;;  %v2504_v4 = vadd.f32 %v4511_v57, %v2503_v63 }
 0x570   :  { %v2523_v6 = vadd.f32 %v4513_v59, %v2522_v1  ;;  %v2540_v7 = vmul.f32 %v4515_v3, %v2538_v56  ;;  %v4517_v10 = vpop.eup %4516  ;;  %vm2545_vm12 = vweird.f32 %v4515_v3 }
 0x571   :  { %v2508_v9 = vsel %vm2507_vm8, %v4511_v57, %v2504_v4  ;;  %vm2546_vm14 = vmor %vm2544_vm13, %vm2545_vm12 }
 0x572   :  { %v2513_v11 = vsel %vm2510_vm10, %v2512_v5, %v2508_v9  ;;  %v2527_v12 = vsel %vm2526_vm9, %v4513_v59, %v2523_v6  ;;  %v2541_v13 = vsub.f32 1.0, %v2540_v7 }
 0x573   :  { %v2532_v14 = vsel %vm2529_vm11, %v2531_v8, %v2527_v12  ;;  %v2555_v15 = vmul.f32 %v4517_v10, %v2513_v11 }
 0x574   :  { %v2554_v16 = vmul.f32 %v2532_v14, %v6214_v50  ;;  %v2542_v17 = vmul.f32 %v4515_v3, %v2541_v13 }
 0x576   :  { %v6425_v18 = vadd.f32 %v2555_v15, %v2554_v16  ;;  %v2543_v22 = vadd.f32 %v4515_v3, %v2542_v17 }
 0x578   :  { %4518 = vtanh.f32 %v6425_v18  ;;  %v2547_v25 = vsel %vm2546_vm14, %v4515_v3, %v2543_v22 }
 0x579   :  { %v2552_v28 = vsel %vm2549_vm15, %v2551_v26, %v2547_v25 }
 0x57e   :  { %v4519_v27 = vpop.eup %4518 }
 0x57f   :  { %v2558_v29 = vmul.f32 %v4519_v27, %v2552_v28 }
 0x581   :  { %3966 = vst [vmem:[%s6449_s2 + $0x38] sm:$0xff] %v2558_v29  ;;  %v2566_v50 = vpack.c.bf16 %v2558_v29, %v2558_v29 }
 0x583   :  { %2767 = vmatmul.bf16.vlgmr.msra.gmra.mxu0 %v2566_v50  ;;  %2780 = vmatmul.bf16.vlgmr.msra.gmra.mxu1 %v2566_v50 }
 0x584   :  { %2793 = vmatmul.bf16.vlgmr.msra.gmra.mxu2 %v2566_v50  ;;  %2806 = vmatmul.bf16.vlgmr.msra.gmra.mxu3 %v2566_v50 }
 0x600   :  { %v2768_v53 = vpop.f32.mrf.mxu0  ;;  %v2781_v30 = vpop.f32.mrf.mxu1 }
 0x601   :  { %v2811_v31 = vadd.f32 %v3967_v51, %v2768_v53  ;;  %v2812_v32 = vadd.f32 %v3968_v52, %v2781_v30 }
 0x603   :  { %v4099_v33 = vmul.f32 -1.442695, %v2811_v31  ;;  %v4100_v34 = vmul.f32 -1.442695, %v2812_v32 }
 0x605   :  { %4520 = vpow2.f32 %v4099_v33 }
 0x606   :  { %4522 = vpow2.f32 %v4100_v34 }
 0x607   :  { %v2794_v36 = vpop.f32.mrf.mxu2  ;;  %v2807_v37 = vpop.f32.mrf.mxu3 }
 0x608   :  { %v2814_v38 = vadd.f32 %v3970_v35, %v2807_v37  ;;  %v2770_v39 = vpop.f32.mrf.mxu0  ;;  %v2783_v40 = vpop.f32.mrf.mxu1  ;;  %v2813_v56 = vadd.f32 %v3969_v48, %v2794_v36 }
 0x60a   :  { %v4101_v41 = vmul.f32 -1.442695, %v2814_v38 }
 0x60b   :  { %v4521_v42 = vpop.eup %4520 }
 0x60c   :  { %v4523_v43 = vpop.eup %4522  ;;  %v2818_v44 = vadd.f32 1.0, %v4521_v42  ;;  %4524 = vpow2.f32 %v4101_v41 }
 0x60d   :  { %v2837_v45 = vadd.f32 1.0, %v4523_v43 }
 0x60e   :  { %4526 = vrcp.f32 %v2818_v44  ;;  %v2830_v19 = vand.u32 2147483648, %v2818_v44  ;;  %v2828_v62 = vand.u32 2147483647, %v2818_v44  ;;  %vm2824_vm2 = vweird.f32 %v2818_v44 }
 0x60f   :  { %4528 = vrcp.f32 %v2837_v45  ;;  %v2796_v46 = vpop.f32.mrf.mxu2  ;;  %v2809_v47 = vpop.f32.mrf.mxu3  ;;  %v2849_v20 = vand.u32 2147483648, %v2837_v45  ;;  %v2847_v0 = vand.u32 2147483647, %v2837_v45  ;;  %vm2843_vm3 = vweird.f32 %v2837_v45 }
 0x610   :  { %v2831_v3 = vor.u32 1.1754944e-38, %v2830_v19  ;;  %vm2829_vm6 = vcmp.eq.f32.partialorder %v2828_v62, 8.507059e+37 }
 0x611   :  { %v2850_v6 = vor.u32 1.1754944e-38, %v2849_v20  ;;  %vm2848_vm7 = vcmp.eq.f32.partialorder %v2847_v0, 8.507059e+37 }
 0x612   :  { %v4525_v49 = vpop.eup %4524 }
 0x613   :  { %v2857_v54 = vadd.f32 1.0, %v4525_v49 }
 0x614   :  { %v4527_v55 = vpop.eup %4526 }
 0x615   :  { %v4529_v57 = vpop.eup %4528  ;;  %v2820_v58 = vmul.f32 %v4527_v55, %v2818_v44  ;;  %4530 = vrcp.f32 %v2857_v54  ;;  %vm2825_vm0 = vweird.f32 %v4527_v55  ;;  %v2869_v22 = vand.u32 2147483648, %v2857_v54 }
 0x616   :  { %v2839_v59 = vmul.f32 %v4529_v57, %v2837_v45  ;;  %4532 = vtanh.f32 %v2813_v56  ;;  %vm2844_vm1 = vweird.f32 %v4529_v57  ;;  %vm2826_vm4 = vmor %vm2824_vm2, %vm2825_vm0  ;;  %vm2863_vm9 = vweird.f32 %v2857_v54 }
 0x617   :  { %v2821_v60 = vsub.f32 1.0, %v2820_v58  ;;  %vm2845_vm5 = vmor %vm2843_vm3, %vm2844_vm1  ;;  %v2867_v23 = vand.u32 2147483647, %v2857_v54  ;;  %v2870_v25 = vor.u32 1.1754944e-38, %v2869_v22 }
 0x618   :  { %v2840_v61 = vsub.f32 1.0, %v2839_v59 }
 0x619   :  { %v2822_v21 = vmul.f32 %v4527_v55, %v2821_v60  ;;  %vm2868_vm11 = vcmp.eq.f32.partialorder %v2867_v23, 8.507059e+37 }
 0x61a   :  { %v2841_v63 = vmul.f32 %v4529_v57, %v2840_v61 }
 0x61b   :  { %v4531_v1 = vpop.eup %4530  ;;  %v2823_v2 = vadd.f32 %v4527_v55, %v2822_v21 }
 0x61c   :  { %v2842_v4 = vadd.f32 %v4529_v57, %v2841_v63  ;;  %v2859_v5 = vmul.f32 %v4531_v1, %v2857_v54  ;;  %v4533_v8 = vpop.eup %4532  ;;  %vm2864_vm8 = vweird.f32 %v4531_v1 }
 0x61d   :  { %v2827_v7 = vsel %vm2826_vm4, %v4527_v55, %v2823_v2  ;;  %vm2865_vm10 = vmor %vm2863_vm9, %vm2864_vm8 }
 0x61e   :  { %v2832_v9 = vsel %vm2829_vm6, %v2831_v3, %v2827_v7  ;;  %v2846_v10 = vsel %vm2845_vm5, %v4529_v57, %v2842_v4  ;;  %v2860_v11 = vsub.f32 1.0, %v2859_v5 }
 0x61f   :  { %v2851_v12 = vsel %vm2848_vm7, %v2850_v6, %v2846_v10  ;;  %v2874_v13 = vmul.f32 %v4533_v8, %v2832_v9 }
 0x620   :  { %v2873_v14 = vmul.f32 %v2851_v12, %v6425_v18  ;;  %v2861_v15 = vmul.f32 %v4531_v1, %v2860_v11 }
 0x622   :  { %v2875_v16 = vadd.f32 %v2874_v13, %v2873_v14  ;;  %v2862_v17 = vadd.f32 %v4531_v1, %v2861_v15 }
 0x624   :  { %4534 = vtanh.f32 %v2875_v16  ;;  %v2866_v24 = vsel %vm2865_vm10, %v4531_v1, %v2862_v17 }
 0x625   :  { %v2871_v27 = vsel %vm2868_vm11, %v2870_v25, %v2866_v24 }
 0x62a   :  { %v4535_v26 = vpop.eup %4534 }
 0x62b   :  { %v2877_v28 = vmul.f32 %v4535_v26, %v2871_v27 }
 0x62d   :  { %4102 = vst [vmem:[%s6449_s2 + $0x40] sm:$0xff] %v2877_v28 }

</bundles_post_ra>
